<compile_context>
chip_gen: v7x
topology: tpu7x:2x2x1
jax: 0.10.0
libtpu: 0.0.40
codegen_flags: <defaults>
</compile_context>

<pallas_src>
import jax
import jax.numpy as jnp
from jax.experimental import pallas as pl
from jax.experimental.pallas import tpu as pltpu

_EPS = 1e-5   # PyTorch BatchNorm2d default eps
_CP = 128     # lane-dense channel / K width
_K = 3        # conv kernel size


# ---------------------------------------------------------------------------
# Fused Pallas kernel: conv1 -> BN1 -> ReLU -> conv2 -> BN2 -> (+shortcut) -> ReLU
# ---------------------------------------------------------------------------
def _make_residual_kernel(*, n, ho, wo, use_proj):
    m = n * ho * wo
    inv_m = 1.0 / m

    def bn(y, g, b):
        # Training-mode batch stats over the M = N*Ho*Wo rows, centered form.
        mean = jnp.sum(y, axis=0, keepdims=True) * inv_m
        d = y - mean
        var = jnp.sum(d * d, axis=0, keepdims=True) * inv_m
        return g * d * jax.lax.rsqrt(var + _EPS) + b

    def kernel(lhs_ref, w1_ref, w2_ref, sc_ref, pp_ref, o_ref, y1p_ref):
        # ---- stage 1: conv1 as ONE K-packed matmul ---------------------------
        lhs = lhs_ref[...]                                        # (m, 128) bf16
        c1 = jnp.dot(lhs, w1_ref[...], preferred_element_type=jnp.float32)
        # conv bias b1 omitted: exactly cancelled by training-mode BN mean sub.
        y1 = jnp.maximum(bn(c1, pp_ref[0:1, :], pp_ref[1:2, :]), 0.0)

        # Stage-1 activation stays in VMEM as bf16; zero only the 1-px halo.
        zrow = jnp.zeros((n, 1, wo + 2, _CP), jnp.bfloat16)
        zcol = jnp.zeros((n, ho, 1, _CP), jnp.bfloat16)
        y1p_ref[:, 0:1, :, :] = zrow
        y1p_ref[:, ho + 1:ho + 2, :, :] = zrow
        y1p_ref[:, 1:1 + ho, 0:1, :] = zcol
        y1p_ref[:, 1:1 + ho, wo + 1:wo + 2, :] = zcol
        y1p_ref[:, 1:1 + ho, 1:1 + wo, :] = (
            y1.astype(jnp.bfloat16).reshape(n, ho, wo, _CP))

        # ---- stage 2: conv2 (stride 1, pad 1) as a chained sum of 9 dots ------
        # TODO(synk): for Cout <= 14 the 9 taps could also be K-packed in-kernel
        # via pltpu.roll lane placement (1 matmul); kept as 9 value-accumulated
        # dots here to stay on the known-good lowering path.
        acc = None
        for kh in range(_K):
            for kw in range(_K):
                l2 = y1p_ref[:, kh:kh + ho, kw:kw + wo, :].reshape(m, _CP)
                d2 = jnp.dot(l2, w2_ref[kh * _K + kw],
                             preferred_element_type=jnp.float32)
                acc = d2 if acc is None else acc + d2
        y2 = bn(acc, pp_ref[2:3, :], pp_ref[3:4, :])   # b2 dropped too

        # ---- shortcut ---------------------------------------------------------
        if use_proj:
            # 1x1 conv reuses the packed LHS: its weights sit at the center-tap
            # rows of sc_ref.  NOT fused into the conv2 matmul because BN2 stats
            # must be computed on the conv2 output alone, before the add.
            sc = jnp.dot(lhs, sc_ref[...],
                         preferred_element_type=jnp.float32) + pp_ref[4:5, :]
        else:
            sc = sc_ref[...]                           # exact f32 copy of x

        o_ref[...] = jnp.maximum(y2 + sc, 0.0)

    return kernel


# ---------------------------------------------------------------------------
# Wrapper-side packing helpers (plain JAX)
# ---------------------------------------------------------------------------
def _im2col_conv1(x_nhwc, stride):
    """Zero-pad spatially (+1) and pack the 9 conv taps (REAL channels only)
    along the contraction dim: (M, 9*Cin) -> zero-pad K to 128 -> bf16."""
    n, h, w, c = x_nhwc.shape
    xp = jnp.pad(x_nhwc, ((0, 0), (1, 1), (1, 1), (0, 0)))
    ho = (h + 2 - _K) // stride + 1
    wo = (w + 2 - _K) // stride + 1
    taps = [xp[:, kh:kh + (ho - 1) * stride + 1:stride,
               kw:kw + (wo - 1) * stride + 1:stride, :]
            for kh in range(_K) for kw in range(_K)]
    lhs = jnp.concatenate(taps, axis=-1).reshape(n * ho * wo, _K * _K * c)
    lhs = jnp.pad(lhs, ((0, 0), (0, _CP - _K * _K * c)))
    return lhs.astype(jnp.bfloat16)


def _pack_w1(w_oihw):
    """(Cout, Cin, 3, 3) -> (128, 128) bf16 with rows in (kh, kw, ci) order,
    matching the im2col column order."""
    co, ci, kh, kw = w_oihw.shape
    w = jnp.transpose(w_oihw, (2, 3, 1, 0)).reshape(kh * kw * ci, co)
    w = jnp.pad(w, ((0, _CP - kh * kw * ci), (0, _CP - co)))
    return w.astype(jnp.bfloat16)


def _conv2_taps(w_oihw):
    """(Cout, Cin, 3, 3) -> (9, 128, 128) bf16, one weight matrix per tap."""
    co, ci, kh, kw = w_oihw.shape
    w = jnp.transpose(w_oihw, (2, 3, 1, 0)).reshape(kh * kw, ci, co)
    w = jnp.pad(w, ((0, 0), (0, _CP - ci), (0, _CP - co)))
    return w.astype(jnp.bfloat16)


def _pack_wc(wc_oihw, cin):
    """1x1 projection weights placed at the center-tap (kh=kw=1) rows of a
    (128,128) matrix so the shortcut matmul can reuse the packed conv1 LHS."""
    co = wc_oihw.shape[0]
    w = wc_oihw[:, :, 0, 0].T                       # (cin, cout)
    base = jnp.zeros((_CP, _CP), jnp.float32)
    base = base.at[4 * cin:5 * cin, :co].set(w)     # tap index 1*3+1 = 4
    return base.astype(jnp.bfloat16)


def _pack_bn_params(params, use_proj):
    """gamma1, beta1, gamma2, beta2, bc packed as one (8, 128) f32 tile."""
    def row(v):
        return jnp.pad(v.astype(jnp.float32), (0, _CP - v.shape[0]))
    zero = jnp.zeros((_CP,), jnp.float32)
    rows = [row(params["g1"]), row(params["beta1"]),
            row(params["g2"]), row(params["beta2"]),
            row(params["bc"]) if use_proj else zero, zero, zero, zero]
    return jnp.stack(rows, axis=0)


# ---------------------------------------------------------------------------
# Residual forward (equivalent to Residual.forward)
# ---------------------------------------------------------------------------
def residual_forward(x_nchw, params, *, use_1x1conv=False, strides=1):
    x = jnp.transpose(x_nchw, (0, 2, 3, 1)).astype(jnp.float32)   # NCHW -> NHWC
    n, h, w, cin = x.shape
    cout = params["w1"].shape[0]
    ho = (h + 2 - _K) // strides + 1
    wo = (w + 2 - _K) // strides + 1
    m = n * ho * wo
    assert _K * _K * cin <= _CP, \
        "TODO(synk): Cin > 14 needs multi-chunk K packing (e.g. 2 taps/chunk)"
    assert cout <= _CP
    if not use_1x1conv:
        assert strides == 1 and cin == cout, "identity shortcut needs matching shapes"

    lhs = _im2col_conv1(x, strides)
    w1p = _pack_w1(params["w1"])
    w2p = _conv2_taps(params["w2"])
    pp = _pack_bn_params(params, use_1x1conv)
    if use_1x1conv:
        sc_op = _pack_wc(params["wc"], cin)                       # (128,128) bf16
    else:
        # Exact f32 copy of x for the identity residual add (stride==1 here).
        sc_op = jnp.pad(x.reshape(m, cin), ((0, 0), (0, _CP - cin)))

    kernel = _make_residual_kernel(n=n, ho=ho, wo=wo, use_proj=use_1x1conv)
    vmem = pl.BlockSpec(memory_space=pltpu.MemorySpace.VMEM)

    out = pl.pallas_call(
        kernel,
        out_shape=jax.ShapeDtypeStruct((m, _CP), jnp.float32),
        in_specs=[vmem] * 5,
        out_specs=vmem,
        scratch_shapes=[
            pltpu.VMEM((n, ho + 2, wo + 2, _CP), jnp.bfloat16),   # padded stage-1 act
        ],
        compiler_params=pltpu.CompilerParams(vmem_limit_bytes=32 * 1024 * 1024),
    )(lhs, w1p, w2p, sc_op, pp)

    out = out.reshape(n, ho, wo, _CP)[:, :, :, :cout]
    return jnp.transpose(out, (0, 3, 1, 2))                       # -> NCHW


# ---------------------------------------------------------------------------
# Deterministic parameter init (shapes dictated by the PyTorch module)
# ---------------------------------------------------------------------------
def init_params(key, cin, cout, use_1x1conv):
    ks = jax.random.split(key, 10)
    p = {
        "w1": 0.1 * jax.random.normal(ks[0], (cout, cin, 3, 3), jnp.float32),
        "b1": 0.1 * jax.random.normal(ks[1], (cout,), jnp.float32),
        "g1": 1.0 + 0.1 * jax.random.normal(ks[2], (cout,), jnp.float32),
        "beta1": 0.1 * jax.random.normal(ks[3], (cout,), jnp.float32),
        "w2": 0.1 * jax.random.normal(ks[4], (cout, cout, 3, 3), jnp.float32),
        "b2": 0.1 * jax.random.normal(ks[5], (cout,), jnp.float32),
        "g2": 1.0 + 0.1 * jax.random.normal(ks[6], (cout,), jnp.float32),
        "beta2": 0.1 * jax.random.normal(ks[7], (cout,), jnp.float32),
    }
    if use_1x1conv:
        p["wc"] = 0.1 * jax.random.normal(ks[8], (cout, cin, 1, 1), jnp.float32)
        p["bc"] = 0.1 * jax.random.normal(ks[9], (cout,), jnp.float32)
    return p


# ---------------------------------------------------------------------------
# Reference (plain JAX).  Conv operands cast to bf16 / f32 accumulation to
# match the kernel's MXU precision; BN / residual math in f32.  Keeps b1/b2 to
# validate that dropping them inside the kernel is exact under training-mode BN.
# ---------------------------------------------------------------------------
def residual_ref(x, params, *, use_1x1conv=False, strides=1):
    def conv(z, w, b, stride, pad):
        y = jax.lax.conv_general_dilated(
            z.astype(jnp.bfloat16), w.astype(jnp.bfloat16),
            (stride, stride), [(pad, pad), (pad, pad)],
            dimension_numbers=("NCHW", "OIHW", "NCHW"),
            preferred_element_type=jnp.float32)
        return y + b[None, :, None, None]

    def bn(y, g, be):
        mean = jnp.mean(y, axis=(0, 2, 3), keepdims=True)
        var = jnp.mean((y - mean) ** 2, axis=(0, 2, 3), keepdims=True)
        return (g[None, :, None, None] * (y - mean) * jax.lax.rsqrt(var + _EPS)
                + be[None, :, None, None])

    y = jax.nn.relu(bn(conv(x, params["w1"], params["b1"], strides, 1),
                       params["g1"], params["beta1"]))
    y = bn(conv(y, params["w2"], params["b2"], 1, 1),
           params["g2"], params["beta2"])
    sc = conv(x, params["wc"], params["bc"], strides, 0) if use_1x1conv else x
    return jax.nn.relu(y + sc)


if __name__ == "__main__":
    key = jax.random.PRNGKey(0)
    kx, kp1, kp2 = jax.random.split(key, 3)

    x = jax.random.normal(kx, (2, 4, 16, 16), jnp.float32)   # NCHW like PyTorch

    # Case 1: Residual(num_channels=4), identity shortcut, stride 1
    params = init_params(kp1, 4, 4, False)
    out = residual_forward(x, params, use_1x1conv=False, strides=1)
    jax.block_until_ready(out)
    ref = residual_ref(x, params, use_1x1conv=False, strides=1)
    assert out.shape == (2, 4, 16, 16)
    assert jnp.allclose(out, ref, atol=2e-2, rtol=2e-2), "mismatch (identity path)"

    # Case 2: Residual(num_channels=8, use_1x1conv=True, strides=2)
    params2 = init_params(kp2, 4, 8, True)
    out2 = residual_forward(x, params2, use_1x1conv=True, strides=2)
    jax.block_until_ready(out2)
    ref2 = residual_ref(x, params2, use_1x1conv=True, strides=2)
    assert out2.shape == (2, 8, 8, 8)
    assert jnp.allclose(out2, ref2, atol=2e-2, rtol=2e-2), "mismatch (projection path)"

    # TODO(synk): BatchNorm running-mean/var (momentum) buffer updates are a
    # training-time side effect, not part of the forward value; not materialized.
    print("KERNEL_OK")
</pallas_src>

<mosaic_0001>
module attributes {stable_mosaic.version = 11 : i64} {
  func.func @kernel(%arg0: memref<512x128xbf16, #tpu.memory_space<vmem>>, %arg1: memref<128x128xbf16, #tpu.memory_space<vmem>>, %arg2: memref<9x128x128xbf16, #tpu.memory_space<vmem>>, %arg3: memref<512x128xf32, #tpu.memory_space<vmem>>, %arg4: memref<8x128xf32, #tpu.memory_space<vmem>>, %arg5: memref<512x128xf32, #tpu.memory_space<vmem>>, %arg6: memref<2x18x18x128xbf16, #tpu.memory_space<vmem>>) attributes {dimension_semantics = [], scalar_prefetch = 0 : i64, scratch_operands = 1 : i64, tpu.core_type = #tpu.core_type<tc>} {
    %c0 = arith.constant 0 : index
    %c0_0 = arith.constant 0 : index
    %0 = vector.load %arg0[%c0, %c0_0] : memref<512x128xbf16, #tpu.memory_space<vmem>>, vector<512x128xbf16>
    %c0_1 = arith.constant 0 : index
    %c0_2 = arith.constant 0 : index
    %1 = vector.load %arg1[%c0_1, %c0_2] : memref<128x128xbf16, #tpu.memory_space<vmem>>, vector<128x128xbf16>
    %cst = arith.constant dense<0.000000e+00> : vector<512x128xf32>
    %2 = tpu.matmul %0, %1, %cst {dimension_numbers = #tpu.dot_dimension_numbers<[1], [0], [0], [1], [0, 0, 1, 1], [], []>} : vector<512x128xbf16>, vector<128x128xbf16>, vector<512x128xf32> -> vector<512x128xf32>
    %c0_3 = arith.constant 0 : index
    %c0_4 = arith.constant 0 : index
    %3 = vector.load %arg4[%c0_3, %c0_4] : memref<8x128xf32, #tpu.memory_space<vmem>>, vector<1x128xf32>
    %c1 = arith.constant 1 : index
    %c0_5 = arith.constant 0 : index
    %4 = vector.load %arg4[%c1, %c0_5] : memref<8x128xf32, #tpu.memory_space<vmem>>, vector<1x128xf32>
    %cst_6 = arith.constant dense<0.000000e+00> : vector<128xf32>
    %5 = vector.multi_reduction <add>, %2, %cst_6 [0] : vector<512x128xf32> to vector<128xf32>
    %6 = vector.shape_cast %5 : vector<128xf32> to vector<1x128xf32>
    %cst_7 = arith.constant 0.001953125 : f32
    %7 = vector.broadcast %cst_7 : f32 to vector<1x128xf32>
    %8 = arith.mulf %6, %7 : vector<1x128xf32>
    %9 = vector.broadcast %8 : vector<1x128xf32> to vector<512x128xf32>
    %10 = arith.subf %2, %9 : vector<512x128xf32>
    %11 = arith.mulf %10, %10 : vector<512x128xf32>
    %cst_8 = arith.constant dense<0.000000e+00> : vector<128xf32>
    %12 = vector.multi_reduction <add>, %11, %cst_8 [0] : vector<512x128xf32> to vector<128xf32>
    %13 = vector.shape_cast %12 : vector<128xf32> to vector<1x128xf32>
    %cst_9 = arith.constant 0.001953125 : f32
    %14 = vector.broadcast %cst_9 : f32 to vector<1x128xf32>
    %15 = arith.mulf %13, %14 : vector<1x128xf32>
    %16 = vector.broadcast %3 : vector<1x128xf32> to vector<512x128xf32>
    %17 = arith.mulf %16, %10 : vector<512x128xf32>
    %cst_10 = arith.constant 9.99999974E-6 : f32
    %18 = vector.broadcast %cst_10 : f32 to vector<1x128xf32>
    %19 = arith.addf %15, %18 : vector<1x128xf32>
    %20 = math.rsqrt %19 : vector<1x128xf32>
    %21 = vector.broadcast %20 : vector<1x128xf32> to vector<512x128xf32>
    %22 = arith.mulf %17, %21 : vector<512x128xf32>
    %23 = vector.broadcast %4 : vector<1x128xf32> to vector<512x128xf32>
    %24 = arith.addf %22, %23 : vector<512x128xf32>
    %cst_11 = arith.constant 0.000000e+00 : f32
    %25 = vector.broadcast %cst_11 : f32 to vector<512x128xf32>
    %26 = arith.maximumf %24, %25 : vector<512x128xf32>
    %cst_12 = arith.constant 0.000000e+00 : bf16
    %27 = vector.broadcast %cst_12 : bf16 to vector<2x1x18x128xbf16>
    %cst_13 = arith.constant 0.000000e+00 : bf16
    %28 = vector.broadcast %cst_13 : bf16 to vector<2x16x1x128xbf16>
    %c0_14 = arith.constant 0 : index
    %c0_15 = arith.constant 0 : index
    %c0_16 = arith.constant 0 : index
    %c0_17 = arith.constant 0 : index
    %29 = vector.load %arg6[%c0_14, %c0_15, %c0_16, %c0_17] : memref<2x18x18x128xbf16, #tpu.memory_space<vmem>>, vector<2x1x18x128xbf16>
    tpu.vector_store %arg6[%c0_14, %c0_15, %c0_16, %c0_17], %27 {strides = array<i32>} : memref<2x18x18x128xbf16, #tpu.memory_space<vmem>>, vector<2x1x18x128xbf16>,
    %c0_18 = arith.constant 0 : index
    %c17 = arith.constant 17 : index
    %c0_19 = arith.constant 0 : index
    %c0_20 = arith.constant 0 : index
    %30 = vector.load %arg6[%c0_18, %c17, %c0_19, %c0_20] : memref<2x18x18x128xbf16, #tpu.memory_space<vmem>>, vector<2x1x18x128xbf16>
    tpu.vector_store %arg6[%c0_18, %c17, %c0_19, %c0_20], %27 {strides = array<i32>} : memref<2x18x18x128xbf16, #tpu.memory_space<vmem>>, vector<2x1x18x128xbf16>,
    %c0_21 = arith.constant 0 : index
    %c1_22 = arith.constant 1 : index
    %c0_23 = arith.constant 0 : index
    %c0_24 = arith.constant 0 : index
    %31 = vector.load %arg6[%c0_21, %c1_22, %c0_23, %c0_24] : memref<2x18x18x128xbf16, #tpu.memory_space<vmem>>, vector<2x16x1x128xbf16>
    tpu.vector_store %arg6[%c0_21, %c1_22, %c0_23, %c0_24], %28 {strides = array<i32>} : memref<2x18x18x128xbf16, #tpu.memory_space<vmem>>, vector<2x16x1x128xbf16>,
    %c0_25 = arith.constant 0 : index
    %c1_26 = arith.constant 1 : index
    %c17_27 = arith.constant 17 : index
    %c0_28 = arith.constant 0 : index
    %32 = vector.load %arg6[%c0_25, %c1_26, %c17_27, %c0_28] : memref<2x18x18x128xbf16, #tpu.memory_space<vmem>>, vector<2x16x1x128xbf16>
    tpu.vector_store %arg6[%c0_25, %c1_26, %c17_27, %c0_28], %28 {strides = array<i32>} : memref<2x18x18x128xbf16, #tpu.memory_space<vmem>>, vector<2x16x1x128xbf16>,
    %33 = arith.truncf %26 : vector<512x128xf32> to vector<512x128xbf16>
    %34 = vector.shape_cast %33 : vector<512x128xbf16> to vector<2x16x16x128xbf16>
    %c0_29 = arith.constant 0 : index
    %c1_30 = arith.constant 1 : index
    %c1_31 = arith.constant 1 : index
    %c0_32 = arith.constant 0 : index
    %35 = vector.load %arg6[%c0_29, %c1_30, %c1_31, %c0_32] : memref<2x18x18x128xbf16, #tpu.memory_space<vmem>>, vector<2x16x16x128xbf16>
    tpu.vector_store %arg6[%c0_29, %c1_30, %c1_31, %c0_32], %34 {strides = array<i32>} : memref<2x18x18x128xbf16, #tpu.memory_space<vmem>>, vector<2x16x16x128xbf16>,
    %c0_33 = arith.constant 0 : index
    %c0_34 = arith.constant 0 : index
    %c0_35 = arith.constant 0 : index
    %c0_36 = arith.constant 0 : index
    %36 = vector.load %arg6[%c0_33, %c0_34, %c0_35, %c0_36] : memref<2x18x18x128xbf16, #tpu.memory_space<vmem>>, vector<2x16x16x128xbf16>
    %37 = vector.shape_cast %36 : vector<2x16x16x128xbf16> to vector<512x128xbf16>
    %c0_37 = arith.constant 0 : index
    %c0_38 = arith.constant 0 : index
    %c0_39 = arith.constant 0 : index
    %38 = vector.load %arg2[%c0_37, %c0_38, %c0_39] : memref<9x128x128xbf16, #tpu.memory_space<vmem>>, vector<1x128x128xbf16>
    %39 = vector.shape_cast %38 : vector<1x128x128xbf16> to vector<128x128xbf16>
    %cst_40 = arith.constant dense<0.000000e+00> : vector<512x128xf32>
    %40 = tpu.matmul %37, %39, %cst_40 {dimension_numbers = #tpu.dot_dimension_numbers<[1], [0], [0], [1], [0, 0, 1, 1], [], []>} : vector<512x128xbf16>, vector<128x128xbf16>, vector<512x128xf32> -> vector<512x128xf32>
    %c0_41 = arith.constant 0 : index
    %c0_42 = arith.constant 0 : index
    %c1_43 = arith.constant 1 : index
    %c0_44 = arith.constant 0 : index
    %41 = vector.load %arg6[%c0_41, %c0_42, %c1_43, %c0_44] : memref<2x18x18x128xbf16, #tpu.memory_space<vmem>>, vector<2x16x16x128xbf16>
    %42 = vector.shape_cast %41 : vector<2x16x16x128xbf16> to vector<512x128xbf16>
    %c1_45 = arith.constant 1 : index
    %c0_46 = arith.constant 0 : index
    %c0_47 = arith.constant 0 : index
    %43 = vector.load %arg2[%c1_45, %c0_46, %c0_47] : memref<9x128x128xbf16, #tpu.memory_space<vmem>>, vector<1x128x128xbf16>
    %44 = vector.shape_cast %43 : vector<1x128x128xbf16> to vector<128x128xbf16>
    %cst_48 = arith.constant dense<0.000000e+00> : vector<512x128xf32>
    %45 = tpu.matmul %42, %44, %cst_48 {dimension_numbers = #tpu.dot_dimension_numbers<[1], [0], [0], [1], [0, 0, 1, 1], [], []>} : vector<512x128xbf16>, vector<128x128xbf16>, vector<512x128xf32> -> vector<512x128xf32>
    %46 = arith.addf %40, %45 : vector<512x128xf32>
    %c0_49 = arith.constant 0 : index
    %c0_50 = arith.constant 0 : index
    %c2 = arith.constant 2 : index
    %c0_51 = arith.constant 0 : index
    %47 = vector.load %arg6[%c0_49, %c0_50, %c2, %c0_51] : memref<2x18x18x128xbf16, #tpu.memory_space<vmem>>, vector<2x16x16x128xbf16>
    %48 = vector.shape_cast %47 : vector<2x16x16x128xbf16> to vector<512x128xbf16>
    %c2_52 = arith.constant 2 : index
    %c0_53 = arith.constant 0 : index
    %c0_54 = arith.constant 0 : index
    %49 = vector.load %arg2[%c2_52, %c0_53, %c0_54] : memref<9x128x128xbf16, #tpu.memory_space<vmem>>, vector<1x128x128xbf16>
    %50 = vector.shape_cast %49 : vector<1x128x128xbf16> to vector<128x128xbf16>
    %cst_55 = arith.constant dense<0.000000e+00> : vector<512x128xf32>
    %51 = tpu.matmul %48, %50, %cst_55 {dimension_numbers = #tpu.dot_dimension_numbers<[1], [0], [0], [1], [0, 0, 1, 1], [], []>} : vector<512x128xbf16>, vector<128x128xbf16>, vector<512x128xf32> -> vector<512x128xf32>
    %52 = arith.addf %46, %51 : vector<512x128xf32>
    %c0_56 = arith.constant 0 : index
    %c1_57 = arith.constant 1 : index
    %c0_58 = arith.constant 0 : index
    %c0_59 = arith.constant 0 : index
    %53 = vector.load %arg6[%c0_56, %c1_57, %c0_58, %c0_59] : memref<2x18x18x128xbf16, #tpu.memory_space<vmem>>, vector<2x16x16x128xbf16>
    %54 = vector.shape_cast %53 : vector<2x16x16x128xbf16> to vector<512x128xbf16>
    %c3 = arith.constant 3 : index
    %c0_60 = arith.constant 0 : index
    %c0_61 = arith.constant 0 : index
    %55 = vector.load %arg2[%c3, %c0_60, %c0_61] : memref<9x128x128xbf16, #tpu.memory_space<vmem>>, vector<1x128x128xbf16>
    %56 = vector.shape_cast %55 : vector<1x128x128xbf16> to vector<128x128xbf16>
    %cst_62 = arith.constant dense<0.000000e+00> : vector<512x128xf32>
    %57 = tpu.matmul %54, %56, %cst_62 {dimension_numbers = #tpu.dot_dimension_numbers<[1], [0], [0], [1], [0, 0, 1, 1], [], []>} : vector<512x128xbf16>, vector<128x128xbf16>, vector<512x128xf32> -> vector<512x128xf32>
    %58 = arith.addf %52, %57 : vector<512x128xf32>
    %c0_63 = arith.constant 0 : index
    %c1_64 = arith.constant 1 : index
    %c1_65 = arith.constant 1 : index
    %c0_66 = arith.constant 0 : index
    %59 = vector.load %arg6[%c0_63, %c1_64, %c1_65, %c0_66] : memref<2x18x18x128xbf16, #tpu.memory_space<vmem>>, vector<2x16x16x128xbf16>
    %60 = vector.shape_cast %59 : vector<2x16x16x128xbf16> to vector<512x128xbf16>
    %c4 = arith.constant 4 : index
    %c0_67 = arith.constant 0 : index
    %c0_68 = arith.constant 0 : index
    %61 = vector.load %arg2[%c4, %c0_67, %c0_68] : memref<9x128x128xbf16, #tpu.memory_space<vmem>>, vector<1x128x128xbf16>
    %62 = vector.shape_cast %61 : vector<1x128x128xbf16> to vector<128x128xbf16>
    %cst_69 = arith.constant dense<0.000000e+00> : vector<512x128xf32>
    %63 = tpu.matmul %60, %62, %cst_69 {dimension_numbers = #tpu.dot_dimension_numbers<[1], [0], [0], [1], [0, 0, 1, 1], [], []>} : vector<512x128xbf16>, vector<128x128xbf16>, vector<512x128xf32> -> vector<512x128xf32>
    %64 = arith.addf %58, %63 : vector<512x128xf32>
    %c0_70 = arith.constant 0 : index
    %c1_71 = arith.constant 1 : index
    %c2_72 = arith.constant 2 : index
    %c0_73 = arith.constant 0 : index
    %65 = vector.load %arg6[%c0_70, %c1_71, %c2_72, %c0_73] : memref<2x18x18x128xbf16, #tpu.memory_space<vmem>>, vector<2x16x16x128xbf16>
    %66 = vector.shape_cast %65 : vector<2x16x16x128xbf16> to vector<512x128xbf16>
    %c5 = arith.constant 5 : index
    %c0_74 = arith.constant 0 : index
    %c0_75 = arith.constant 0 : index
    %67 = vector.load %arg2[%c5, %c0_74, %c0_75] : memref<9x128x128xbf16, #tpu.memory_space<vmem>>, vector<1x128x128xbf16>
    %68 = vector.shape_cast %67 : vector<1x128x128xbf16> to vector<128x128xbf16>
    %cst_76 = arith.constant dense<0.000000e+00> : vector<512x128xf32>
    %69 = tpu.matmul %66, %68, %cst_76 {dimension_numbers = #tpu.dot_dimension_numbers<[1], [0], [0], [1], [0, 0, 1, 1], [], []>} : vector<512x128xbf16>, vector<128x128xbf16>, vector<512x128xf32> -> vector<512x128xf32>
    %70 = arith.addf %64, %69 : vector<512x128xf32>
    %c0_77 = arith.constant 0 : index
    %c2_78 = arith.constant 2 : index
    %c0_79 = arith.constant 0 : index
    %c0_80 = arith.constant 0 : index
    %71 = vector.load %arg6[%c0_77, %c2_78, %c0_79, %c0_80] : memref<2x18x18x128xbf16, #tpu.memory_space<vmem>>, vector<2x16x16x128xbf16>
    %72 = vector.shape_cast %71 : vector<2x16x16x128xbf16> to vector<512x128xbf16>
    %c6 = arith.constant 6 : index
    %c0_81 = arith.constant 0 : index
    %c0_82 = arith.constant 0 : index
    %73 = vector.load %arg2[%c6, %c0_81, %c0_82] : memref<9x128x128xbf16, #tpu.memory_space<vmem>>, vector<1x128x128xbf16>
    %74 = vector.shape_cast %73 : vector<1x128x128xbf16> to vector<128x128xbf16>
    %cst_83 = arith.constant dense<0.000000e+00> : vector<512x128xf32>
    %75 = tpu.matmul %72, %74, %cst_83 {dimension_numbers = #tpu.dot_dimension_numbers<[1], [0], [0], [1], [0, 0, 1, 1], [], []>} : vector<512x128xbf16>, vector<128x128xbf16>, vector<512x128xf32> -> vector<512x128xf32>
    %76 = arith.addf %70, %75 : vector<512x128xf32>
    %c0_84 = arith.constant 0 : index
    %c2_85 = arith.constant 2 : index
    %c1_86 = arith.constant 1 : index
    %c0_87 = arith.constant 0 : index
    %77 = vector.load %arg6[%c0_84, %c2_85, %c1_86, %c0_87] : memref<2x18x18x128xbf16, #tpu.memory_space<vmem>>, vector<2x16x16x128xbf16>
    %78 = vector.shape_cast %77 : vector<2x16x16x128xbf16> to vector<512x128xbf16>
    %c7 = arith.constant 7 : index
    %c0_88 = arith.constant 0 : index
    %c0_89 = arith.constant 0 : index
    %79 = vector.load %arg2[%c7, %c0_88, %c0_89] : memref<9x128x128xbf16, #tpu.memory_space<vmem>>, vector<1x128x128xbf16>
    %80 = vector.shape_cast %79 : vector<1x128x128xbf16> to vector<128x128xbf16>
    %cst_90 = arith.constant dense<0.000000e+00> : vector<512x128xf32>
    %81 = tpu.matmul %78, %80, %cst_90 {dimension_numbers = #tpu.dot_dimension_numbers<[1], [0], [0], [1], [0, 0, 1, 1], [], []>} : vector<512x128xbf16>, vector<128x128xbf16>, vector<512x128xf32> -> vector<512x128xf32>
    %82 = arith.addf %76, %81 : vector<512x128xf32>
    %c0_91 = arith.constant 0 : index
    %c2_92 = arith.constant 2 : index
    %c2_93 = arith.constant 2 : index
    %c0_94 = arith.constant 0 : index
    %83 = vector.load %arg6[%c0_91, %c2_92, %c2_93, %c0_94] : memref<2x18x18x128xbf16, #tpu.memory_space<vmem>>, vector<2x16x16x128xbf16>
    %84 = vector.shape_cast %83 : vector<2x16x16x128xbf16> to vector<512x128xbf16>
    %c8 = arith.constant 8 : index
    %c0_95 = arith.constant 0 : index
    %c0_96 = arith.constant 0 : index
    %85 = vector.load %arg2[%c8, %c0_95, %c0_96] : memref<9x128x128xbf16, #tpu.memory_space<vmem>>, vector<1x128x128xbf16>
    %86 = vector.shape_cast %85 : vector<1x128x128xbf16> to vector<128x128xbf16>
    %cst_97 = arith.constant dense<0.000000e+00> : vector<512x128xf32>
    %87 = tpu.matmul %84, %86, %cst_97 {dimension_numbers = #tpu.dot_dimension_numbers<[1], [0], [0], [1], [0, 0, 1, 1], [], []>} : vector<512x128xbf16>, vector<128x128xbf16>, vector<512x128xf32> -> vector<512x128xf32>
    %88 = arith.addf %82, %87 : vector<512x128xf32>
    %c2_98 = arith.constant 2 : index
    %c0_99 = arith.constant 0 : index
    %89 = vector.load %arg4[%c2_98, %c0_99] : memref<8x128xf32, #tpu.memory_space<vmem>>, vector<1x128xf32>
    %c3_100 = arith.constant 3 : index
    %c0_101 = arith.constant 0 : index
    %90 = vector.load %arg4[%c3_100, %c0_101] : memref<8x128xf32, #tpu.memory_space<vmem>>, vector<1x128xf32>
    %cst_102 = arith.constant dense<0.000000e+00> : vector<128xf32>
    %91 = vector.multi_reduction <add>, %88, %cst_102 [0] : vector<512x128xf32> to vector<128xf32>
    %92 = vector.shape_cast %91 : vector<128xf32> to vector<1x128xf32>
    %cst_103 = arith.constant 0.001953125 : f32
    %93 = vector.broadcast %cst_103 : f32 to vector<1x128xf32>
    %94 = arith.mulf %92, %93 : vector<1x128xf32>
    %95 = vector.broadcast %94 : vector<1x128xf32> to vector<512x128xf32>
    %96 = arith.subf %88, %95 : vector<512x128xf32>
    %97 = arith.mulf %96, %96 : vector<512x128xf32>
    %cst_104 = arith.constant dense<0.000000e+00> : vector<128xf32>
    %98 = vector.multi_reduction <add>, %97, %cst_104 [0] : vector<512x128xf32> to vector<128xf32>
    %99 = vector.shape_cast %98 : vector<128xf32> to vector<1x128xf32>
    %cst_105 = arith.constant 0.001953125 : f32
    %100 = vector.broadcast %cst_105 : f32 to vector<1x128xf32>
    %101 = arith.mulf %99, %100 : vector<1x128xf32>
    %102 = vector.broadcast %89 : vector<1x128xf32> to vector<512x128xf32>
    %103 = arith.mulf %102, %96 : vector<512x128xf32>
    %cst_106 = arith.constant 9.99999974E-6 : f32
    %104 = vector.broadcast %cst_106 : f32 to vector<1x128xf32>
    %105 = arith.addf %101, %104 : vector<1x128xf32>
    %106 = math.rsqrt %105 : vector<1x128xf32>
    %107 = vector.broadcast %106 : vector<1x128xf32> to vector<512x128xf32>
    %108 = arith.mulf %103, %107 : vector<512x128xf32>
    %109 = vector.broadcast %90 : vector<1x128xf32> to vector<512x128xf32>
    %110 = arith.addf %108, %109 : vector<512x128xf32>
    %c0_107 = arith.constant 0 : index
    %c0_108 = arith.constant 0 : index
    %111 = vector.load %arg3[%c0_107, %c0_108] : memref<512x128xf32, #tpu.memory_space<vmem>>, vector<512x128xf32>
    %112 = arith.addf %110, %111 : vector<512x128xf32>
    %cst_109 = arith.constant 0.000000e+00 : f32
    %113 = vector.broadcast %cst_109 : f32 to vector<512x128xf32>
    %114 = arith.maximumf %112, %113 : vector<512x128xf32>
    %c0_110 = arith.constant 0 : index
    %c0_111 = arith.constant 0 : index
    %115 = vector.load %arg5[%c0_110, %c0_111] : memref<512x128xf32, #tpu.memory_space<vmem>>, vector<512x128xf32>
    tpu.vector_store %arg5[%c0_110, %c0_111], %114 {strides = array<i32>} : memref<512x128xf32, #tpu.memory_space<vmem>>, vector<512x128xf32>,
    return
  }
}

</mosaic_0001>

<bundles_post_ra>
// kernel: tpu_custom_call.1
= control target key start
LH: loop header
LB: loop body
LE: loop exit
PB: predicated region body
PF: predicated region fallthrough
CT: control target
= control target key end

     0   :  { %10 = vsyncpa [#allocation4], 0  ;;  %s20582_s0 = inlined_call_operand.hbm [shape: bf16[512,128], index: 0, kind: input, shape index: {}]   ;;  %s20583_s1 = inlined_call_operand.hbm [shape: bf16[128,128], index: 1, kind: input, shape index: {}]   ;;  %s20584_s2 = inlined_call_operand.hbm [shape: bf16[9,128,128], index: 2, kind: input, shape index: {}]   ;;  %s20585_s3 = inlined_call_operand.hbm [shape: f32[512,128], index: 3, kind: input, shape index: {}]   ;;  %s20586_s4 = inlined_call_operand.vmem [shape: f32[8,128], index: 4, kind: input, shape index: {}]   ;;  %s20587_s5 = inlined_call_operand.hbm [shape: f32[512,128], index: 5, kind: output, shape index: {}]  }
   0x1   :  { %11 = vsyncpa [#allocation7], 0 }
   0x2   :  { %12 = vsyncpa [#allocation10], 0 }
   0x3   :  { %13 = vsyncpa [#allocation5], 0  ;;  %s14837_s18 = smov [#allocation6]   ;;  %s14838_s20 = smov [#allocation3]  }
   0x4   :  { %s31_s19 = sshll.u32 %s14837_s18, 4  ;;  %s19_s21 = sshll.u32 %s14838_s20, 4  ;;  %s32_s19 = int_to_ptr.vmem [resolvable:$true] %s31_s19  ;;  %s14877_s21 = int_to_ptr.vmem [resolvable:$true] %s19_s21 }
   0x5   :  { %s14719_s24 = scalar_lea.hbm %s20583_s1, 1024 }
   0x6   :  { %p14720_p0 = scmp.ne.s32.totalorder %s20583_s1, %s14719_s24  ;;  %p14723_p1 = scmp.lt.u32.totalorder %s14719_s24, %s20583_s1 }
   0x8   :  { %p14725_p2 = pnand %p14723_p1, %p14720_p0 }
   0xa   :  { %14728 = shalt.err (!%p14725_p2)
}
   0xb   :  { %s14729_s29 = scalar_lea.vmem %s32_s19, 1024  ;;  %p14734_p4 = scmp.lt.s32.totalorder %s32_s19, %s32_s19 }
   0xc   :  { %p14730_p3 = scmp.ne.s32.totalorder %s32_s19, %s14729_s29  ;;  %p14735_p5 = scmp.lt.s32.totalorder %s14729_s29, %s14729_s29 }
   0xe   :  { %p14736_p6 = por %p14735_p5, %p14734_p4 }
  0x10   :  { %p14737_p7 = pnand %p14736_p6, %p14730_p3 }
  0x12   :  { %14740 = shalt.err (!%p14737_p7)
}
  0x13   :  { %s14839_s30 = smov 64   ;;  %s14840_s6 = smov 4  }
  0x14   :  { %37 = dma.hbm_to_vmem [thread:$0]  %s20583_s1, 1024, %s32_s19, [#allocation7], %s14839_s30, %s14839_s30, %s14840_s6  }
  0x15   :  { %s14741_s11 = scalar_lea.hbm %s20582_s0, 4096 }
  0x16   :  { %p14742_p8 = scmp.ne.s32.totalorder %s20582_s0, %s14741_s11  ;;  %p14745_p9 = scmp.lt.u32.totalorder %s14741_s11, %s20582_s0 }
  0x18   :  { %p14747_p10 = pnand %p14745_p9, %p14742_p8 }
  0x1a   :  { %14750 = shalt.err (!%p14747_p10)
}
  0x1b   :  { %s14751_s16 = scalar_lea.vmem %s14877_s21, 4096  ;;  %p14756_p12 = scmp.lt.s32.totalorder %s14877_s21, %s14877_s21 }
  0x1c   :  { %p14752_p11 = scmp.ne.s32.totalorder %s14877_s21, %s14751_s16  ;;  %p14757_p13 = scmp.lt.s32.totalorder %s14751_s16, %s14751_s16 }
  0x1e   :  { %p14758_p0 = por %p14757_p13, %p14756_p12 }
  0x20   :  { %p14759_p1 = pnand %p14758_p0, %p14752_p11 }
  0x22   :  { %14762 = shalt.err (!%p14759_p1)
}
  0x23   :  { %25 = dma.hbm_to_vmem [thread:$0]  %s20582_s0, 4096, %s14877_s21, [#allocation4], %s14839_s30, %s14839_s30, %s14840_s6  }
  0x24   :  { %s14841_s18 = smov [#allocation8]   ;;  %s14842_s20 = smov [#allocation9]  }
  0x25   :  { %s43_s19 = sshll.u32 %s14841_s18, 4  ;;  %s55_s22 = sshll.u32 %s14842_s20, 4  ;;  %s44_s19 = int_to_ptr.vmem [resolvable:$true] %s43_s19  ;;  %s14914_s22 = int_to_ptr.vmem [resolvable:$true] %s55_s22 }
  0x26   :  { %s14763_s25 = scalar_lea.hbm %s20584_s2, 9216 }
  0x27   :  { %p14764_p2 = scmp.ne.s32.totalorder %s20584_s2, %s14763_s25  ;;  %p14767_p3 = scmp.lt.u32.totalorder %s14763_s25, %s20584_s2 }
  0x29   :  { %p14769_p4 = pnand %p14767_p3, %p14764_p2 }
  0x2b   :  { %14772 = shalt.err (!%p14769_p4)
}
  0x2c   :  { %s14773_s0 = scalar_lea.vmem %s44_s19, 9216  ;;  %p14778_p6 = scmp.lt.s32.totalorder %s44_s19, %s44_s19 }
  0x2d   :  { %p14774_p5 = scmp.ne.s32.totalorder %s44_s19, %s14773_s0  ;;  %p14779_p7 = scmp.lt.s32.totalorder %s14773_s0, %s14773_s0 }
  0x2f   :  { %p14780_p8 = por %p14779_p7, %p14778_p6 }
  0x31   :  { %p14781_p9 = pnand %p14780_p8, %p14774_p5 }
  0x33   :  { %14784 = shalt.err (!%p14781_p9)
}
  0x34   :  { %49 = dma.hbm_to_vmem [thread:$0]  %s20584_s2, 9216, %s44_s19, [#allocation7], %s14839_s30, %s14839_s30, %s14840_s6  }
  0x35   :  { %s14785_s10 = scalar_lea.hbm %s20585_s3, 8192 }
  0x36   :  { %p14786_p10 = scmp.ne.s32.totalorder %s20585_s3, %s14785_s10  ;;  %p14789_p11 = scmp.lt.u32.totalorder %s14785_s10, %s20585_s3 }
  0x38   :  { %p14791_p12 = pnand %p14789_p11, %p14786_p10 }
  0x3a   :  { %14794 = shalt.err (!%p14791_p12)
}
  0x3b   :  { %s14795_s15 = scalar_lea.vmem %s14914_s22, 8192  ;;  %p14800_p0 = scmp.lt.s32.totalorder %s14914_s22, %s14914_s22 }
  0x3c   :  { %p14796_p13 = scmp.ne.s32.totalorder %s14914_s22, %s14795_s15  ;;  %p14801_p1 = scmp.lt.s32.totalorder %s14795_s15, %s14795_s15 }
  0x3e   :  { %p14802_p2 = por %p14801_p1, %p14800_p0 }
  0x40   :  { %p14803_p3 = pnand %p14802_p2, %p14796_p13 }
  0x42   :  { %14806 = shalt.err (!%p14803_p3)
}
  0x43   :  { %s14843_s2 = smov 128   ;;  %s14844_s30 = smov 8  }
  0x44   :  { %61 = dma.hbm_to_vmem [thread:$0]  %s20585_s3, 8192, %s14914_s22, [#allocation10], %s14843_s2, %s14843_s2, %s14844_s30  }
  0x45   :  { %14829 = dma.done.wait [#allocation4], 4096  }
  0x46   :  { %14830 = vsyncadd [#allocation4], 4294963200 }
  0x47   :  { %14831 = dma.done.wait [#allocation7], 10240  }
  0x48   :  { %14832 = vsyncadd [#allocation7], 4294957056 }
  0x49   :  { %14833 = dma.done.wait [#allocation10], 8192  }
  0x4a   :  { %14834 = vsyncadd [#allocation10], 4294959104  ;;  %v14318_v0 = vld [vmem:[#allocation6] sm:$0xff]   ;;  %v14319_v1 = vld [vmem:[#allocation6 + $0x8] sm:$0xff]   ;;  %vm1236_vm0 = vcmask 1040384   ;;  %v20710_v34 = vmov 0 }
  0x4b   :  { %12996 = vmatprep.subr.bf16.mxu0 %v14318_v0  ;;  %v14320_v2 = vld [vmem:[#allocation6 + $0x10] sm:$0xff]   ;;  %v14321_v3 = vld [vmem:[#allocation6 + $0x18] sm:$0xff]   ;;  %v14326_v4 = vld [vmem:[#allocation3] sm:$0xff]   ;;  %vm1237_vm1 = vsmask.f32 256  ;;  %v20713_v39 = vmov 0 }
  0x4c   :  { %12997 = vmatpush3.bf16.msra.mxu0 %v14318_v0  ;;  %13012 = vmatprep.mubr.bf16.mxu0 %v14326_v4  ;;  %v14322_v5 = vld [vmem:[#allocation6 + $0x20] sm:$0xff]   ;;  %v14323_v6 = vld [vmem:[#allocation6 + $0x28] sm:$0xff]   ;;  %v14324_v7 = vld [vmem:[#allocation6 + $0x30] sm:$0xff]   ;;  %vm1335_vm2 = vsmask.f32 7938  ;;  %vm2267_vm7 = vcmask 1043456  }
  0x4d   :  { %12998 = vmatprep.subr.bf16.mxu0 %v14319_v1  ;;  %v14325_v8 = vld [vmem:[#allocation6 + $0x38] sm:$0xff]   ;;  %v14327_v9 = vld [vmem:[#allocation3 + $0x8] sm:$0xff]   ;;  %v14328_v10 = vld [vmem:[#allocation3 + $0x10] sm:$0xff]   ;;  %vm1625_vm5 = vsmask.f32 4368  ;;  %vm4483_vm12 = vcmask 1042432  }
  0x4e   :  { %v14329_v11 = vld [vmem:[#allocation3 + $0x18] sm:$0xff]   ;;  %v14330_v12 = vld [vmem:[#allocation3 + $0x20] sm:$0xff]   ;;  %v14331_v13 = vld [vmem:[#allocation3 + $0x28] sm:$0xff]   ;;  %vm2605_vm9 = vsmask.f32 3328  ;;  %vm4484_vm13 = vcmask 1046532  }
  0x4f   :  { %v14332_v14 = vld [vmem:[#allocation3 + $0x30] sm:$0xff]   ;;  %v14333_v15 = vld [vmem:[#allocation3 + $0x38] sm:$0xff]   ;;  %v14334_v16 = vld [vmem:[#allocation3 + $0x40] sm:$0xff]   ;;  %vm2606_vm10 = vsmask.f32 7440 }
  0x50   :  { %12999 = vmatpush3.bf16.msra.mxu0 %v14319_v1  ;;  %v14335_v17 = vld [vmem:[#allocation3 + $0x48] sm:$0xff]   ;;  %v14336_v18 = vld [vmem:[#allocation3 + $0x50] sm:$0xff]   ;;  %v14337_v19 = vld [vmem:[#allocation3 + $0x58] sm:$0xff]  }
  0x51   :  { %13000 = vmatprep.subr.bf16.mxu0 %v14320_v2  ;;  %v14338_v20 = vld [vmem:[#allocation3 + $0x60] sm:$0xff]   ;;  %v14339_v21 = vld [vmem:[#allocation3 + $0x68] sm:$0xff]   ;;  %v14340_v22 = vld [vmem:[#allocation3 + $0x70] sm:$0xff]  }
  0x52   :  { %v14341_v23 = vld [vmem:[#allocation3 + $0x78] sm:$0xff]   ;;  %v14342_v24 = vld [vmem:[#allocation3 + $0x80] sm:$0xff]   ;;  %v14343_v25 = vld [vmem:[#allocation3 + $0x88] sm:$0xff]  }
  0x53   :  { %v14344_v26 = vld [vmem:[#allocation3 + $0x90] sm:$0xff]   ;;  %v14345_v27 = vld [vmem:[#allocation3 + $0x98] sm:$0xff]   ;;  %v14346_v28 = vld [vmem:[#allocation3 + $0xa0] sm:$0xff]  }
  0x54   :  { %13001 = vmatpush3.bf16.msra.mxu0 %v14320_v2  ;;  %v14347_v29 = vld [vmem:[#allocation3 + $0xa8] sm:$0xff]   ;;  %v14348_v30 = vld [vmem:[#allocation3 + $0xb0] sm:$0xff]   ;;  %v14349_v31 = vld [vmem:[#allocation3 + $0xb8] sm:$0xff]  }
  0x55   :  { %13002 = vmatprep.subr.bf16.mxu0 %v14321_v3  ;;  %v14350_v32 = vld [vmem:[#allocation3 + $0xc0] sm:$0xff]   ;;  %v1242_v33 = vld [vmem:[#allocation2 + $0x18] sm:$0x1]  ;;  %vm14952_vm3 = vmand %vm1236_vm0, %vm1237_vm1 }
  0x56   :  { %v20711_v34 = vsel %vm14952_vm3, 4294967295, %v20710_v34  ;;  %v1239_v35 = vld [vmem:[#allocation2 + $0xc] sm:$0x1]  ;;  %v1340_v36 = vld [vmem:[#allocation2 + $0x20] sm:$0x1]  ;;  %v1243_v37 = vsel %vm14952_vm3, 0, %v1242_v33  ;;  %vm14961_vm4 = vmand %vm1236_vm0, %vm1335_vm2 }
  0x57   :  { %20712 = vst [vmem:[#allocation16_spill] sm:$0xff] %v20711_v34  ;;  %v1240_v38 = vsel %vm14952_vm3, 0, %v1239_v35  ;;  %1244 = vst [vmem:[#allocation2 + $0x18] sm:$0x1] %v1243_v37  ;;  %v20714_v39 = vsel %vm14961_vm4, 4294967295, %v20713_v39  ;;  %v1341_v40 = vsel %vm14961_vm4, 0, %v1340_v36 }
  0x58   :  { %13003 = vmatpush3.bf16.msra.mxu0 %v14321_v3  ;;  %1241 = vst [vmem:[#allocation2 + $0xc] sm:$0x1] %v1240_v38  ;;  %20715 = vst [vmem:[#allocation17_spill] sm:$0xff] %v20714_v39  ;;  %v1337_v41 = vld [vmem:[#allocation2 + $0x14] sm:$0x1]  ;;  %v14351_v44 = vld [vmem:[#allocation3 + $0xc8] sm:$0xff]  }
  0x59   :  { %13004 = vmatprep.subr.bf16.mxu0 %v14322_v5  ;;  %1342 = vst [vmem:[#allocation2 + $0x20] sm:$0x1] %v1341_v40  ;;  %v1338_v42 = vsel %vm14961_vm4, 0, %v1337_v41  ;;  %v1248_v43 = vld [vmem:[#allocation2 + $0x30] sm:$0x1]  ;;  %v14352_v46 = vld [vmem:[#allocation3 + $0xd0] sm:$0xff]   ;;  %vm16048_vm6 = vmor %vm1237_vm1, %vm1625_vm5 }
  0x5a   :  { %1339 = vst [vmem:[#allocation2 + $0x14] sm:$0x1] %v1338_v42  ;;  %v1249_v45 = vsel %vm14952_vm3, 0, %v1248_v43  ;;  %v1245_v47 = vld [vmem:[#allocation2 + $0x24] sm:$0x1]  ;;  %v14353_v54 = vld [vmem:[#allocation3 + $0xd8] sm:$0xff]   ;;  %vm17156_vm8 = vmand %vm2267_vm7, %vm1335_vm2 }
  0x5b   :  { %1250 = vst [vmem:[#allocation2 + $0x30] sm:$0x1] %v1249_v45  ;;  %v1346_v48 = vld [vmem:[#allocation2 + $0x38] sm:$0x1]  ;;  %v1246_v49 = vsel %vm14952_vm3, 0, %v1245_v47  ;;  %v14354_v56 = vld [vmem:[#allocation3 + $0xe0] sm:$0xff]   ;;  %vm17494_vm11 = vmor %vm2605_vm9, %vm2606_vm10 }
  0x5c   :  { %13005 = vmatpush3.bf16.msra.mxu0 %v14322_v5  ;;  %v1347_v50 = vsel %vm14961_vm4, 0, %v1346_v48  ;;  %1247 = vst [vmem:[#allocation2 + $0x24] sm:$0x1] %v1246_v49  ;;  %v1343_v51 = vld [vmem:[#allocation2 + $0x2c] sm:$0x1]  ;;  %v14355_v0 = vld [vmem:[#allocation3 + $0xe8] sm:$0xff]   ;;  %vm17800_vm14 = vmor %vm4483_vm12, %vm4484_vm13 }
  0x5d   :  { %13006 = vmatprep.subr.bf16.mxu0 %v14323_v6  ;;  %1348 = vst [vmem:[#allocation2 + $0x38] sm:$0x1] %v1347_v50  ;;  %v1344_v52 = vsel %vm14961_vm4, 0, %v1343_v51  ;;  %v1254_v53 = vld [vmem:[#allocation2 + $0x48] sm:$0x1]  ;;  %v14356_v2 = vld [vmem:[#allocation3 + $0xf0] sm:$0xff]  }
  0x5e   :  { %1345 = vst [vmem:[#allocation2 + $0x2c] sm:$0x1] %v1344_v52  ;;  %v1255_v55 = vsel %vm14952_vm3, 0, %v1254_v53  ;;  %v1251_v57 = vld [vmem:[#allocation2 + $0x3c] sm:$0x1] }
  0x5f   :  { %1256 = vst [vmem:[#allocation2 + $0x48] sm:$0x1] %v1255_v55  ;;  %v1352_v58 = vld [vmem:[#allocation2 + $0x50] sm:$0x1]  ;;  %v1252_v59 = vsel %vm14952_vm3, 0, %v1251_v57 }
  0x60   :  { %13007 = vmatpush3.bf16.msra.mxu0 %v14323_v6  ;;  %v1353_v60 = vsel %vm14961_vm4, 0, %v1352_v58  ;;  %1253 = vst [vmem:[#allocation2 + $0x3c] sm:$0x1] %v1252_v59  ;;  %v1349_v61 = vld [vmem:[#allocation2 + $0x44] sm:$0x1] }
  0x61   :  { %13008 = vmatprep.subr.bf16.mxu0 %v14324_v7  ;;  %1354 = vst [vmem:[#allocation2 + $0x50] sm:$0x1] %v1353_v60  ;;  %v1350_v62 = vsel %vm14961_vm4, 0, %v1349_v61  ;;  %v1260_v63 = vld [vmem:[#allocation2 + $0x60] sm:$0x1] }
  0x62   :  { %1351 = vst [vmem:[#allocation2 + $0x44] sm:$0x1] %v1350_v62  ;;  %v1261_v1 = vsel %vm14952_vm3, 0, %v1260_v63  ;;  %v1257_v3 = vld [vmem:[#allocation2 + $0x54] sm:$0x1] }
  0x63   :  { %1262 = vst [vmem:[#allocation2 + $0x60] sm:$0x1] %v1261_v1  ;;  %v1358_v4 = vld [vmem:[#allocation2 + $0x68] sm:$0x1]  ;;  %v1258_v5 = vsel %vm14952_vm3, 0, %v1257_v3 }
  0x64   :  { %13009 = vmatpush3.bf16.msra.mxu0 %v14324_v7  ;;  %v1359_v6 = vsel %vm14961_vm4, 0, %v1358_v4  ;;  %1259 = vst [vmem:[#allocation2 + $0x54] sm:$0x1] %v1258_v5  ;;  %v1355_v7 = vld [vmem:[#allocation2 + $0x5c] sm:$0x1] }
  0x65   :  { %13010 = vmatprep.subr.bf16.mxu0 %v14325_v8  ;;  %1360 = vst [vmem:[#allocation2 + $0x68] sm:$0x1] %v1359_v6  ;;  %v1284_v35 = vld [vmem:[#allocation2 + $0xc0] sm:$0x1]  ;;  %v1281_v37 = vld [vmem:[#allocation2 + $0xb4] sm:$0x1] }
  0x66   :  { %v1285_v36 = vsel %vm14952_vm3, 0, %v1284_v35  ;;  %v1382_v38 = vld [vmem:[#allocation2 + $0xc8] sm:$0x1]  ;;  %v1282_v40 = vsel %vm14952_vm3, 0, %v1281_v37  ;;  %v1379_v42 = vld [vmem:[#allocation2 + $0xbc] sm:$0x1] }
  0x67   :  { %1286 = vst [vmem:[#allocation2 + $0xc0] sm:$0x1] %v1285_v36  ;;  %v1383_v41 = vsel %vm14961_vm4, 0, %v1382_v38  ;;  %1283 = vst [vmem:[#allocation2 + $0xb4] sm:$0x1] %v1282_v40  ;;  %v1380_v43 = vsel %vm14961_vm4, 0, %v1379_v42 }
  0x68   :  { %13011 = vmatpush3.bf16.msra.mxu0 %v14325_v8  ;;  %v1356_v8 = vsel %vm14961_vm4, 0, %v1355_v7  ;;  %1384 = vst [vmem:[#allocation2 + $0xc8] sm:$0x1] %v1383_v41  ;;  %1381 = vst [vmem:[#allocation2 + $0xbc] sm:$0x1] %v1380_v43 }
  0x69   :  { %1357 = vst [vmem:[#allocation2 + $0x5c] sm:$0x1] %v1356_v8  ;;  %v1388_v47 = vld [vmem:[#allocation2 + $0xf8] sm:$0x1]  ;;  %v1385_v50 = vld [vmem:[#allocation2 + $0xec] sm:$0x1] }
  0x6a   :  { %v1389_v49 = vsel %vm14961_vm4, 0, %v1388_v47  ;;  %v1386_v51 = vsel %vm14961_vm4, 0, %v1385_v50  ;;  %v1296_v52 = vld [vmem:[#allocation2 + $0x108] sm:$0x1]  ;;  %v1394_v55 = vld [vmem:[#allocation2 + $0x110] sm:$0x1] }
  0x6b   :  { %13013 = vmatmul.mubr.bf16.vlgmr.msra.gmra.mrb[0].mxu0 %v14327_v9  ;;  %v1266_v9 = vld [vmem:[#allocation2 + $0x78] sm:$0x1]  ;;  %1390 = vst [vmem:[#allocation2 + $0xf8] sm:$0x1] %v1389_v49  ;;  %1387 = vst [vmem:[#allocation2 + $0xec] sm:$0x1] %v1386_v51 }
  0x6c   :  { %13016 = vmatprep.mubr.bf16.mxu0 %v14328_v10  ;;  %v14357_v10 = vld [vmem:[#allocation3 + $0xf8] sm:$0xff]   ;;  %v1297_v53 = vsel %vm14952_vm3, 0, %v1296_v52  ;;  %v1395_v57 = vsel %vm14961_vm4, 0, %v1394_v55  ;;  %v1391_v58 = vld [vmem:[#allocation2 + $0x104] sm:$0x1] }
  0x6d   :  { %1298 = vst [vmem:[#allocation2 + $0x108] sm:$0x1] %v1297_v53  ;;  %1396 = vst [vmem:[#allocation2 + $0x110] sm:$0x1] %v1395_v57  ;;  %v1392_v59 = vsel %vm14961_vm4, 0, %v1391_v58 }
  0x6e   :  { %1393 = vst [vmem:[#allocation2 + $0x104] sm:$0x1] %v1392_v59  ;;  %v1302_v60 = vld [vmem:[#allocation2 + $0x120] sm:$0x1]  ;;  %v1299_v62 = vld [vmem:[#allocation2 + $0x114] sm:$0x1] }
  0x6f   :  { %v1303_v61 = vsel %vm14952_vm3, 0, %v1302_v60  ;;  %v1400_v63 = vld [vmem:[#allocation2 + $0x128] sm:$0x1]  ;;  %v1308_v4 = vld [vmem:[#allocation2 + $0x138] sm:$0x1] }
  0x70   :  { %1304 = vst [vmem:[#allocation2 + $0x120] sm:$0x1] %v1303_v61  ;;  %v1401_v1 = vsel %vm14961_vm4, 0, %v1400_v63  ;;  %v1309_v5 = vsel %vm14952_vm3, 0, %v1308_v4  ;;  %v1305_v6 = vld [vmem:[#allocation2 + $0x12c] sm:$0x1] }
  0x71   :  { %1402 = vst [vmem:[#allocation2 + $0x128] sm:$0x1] %v1401_v1  ;;  %1310 = vst [vmem:[#allocation2 + $0x138] sm:$0x1] %v1309_v5  ;;  %v1406_v7 = vld [vmem:[#allocation2 + $0x140] sm:$0x1] }
  0x72   :  { %v1306_v8 = vsel %vm14952_vm3, 0, %v1305_v6  ;;  %v1421_v35 = vld [vmem:[#allocation2 + $0x17c] sm:$0x1]  ;;  %v1332_v37 = vld [vmem:[#allocation2 + $0x198] sm:$0x1] }
  0x73   :  { %13017 = vmatmul.mubr.bf16.gmra.mrb[4].mxu0 %v14329_v11  ;;  %v1267_v11 = vsel %vm14952_vm3, 0, %v1266_v9  ;;  %v1407_v9 = vsel %vm14961_vm4, 0, %v1406_v7  ;;  %1307 = vst [vmem:[#allocation2 + $0x12c] sm:$0x1] %v1306_v8  ;;  %v1422_v36 = vsel %vm14961_vm4, 0, %v1421_v35  ;;  %v1333_v38 = vsel %vm14952_vm3, 0, %v1332_v37 }
  0x74   :  { %13020 = vmatprep.mubr.bf16.mxu0 %v14330_v12  ;;  %1268 = vst [vmem:[#allocation2 + $0x78] sm:$0x1] %v1267_v11  ;;  %v1263_v12 = vld [vmem:[#allocation2 + $0x6c] sm:$0x1]  ;;  %1408 = vst [vmem:[#allocation2 + $0x140] sm:$0x1] %v1407_v9 }
  0x75   :  { %1423 = vst [vmem:[#allocation2 + $0x17c] sm:$0x1] %v1422_v36  ;;  %1334 = vst [vmem:[#allocation2 + $0x198] sm:$0x1] %v1333_v38  ;;  %v1329_v40 = vld [vmem:[#allocation2 + $0x18c] sm:$0x1] }
  0x76   :  { %v1430_v41 = vld [vmem:[#allocation2 + $0x1a0] sm:$0x1]  ;;  %v1330_v42 = vsel %vm14952_vm3, 0, %v1329_v40 }
  0x77   :  { %v1431_v43 = vsel %vm14961_vm4, 0, %v1430_v41  ;;  %1331 = vst [vmem:[#allocation2 + $0x18c] sm:$0x1] %v1330_v42 }
  0x78   :  { %1432 = vst [vmem:[#allocation2 + $0x1a0] sm:$0x1] %v1431_v43 }
  0x7b   :  { %13021 = vmatmul.mubr.bf16.gmra.mrb[8].mxu0 %v14331_v13  ;;  %v1364_v13 = vld [vmem:[#allocation2 + $0x80] sm:$0x1] }
  0x7c   :  { %13024 = vmatprep.mubr.bf16.mxu0 %v14332_v14  ;;  %v1264_v14 = vsel %vm14952_vm3, 0, %v1263_v12  ;;  %v1314_v12 = vld [vmem:[#allocation2 + $0x150] sm:$0x1] }
  0x7d   :  { %1265 = vst [vmem:[#allocation2 + $0x6c] sm:$0x1] %v1264_v14  ;;  %v1311_v14 = vld [vmem:[#allocation2 + $0x144] sm:$0x1] }
  0x83   :  { %13025 = vmatmul.mubr.bf16.gmra.mrb[12].mxu0 %v14333_v15  ;;  %v1365_v15 = vsel %vm14961_vm4, 0, %v1364_v13  ;;  %v1315_v13 = vsel %vm14952_vm3, 0, %v1314_v12 }
  0x84   :  { %13028 = vmatprep.mubr.bf16.mxu0 %v14334_v16  ;;  %1366 = vst [vmem:[#allocation2 + $0x80] sm:$0x1] %v1365_v15  ;;  %v1361_v16 = vld [vmem:[#allocation2 + $0x74] sm:$0x1]  ;;  %1316 = vst [vmem:[#allocation2 + $0x150] sm:$0x1] %v1315_v13 }
  0x85   :  { %v1412_v15 = vld [vmem:[#allocation2 + $0x158] sm:$0x1] }
  0x8b   :  { %13029 = vmatmul.mubr.bf16.gmra.mrb[16].mxu0 %v14335_v17  ;;  %v1362_v17 = vsel %vm14961_vm4, 0, %v1361_v16  ;;  %v1312_v16 = vsel %vm14952_vm3, 0, %v1311_v14 }
  0x8c   :  { %13032 = vmatprep.mubr.bf16.mxu0 %v14336_v18  ;;  %1363 = vst [vmem:[#allocation2 + $0x74] sm:$0x1] %v1362_v17  ;;  %v1272_v18 = vld [vmem:[#allocation2 + $0x90] sm:$0x1]  ;;  %v1413_v17 = vsel %vm14961_vm4, 0, %v1412_v15 }
  0x8d   :  { %1313 = vst [vmem:[#allocation2 + $0x144] sm:$0x1] %v1312_v16  ;;  %1414 = vst [vmem:[#allocation2 + $0x158] sm:$0x1] %v1413_v17 }
  0x93   :  { %13033 = vmatmul.mubr.bf16.gmra.mrb[20].mxu0 %v14337_v19  ;;  %v1273_v19 = vsel %vm14952_vm3, 0, %v1272_v18  ;;  %v1409_v18 = vld [vmem:[#allocation2 + $0x14c] sm:$0x1] }
  0x94   :  { %13036 = vmatprep.mubr.bf16.mxu0 %v14338_v20  ;;  %1274 = vst [vmem:[#allocation2 + $0x90] sm:$0x1] %v1273_v19  ;;  %v1269_v20 = vld [vmem:[#allocation2 + $0x84] sm:$0x1]  ;;  %v1410_v19 = vsel %vm14961_vm4, 0, %v1409_v18 }
  0x95   :  { %1411 = vst [vmem:[#allocation2 + $0x14c] sm:$0x1] %v1410_v19 }
  0x9b   :  { %13037 = vmatmul.mubr.bf16.gmra.mrb[24].mxu0 %v14339_v21  ;;  %v1370_v21 = vld [vmem:[#allocation2 + $0x98] sm:$0x1] }
  0x9c   :  { %13040 = vmatprep.mubr.bf16.mxu0 %v14340_v22  ;;  %v1270_v22 = vsel %vm14952_vm3, 0, %v1269_v20  ;;  %v1320_v20 = vld [vmem:[#allocation2 + $0x168] sm:$0x1] }
  0x9d   :  { %1271 = vst [vmem:[#allocation2 + $0x84] sm:$0x1] %v1270_v22  ;;  %v1317_v22 = vld [vmem:[#allocation2 + $0x15c] sm:$0x1] }
  0xa3   :  { %13041 = vmatmul.mubr.bf16.gmra.mrb[28].mxu0 %v14341_v23  ;;  %v1371_v23 = vsel %vm14961_vm4, 0, %v1370_v21  ;;  %v1321_v21 = vsel %vm14952_vm3, 0, %v1320_v20 }
  0xa4   :  { %13044 = vmatprep.mubr.bf16.mxu0 %v14342_v24  ;;  %1372 = vst [vmem:[#allocation2 + $0x98] sm:$0x1] %v1371_v23  ;;  %v1367_v24 = vld [vmem:[#allocation2 + $0x8c] sm:$0x1]  ;;  %1322 = vst [vmem:[#allocation2 + $0x168] sm:$0x1] %v1321_v21 }
  0xa5   :  { %v1418_v23 = vld [vmem:[#allocation2 + $0x170] sm:$0x1] }
  0xab   :  { %13045 = vmatmul.mubr.bf16.gmra.mrb[32].mxu0 %v14343_v25  ;;  %v1368_v25 = vsel %vm14961_vm4, 0, %v1367_v24  ;;  %v1318_v24 = vsel %vm14952_vm3, 0, %v1317_v22 }
  0xac   :  { %13048 = vmatprep.mubr.bf16.mxu0 %v14344_v26  ;;  %1369 = vst [vmem:[#allocation2 + $0x8c] sm:$0x1] %v1368_v25  ;;  %v1278_v26 = vld [vmem:[#allocation2 + $0xa8] sm:$0x1]  ;;  %v1419_v25 = vsel %vm14961_vm4, 0, %v1418_v23 }
  0xad   :  { %1319 = vst [vmem:[#allocation2 + $0x15c] sm:$0x1] %v1318_v24  ;;  %1420 = vst [vmem:[#allocation2 + $0x170] sm:$0x1] %v1419_v25 }
  0xb3   :  { %13049 = vmatmul.mubr.bf16.gmra.mrb[36].mxu0 %v14345_v27  ;;  %v1279_v27 = vsel %vm14952_vm3, 0, %v1278_v26  ;;  %v1415_v26 = vld [vmem:[#allocation2 + $0x164] sm:$0x1] }
  0xb4   :  { %13052 = vmatprep.mubr.bf16.mxu0 %v14346_v28  ;;  %1280 = vst [vmem:[#allocation2 + $0xa8] sm:$0x1] %v1279_v27  ;;  %v1275_v28 = vld [vmem:[#allocation2 + $0x9c] sm:$0x1]  ;;  %v1416_v27 = vsel %vm14961_vm4, 0, %v1415_v26 }
  0xb5   :  { %1417 = vst [vmem:[#allocation2 + $0x164] sm:$0x1] %v1416_v27 }
  0xbb   :  { %13053 = vmatmul.mubr.bf16.gmra.mrb[40].mxu0 %v14347_v29  ;;  %v1376_v29 = vld [vmem:[#allocation2 + $0xb0] sm:$0x1] }
  0xbc   :  { %13056 = vmatprep.mubr.bf16.mxu0 %v14348_v30  ;;  %v1276_v30 = vsel %vm14952_vm3, 0, %v1275_v28  ;;  %v1326_v28 = vld [vmem:[#allocation2 + $0x180] sm:$0x1] }
  0xbd   :  { %1277 = vst [vmem:[#allocation2 + $0x9c] sm:$0x1] %v1276_v30  ;;  %v1323_v30 = vld [vmem:[#allocation2 + $0x174] sm:$0x1] }
  0xc3   :  { %13057 = vmatmul.mubr.bf16.gmra.mrb[44].mxu0 %v14349_v31  ;;  %v1377_v31 = vsel %vm14961_vm4, 0, %v1376_v29  ;;  %v1327_v29 = vsel %vm14952_vm3, 0, %v1326_v28 }
  0xc4   :  { %13060 = vmatprep.mubr.bf16.mxu0 %v14350_v32  ;;  %1378 = vst [vmem:[#allocation2 + $0xb0] sm:$0x1] %v1377_v31  ;;  %v1373_v32 = vld [vmem:[#allocation2 + $0xa4] sm:$0x1]  ;;  %1328 = vst [vmem:[#allocation2 + $0x180] sm:$0x1] %v1327_v29 }
  0xc5   :  { %v1374_v33 = vsel %vm14961_vm4, 0, %v1373_v32  ;;  %v1424_v31 = vld [vmem:[#allocation2 + $0x188] sm:$0x1]  ;;  %v1324_v32 = vsel %vm14952_vm3, 0, %v1323_v30 }
  0xc6   :  { %1375 = vst [vmem:[#allocation2 + $0xa4] sm:$0x1] %v1374_v33  ;;  %v1425_v33 = vsel %vm14961_vm4, 0, %v1424_v31  ;;  %1325 = vst [vmem:[#allocation2 + $0x174] sm:$0x1] %v1324_v32 }
  0xc7   :  { %1426 = vst [vmem:[#allocation2 + $0x188] sm:$0x1] %v1425_v33 }
  0xcb   :  { %13061 = vmatmul.mubr.bf16.gmra.mrb[48].mxu0 %v14351_v44  ;;  %v1290_v44 = vld [vmem:[#allocation2 + $0xf0] sm:$0x1] }
  0xcc   :  { %13064 = vmatprep.mubr.bf16.mxu0 %v14352_v46  ;;  %v1291_v45 = vsel %vm14952_vm3, 0, %v1290_v44  ;;  %v1287_v46 = vld [vmem:[#allocation2 + $0xe4] sm:$0x1] }
  0xcd   :  { %1292 = vst [vmem:[#allocation2 + $0xf0] sm:$0x1] %v1291_v45  ;;  %v1288_v48 = vsel %vm14952_vm3, 0, %v1287_v46 }
  0xce   :  { %1289 = vst [vmem:[#allocation2 + $0xe4] sm:$0x1] %v1288_v48 }
  0xd3   :  { %13065 = vmatmul.mubr.bf16.gmra.mrb[52].mxu0 %v14353_v54  ;;  %v1293_v54 = vld [vmem:[#allocation2 + $0xfc] sm:$0x1] }
  0xd4   :  { %13068 = vmatprep.mubr.bf16.mxu0 %v14354_v56  ;;  %v1294_v56 = vsel %vm14952_vm3, 0, %v1293_v54 }
  0xd5   :  { %1295 = vst [vmem:[#allocation2 + $0xfc] sm:$0x1] %v1294_v56 }
  0xdb   :  { %13069 = vmatmul.mubr.bf16.gmra.mrb[56].mxu0 %v14355_v0  ;;  %v1300_v0 = vsel %vm14952_vm3, 0, %v1299_v62 }
  0xdc   :  { %13072 = vmatprep.mubr.bf16.mxu0 %v14356_v2  ;;  %1301 = vst [vmem:[#allocation2 + $0x114] sm:$0x1] %v1300_v0  ;;  %v1397_v2 = vld [vmem:[#allocation2 + $0x11c] sm:$0x1] }
  0xdd   :  { %v1398_v3 = vsel %vm14961_vm4, 0, %v1397_v2 }
  0xde   :  { %1399 = vst [vmem:[#allocation2 + $0x11c] sm:$0x1] %v1398_v3 }
  0xe3   :  { %13073 = vmatmul.mubr.bf16.gmra.mrb[60].mxu0 %v14357_v10  ;;  %v1403_v10 = vld [vmem:[#allocation2 + $0x134] sm:$0x1] }
  0xe4   :  { %v1404_v11 = vsel %vm14961_vm4, 0, %v1403_v10 }
  0xe5   :  { %1405 = vst [vmem:[#allocation2 + $0x134] sm:$0x1] %v1404_v11 }
 0x13e   :  { %v15087_v44 = vpop.f32.mrb[0].mxu0 }
 0x13f   :  { %v15089_v45 = vpop.f32.mrb[1].mxu0 }
 0x140   :  { %v15091_v46 = vpop.f32.mrb[2].mxu0 }
 0x141   :  { %v15093_v47 = vpop.f32.mrb[3].mxu0 }
 0x142   :  { %v688_v48 = vadd.f32 %v15093_v47, %v15089_v45 }
 0x144   :  { %v689_v49 = vadd.f32 %v15087_v44, %v688_v48 }
 0x146   :  { %v15098_v50 = vpop.f32.mrb[4].mxu0  ;;  %v690_v51 = vadd.f32 %v15091_v46, %v689_v49 }
 0x147   :  { %v15101_v52 = vpop.f32.mrb[5].mxu0 }
 0x148   :  { %v691_v53 = vadd.f32 %v690_v51, %v15101_v52  ;;  %v15104_v54 = vpop.f32.mrb[6].mxu0 }
 0x149   :  { %v15106_v55 = vpop.f32.mrb[7].mxu0 }
 0x14a   :  { %v692_v56 = vadd.f32 %v691_v53, %v15106_v55 }
 0x14c   :  { %v693_v57 = vadd.f32 %v15098_v50, %v692_v56 }
 0x14e   :  { %v15110_v58 = vpop.f32.mrb[8].mxu0  ;;  %v694_v59 = vadd.f32 %v15104_v54, %v693_v57 }
 0x14f   :  { %v15113_v60 = vpop.f32.mrb[9].mxu0 }
 0x150   :  { %v695_v61 = vadd.f32 %v694_v59, %v15113_v60  ;;  %v15116_v62 = vpop.f32.mrb[10].mxu0 }
 0x151   :  { %v15118_v63 = vpop.f32.mrb[11].mxu0 }
 0x152   :  { %v696_v0 = vadd.f32 %v695_v61, %v15118_v63 }
 0x154   :  { %v697_v1 = vadd.f32 %v15110_v58, %v696_v0 }
 0x156   :  { %v15122_v2 = vpop.f32.mrb[12].mxu0  ;;  %v698_v3 = vadd.f32 %v15116_v62, %v697_v1 }
 0x157   :  { %v15125_v4 = vpop.f32.mrb[13].mxu0 }
 0x158   :  { %v699_v5 = vadd.f32 %v698_v3, %v15125_v4  ;;  %v15128_v6 = vpop.f32.mrb[14].mxu0 }
 0x159   :  { %v15130_v7 = vpop.f32.mrb[15].mxu0 }
 0x15a   :  { %v700_v8 = vadd.f32 %v699_v5, %v15130_v7 }
 0x15c   :  { %v701_v9 = vadd.f32 %v15122_v2, %v700_v8 }
 0x15e   :  { %v15134_v10 = vpop.f32.mrb[16].mxu0  ;;  %v702_v11 = vadd.f32 %v15128_v6, %v701_v9 }
 0x15f   :  { %v15137_v12 = vpop.f32.mrb[17].mxu0 }
 0x160   :  { %v703_v13 = vadd.f32 %v702_v11, %v15137_v12  ;;  %v15140_v14 = vpop.f32.mrb[18].mxu0 }
 0x161   :  { %v15142_v15 = vpop.f32.mrb[19].mxu0 }
 0x162   :  { %v704_v16 = vadd.f32 %v703_v13, %v15142_v15 }
 0x164   :  { %v705_v17 = vadd.f32 %v15134_v10, %v704_v16 }
 0x166   :  { %v15146_v18 = vpop.f32.mrb[20].mxu0  ;;  %v706_v19 = vadd.f32 %v15140_v14, %v705_v17 }
 0x167   :  { %v15149_v20 = vpop.f32.mrb[21].mxu0 }
 0x168   :  { %v707_v21 = vadd.f32 %v706_v19, %v15149_v20  ;;  %v15152_v22 = vpop.f32.mrb[22].mxu0 }
 0x169   :  { %v15154_v23 = vpop.f32.mrb[23].mxu0 }
 0x16a   :  { %v708_v24 = vadd.f32 %v707_v21, %v15154_v23 }
 0x16c   :  { %v709_v25 = vadd.f32 %v15146_v18, %v708_v24 }
 0x16e   :  { %v15158_v26 = vpop.f32.mrb[24].mxu0  ;;  %v710_v27 = vadd.f32 %v15152_v22, %v709_v25 }
 0x16f   :  { %v15161_v28 = vpop.f32.mrb[25].mxu0 }
 0x170   :  { %v711_v29 = vadd.f32 %v710_v27, %v15161_v28  ;;  %v15164_v30 = vpop.f32.mrb[26].mxu0 }
 0x171   :  { %v15166_v31 = vpop.f32.mrb[27].mxu0 }
 0x172   :  { %v712_v32 = vadd.f32 %v711_v29, %v15166_v31 }
 0x174   :  { %v713_v33 = vadd.f32 %v15158_v26, %v712_v32 }
 0x176   :  { %v15170_v35 = vpop.f32.mrb[28].mxu0  ;;  %v714_v36 = vadd.f32 %v15164_v30, %v713_v33 }
 0x177   :  { %v15173_v37 = vpop.f32.mrb[29].mxu0 }
 0x178   :  { %v715_v38 = vadd.f32 %v714_v36, %v15173_v37  ;;  %v15176_v40 = vpop.f32.mrb[30].mxu0 }
 0x179   :  { %v15178_v41 = vpop.f32.mrb[31].mxu0 }
 0x17a   :  { %v716_v42 = vadd.f32 %v715_v38, %v15178_v41 }
 0x17c   :  { %v717_v43 = vadd.f32 %v15170_v35, %v716_v42 }
 0x17e   :  { %v15182_v48 = vpop.f32.mrb[32].mxu0  ;;  %v718_v49 = vadd.f32 %v15176_v40, %v717_v43 }
 0x17f   :  { %v15185_v51 = vpop.f32.mrb[33].mxu0 }
 0x180   :  { %v719_v53 = vadd.f32 %v718_v49, %v15185_v51  ;;  %v15188_v56 = vpop.f32.mrb[34].mxu0 }
 0x181   :  { %v15190_v57 = vpop.f32.mrb[35].mxu0 }
 0x182   :  { %v720_v59 = vadd.f32 %v719_v53, %v15190_v57 }
 0x184   :  { %v721_v61 = vadd.f32 %v15182_v48, %v720_v59 }
 0x186   :  { %v15194_v0 = vpop.f32.mrb[36].mxu0  ;;  %v722_v1 = vadd.f32 %v15188_v56, %v721_v61 }
 0x187   :  { %v15197_v3 = vpop.f32.mrb[37].mxu0 }
 0x188   :  { %v723_v5 = vadd.f32 %v722_v1, %v15197_v3  ;;  %v15200_v8 = vpop.f32.mrb[38].mxu0 }
 0x189   :  { %v15202_v9 = vpop.f32.mrb[39].mxu0 }
 0x18a   :  { %v724_v11 = vadd.f32 %v723_v5, %v15202_v9 }
 0x18c   :  { %v725_v13 = vadd.f32 %v15194_v0, %v724_v11 }
 0x18e   :  { %v15206_v16 = vpop.f32.mrb[40].mxu0  ;;  %v726_v17 = vadd.f32 %v15200_v8, %v725_v13 }
 0x18f   :  { %v15209_v19 = vpop.f32.mrb[41].mxu0 }
 0x190   :  { %v727_v21 = vadd.f32 %v726_v17, %v15209_v19  ;;  %v15212_v24 = vpop.f32.mrb[42].mxu0 }
 0x191   :  { %v15214_v25 = vpop.f32.mrb[43].mxu0 }
 0x192   :  { %v728_v27 = vadd.f32 %v727_v21, %v15214_v25 }
 0x194   :  { %v729_v29 = vadd.f32 %v15206_v16, %v728_v27 }
 0x196   :  { %v15218_v32 = vpop.f32.mrb[44].mxu0  ;;  %v730_v33 = vadd.f32 %v15212_v24, %v729_v29 }
 0x197   :  { %v15221_v36 = vpop.f32.mrb[45].mxu0 }
 0x198   :  { %v731_v38 = vadd.f32 %v730_v33, %v15221_v36  ;;  %v15224_v42 = vpop.f32.mrb[46].mxu0 }
 0x199   :  { %v15226_v43 = vpop.f32.mrb[47].mxu0 }
 0x19a   :  { %v732_v49 = vadd.f32 %v731_v38, %v15226_v43 }
 0x19c   :  { %v733_v53 = vadd.f32 %v15218_v32, %v732_v49 }
 0x19e   :  { %v15230_v59 = vpop.f32.mrb[48].mxu0  ;;  %v734_v61 = vadd.f32 %v15224_v42, %v733_v53 }
 0x19f   :  { %20716 = vst [vmem:[#allocation18_spill] sm:$0xff] %v15230_v59  ;;  %v15233_v1 = vpop.f32.mrb[49].mxu0 }
 0x1a0   :  { %20717 = vst [vmem:[#allocation19_spill] sm:$0xff] %v15233_v1  ;;  %v735_v5 = vadd.f32 %v734_v61, %v15233_v1  ;;  %v15236_v11 = vpop.f32.mrb[50].mxu0 }
 0x1a1   :  { %20718 = vst [vmem:[#allocation20_spill] sm:$0xff] %v15236_v11  ;;  %v15238_v13 = vpop.f32.mrb[51].mxu0 }
 0x1a2   :  { %20719 = vst [vmem:[#allocation21_spill] sm:$0xff] %v15238_v13  ;;  %v736_v17 = vadd.f32 %v735_v5, %v15238_v13 }
 0x1a4   :  { %v737_v21 = vadd.f32 %v15230_v59, %v736_v17 }
 0x1a6   :  { %v15242_v27 = vpop.f32.mrb[52].mxu0  ;;  %v738_v29 = vadd.f32 %v15236_v11, %v737_v21 }
 0x1a7   :  { %20720 = vst [vmem:[#allocation22_spill] sm:$0xff] %v15242_v27  ;;  %v15245_v33 = vpop.f32.mrb[53].mxu0 }
 0x1a8   :  { %20721 = vst [vmem:[#allocation23_spill] sm:$0xff] %v15245_v33  ;;  %v739_v38 = vadd.f32 %v738_v29, %v15245_v33  ;;  %v15248_v49 = vpop.f32.mrb[54].mxu0 }
 0x1a9   :  { %20722 = vst [vmem:[#allocation24_spill] sm:$0xff] %v15248_v49  ;;  %v15250_v53 = vpop.f32.mrb[55].mxu0 }
 0x1aa   :  { %20723 = vst [vmem:[#allocation25_spill] sm:$0xff] %v15250_v53  ;;  %v740_v61 = vadd.f32 %v739_v38, %v15250_v53 }
 0x1ac   :  { %v741_v34 = vadd.f32 %v15242_v27, %v740_v61 }
 0x1ae   :  { %v15254_v39 = vpop.f32.mrb[56].mxu0  ;;  %v742_v5 = vadd.f32 %v15248_v49, %v741_v34 }
 0x1af   :  { %20724 = vst [vmem:[#allocation26_spill] sm:$0xff] %v15254_v39  ;;  %v15257_v17 = vpop.f32.mrb[57].mxu0 }
 0x1b0   :  { %20725 = vst [vmem:[#allocation27_spill] sm:$0xff] %v15257_v17  ;;  %v743_v21 = vadd.f32 %v742_v5, %v15257_v17  ;;  %v15260_v11 = vpop.f32.mrb[58].mxu0 }
 0x1b1   :  { %20726 = vst [vmem:[#allocation28_spill] sm:$0xff] %v15260_v11  ;;  %v15262_v59 = vpop.f32.mrb[59].mxu0 }
 0x1b2   :  { %20727 = vst [vmem:[#allocation29_spill] sm:$0xff] %v15262_v59  ;;  %v744_v29 = vadd.f32 %v743_v21, %v15262_v59 }
 0x1b4   :  { %v745_v33 = vadd.f32 %v15254_v39, %v744_v29 }
 0x1b6   :  { %v15266_v13 = vpop.f32.mrb[60].mxu0  ;;  %v746_v38 = vadd.f32 %v15260_v11, %v745_v33 }
 0x1b7   :  { %v15269_v61 = vpop.f32.mrb[61].mxu0 }
 0x1b8   :  { %20728 = vst [vmem:[#allocation30_spill] sm:$0xff] %v15269_v61  ;;  %v747_v34 = vadd.f32 %v746_v38, %v15269_v61  ;;  %v15272_v49 = vpop.f32.mrb[62].mxu0 }
 0x1b9   :  { %v15274_v27 = vpop.f32.mrb[63].mxu0 }
 0x1ba   :  { %v748_v5 = vadd.f32 %v747_v34, %v15274_v27 }
 0x1bc   :  { %v749_v17 = vadd.f32 %v15266_v13, %v748_v5  ;;  %v20740_v5 = vld [vmem:[#allocation20_spill] sm:$0xff] }
 0x1be   :  { %v750_v21 = vadd.f32 %v15272_v49, %v749_v17  ;;  %v20738_v17 = vld [vmem:[#allocation18_spill] sm:$0xff] }
 0x1c0   :  { %v751_v59 = vrot.slane %v750_v21, 4 }
 0x1c2   :  { %v752_v29 = vadd.f32 %v751_v59, %v750_v21  ;;  %v20742_v21 = vld [vmem:[#allocation23_spill] sm:$0xff] }
 0x1c4   :  { %v753_v39 = vrot.slane %v752_v29, 2 }
 0x1c6   :  { %v754_v53 = vadd.f32 %v753_v39, %v752_v29  ;;  %v20744_v29 = vld [vmem:[#allocation25_spill] sm:$0xff] }
 0x1c8   :  { %v755_v1 = vrot.slane %v754_v53, 1 }
 0x1ca   :  { %v756_v33 = vadd.f32 %v755_v1, %v754_v53  ;;  %v20735_v1 = vld [vmem:[#allocation19_spill] sm:$0xff]  ;;  %v20736_v53 = vld [vmem:[#allocation21_spill] sm:$0xff] }
 0x1cc   :  { %v15279_v11 = vmul.f32 0.001953125, %v756_v33 }
 0x1ce   :  { %v15283_v38 = vsub.f32 %v15089_v45, %v15279_v11  ;;  %v15287_v61 = vsub.f32 %v15093_v47, %v15279_v11  ;;  %v15291_v34 = vsub.f32 %v15087_v44, %v15279_v11  ;;  %v15295_v59 = vsub.f32 %v15091_v46, %v15279_v11 }
 0x1cf   :  { %v15299_v39 = vsub.f32 %v15101_v52, %v15279_v11  ;;  %v15303_v45 = vsub.f32 %v15106_v55, %v15279_v11  ;;  %v15307_v47 = vsub.f32 %v15098_v50, %v15279_v11  ;;  %v15311_v44 = vsub.f32 %v15104_v54, %v15279_v11 }
 0x1d0   :  { %20729 = vst [vmem:[#allocation31_spill] sm:$0xff] %v15283_v38  ;;  %20730 = vst [vmem:[#allocation32_spill] sm:$0xff] %v15287_v61  ;;  %v15315_v46 = vsub.f32 %v15113_v60, %v15279_v11  ;;  %v15319_v52 = vsub.f32 %v15118_v63, %v15279_v11  ;;  %v15323_v55 = vsub.f32 %v15110_v58, %v15279_v11 }
 0x1d1   :  { %20731 = vst [vmem:[#allocation33_spill] sm:$0xff] %v15291_v34  ;;  %20732 = vst [vmem:[#allocation34_spill] sm:$0xff] %v15295_v59  ;;  %v15327_v50 = vsub.f32 %v15116_v62, %v15279_v11  ;;  %v15331_v54 = vsub.f32 %v15125_v4, %v15279_v11  ;;  %v15335_v60 = vsub.f32 %v15130_v7, %v15279_v11 }
 0x1d2   :  { %20733 = vst [vmem:[#allocation35_spill] sm:$0xff] %v15299_v39  ;;  %20734 = vst [vmem:[#allocation36_spill] sm:$0xff] %v15303_v45  ;;  %v15339_v63 = vsub.f32 %v15122_v2, %v15279_v11  ;;  %v15343_v58 = vsub.f32 %v15128_v6, %v15279_v11  ;;  %v15347_v62 = vsub.f32 %v15137_v12, %v15279_v11 }
 0x1d3   :  { %v15351_v4 = vsub.f32 %v15142_v15, %v15279_v11  ;;  %v15355_v7 = vsub.f32 %v15134_v10, %v15279_v11  ;;  %v15359_v2 = vsub.f32 %v15140_v14, %v15279_v11  ;;  %v15363_v6 = vsub.f32 %v15149_v20, %v15279_v11 }
 0x1d4   :  { %v15367_v12 = vsub.f32 %v15154_v23, %v15279_v11  ;;  %v15371_v15 = vsub.f32 %v15146_v18, %v15279_v11  ;;  %v15375_v10 = vsub.f32 %v15152_v22, %v15279_v11  ;;  %v15379_v14 = vsub.f32 %v15161_v28, %v15279_v11 }
 0x1d5   :  { %v15383_v20 = vsub.f32 %v15166_v31, %v15279_v11  ;;  %v15387_v23 = vsub.f32 %v15158_v26, %v15279_v11  ;;  %v15391_v18 = vsub.f32 %v15164_v30, %v15279_v11  ;;  %v15395_v22 = vsub.f32 %v15173_v37, %v15279_v11 }
 0x1d6   :  { %v15399_v28 = vsub.f32 %v15178_v41, %v15279_v11  ;;  %v15403_v31 = vsub.f32 %v15170_v35, %v15279_v11  ;;  %v15407_v26 = vsub.f32 %v15176_v40, %v15279_v11  ;;  %v15411_v30 = vsub.f32 %v15185_v51, %v15279_v11 }
 0x1d7   :  { %v15415_v37 = vsub.f32 %v15190_v57, %v15279_v11  ;;  %v15419_v41 = vsub.f32 %v15182_v48, %v15279_v11  ;;  %v15423_v35 = vsub.f32 %v15188_v56, %v15279_v11  ;;  %v15427_v40 = vsub.f32 %v15197_v3, %v15279_v11 }
 0x1d8   :  { %v15431_v51 = vsub.f32 %v15202_v9, %v15279_v11  ;;  %v15435_v57 = vsub.f32 %v15194_v0, %v15279_v11  ;;  %v15439_v48 = vsub.f32 %v15200_v8, %v15279_v11  ;;  %v15443_v56 = vsub.f32 %v15209_v19, %v15279_v11 }
 0x1d9   :  { %v15447_v3 = vsub.f32 %v15214_v25, %v15279_v11  ;;  %v15451_v9 = vsub.f32 %v15206_v16, %v15279_v11  ;;  %v15455_v0 = vsub.f32 %v15212_v24, %v15279_v11  ;;  %v15459_v8 = vsub.f32 %v15221_v36, %v15279_v11 }
 0x1da   :  { %v15463_v19 = vsub.f32 %v15226_v43, %v15279_v11  ;;  %v15467_v25 = vsub.f32 %v15218_v32, %v15279_v11  ;;  %v15471_v16 = vsub.f32 %v15224_v42, %v15279_v11  ;;  %v15475_v24 = vsub.f32 %v20735_v1, %v15279_v11  ;;  %v20746_v1 = vld [vmem:[#allocation22_spill] sm:$0xff] }
 0x1db   :  { %v15479_v36 = vsub.f32 %v20736_v53, %v15279_v11  ;;  %v15483_v43 = vsub.f32 %v20738_v17, %v15279_v11  ;;  %v15487_v32 = vsub.f32 %v20740_v5, %v15279_v11  ;;  %v15491_v42 = vsub.f32 %v20742_v21, %v15279_v11 }
 0x1dc   :  { %v15495_v33 = vsub.f32 %v20744_v29, %v15279_v11  ;;  %v15499_v53 = vsub.f32 %v20746_v1, %v15279_v11 }
 0x1dd   :  { %20737 = vst [vmem:[#allocation19_spill] sm:$0xff] %v15479_v36  ;;  %20739 = vst [vmem:[#allocation21_spill] sm:$0xff] %v15483_v43  ;;  %v20748_v36 = vld [vmem:[#allocation24_spill] sm:$0xff]  ;;  %v20749_v43 = vld [vmem:[#allocation27_spill] sm:$0xff] }
 0x1de   :  { %20741 = vst [vmem:[#allocation18_spill] sm:$0xff] %v15487_v32  ;;  %20743 = vst [vmem:[#allocation20_spill] sm:$0xff] %v15491_v42  ;;  %v15503_v17 = vsub.f32 %v20748_v36, %v15279_v11  ;;  %v15507_v5 = vsub.f32 %v20749_v43, %v15279_v11  ;;  %v20750_v32 = vld [vmem:[#allocation29_spill] sm:$0xff]  ;;  %v20751_v42 = vld [vmem:[#allocation26_spill] sm:$0xff]  ;;  %v15527_v43 = vsub.f32 %v15274_v27, %v15279_v11 }
 0x1df   :  { %20745 = vst [vmem:[#allocation23_spill] sm:$0xff] %v15495_v33  ;;  %20747 = vst [vmem:[#allocation25_spill] sm:$0xff] %v15499_v53  ;;  %v15511_v21 = vsub.f32 %v20750_v32, %v15279_v11  ;;  %v15515_v29 = vsub.f32 %v20751_v42, %v15279_v11  ;;  %v20752_v33 = vld [vmem:[#allocation28_spill] sm:$0xff]  ;;  %v20754_v53 = vld [vmem:[#allocation30_spill] sm:$0xff]  ;;  %v15531_v32 = vsub.f32 %v15266_v13, %v15279_v11 }
 0x1e0   :  { %v15519_v1 = vsub.f32 %v20752_v33, %v15279_v11  ;;  %v15523_v36 = vsub.f32 %v20754_v53, %v15279_v11  ;;  %20756 = vst [vmem:[#allocation27_spill] sm:$0xff] %v15527_v43  ;;  %v15535_v42 = vsub.f32 %v15272_v49, %v15279_v11  ;;  %v822_v33 = vmul.f32 %v15283_v38, %v15283_v38  ;;  %v15544_v53 = vld [vmem:[%s20586_s4] ss:$0 sm:$0xff] }
 0x1e1   :  { %v824_v27 = vmul.f32 %v15291_v34, %v15291_v34  ;;  %v825_v13 = vmul.f32 %v15295_v59, %v15295_v59  ;;  %v826_v11 = vmul.f32 %v15299_v39, %v15299_v39  ;;  %v827_v49 = vmul.f32 %v15303_v45, %v15303_v45 }
 0x1e2   :  { %20753 = vst [vmem:[#allocation22_spill] sm:$0xff] %v15519_v1  ;;  %20755 = vst [vmem:[#allocation24_spill] sm:$0xff] %v15523_v36  ;;  %v823_v1 = vmul.f32 %v15287_v61, %v15287_v61  ;;  %v828_v61 = vmul.f32 %v15307_v47, %v15307_v47  ;;  %v829_v43 = vmul.f32 %v15311_v44, %v15311_v44 }
 0x1e3   :  { %20757 = vst [vmem:[#allocation29_spill] sm:$0xff] %v15535_v42  ;;  %v830_v36 = vmul.f32 %v15315_v46, %v15315_v46  ;;  %v831_v34 = vmul.f32 %v15319_v52, %v15319_v52  ;;  %v15564_v59 = vmul.f32 %v15323_v55, %v15323_v55  ;;  %v15576_v45 = vmul.f32 %v15544_v53, %v15315_v46 }
 0x1e4   :  { %v886_v38 = vadd.f32 %v823_v1, %v822_v33  ;;  %v15568_v1 = vmul.f32 %v15544_v53, %v15307_v47  ;;  %v15572_v33 = vmul.f32 %v15544_v53, %v15311_v44  ;;  %v15580_v42 = vmul.f32 %v15544_v53, %v15319_v52 }
 0x1e5   :  { %20758 = vst [vmem:[#allocation26_spill] sm:$0xff] %v15564_v59  ;;  %20761 = vst [vmem:[#allocation37_spill] sm:$0xff] %v15576_v45  ;;  %v15584_v59 = vmul.f32 %v15544_v53, %v15323_v55  ;;  %v15592_v44 = vmul.f32 %v15544_v53, %v15331_v54  ;;  %v15596_v46 = vmul.f32 %v15544_v53, %v15335_v60 }
 0x1e6   :  { %v887_v39 = vadd.f32 %v886_v38, %v824_v27  ;;  %20759 = vst [vmem:[#allocation28_spill] sm:$0xff] %v15568_v1  ;;  %20760 = vst [vmem:[#allocation30_spill] sm:$0xff] %v15572_v33  ;;  %v15588_v38 = vmul.f32 %v15544_v53, %v15327_v50  ;;  %v15600_v52 = vmul.f32 %v15544_v53, %v15339_v63  ;;  %v1427_v1 = vld [vmem:[#allocation2 + $0x194] sm:$0x1] }
 0x1e7   :  { %20762 = vst [vmem:[#allocation38_spill] sm:$0xff] %v15580_v42  ;;  %20763 = vst [vmem:[#allocation39_spill] sm:$0xff] %v15584_v59  ;;  %v15604_v55 = vmul.f32 %v15544_v53, %v15343_v58  ;;  %v15608_v27 = vmul.f32 %v15544_v53, %v15347_v62 }
 0x1e8   :  { %20764 = vst [vmem:[#allocation40_spill] sm:$0xff] %v15588_v38  ;;  %v888_v47 = vadd.f32 %v887_v39, %v825_v13  ;;  %20765 = vst [vmem:[#allocation41_spill] sm:$0xff] %v15592_v44  ;;  %v15612_v39 = vmul.f32 %v15544_v53, %v15351_v4  ;;  %v15616_v13 = vmul.f32 %v15544_v53, %v15355_v7  ;;  %v20812_v44 = vld [vmem:[#allocation25_spill] sm:$0xff] }
 0x1e9   :  { %20766 = vst [vmem:[#allocation42_spill] sm:$0xff] %v15596_v46  ;;  %20767 = vst [vmem:[#allocation43_spill] sm:$0xff] %v15600_v52  ;;  %v15620_v52 = vmul.f32 %v15544_v53, %v15359_v2 }
 0x1ea   :  { %20768 = vst [vmem:[#allocation44_spill] sm:$0xff] %v15604_v55  ;;  %20769 = vst [vmem:[#allocation45_spill] sm:$0xff] %v15608_v27  ;;  %v889_v46 = vadd.f32 %v888_v47, %v826_v11  ;;  %v15624_v55 = vmul.f32 %v15544_v53, %v15363_v6  ;;  %v15628_v27 = vmul.f32 %v15544_v53, %v15367_v12  ;;  %v20822_v59 = vld [vmem:[#allocation29_spill] sm:$0xff] }
 0x1eb   :  { %20770 = vst [vmem:[#allocation46_spill] sm:$0xff] %v15612_v39  ;;  %20771 = vst [vmem:[#allocation47_spill] sm:$0xff] %v15616_v13  ;;  %v15632_v39 = vmul.f32 %v15544_v53, %v15371_v15  ;;  %v15636_v13 = vmul.f32 %v15544_v53, %v15375_v10  ;;  %v15640_v11 = vmul.f32 %v15544_v53, %v15379_v14 }
 0x1ec   :  { %20772 = vst [vmem:[#allocation48_spill] sm:$0xff] %v15620_v52  ;;  %20773 = vst [vmem:[#allocation49_spill] sm:$0xff] %v15624_v55  ;;  %v15644_v47 = vmul.f32 %v15544_v53, %v15383_v20  ;;  %v890_v55 = vadd.f32 %v889_v46, %v827_v49  ;;  %v15668_v49 = vmul.f32 %v15544_v53, %v15407_v26 }
 0x1ed   :  { %20774 = vst [vmem:[#allocation50_spill] sm:$0xff] %v15628_v27  ;;  %20775 = vst [vmem:[#allocation51_spill] sm:$0xff] %v15632_v39  ;;  %v15648_v27 = vmul.f32 %v15544_v53, %v15387_v23  ;;  %v15652_v39 = vmul.f32 %v15544_v53, %v15391_v18  ;;  %v15672_v46 = vmul.f32 %v15544_v53, %v15411_v30 }
 0x1ee   :  { %20776 = vst [vmem:[#allocation52_spill] sm:$0xff] %v15636_v13  ;;  %20777 = vst [vmem:[#allocation53_spill] sm:$0xff] %v15640_v11  ;;  %v15656_v13 = vmul.f32 %v15544_v53, %v15395_v22  ;;  %v15660_v11 = vmul.f32 %v15544_v53, %v15399_v28 }
 0x1ef   :  { %20778 = vst [vmem:[#allocation54_spill] sm:$0xff] %v15644_v47  ;;  %20779 = vst [vmem:[#allocation55_spill] sm:$0xff] %v15648_v27  ;;  %v15664_v47 = vmul.f32 %v15544_v53, %v15403_v31  ;;  %v20806_v27 = vld [vmem:[#allocation18_spill] sm:$0xff] }
 0x1f0   :  { %20780 = vst [vmem:[#allocation56_spill] sm:$0xff] %v15652_v39  ;;  %20781 = vst [vmem:[#allocation57_spill] sm:$0xff] %v15656_v13  ;;  %v891_v39 = vadd.f32 %v890_v55, %v828_v61  ;;  %v15676_v13 = vmul.f32 %v15544_v53, %v15415_v37  ;;  %v15696_v61 = vmul.f32 %v15544_v53, %v15435_v57 }
 0x1f1   :  { %20782 = vst [vmem:[#allocation58_spill] sm:$0xff] %v15660_v11  ;;  %20783 = vst [vmem:[#allocation59_spill] sm:$0xff] %v15664_v47  ;;  %v15680_v11 = vmul.f32 %v15544_v53, %v15419_v41  ;;  %v15684_v47 = vmul.f32 %v15544_v53, %v15423_v35  ;;  %v15700_v55 = vmul.f32 %v15544_v53, %v15439_v48 }
 0x1f2   :  { %20784 = vst [vmem:[#allocation60_spill] sm:$0xff] %v15668_v49  ;;  %20785 = vst [vmem:[#allocation61_spill] sm:$0xff] %v15672_v46  ;;  %v15688_v49 = vmul.f32 %v15544_v53, %v15427_v40  ;;  %v15692_v46 = vmul.f32 %v15544_v53, %v15431_v51 }
 0x1f3   :  { %20786 = vst [vmem:[#allocation62_spill] sm:$0xff] %v15676_v13  ;;  %20787 = vst [vmem:[#allocation63_spill] sm:$0xff] %v15680_v11  ;;  %v892_v11 = vadd.f32 %v891_v39, %v829_v43  ;;  %v15724_v43 = vmul.f32 %v15544_v53, %v15463_v19  ;;  %v15728_v39 = vmul.f32 %v15544_v53, %v15467_v25  ;;  %v20804_v13 = vld [vmem:[#allocation21_spill] sm:$0xff] }
 0x1f4   :  { %20788 = vst [vmem:[#allocation64_spill] sm:$0xff] %v15684_v47  ;;  %20789 = vst [vmem:[#allocation65_spill] sm:$0xff] %v15688_v49  ;;  %v15704_v47 = vmul.f32 %v15544_v53, %v15443_v56  ;;  %v15708_v49 = vmul.f32 %v15544_v53, %v15447_v3 }
 0x1f5   :  { %20790 = vst [vmem:[#allocation66_spill] sm:$0xff] %v15692_v46  ;;  %20791 = vst [vmem:[#allocation67_spill] sm:$0xff] %v15696_v61  ;;  %v15712_v46 = vmul.f32 %v15544_v53, %v15451_v9  ;;  %v15716_v61 = vmul.f32 %v15544_v53, %v15455_v0 }
 0x1f6   :  { %20792 = vst [vmem:[#allocation68_spill] sm:$0xff] %v15700_v55  ;;  %20793 = vst [vmem:[#allocation69_spill] sm:$0xff] %v15704_v47  ;;  %v15720_v55 = vmul.f32 %v15544_v53, %v15459_v8  ;;  %v20802_v47 = vld [vmem:[#allocation19_spill] sm:$0xff] }
 0x1f7   :  { %20794 = vst [vmem:[#allocation70_spill] sm:$0xff] %v15708_v49  ;;  %20795 = vst [vmem:[#allocation71_spill] sm:$0xff] %v15712_v46  ;;  %v893_v49 = vadd.f32 %v892_v11, %v830_v36  ;;  %v15732_v46 = vmul.f32 %v15544_v53, %v15471_v16  ;;  %v20808_v36 = vld [vmem:[#allocation20_spill] sm:$0xff] }
 0x1f8   :  { %20796 = vst [vmem:[#allocation72_spill] sm:$0xff] %v15716_v61  ;;  %20797 = vst [vmem:[#allocation73_spill] sm:$0xff] %v15720_v55  ;;  %v15736_v61 = vmul.f32 %v15544_v53, %v15475_v24  ;;  %v15740_v55 = vmul.f32 %v15544_v53, %v20802_v47  ;;  %v15752_v11 = vmul.f32 %v15544_v53, %v20808_v36 }
 0x1f9   :  { %20798 = vst [vmem:[#allocation74_spill] sm:$0xff] %v15724_v43  ;;  %20799 = vst [vmem:[#allocation75_spill] sm:$0xff] %v15728_v39  ;;  %v15744_v43 = vmul.f32 %v15544_v53, %v20804_v13  ;;  %v15748_v39 = vmul.f32 %v15544_v53, %v20806_v27 }
 0x1fa   :  { %20800 = vst [vmem:[#allocation76_spill] sm:$0xff] %v15732_v46  ;;  %20801 = vst [vmem:[#allocation77_spill] sm:$0xff] %v15736_v61  ;;  %v20810_v46 = vld [vmem:[#allocation23_spill] sm:$0xff]  ;;  %v894_v61 = vadd.f32 %v893_v49, %v831_v34  ;;  %v20818_v34 = vld [vmem:[#allocation22_spill] sm:$0xff] }
 0x1fb   :  { %20803 = vst [vmem:[#allocation19_spill] sm:$0xff] %v15740_v55  ;;  %20805 = vst [vmem:[#allocation21_spill] sm:$0xff] %v15744_v43  ;;  %v15756_v52 = vmul.f32 %v15544_v53, %v20810_v46  ;;  %v15760_v55 = vmul.f32 %v15544_v53, %v20812_v44  ;;  %v15764_v43 = vmul.f32 %v15544_v53, %v15503_v17 }
 0x1fc   :  { %20807 = vst [vmem:[#allocation18_spill] sm:$0xff] %v15748_v39  ;;  %20809 = vst [vmem:[#allocation20_spill] sm:$0xff] %v15752_v11  ;;  %v15768_v39 = vmul.f32 %v15544_v53, %v15507_v5  ;;  %v15772_v11 = vmul.f32 %v15544_v53, %v15511_v21  ;;  %v15780_v49 = vmul.f32 %v15544_v53, %v20818_v34 }
 0x1fd   :  { %20811 = vst [vmem:[#allocation23_spill] sm:$0xff] %v15756_v52  ;;  %20813 = vst [vmem:[#allocation25_spill] sm:$0xff] %v15760_v55  ;;  %v15776_v52 = vmul.f32 %v15544_v53, %v15515_v29  ;;  %v15784_v55 = vmul.f32 %v15544_v53, %v15531_v32 }
 0x1fe   :  { %20814 = vst [vmem:[#allocation78_spill] sm:$0xff] %v15764_v43  ;;  %20815 = vst [vmem:[#allocation79_spill] sm:$0xff] %v15768_v39  ;;  %v833_v43 = vmul.f32 %v15327_v50, %v15327_v50  ;;  %v20821_v39 = vld [vmem:[#allocation26_spill] sm:$0xff]  ;;  %v837_v50 = vmul.f32 %v15343_v58, %v15343_v58  ;;  %v841_v58 = vmul.f32 %v15359_v2, %v15359_v2 }
 0x1ff   :  { %20816 = vst [vmem:[#allocation80_spill] sm:$0xff] %v15772_v11  ;;  %20817 = vst [vmem:[#allocation81_spill] sm:$0xff] %v15776_v52  ;;  %v895_v38 = vadd.f32 %v894_v61, %v20821_v39  ;;  %v15791_v11 = vmul.f32 %v15544_v53, %v20822_v59  ;;  %v834_v52 = vmul.f32 %v15331_v54, %v15331_v54 }
 0x200   :  { %20819 = vst [vmem:[#allocation22_spill] sm:$0xff] %v15780_v49  ;;  %20820 = vst [vmem:[#allocation82_spill] sm:$0xff] %v15784_v55  ;;  %v835_v49 = vmul.f32 %v15335_v60, %v15335_v60  ;;  %v836_v55 = vmul.f32 %v15339_v63, %v15339_v63  ;;  %v838_v39 = vmul.f32 %v15347_v62, %v15347_v62  ;;  %v1428_v60 = vsel %vm14961_vm4, 0, %v1427_v1 }
 0x201   :  { %20823 = vst [vmem:[#allocation26_spill] sm:$0xff] %v15791_v11  ;;  %v896_v42 = vadd.f32 %v895_v38, %v833_v43  ;;  %v839_v54 = vmul.f32 %v15351_v4, %v15351_v4  ;;  %1429 = vst [vmem:[#allocation2 + $0x194] sm:$0x1] %v1428_v60  ;;  %v842_v62 = vmul.f32 %v15363_v6, %v15363_v6 }
 0x202   :  { %v843_v4 = vmul.f32 %v15367_v12, %v15367_v12  ;;  %v844_v1 = vmul.f32 %v15371_v15, %v15371_v15  ;;  %v846_v2 = vmul.f32 %v15379_v14, %v15379_v14  ;;  %v847_v6 = vmul.f32 %v15383_v20, %v15383_v20 }
 0x203   :  { %v897_v45 = vadd.f32 %v896_v42, %v834_v52  ;;  %v848_v12 = vmul.f32 %v15387_v23, %v15387_v23  ;;  %v849_v15 = vmul.f32 %v15391_v18, %v15391_v18  ;;  %v851_v14 = vmul.f32 %v15399_v28, %v15399_v28 }
 0x204   :  { %v852_v20 = vmul.f32 %v15403_v31, %v15403_v31  ;;  %v853_v23 = vmul.f32 %v15407_v26, %v15407_v26  ;;  %v854_v18 = vmul.f32 %v15411_v30, %v15411_v30  ;;  %v856_v28 = vmul.f32 %v15419_v41, %v15419_v41 }
 0x205   :  { %v898_v33 = vadd.f32 %v897_v45, %v835_v49  ;;  %v840_v45 = vmul.f32 %v15355_v7, %v15355_v7  ;;  %v845_v7 = vmul.f32 %v15375_v10, %v15375_v10  ;;  %v850_v10 = vmul.f32 %v15395_v22, %v15395_v22 }
 0x206   :  { %v855_v22 = vmul.f32 %v15415_v37, %v15415_v37  ;;  %v857_v31 = vmul.f32 %v15423_v35, %v15423_v35  ;;  %v858_v26 = vmul.f32 %v15427_v40, %v15427_v40  ;;  %v859_v30 = vmul.f32 %v15431_v51, %v15431_v51 }
 0x207   :  { %v899_v61 = vadd.f32 %v898_v33, %v836_v55  ;;  %v860_v37 = vmul.f32 %v15435_v57, %v15435_v57  ;;  %v861_v41 = vmul.f32 %v15439_v48, %v15439_v48  ;;  %v862_v35 = vmul.f32 %v15443_v56, %v15443_v56 }
 0x208   :  { %v863_v40 = vmul.f32 %v15447_v3, %v15447_v3  ;;  %v864_v51 = vmul.f32 %v15451_v9, %v15451_v9  ;;  %v865_v57 = vmul.f32 %v15455_v0, %v15455_v0  ;;  %v866_v48 = vmul.f32 %v15459_v8, %v15459_v8 }
 0x209   :  { %v900_v11 = vadd.f32 %v899_v61, %v837_v50  ;;  %v867_v56 = vmul.f32 %v15463_v19, %v15463_v19  ;;  %v868_v3 = vmul.f32 %v15467_v25, %v15467_v25  ;;  %v869_v9 = vmul.f32 %v15471_v16, %v15471_v16 }
 0x20a   :  { %v870_v0 = vmul.f32 %v15475_v24, %v15475_v24  ;;  %v871_v8 = vmul.f32 %v20802_v47, %v20802_v47  ;;  %v872_v19 = vmul.f32 %v20804_v13, %v20804_v13  ;;  %v873_v25 = vmul.f32 %v20806_v27, %v20806_v27 }
 0x20b   :  { %v901_v38 = vadd.f32 %v900_v11, %v838_v39  ;;  %v874_v16 = vmul.f32 %v20808_v36, %v20808_v36  ;;  %v875_v24 = vmul.f32 %v20810_v46, %v20810_v46  ;;  %v876_v47 = vmul.f32 %v20812_v44, %v20812_v44 }
 0x20c   :  { %v877_v13 = vmul.f32 %v15503_v17, %v15503_v17  ;;  %v878_v27 = vmul.f32 %v15507_v5, %v15507_v5  ;;  %v879_v36 = vmul.f32 %v15511_v21, %v15511_v21  ;;  %v880_v46 = vmul.f32 %v15515_v29, %v15515_v29 }
 0x20d   :  { %v902_v63 = vadd.f32 %v901_v38, %v839_v54  ;;  %v881_v44 = vmul.f32 %v20818_v34, %v20818_v34  ;;  %v884_v21 = vmul.f32 %v15531_v32, %v15531_v32  ;;  %v885_v29 = vmul.f32 %v20822_v59, %v20822_v59 }
 0x20f   :  { %v903_v42 = vadd.f32 %v902_v63, %v840_v45 }
 0x211   :  { %v904_v33 = vadd.f32 %v903_v42, %v841_v58 }
 0x213   :  { %v905_v52 = vadd.f32 %v904_v33, %v842_v62 }
 0x215   :  { %v906_v55 = vadd.f32 %v905_v52, %v843_v4 }
 0x217   :  { %v907_v11 = vadd.f32 %v906_v55, %v844_v1 }
 0x219   :  { %v908_v49 = vadd.f32 %v907_v11, %v845_v7 }
 0x21b   :  { %v909_v50 = vadd.f32 %v908_v49, %v846_v2 }
 0x21d   :  { %v910_v61 = vadd.f32 %v909_v50, %v847_v6 }
 0x21f   :  { %v911_v39 = vadd.f32 %v910_v61, %v848_v12 }
 0x221   :  { %v912_v54 = vadd.f32 %v911_v39, %v849_v15 }
 0x223   :  { %v913_v38 = vadd.f32 %v912_v54, %v850_v10 }
 0x225   :  { %v914_v43 = vadd.f32 %v913_v38, %v851_v14 }
 0x227   :  { %v915_v60 = vadd.f32 %v914_v43, %v852_v20 }
 0x229   :  { %v916_v45 = vadd.f32 %v915_v60, %v853_v23 }
 0x22b   :  { %v917_v63 = vadd.f32 %v916_v45, %v854_v18  ;;  %v20825_v18 = vld [vmem:[#allocation24_spill] sm:$0xff] }
 0x22c   :  { %v882_v17 = vmul.f32 %v20825_v18, %v20825_v18 }
 0x22d   :  { %v918_v58 = vadd.f32 %v917_v63, %v855_v22  ;;  %v20826_v22 = vld [vmem:[#allocation27_spill] sm:$0xff] }
 0x22e   :  { %v883_v5 = vmul.f32 %v20826_v22, %v20826_v22  ;;  %v1021_v32 = vmul.f32 %v15544_v53, %v20826_v22  ;;  %v20843_v22 = vld [vmem:[#allocation45_spill] sm:$0xff] }
 0x22f   :  { %v919_v42 = vadd.f32 %v918_v58, %v856_v28 }
 0x231   :  { %v920_v62 = vadd.f32 %v919_v42, %v857_v31 }
 0x233   :  { %v921_v33 = vadd.f32 %v920_v62, %v858_v26 }
 0x235   :  { %v922_v4 = vadd.f32 %v921_v33, %v859_v30 }
 0x237   :  { %v923_v52 = vadd.f32 %v922_v4, %v860_v37 }
 0x239   :  { %v924_v1 = vadd.f32 %v923_v52, %v861_v41  ;;  %v1020_v41 = vmul.f32 %v15544_v53, %v20825_v18  ;;  %v20827_v52 = vld [vmem:[#allocation31_spill] sm:$0xff] }
 0x23a   :  { %v960_v59 = vmul.f32 %v15544_v53, %v20827_v52 }
 0x23b   :  { %v925_v55 = vadd.f32 %v924_v1, %v862_v35  ;;  %v20828_v35 = vld [vmem:[#allocation32_spill] sm:$0xff] }
 0x23c   :  { %v961_v1 = vmul.f32 %v15544_v53, %v20828_v35 }
 0x23d   :  { %v926_v7 = vadd.f32 %v925_v55, %v863_v40  ;;  %v15912_v55 = vld [vmem:[%s20586_s4 + $0x1] ss:$0 sm:$0xff] }
 0x23f   :  { %v927_v11 = vadd.f32 %v926_v7, %v864_v51  ;;  %v20829_v51 = vld [vmem:[#allocation33_spill] sm:$0xff] }
 0x240   :  { %v962_v7 = vmul.f32 %v15544_v53, %v20829_v51  ;;  %v20852_v51 = vld [vmem:[#allocation53_spill] sm:$0xff] }
 0x241   :  { %v928_v2 = vadd.f32 %v927_v11, %v865_v57  ;;  %v20830_v57 = vld [vmem:[#allocation34_spill] sm:$0xff] }
 0x242   :  { %v963_v11 = vmul.f32 %v15544_v53, %v20830_v57  ;;  %v20853_v57 = vld [vmem:[#allocation54_spill] sm:$0xff] }
 0x243   :  { %v929_v49 = vadd.f32 %v928_v2, %v866_v48  ;;  %v20831_v48 = vld [vmem:[#allocation35_spill] sm:$0xff] }
 0x244   :  { %v964_v2 = vmul.f32 %v15544_v53, %v20831_v48  ;;  %v20854_v48 = vld [vmem:[#allocation55_spill] sm:$0xff] }
 0x245   :  { %v930_v6 = vadd.f32 %v929_v49, %v867_v56  ;;  %v20832_v56 = vld [vmem:[#allocation36_spill] sm:$0xff] }
 0x246   :  { %v965_v49 = vmul.f32 %v15544_v53, %v20832_v56  ;;  %v20855_v56 = vld [vmem:[#allocation56_spill] sm:$0xff] }
 0x247   :  { %v931_v50 = vadd.f32 %v930_v6, %v868_v3 }
 0x249   :  { %v932_v12 = vadd.f32 %v931_v50, %v869_v9 }
 0x24b   :  { %v933_v61 = vadd.f32 %v932_v12, %v870_v0 }
 0x24d   :  { %v934_v15 = vadd.f32 %v933_v61, %v871_v8 }
 0x24f   :  { %v935_v39 = vadd.f32 %v934_v15, %v872_v19  ;;  %v20833_v15 = vld [vmem:[#allocation28_spill] sm:$0xff] }
 0x251   :  { %v936_v10 = vadd.f32 %v935_v39, %v873_v25  ;;  %v20834_v39 = vld [vmem:[#allocation30_spill] sm:$0xff] }
 0x253   :  { %v937_v54 = vadd.f32 %v936_v10, %v874_v16  ;;  %v20835_v10 = vld [vmem:[#allocation37_spill] sm:$0xff] }
 0x255   :  { %v938_v14 = vadd.f32 %v937_v54, %v875_v24  ;;  %v20836_v54 = vld [vmem:[#allocation38_spill] sm:$0xff] }
 0x257   :  { %v939_v38 = vadd.f32 %v938_v14, %v876_v47  ;;  %v20837_v14 = vld [vmem:[#allocation39_spill] sm:$0xff] }
 0x259   :  { %v940_v20 = vadd.f32 %v939_v38, %v877_v13  ;;  %v20838_v38 = vld [vmem:[#allocation40_spill] sm:$0xff] }
 0x25b   :  { %v941_v43 = vadd.f32 %v940_v20, %v878_v27 }
 0x25d   :  { %v942_v23 = vadd.f32 %v941_v43, %v879_v36  ;;  %v20839_v43 = vld [vmem:[#allocation41_spill] sm:$0xff] }
 0x25f   :  { %v943_v60 = vadd.f32 %v942_v23, %v880_v46  ;;  %v20840_v23 = vld [vmem:[#allocation42_spill] sm:$0xff] }
 0x261   :  { %v944_v45 = vadd.f32 %v943_v60, %v881_v44  ;;  %v20841_v60 = vld [vmem:[#allocation43_spill] sm:$0xff] }
 0x263   :  { %v945_v63 = vadd.f32 %v944_v45, %v882_v17  ;;  %v20842_v17 = vld [vmem:[#allocation44_spill] sm:$0xff] }
 0x265   :  { %v946_v28 = vadd.f32 %v945_v63, %v883_v5  ;;  %v20844_v63 = vld [vmem:[#allocation46_spill] sm:$0xff] }
 0x267   :  { %v947_v58 = vadd.f32 %v946_v28, %v884_v21 }
 0x269   :  { %v948_v31 = vadd.f32 %v947_v58, %v885_v29  ;;  %v20846_v58 = vld [vmem:[#allocation47_spill] sm:$0xff] }
 0x26b   :  { %v949_v42 = vrot.slane %v948_v31, 4 }
 0x26d   :  { %v950_v34 = vadd.f32 %v949_v42, %v948_v31  ;;  %v20847_v42 = vld [vmem:[#allocation48_spill] sm:$0xff] }
 0x26f   :  { %v951_v26 = vrot.slane %v950_v34, 2 }
 0x271   :  { %v952_v62 = vadd.f32 %v951_v26, %v950_v34  ;;  %v20848_v26 = vld [vmem:[#allocation49_spill] sm:$0xff] }
 0x273   :  { %v953_v30 = vrot.slane %v952_v62, 1 }
 0x275   :  { %v954_v33 = vadd.f32 %v953_v30, %v952_v62  ;;  %v20849_v30 = vld [vmem:[#allocation50_spill] sm:$0xff] }
 0x277   :  { %v955_v37 = vmul.f32 0.001953125, %v954_v33 }
 0x279   :  { %v1024_v4 = vadd.f32 1e-05, %v955_v37  ;;  %v20850_v37 = vld [vmem:[#allocation51_spill] sm:$0xff] }
 0x27b   :  { %14526 = vrsqrt.f32 %v1024_v4 }
 0x285   :  { %v15907_v40 = vpop.eup %14526 }
 0x286   :  { %v1086_v3 = vmul.f32 %v15907_v40, %v1020_v41  ;;  %v1087_v6 = vmul.f32 %v15907_v40, %v1021_v32  ;;  %v15925_v9 = vmul.f32 %v15907_v40, %v960_v59  ;;  %v15928_v50 = vmul.f32 %v15907_v40, %v961_v1  ;;  %v20851_v41 = vld [vmem:[#allocation52_spill] sm:$0xff] }
 0x287   :  { %v15931_v0 = vmul.f32 %v15907_v40, %v962_v7  ;;  %v15934_v12 = vmul.f32 %v15907_v40, %v963_v11  ;;  %v15937_v8 = vmul.f32 %v15907_v40, %v964_v2  ;;  %v15940_v53 = vmul.f32 %v15907_v40, %v965_v49  ;;  %v20886_v1 = vld [vmem:[#allocation20_spill] sm:$0xff] }
 0x288   :  { %v1154_v61 = vadd.f32 %v15912_v55, %v1086_v3  ;;  %v1155_v19 = vadd.f32 %v15912_v55, %v1087_v6  ;;  %v15946_v25 = vmul.f32 %v15907_v40, %v20833_v15  ;;  %v15950_v16 = vmul.f32 %v15907_v40, %v20834_v39  ;;  %v20858_v15 = vld [vmem:[#allocation58_spill] sm:$0xff] }
 0x289   :  { %v15954_v24 = vmul.f32 %v15907_v40, %v20835_v10  ;;  %v15958_v47 = vmul.f32 %v15907_v40, %v20836_v54  ;;  %v15962_v13 = vmul.f32 %v15907_v40, %v20837_v14  ;;  %v15966_v27 = vmul.f32 %v15907_v40, %v20838_v38  ;;  %v2483_v54 = vld [vmem:[#allocation2 + $0x194] sm:$0x1]  ;;  %v20862_v14 = vld [vmem:[#allocation59_spill] sm:$0xff] }
 0x28a   :  { %v1218_v20 = vmax.f32 %v1154_v61, 0.0  ;;  %v1219_v36 = vmax.f32 %v1155_v19, 0.0  ;;  %v15970_v46 = vmul.f32 %v15907_v40, %v20839_v43  ;;  %v15974_v44 = vmul.f32 %v15907_v40, %v20840_v23  ;;  %v20857_v61 = vld [vmem:[#allocation57_spill] sm:$0xff] }
 0x28b   :  { %v15978_v18 = vmul.f32 %v15907_v40, %v20841_v60  ;;  %v15982_v45 = vmul.f32 %v15907_v40, %v20842_v17  ;;  %v15986_v5 = vmul.f32 %v15907_v40, %v20843_v22  ;;  %v15990_v21 = vmul.f32 %v15907_v40, %v20844_v63  ;;  %v20864_v43 = vld [vmem:[#allocation61_spill] sm:$0xff]  ;;  %v20865_v60 = vld [vmem:[#allocation62_spill] sm:$0xff] }
 0x28c   :  { %v15992_v28 = vpack.c.bf16 %v1218_v20, %v1218_v20  ;;  %v12593_v29 = vpack.c.bf16 %v1219_v36, %v1219_v36  ;;  %v15996_v31 = vmul.f32 %v15907_v40, %v20846_v58  ;;  %v16000_v34 = vmul.f32 %v15907_v40, %v20847_v42  ;;  %v20863_v20 = vld [vmem:[#allocation60_spill] sm:$0xff]  ;;  %v20866_v58 = vld [vmem:[#allocation63_spill] sm:$0xff] }
 0x28d   :  { %v16004_v62 = vmul.f32 %v15907_v40, %v20848_v26  ;;  %v16008_v33 = vmul.f32 %v15907_v40, %v20849_v30  ;;  %v16012_v4 = vmul.f32 %v15907_v40, %v20850_v37  ;;  %v16016_v32 = vmul.f32 %v15907_v40, %v20851_v41  ;;  %v20867_v26 = vld [vmem:[#allocation64_spill] sm:$0xff]  ;;  %v20868_v37 = vld [vmem:[#allocation65_spill] sm:$0xff] }
 0x28e   :  { %20845 = vst [vmem:[#allocation29_spill] sm:$0xff] %v15992_v28  ;;  %v2138_v52 = vshrl.u32 %v15992_v28, 16  ;;  %v2146_v59 = vshrl.u32 %v12593_v29, 16  ;;  %v2149_v35 = vshll.u32 %v12593_v29, 16  ;;  %v16022_v7 = vmul.f32 %v15907_v40, %v20852_v51  ;;  %v20870_v51 = vld [vmem:[#allocation67_spill] sm:$0xff]  ;;  %v20890_v28 = vld [vmem:[#allocation25_spill] sm:$0xff] }
 0x28f   :  { %v16026_v11 = vmul.f32 %v15907_v40, %v20853_v57  ;;  %v16030_v2 = vmul.f32 %v15907_v40, %v20854_v48  ;;  %v16034_v49 = vmul.f32 %v15907_v40, %v20855_v56  ;;  %v16040_v19 = vmul.f32 %v15907_v40, %v20857_v61  ;;  %v20888_v48 = vld [vmem:[#allocation23_spill] sm:$0xff] }
 0x290   :  { %v16036_v3 = vrot.slane %v2138_v52, 7  ;;  %v2148_v6 = vrot.slane %v2146_v59, 7  ;;  %v16044_v39 = vmul.f32 %v15907_v40, %v20858_v15  ;;  %v20859_v10 = vmov 0  ;;  %v20869_v52 = vld [vmem:[#allocation66_spill] sm:$0xff]  ;;  %v20873_v15 = vld [vmem:[#allocation69_spill] sm:$0xff] }
 0x291   :  { %v20860_v10 = vsel %vm16048_vm6, 4294967295, %v20859_v10  ;;  %v16054_v38 = vmul.f32 %v15907_v40, %v20862_v14  ;;  %v16058_v36 = vmul.f32 %v15907_v40, %v20863_v20  ;;  %v16062_v23 = vmul.f32 %v15907_v40, %v20864_v43  ;;  %v20874_v20 = vld [vmem:[#allocation70_spill] sm:$0xff] }
 0x292   :  { %20856 = vst [vmem:[#allocation17_spill] sm:$0xff] %v16036_v3  ;;  %20861 = vst [vmem:[#allocation24_spill] sm:$0xff] %v20860_v10  ;;  %v16066_v17 = vmul.f32 %v15907_v40, %v20865_v60  ;;  %v2144_v22 = vrot.slane %v16036_v3, 4  ;;  %v2151_v63 = vor.u32 %v2149_v35, %v2148_v6  ;;  %v2153_v29 = vrot.slane %v2148_v6, 4  ;;  %v20872_v6 = vld [vmem:[#allocation68_spill] sm:$0xff]  ;;  %v20875_v60 = vld [vmem:[#allocation71_spill] sm:$0xff] }
 0x293   :  { %v16071_v42 = vmul.f32 %v15907_v40, %v20866_v58  ;;  %v16075_v30 = vmul.f32 %v15907_v40, %v20867_v26  ;;  %v16079_v41 = vmul.f32 %v15907_v40, %v20868_v37  ;;  %v16083_v59 = vmul.f32 %v15907_v40, %v20869_v52  ;;  %v20878_v26 = vld [vmem:[#allocation74_spill] sm:$0xff]  ;;  %v20879_v52 = vld [vmem:[#allocation75_spill] sm:$0xff] }
 0x294   :  { %v16087_v35 = vmul.f32 %v15907_v40, %v20870_v51  ;;  %v2152_v57 = vsel %vm16048_vm6, %v2144_v22, %v2151_v63  ;;  %v2484_v56 = vsel %vm14952_vm3, %v2153_v29, %v2483_v54  ;;  %v16095_v61 = vmul.f32 %v15907_v40, %v20872_v6  ;;  %v20876_v63 = vld [vmem:[#allocation72_spill] sm:$0xff]  ;;  %v20877_v29 = vld [vmem:[#allocation73_spill] sm:$0xff]  ;;  %v20892_v3 = vld [vmem:[#allocation78_spill] sm:$0xff] }
 0x295   :  { %v16099_v14 = vmul.f32 %v15907_v40, %v20873_v15  ;;  %2482 = vst [vmem:[#allocation2 + $0x190] sm:$0xf] %v2152_v57  ;;  %2485 = vst [vmem:[#allocation2 + $0x194] sm:$0x1] %v2484_v56  ;;  %v16103_v43 = vmul.f32 %v15907_v40, %v20874_v20  ;;  %v16107_v22 = vmul.f32 %v15907_v40, %v20875_v60  ;;  %v20880_v57 = vld [vmem:[#allocation76_spill] sm:$0xff]  ;;  %v20881_v6 = vld [vmem:[#allocation77_spill] sm:$0xff] }
 0x296   :  { %v16111_v54 = vmul.f32 %v15907_v40, %v20876_v63  ;;  %v16115_v58 = vmul.f32 %v15907_v40, %v20877_v29  ;;  %v16119_v37 = vmul.f32 %v15907_v40, %v20878_v26  ;;  %v16123_v51 = vmul.f32 %v15907_v40, %v20879_v52  ;;  %v20882_v20 = vld [vmem:[#allocation19_spill] sm:$0xff]  ;;  %v20883_v63 = vld [vmem:[#allocation21_spill] sm:$0xff]  ;;  %v20884_v26 = vld [vmem:[#allocation18_spill] sm:$0xff] }
 0x297   :  { %v16127_v56 = vmul.f32 %v15907_v40, %v20880_v57  ;;  %v16131_v15 = vmul.f32 %v15907_v40, %v20881_v6  ;;  %v16135_v60 = vmul.f32 %v15907_v40, %v20882_v20  ;;  %v16139_v29 = vmul.f32 %v15907_v40, %v20883_v63  ;;  %v20894_v10 = vld [vmem:[#allocation79_spill] sm:$0xff] }
 0x298   :  { %v16143_v52 = vmul.f32 %v15907_v40, %v20884_v26  ;;  %v16147_v57 = vmul.f32 %v15907_v40, %v20886_v1  ;;  %v16151_v6 = vmul.f32 %v15907_v40, %v20888_v48  ;;  %v16155_v20 = vmul.f32 %v15907_v40, %v20890_v28 }
 0x299   :  { %v16159_v63 = vmul.f32 %v15907_v40, %v20892_v3  ;;  %v16163_v26 = vmul.f32 %v15907_v40, %v20894_v10 }
 0x29a   :  { %20885 = vst [vmem:[#allocation27_spill] sm:$0xff] %v16143_v52  ;;  %20887 = vst [vmem:[#allocation31_spill] sm:$0xff] %v16147_v57  ;;  %v20895_v52 = vld [vmem:[#allocation80_spill] sm:$0xff]  ;;  %v20896_v57 = vld [vmem:[#allocation81_spill] sm:$0xff] }
 0x29b   :  { %20889 = vst [vmem:[#allocation32_spill] sm:$0xff] %v16151_v6  ;;  %20891 = vst [vmem:[#allocation33_spill] sm:$0xff] %v16155_v20  ;;  %v16167_v1 = vmul.f32 %v15907_v40, %v20895_v52  ;;  %v16171_v48 = vmul.f32 %v15907_v40, %v20896_v57  ;;  %v20897_v6 = vld [vmem:[#allocation22_spill] sm:$0xff]  ;;  %v16187_v52 = vadd.f32 %v15912_v55, %v15925_v9 }
 0x29c   :  { %20893 = vst [vmem:[#allocation34_spill] sm:$0xff] %v16159_v63  ;;  %v16175_v28 = vmul.f32 %v15907_v40, %v20897_v6  ;;  %v20898_v20 = vld [vmem:[#allocation82_spill] sm:$0xff]  ;;  %v16191_v57 = vadd.f32 %v15912_v55, %v15928_v50  ;;  %v16195_v6 = vadd.f32 %v15912_v55, %v15931_v0  ;;  %v16207_v9 = vadd.f32 %v15912_v55, %v15940_v53 }
 0x29d   :  { %v16179_v3 = vmul.f32 %v15907_v40, %v20898_v20  ;;  %v20899_v63 = vld [vmem:[#allocation26_spill] sm:$0xff]  ;;  %v16199_v20 = vadd.f32 %v15912_v55, %v15934_v12  ;;  %v16211_v50 = vadd.f32 %v15912_v55, %v15946_v25  ;;  %v16215_v0 = vadd.f32 %v15912_v55, %v15950_v16 }
 0x29e   :  { %v16183_v10 = vmul.f32 %v15907_v40, %v20899_v63  ;;  %v16203_v40 = vadd.f32 %v15912_v55, %v15937_v8  ;;  %v16219_v12 = vadd.f32 %v15912_v55, %v15954_v24  ;;  %v16223_v8 = vadd.f32 %v15912_v55, %v15958_v47  ;;  %v14358_v63 = vld [vmem:[#allocation8 + $0x40] sm:$0xff]  }
 0x29f   :  { %v16227_v53 = vadd.f32 %v15912_v55, %v15962_v13  ;;  %v16231_v25 = vadd.f32 %v15912_v55, %v15966_v27  ;;  %v16235_v16 = vadd.f32 %v15912_v55, %v15970_v46  ;;  %v16239_v24 = vadd.f32 %v15912_v55, %v15974_v44  ;;  %13076 = vmatprep.subr.bf16.mxu0 %v14358_v63 }
 0x2a0   :  { %v16243_v47 = vadd.f32 %v15912_v55, %v15978_v18  ;;  %v16247_v13 = vadd.f32 %v15912_v55, %v15982_v45  ;;  %v16251_v27 = vadd.f32 %v15912_v55, %v15986_v5  ;;  %v16255_v46 = vadd.f32 %v15912_v55, %v15990_v21  ;;  %13077 = vmatpush3.bf16.msra.mxu0 %v14358_v63 }
 0x2a1   :  { %20900 = vst [vmem:[#allocation35_spill] sm:$0xff] %v16235_v16  ;;  %v16259_v44 = vadd.f32 %v15912_v55, %v15996_v31  ;;  %v16263_v18 = vadd.f32 %v15912_v55, %v16000_v34  ;;  %v16267_v45 = vadd.f32 %v15912_v55, %v16004_v62  ;;  %v16271_v5 = vadd.f32 %v15912_v55, %v16008_v33 }
 0x2a2   :  { %v16275_v21 = vadd.f32 %v15912_v55, %v16012_v4  ;;  %v16279_v31 = vadd.f32 %v15912_v55, %v16016_v32  ;;  %v16283_v34 = vadd.f32 %v15912_v55, %v16022_v7  ;;  %v16287_v62 = vadd.f32 %v15912_v55, %v16026_v11 }
 0x2a3   :  { %20901 = vst [vmem:[#allocation36_spill] sm:$0xff] %v16267_v45  ;;  %20902 = vst [vmem:[#allocation28_spill] sm:$0xff] %v16271_v5  ;;  %v16291_v33 = vadd.f32 %v15912_v55, %v16030_v2  ;;  %v14359_v5 = vld [vmem:[#allocation8 + $0x100] sm:$0xff]   ;;  %v16295_v4 = vadd.f32 %v15912_v55, %v16034_v49  ;;  %v16299_v32 = vadd.f32 %v15912_v55, %v16040_v19  ;;  %v14368_v45 = vld [vmem:[#allocation8 + $0x68] sm:$0xff]  }
 0x2a4   :  { %v16303_v7 = vadd.f32 %v15912_v55, %v16044_v39  ;;  %v16307_v11 = vadd.f32 %v15912_v55, %v16054_v38  ;;  %v16311_v2 = vadd.f32 %v15912_v55, %v16058_v36  ;;  %v16315_v49 = vadd.f32 %v15912_v55, %v16062_v23  ;;  %13396 = vmatprep.subr.bf16.mxu1 %v14359_v5 }
 0x2a5   :  { %20903 = vst [vmem:[#allocation30_spill] sm:$0xff] %v16291_v33  ;;  %v16319_v19 = vadd.f32 %v15912_v55, %v16066_v17  ;;  %v16323_v39 = vadd.f32 %v15912_v55, %v16071_v42  ;;  %v16327_v38 = vadd.f32 %v15912_v55, %v16075_v30  ;;  %v16331_v36 = vadd.f32 %v15912_v55, %v16079_v41  ;;  %v14360_v42 = vld [vmem:[#allocation8 + $0x48] sm:$0xff]  }
 0x2a6   :  { %20904 = vst [vmem:[#allocation37_spill] sm:$0xff] %v16315_v49  ;;  %v16335_v23 = vadd.f32 %v15912_v55, %v16083_v59  ;;  %v16339_v17 = vadd.f32 %v15912_v55, %v16087_v35  ;;  %v16347_v30 = vadd.f32 %v15912_v55, %v16099_v14  ;;  %v16351_v41 = vadd.f32 %v15912_v55, %v16103_v43  ;;  %v14361_v35 = vld [vmem:[#allocation8 + $0x108] sm:$0xff]  }
 0x2a7   :  { %20905 = vst [vmem:[#allocation38_spill] sm:$0xff] %v16323_v39  ;;  %v16343_v39 = vadd.f32 %v15912_v55, %v16095_v61  ;;  %v16355_v59 = vadd.f32 %v15912_v55, %v16107_v22  ;;  %13397 = vmatpush3.bf16.msra.mxu1 %v14359_v5  ;;  %v16359_v63 = vadd.f32 %v15912_v55, %v16111_v54  ;;  %v20933_v33 = vmax.f32 %v16187_v52, 0.0 }
 0x2a8   :  { %20906 = vst [vmem:[#allocation39_spill] sm:$0xff] %v16339_v17  ;;  %20908 = vst [vmem:[#allocation41_spill] sm:$0xff] %v16351_v41  ;;  %v16363_v61 = vadd.f32 %v15912_v55, %v16115_v58  ;;  %v16367_v14 = vadd.f32 %v15912_v55, %v16119_v37  ;;  %v16371_v43 = vadd.f32 %v15912_v55, %v16123_v51  ;;  %13078 = vmatprep.subr.bf16.mxu0 %v14360_v42  ;;  %v20915_v51 = vld [vmem:[#allocation27_spill] sm:$0xff] }
 0x2a9   :  { %20907 = vst [vmem:[#allocation40_spill] sm:$0xff] %v16343_v39  ;;  %20909 = vst [vmem:[#allocation42_spill] sm:$0xff] %v16355_v59  ;;  %v16375_v22 = vadd.f32 %v15912_v55, %v16127_v56  ;;  %v16379_v54 = vadd.f32 %v15912_v55, %v16131_v15  ;;  %v16383_v58 = vadd.f32 %v15912_v55, %v16135_v60  ;;  %13398 = vmatprep.subr.bf16.mxu1 %v14361_v35 }
 0x2aa   :  { %20910 = vst [vmem:[#allocation43_spill] sm:$0xff] %v16371_v43  ;;  %v16387_v37 = vadd.f32 %v15912_v55, %v16139_v29  ;;  %v16391_v5 = vadd.f32 %v15912_v55, %v20915_v51  ;;  %v20916_v43 = vld [vmem:[#allocation31_spill] sm:$0xff]  ;;  %13079 = vmatpush3.bf16.msra.mxu0 %v14360_v42  ;;  %v14362_v29 = vld [vmem:[#allocation8 + $0x50] sm:$0xff]   ;;  %v16411_v51 = vadd.f32 %v15912_v55, %v16163_v26  ;;  %v20923_v16 = vld [vmem:[#allocation28_spill] sm:$0xff]  ;;  %v20935_v17 = vmax.f32 %v16195_v6, 0.0 }
 0x2ab   :  { %20911 = vst [vmem:[#allocation44_spill] sm:$0xff] %v16375_v22  ;;  %20912 = vst [vmem:[#allocation45_spill] sm:$0xff] %v16379_v54  ;;  %v16395_v56 = vadd.f32 %v15912_v55, %v20916_v43  ;;  %v20917_v22 = vld [vmem:[#allocation32_spill] sm:$0xff]  ;;  %v20918_v54 = vld [vmem:[#allocation33_spill] sm:$0xff]  ;;  %v16415_v43 = vadd.f32 %v15912_v55, %v16167_v1  ;;  %13399 = vmatpush3.bf16.msra.mxu1 %v14361_v35  ;;  %v16423_v42 = vadd.f32 %v15912_v55, %v16175_v28 }
 0x2ac   :  { %20913 = vst [vmem:[#allocation46_spill] sm:$0xff] %v16383_v58  ;;  %20914 = vst [vmem:[#allocation47_spill] sm:$0xff] %v16387_v37  ;;  %v16399_v15 = vadd.f32 %v15912_v55, %v20917_v22  ;;  %v16403_v60 = vadd.f32 %v15912_v55, %v20918_v54  ;;  %v20919_v37 = vld [vmem:[#allocation34_spill] sm:$0xff]  ;;  %v16419_v22 = vadd.f32 %v15912_v55, %v16171_v48  ;;  %13080 = vmatprep.subr.bf16.mxu0 %v14362_v29  ;;  %v14365_v28 = vld [vmem:[#allocation8 + $0x118] sm:$0xff]  }
 0x2ad   :  { %v16407_v58 = vadd.f32 %v15912_v55, %v20919_v37  ;;  %v14363_v54 = vld [vmem:[#allocation8 + $0x110] sm:$0xff]   ;;  %20921 = vst [vmem:[#allocation49_spill] sm:$0xff] %v16423_v42  ;;  %v16427_v37 = vadd.f32 %v15912_v55, %v16179_v3  ;;  %v16431_v26 = vadd.f32 %v15912_v55, %v16183_v10  ;;  %v14364_v10 = vld [vmem:[#allocation8 + $0x58] sm:$0xff]   ;;  %v20931_v41 = vmov %v16423_v42 }
 0x2ae   :  { %20920 = vst [vmem:[#allocation48_spill] sm:$0xff] %v16419_v22  ;;  %13400 = vmatprep.subr.bf16.mxu1 %v14363_v54  ;;  %13081 = vmatpush3.bf16.msra.mxu0 %v14362_v29  ;;  %v14367_v22 = vld [vmem:[#allocation8 + $0x120] sm:$0xff]   ;;  %v20924_v1 = vld [vmem:[#allocation38_spill] sm:$0xff]  ;;  %v16498_v35 = vpack.c.bf16 %v20933_v33, %v20933_v33  ;;  %v20934_v3 = vmax.f32 %v16191_v57, 0.0  ;;  %v16508_v55 = vpack.c.bf16 %v20935_v17, %v20935_v17  ;;  %v20936_v49 = vmax.f32 %v16199_v20, 0.0 }
 0x2af   :  { %20922 = vst [vmem:[#allocation50_spill] sm:$0xff] %v16427_v37  ;;  %13401 = vmatpush3.bf16.msra.mxu1 %v14363_v54  ;;  %13082 = vmatprep.subr.bf16.mxu0 %v14364_v10  ;;  %v14366_v54 = vld [vmem:[#allocation8 + $0x60] sm:$0xff]   ;;  %v20932_v59 = vmov %v16427_v37  ;;  %v20937_v52 = vmax.f32 %v16203_v40, 0.0  ;;  %v20938_v57 = vmax.f32 %v16207_v9, 0.0  ;;  %v20939_v6 = vmax.f32 %v16211_v50, 0.0  ;;  %v14373_v37 = vld [vmem:[#allocation8 + $0x138] sm:$0xff]  }
 0x2b0   :  { %13402 = vmatprep.subr.bf16.mxu1 %v14365_v28  ;;  %v20940_v20 = vmax.f32 %v16215_v0, 0.0  ;;  %v20941_v40 = vmax.f32 %v16219_v12, 0.0  ;;  %v20942_v9 = vmax.f32 %v16223_v8, 0.0  ;;  %v20943_v50 = vmax.f32 %v16227_v53, 0.0  ;;  %v20945_v12 = vld [vmem:[#allocation35_spill] sm:$0xff]  ;;  %v20980_v29 = vld [vmem:[#allocation40_spill] sm:$0xff] }
 0x2b1   :  { %v20925_v48 = vld [vmem:[#allocation43_spill] sm:$0xff]  ;;  %v16518_v33 = vpack.c.bf16 %v20937_v52, %v20937_v52  ;;  %v16528_v17 = vpack.c.bf16 %v20939_v6, %v20939_v6  ;;  %v20944_v0 = vmax.f32 %v16231_v25, 0.0  ;;  %v20946_v42 = vmax.f32 %v20945_v12, 0.0 }
 0x2b2   :  { %13083 = vmatpush3.bf16.msra.mxu0 %v14364_v10  ;;  %v14369_v10 = vld [vmem:[#allocation8 + $0x128] sm:$0xff]   ;;  %v16538_v52 = vpack.c.bf16 %v20941_v40, %v20941_v40  ;;  %v16548_v6 = vpack.c.bf16 %v20943_v50, %v20943_v50  ;;  %v20947_v8 = vmax.f32 %v16239_v24, 0.0  ;;  %v20948_v53 = vmax.f32 %v16243_v47, 0.0 }
 0x2b3   :  { %13403 = vmatpush3.bf16.msra.mxu1 %v14365_v28  ;;  %13084 = vmatprep.subr.bf16.mxu0 %v14366_v54  ;;  %v14370_v28 = vld [vmem:[#allocation8 + $0x70] sm:$0xff]   ;;  %v16558_v40 = vpack.c.bf16 %v20946_v42, %v20946_v42  ;;  %v20949_v25 = vmax.f32 %v16247_v13, 0.0  ;;  %v20951_v24 = vmax.f32 %v16255_v46, 0.0  ;;  %v20952_v47 = vmax.f32 %v16259_v44, 0.0 }
 0x2b4   :  { %13404 = vmatprep.subr.bf16.mxu1 %v14367_v22  ;;  %v16568_v50 = vpack.c.bf16 %v20948_v53, %v20948_v53  ;;  %v20953_v13 = vmax.f32 %v16263_v18, 0.0  ;;  %v20956_v46 = vmax.f32 %v20923_v16, 0.0  ;;  %v20957_v44 = vmax.f32 %v16275_v21, 0.0  ;;  %v20961_v21 = vld [vmem:[#allocation30_spill] sm:$0xff] }
 0x2b5   :  { %v20930_v39 = vld [vmem:[#allocation48_spill] sm:$0xff]  ;;  %v16583_v12 = vpack.c.bf16 %v20951_v24, %v20951_v24  ;;  %v20958_v18 = vmax.f32 %v16279_v31, 0.0  ;;  %v20960_v16 = vmax.f32 %v16287_v62, 0.0  ;;  %v20963_v31 = vmax.f32 %v16295_v4, 0.0 }
 0x2b6   :  { %13085 = vmatpush3.bf16.msra.mxu0 %v14366_v54  ;;  %v14371_v54 = vld [vmem:[#allocation8 + $0x130] sm:$0xff]   ;;  %v16608_v24 = vpack.c.bf16 %v20957_v44, %v20957_v44  ;;  %v20965_v62 = vmax.f32 %v16303_v7, 0.0  ;;  %v20967_v4 = vmax.f32 %v16311_v2, 0.0  ;;  %v20970_v7 = vmax.f32 %v16319_v19, 0.0 }
 0x2b7   :  { %13405 = vmatpush3.bf16.msra.mxu1 %v14367_v22  ;;  %13086 = vmatprep.subr.bf16.mxu0 %v14368_v45  ;;  %v16513_v22 = vpack.c.bf16 %v20936_v49, %v20936_v49  ;;  %v16533_v49 = vpack.c.bf16 %v20940_v20, %v20940_v20  ;;  %v16553_v20 = vpack.c.bf16 %v20944_v0, %v20944_v0  ;;  %v20950_v0 = vmax.f32 %v16251_v27, 0.0  ;;  %v20954_v27 = vld [vmem:[#allocation36_spill] sm:$0xff] }
 0x2b8   :  { %13406 = vmatprep.subr.bf16.mxu1 %v14369_v10  ;;  %v20955_v53 = vmax.f32 %v20954_v27, 0.0  ;;  %v20972_v2 = vmax.f32 %v16327_v38, 0.0  ;;  %v20975_v19 = vmax.f32 %v16335_v23, 0.0  ;;  %v20981_v38 = vmax.f32 %v20980_v29, 0.0 }
 0x2b9   :  { %v16578_v42 = vpack.c.bf16 %v20950_v0, %v20950_v0  ;;  %v16603_v0 = vpack.c.bf16 %v20956_v46, %v20956_v46  ;;  %v20962_v46 = vmax.f32 %v20961_v21, 0.0  ;;  %v20966_v21 = vmax.f32 %v16307_v11, 0.0 }
 0x2ba   :  { %13087 = vmatpush3.bf16.msra.mxu0 %v14368_v45  ;;  %v16503_v45 = vpack.c.bf16 %v20934_v3, %v20934_v3  ;;  %v16523_v3 = vpack.c.bf16 %v20938_v57, %v20938_v57  ;;  %v16543_v57 = vpack.c.bf16 %v20942_v9, %v20942_v9  ;;  %v16563_v9 = vpack.c.bf16 %v20947_v8, %v20947_v8 }
 0x2bb   :  { %13407 = vmatpush3.bf16.msra.mxu1 %v14369_v10  ;;  %13088 = vmatprep.subr.bf16.mxu0 %v14370_v28  ;;  %v14372_v10 = vld [vmem:[#allocation8 + $0x78] sm:$0xff]   ;;  %v16588_v8 = vpack.c.bf16 %v20952_v47, %v20952_v47  ;;  %v16613_v47 = vpack.c.bf16 %v20958_v18, %v20958_v18  ;;  %v16628_v44 = vpack.c.bf16 %v20962_v46, %v20962_v46  ;;  %v20971_v11 = vmax.f32 %v20924_v1, 0.0 }
 0x2bc   :  { %13408 = vmatprep.subr.bf16.mxu1 %v14371_v54  ;;  %v16633_v18 = vpack.c.bf16 %v20963_v31, %v20963_v31  ;;  %v16648_v46 = vpack.c.bf16 %v20966_v21, %v20966_v21  ;;  %v20988_v29 = vmax.f32 %v16359_v63, 0.0 }
 0x2bd   :  { %v16668_v21 = vpack.c.bf16 %v20971_v11, %v20971_v11 }
 0x2be   :  { %13089 = vmatpush3.bf16.msra.mxu0 %v14370_v28  ;;  %v16573_v28 = vpack.c.bf16 %v20949_v25, %v20949_v25  ;;  %v16598_v25 = vpack.c.bf16 %v20955_v53, %v20955_v53  ;;  %v16623_v53 = vpack.c.bf16 %v20960_v16, %v20960_v16  ;;  %v16643_v16 = vpack.c.bf16 %v20965_v62, %v20965_v62 }
 0x2bf   :  { %13409 = vmatpush3.bf16.msra.mxu1 %v14371_v54  ;;  %13090 = vmatprep.subr.bf16.mxu0 %v14372_v10  ;;  %v16593_v54 = vpack.c.bf16 %v20953_v13, %v20953_v13  ;;  %v20959_v13 = vmax.f32 %v16283_v34, 0.0  ;;  %v20964_v34 = vmax.f32 %v16299_v32, 0.0  ;;  %v20968_v32 = vld [vmem:[#allocation37_spill] sm:$0xff]  ;;  %v16663_v62 = vpack.c.bf16 %v20970_v7, %v20970_v7  ;;  %v20977_v7 = vld [vmem:[#allocation39_spill] sm:$0xff] }
 0x2c0   :  { %13410 = vmatprep.subr.bf16.mxu1 %v14373_v37  ;;  %v20969_v31 = vmax.f32 %v20968_v32, 0.0  ;;  %v20978_v1 = vmax.f32 %v20977_v7, 0.0 }
 0x2c1   :  { %v16618_v27 = vpack.c.bf16 %v20959_v13, %v20959_v13  ;;  %v16638_v13 = vpack.c.bf16 %v20964_v34, %v20964_v34 }
 0x2c2   :  { %13091 = vmatpush3.bf16.msra.mxu0 %v14372_v10  ;;  %v16653_v10 = vpack.c.bf16 %v20967_v4, %v20967_v4  ;;  %v16658_v34 = vpack.c.bf16 %v20969_v31, %v20969_v31  ;;  %v20973_v4 = vmax.f32 %v16331_v36, 0.0  ;;  %v16683_v31 = vpack.c.bf16 %v20975_v19, %v20975_v19 }
 0x2c3   :  { %13411 = vmatpush3.bf16.msra.mxu1 %v14373_v37  ;;  %v16673_v37 = vpack.c.bf16 %v20972_v2, %v20972_v2  ;;  %v16688_v11 = vpack.c.bf16 %v20978_v1, %v20978_v1  ;;  %v16693_v2 = vpack.c.bf16 %v20981_v38, %v20981_v38  ;;  %v20982_v36 = vmax.f32 %v16347_v30, 0.0 }
 0x2c4   :  { %v16678_v32 = vpack.c.bf16 %v20973_v4, %v20973_v4  ;;  %20976 = vst [vmem:[#allocation52_spill] sm:$0xff] %v16683_v31  ;;  %v20985_v31 = vld [vmem:[#allocation42_spill] sm:$0xff]  ;;  %v16713_v38 = vpack.c.bf16 %v20988_v29, %v20988_v29  ;;  %v20990_v30 = vmax.f32 %v16363_v61, 0.0 }
 0x2c5   :  { %20979 = vst [vmem:[#allocation53_spill] sm:$0xff] %v16688_v11  ;;  %v16698_v4 = vpack.c.bf16 %v20982_v36, %v20982_v36  ;;  %v20986_v7 = vmax.f32 %v20985_v31, 0.0  ;;  %v14374_v11 = vld [vmem:[#allocation8 + $0x140] sm:$0xff]   ;;  %v20994_v31 = vmax.f32 %v20925_v48, 0.0 }
 0x2c6   :  { %20974 = vst [vmem:[#allocation51_spill] sm:$0xff] %v16678_v32  ;;  %v20983_v32 = vld [vmem:[#allocation41_spill] sm:$0xff]  ;;  %20989 = vst [vmem:[#allocation55_spill] sm:$0xff] %v16713_v38  ;;  %v16718_v36 = vpack.c.bf16 %v20990_v30, %v20990_v30  ;;  %13476 = vmatprep.subr.bf16.mxu1 %v14374_v11 }
 0x2c7   :  { %v20984_v23 = vmax.f32 %v20983_v32, 0.0  ;;  %v16708_v1 = vpack.c.bf16 %v20986_v7, %v20986_v7  ;;  %v20992_v32 = vmax.f32 %v16367_v14, 0.0  ;;  %v16728_v7 = vpack.c.bf16 %v20994_v31, %v20994_v31  ;;  %v20997_v38 = vld [vmem:[#allocation45_spill] sm:$0xff] }
 0x2c8   :  { %20991 = vst [vmem:[#allocation56_spill] sm:$0xff] %v16718_v36  ;;  %v20998_v61 = vmax.f32 %v20997_v38, 0.0  ;;  %v20999_v36 = vld [vmem:[#allocation46_spill] sm:$0xff]  ;;  %v21004_v38 = vmax.f32 %v16395_v56, 0.0  ;;  %v21010_v56 = vmax.f32 %v16411_v51, 0.0  ;;  %v21018_v51 = vmax.f32 %v20932_v59, 0.0 }
 0x2c9   :  { %v16703_v19 = vpack.c.bf16 %v20984_v23, %v20984_v23  ;;  %20987 = vst [vmem:[#allocation54_spill] sm:$0xff] %v16708_v1  ;;  %v16723_v23 = vpack.c.bf16 %v20992_v32, %v20992_v32  ;;  %v20995_v1 = vld [vmem:[#allocation44_spill] sm:$0xff]  ;;  %v21000_v14 = vmax.f32 %v20999_v36, 0.0  ;;  %v21005_v36 = vmax.f32 %v16399_v15, 0.0 }
 0x2ca   :  { %v20996_v63 = vmax.f32 %v20995_v1, 0.0  ;;  %v16738_v30 = vpack.c.bf16 %v20998_v61, %v20998_v61  ;;  %v21003_v1 = vmax.f32 %v16391_v5, 0.0  ;;  %v16758_v61 = vpack.c.bf16 %v21004_v38, %v21004_v38 }
 0x2cb   :  { %20993 = vst [vmem:[#allocation57_spill] sm:$0xff] %v16723_v23  ;;  %v16743_v32 = vpack.c.bf16 %v21000_v14, %v21000_v14  ;;  %v21001_v23 = vld [vmem:[#allocation47_spill] sm:$0xff]  ;;  %v16763_v14 = vpack.c.bf16 %v21005_v36, %v21005_v36  ;;  %v21008_v5 = vmax.f32 %v16407_v58, 0.0  ;;  %v21012_v15 = vmax.f32 %v16415_v43, 0.0 }
 0x2cc   :  { %v16733_v29 = vpack.c.bf16 %v20996_v63, %v20996_v63  ;;  %v21002_v48 = vmax.f32 %v21001_v23, 0.0  ;;  %v16753_v63 = vpack.c.bf16 %v21003_v1, %v21003_v1  ;;  %v21006_v23 = vmax.f32 %v16403_v60, 0.0 }
 0x2cd   :  { %v16773_v11 = vpack.c.bf16 %v21008_v5, %v21008_v5  ;;  %v16778_v1 = vpack.c.bf16 %v21010_v56, %v21010_v56  ;;  %v16783_v38 = vpack.c.bf16 %v21012_v15, %v21012_v15  ;;  %v21014_v60 = vmax.f32 %v20930_v39, 0.0 }
 0x2ce   :  { %v16748_v31 = vpack.c.bf16 %v21002_v48, %v21002_v48  ;;  %v16768_v48 = vpack.c.bf16 %v21006_v23, %v21006_v23  ;;  %v21016_v58 = vmax.f32 %v20931_v41, 0.0  ;;  %v16798_v5 = vpack.c.bf16 %v21018_v51, %v21018_v51 }
 0x2cf   :  { %21009 = vst [vmem:[#allocation59_spill] sm:$0xff] %v16773_v11  ;;  %21011 = vst [vmem:[#allocation60_spill] sm:$0xff] %v16778_v1  ;;  %v16788_v36 = vpack.c.bf16 %v21014_v60, %v21014_v60  ;;  %v21020_v43 = vmax.f32 %v16431_v26, 0.0  ;;  %v1628_v39 = vshrl.u32 %v16498_v35, 16  ;;  %v1631_v15 = vshll.u32 %v16498_v35, 16 }
 0x2d0   :  { %21007 = vst [vmem:[#allocation58_spill] sm:$0xff] %v16768_v48  ;;  %21013 = vst [vmem:[#allocation61_spill] sm:$0xff] %v16783_v38  ;;  %v16793_v23 = vpack.c.bf16 %v21016_v58, %v21016_v58  ;;  %v1636_v60 = vshrl.u32 %v16503_v45, 16  ;;  %v1639_v41 = vshll.u32 %v16503_v45, 16  ;;  %v1645_v58 = vshrl.u32 %v16508_v55, 16 }
 0x2d1   :  { %21015 = vst [vmem:[#allocation62_spill] sm:$0xff] %v16788_v36  ;;  %21019 = vst [vmem:[#allocation64_spill] sm:$0xff] %v16798_v5  ;;  %v16803_v56 = vpack.c.bf16 %v21020_v43, %v21020_v43  ;;  %v1648_v59 = vshll.u32 %v16508_v55, 16  ;;  %v1653_v51 = vshrl.u32 %v16513_v22, 16  ;;  %v1656_v26 = vshll.u32 %v16513_v22, 16 }
 0x2d2   :  { %21017 = vst [vmem:[#allocation63_spill] sm:$0xff] %v16793_v23  ;;  %v1630_v23 = vrot.slane %v1628_v39, 7  ;;  %v16813_v5 = vrot.slane %v1636_v60, 7  ;;  %v1647_v43 = vrot.slane %v1645_v58, 7  ;;  %v1665_v35 = vshll.u32 %v16518_v33, 16 }
 0x2d3   :  { %21021 = vst [vmem:[#allocation65_spill] sm:$0xff] %v16803_v56  ;;  %v1662_v56 = vshrl.u32 %v16518_v33, 16  ;;  %v16819_v45 = vrot.slane %v1653_v51, 7  ;;  %v1670_v39 = vshrl.u32 %v16523_v3, 16  ;;  %v1673_v51 = vshll.u32 %v16523_v3, 16 }
 0x2d4   :  { %v16817_v36 = vor.u32 %v1631_v15, %v1630_v23  ;;  %v1634_v38 = vrot.slane %v1630_v23, 4  ;;  %v1641_v55 = vor.u32 %v1639_v41, %v16813_v5  ;;  %v16824_v11 = vor.u32 %v1648_v59, %v1647_v43  ;;  %v17259_v15 = vld [vmem:[#allocation2 + $0xc8] sm:$0x1] }
 0x2d5   :  { %v1651_v22 = vrot.slane %v1647_v43, 4  ;;  %v1658_v60 = vor.u32 %v1656_v26, %v16819_v45  ;;  %v1664_v48 = vrot.slane %v1662_v56, 7  ;;  %v16828_v33 = vrot.slane %v1670_v39, 7 }
 0x2d6   :  { %21022 = vst [vmem:[#allocation66_spill] sm:$0xff] %v16817_v36  ;;  %v1642_v23 = vsel %vm16048_vm6, %v1634_v38, %v1641_v55  ;;  %v1679_v36 = vshrl.u32 %v16528_v17, 16  ;;  %v1682_v41 = vshll.u32 %v16528_v17, 16  ;;  %v1687_v38 = vshrl.u32 %v16533_v49, 16 }
 0x2d7   :  { %v1659_v59 = vsel %vm16048_vm6, %v1651_v22, %v1658_v60  ;;  %v16837_v43 = vor.u32 %v1665_v35, %v1664_v48  ;;  %v1668_v26 = vrot.slane %v1664_v48, 4  ;;  %2272 = vst [vmem:[#allocation2 + $0x10] sm:$0xf] %v1642_v23  ;;  %v1675_v56 = vor.u32 %v1673_v51, %v16828_v33 }
 0x2d8   :  { %v1681_v39 = vrot.slane %v1679_v36, 7  ;;  %v1690_v3 = vshll.u32 %v16533_v49, 16  ;;  %2279 = vst [vmem:[#allocation2 + $0x1c] sm:$0xf] %v1659_v59  ;;  %v1696_v55 = vshrl.u32 %v16538_v52, 16  ;;  %v1699_v17 = vshll.u32 %v16538_v52, 16 }
 0x2d9   :  { %v1704_v22 = vshrl.u32 %v16543_v57, 16  ;;  %v1707_v35 = vshll.u32 %v16543_v57, 16  ;;  %v1676_v48 = vsel %vm16048_vm6, %v1668_v26, %v1675_v56  ;;  %v16851_v36 = vrot.slane %v1687_v38, 7 }
 0x2da   :  { %v16849_v60 = vor.u32 %v1682_v41, %v1681_v39  ;;  %v1685_v23 = vrot.slane %v1681_v39, 4  ;;  %v1698_v51 = vrot.slane %v1696_v55, 7  ;;  %v1713_v49 = vshrl.u32 %v16548_v6, 16  ;;  %2286 = vst [vmem:[#allocation2 + $0x28] sm:$0xf] %v1676_v48 }
 0x2db   :  { %v16853_v58 = vrot.slane %v1704_v22, 7  ;;  %v1716_v59 = vshll.u32 %v16548_v6, 16  ;;  %v1692_v52 = vor.u32 %v1690_v3, %v16851_v36  ;;  %v1721_v1 = vshrl.u32 %v16553_v20, 16 }
 0x2dc   :  { %v1724_v41 = vshll.u32 %v16553_v20, 16  ;;  %v16861_v26 = vor.u32 %v1699_v17, %v1698_v51  ;;  %v1702_v56 = vrot.slane %v1698_v51, 4  ;;  %v1715_v6 = vrot.slane %v1713_v49, 7 }
 0x2dd   :  { %v1709_v39 = vor.u32 %v1707_v35, %v16853_v58  ;;  %v1693_v55 = vsel %vm16048_vm6, %v1685_v23, %v1692_v52  ;;  %v16867_v22 = vrot.slane %v1721_v1, 7  ;;  %v1730_v3 = vshrl.u32 %v16558_v40, 16 }
 0x2de   :  { %v1733_v20 = vshll.u32 %v16558_v40, 16  ;;  %v1738_v17 = vshrl.u32 %v16563_v9, 16  ;;  %v1741_v51 = vshll.u32 %v16563_v9, 16  ;;  %2293 = vst [vmem:[#allocation2 + $0x34] sm:$0xf] %v1693_v55  ;;  %v16875_v35 = vor.u32 %v1716_v59, %v1715_v6 }
 0x2df   :  { %v1710_v48 = vsel %vm16048_vm6, %v1702_v56, %v1709_v39  ;;  %v1719_v38 = vrot.slane %v1715_v6, 4  ;;  %v1726_v23 = vor.u32 %v1724_v41, %v16867_v22  ;;  %v1732_v49 = vrot.slane %v1730_v3, 7 }
 0x2e0   :  { %2300 = vst [vmem:[#allocation2 + $0x40] sm:$0xf] %v1710_v48  ;;  %v16879_v52 = vrot.slane %v1738_v17, 7  ;;  %v1747_v56 = vshrl.u32 %v16568_v50, 16  ;;  %v1750_v40 = vshll.u32 %v16568_v50, 16  ;;  %v1755_v9 = vshrl.u32 %v16573_v28, 16 }
 0x2e1   :  { %v1727_v39 = vsel %vm16048_vm6, %v1719_v38, %v1726_v23  ;;  %v1758_v59 = vshll.u32 %v16573_v28, 16  ;;  %v1764_v55 = vshrl.u32 %v16578_v42, 16  ;;  %v16888_v41 = vor.u32 %v1733_v20, %v1732_v49 }
 0x2e2   :  { %v1736_v6 = vrot.slane %v1732_v49, 4  ;;  %v1743_v3 = vor.u32 %v1741_v51, %v16879_v52  ;;  %2307 = vst [vmem:[#allocation2 + $0x4c] sm:$0xf] %v1727_v39  ;;  %v1749_v17 = vrot.slane %v1747_v56, 7  ;;  %v16892_v1 = vrot.slane %v1755_v9, 7 }
 0x2e3   :  { %v1766_v50 = vrot.slane %v1764_v55, 7  ;;  %v1767_v38 = vshll.u32 %v16578_v42, 16  ;;  %v1772_v28 = vshrl.u32 %v16583_v12, 16  ;;  %v1775_v20 = vshll.u32 %v16583_v12, 16 }
 0x2e4   :  { %v1744_v23 = vsel %vm16048_vm6, %v1736_v6, %v1743_v3  ;;  %v1781_v49 = vshrl.u32 %v16588_v8, 16  ;;  %v16900_v57 = vor.u32 %v1750_v40, %v1749_v17  ;;  %v1753_v51 = vrot.slane %v1749_v17, 4 }
 0x2e5   :  { %v1760_v39 = vor.u32 %v1758_v59, %v16892_v1  ;;  %2314 = vst [vmem:[#allocation2 + $0x58] sm:$0xf] %v1744_v23  ;;  %v16904_v9 = vor.u32 %v1767_v38, %v1766_v50  ;;  %v1770_v42 = vrot.slane %v1766_v50, 4  ;;  %v16906_v55 = vrot.slane %v1772_v28, 7 }
 0x2e6   :  { %v1783_v6 = vrot.slane %v1781_v49, 7  ;;  %v1784_v12 = vshll.u32 %v16588_v8, 16  ;;  %v1789_v40 = vshrl.u32 %v16593_v54, 16  ;;  %v1792_v17 = vshll.u32 %v16593_v54, 16 }
 0x2e7   :  { %v1761_v3 = vsel %vm16048_vm6, %v1753_v51, %v1760_v39  ;;  %v1777_v59 = vor.u32 %v1775_v20, %v16906_v55  ;;  %v1798_v38 = vshrl.u32 %v16598_v25, 16  ;;  %v1801_v49 = vshll.u32 %v16598_v25, 16 }
 0x2e8   :  { %v1787_v23 = vrot.slane %v1783_v6, 4  ;;  %2321 = vst [vmem:[#allocation2 + $0x64] sm:$0xf] %v1761_v3  ;;  %v16916_v50 = vor.u32 %v1784_v12, %v1783_v6  ;;  %v16918_v28 = vrot.slane %v1789_v40, 7  ;;  %v1806_v8 = vshrl.u32 %v16603_v0, 16 }
 0x2e9   :  { %v1778_v51 = vsel %vm16048_vm6, %v1770_v42, %v1777_v59  ;;  %v1800_v54 = vrot.slane %v1798_v38, 7  ;;  %v1809_v20 = vshll.u32 %v16603_v0, 16  ;;  %v1815_v39 = vshrl.u32 %v16608_v24, 16 }
 0x2ea   :  { %v1794_v56 = vor.u32 %v1792_v17, %v16918_v28  ;;  %v16928_v6 = vrot.slane %v1806_v8, 7  ;;  %v1818_v12 = vshll.u32 %v16608_v24, 16  ;;  %2328 = vst [vmem:[#allocation2 + $0x70] sm:$0xf] %v1778_v51  ;;  %v1823_v42 = vshrl.u32 %v16613_v47, 16 }
 0x2eb   :  { %v16931_v25 = vor.u32 %v1801_v49, %v1800_v54  ;;  %v1804_v40 = vrot.slane %v1800_v54, 4  ;;  %v1817_v48 = vrot.slane %v1815_v39, 7  ;;  %v1826_v38 = vshll.u32 %v16613_v47, 16 }
 0x2ec   :  { %v1795_v0 = vsel %vm16048_vm6, %v1787_v23, %v1794_v56  ;;  %v1811_v59 = vor.u32 %v1809_v20, %v16928_v6  ;;  %v16941_v24 = vrot.slane %v1823_v42, 7  ;;  %v1832_v49 = vshrl.u32 %v16618_v27, 16 }
 0x2ed   :  { %v16939_v8 = vor.u32 %v1818_v12, %v1817_v48  ;;  %v1821_v3 = vrot.slane %v1817_v48, 4  ;;  %2335 = vst [vmem:[#allocation2 + $0x7c] sm:$0xf] %v1795_v0  ;;  %v1835_v54 = vshll.u32 %v16618_v27, 16  ;;  %v1840_v56 = vshrl.u32 %v16623_v53, 16 }
 0x2ee   :  { %v1812_v51 = vsel %vm16048_vm6, %v1804_v40, %v1811_v59  ;;  %v1843_v23 = vshll.u32 %v16623_v53, 16  ;;  %v1828_v20 = vor.u32 %v1826_v38, %v16941_v24  ;;  %v1834_v39 = vrot.slane %v1832_v49, 7 }
 0x2ef   :  { %v1849_v48 = vshrl.u32 %v16628_v44, 16  ;;  %2342 = vst [vmem:[#allocation2 + $0x88] sm:$0xf] %v1812_v51  ;;  %v16952_v12 = vrot.slane %v1840_v56, 7  ;;  %v1852_v42 = vshll.u32 %v16628_v44, 16  ;;  %v1857_v40 = vshrl.u32 %v16633_v18, 16 }
 0x2f0   :  { %v1860_v27 = vshll.u32 %v16633_v18, 16  ;;  %v1829_v0 = vsel %vm16048_vm6, %v1821_v3, %v1828_v20  ;;  %v16959_v53 = vor.u32 %v1835_v54, %v1834_v39  ;;  %v1838_v59 = vrot.slane %v1834_v39, 4 }
 0x2f1   :  { %v1851_v38 = vrot.slane %v1849_v48, 7  ;;  %v1845_v49 = vor.u32 %v1843_v23, %v16952_v12  ;;  %v16963_v51 = vrot.slane %v1857_v40, 7  ;;  %v1866_v56 = vshrl.u32 %v16638_v13, 16  ;;  %2349 = vst [vmem:[#allocation2 + $0x94] sm:$0xf] %v1829_v0 }
 0x2f2   :  { %v1869_v18 = vshll.u32 %v16638_v13, 16  ;;  %v1874_v3 = vshrl.u32 %v16643_v16, 16  ;;  %v1877_v40 = vshll.u32 %v16643_v16, 16  ;;  %v1886_v0 = vshll.u32 %v16648_v46, 16 }
 0x2f3   :  { %v16966_v44 = vor.u32 %v1852_v42, %v1851_v38  ;;  %v1855_v17 = vrot.slane %v1851_v38, 4  ;;  %v1846_v54 = vsel %vm16048_vm6, %v1838_v59, %v1845_v49  ;;  %v1862_v20 = vor.u32 %v1860_v27, %v16963_v51 }
 0x2f4   :  { %v1868_v39 = vrot.slane %v1866_v56, 7  ;;  %v16974_v48 = vrot.slane %v1874_v3, 7  ;;  %v1883_v42 = vshrl.u32 %v16648_v46, 16  ;;  %2356 = vst [vmem:[#allocation2 + $0xa0] sm:$0xf] %v1846_v54  ;;  %v1891_v27 = vshrl.u32 %v16653_v10, 16 }
 0x2f5   :  { %v1863_v13 = vsel %vm16048_vm6, %v1855_v17, %v1862_v20  ;;  %v1894_v16 = vshll.u32 %v16653_v10, 16  ;;  %v1900_v46 = vshrl.u32 %v16658_v34, 16  ;;  %v1903_v54 = vshll.u32 %v16658_v34, 16 }
 0x2f6   :  { %21024 = vst [vmem:[#allocation67_spill] sm:$0xff] %v16974_v48  ;;  %v16981_v38 = vor.u32 %v1869_v18, %v1868_v39  ;;  %v1872_v59 = vrot.slane %v1868_v39, 4  ;;  %v1879_v49 = vor.u32 %v1877_v40, %v16974_v48  ;;  %v1885_v3 = vrot.slane %v1883_v42, 7  ;;  %2363 = vst [vmem:[#allocation2 + $0xac] sm:$0xf] %v1863_v13 }
 0x2f7   :  { %v16987_v23 = vrot.slane %v1891_v27, 7  ;;  %v1908_v17 = vshrl.u32 %v16663_v62, 16  ;;  %v1911_v40 = vshll.u32 %v16663_v62, 16  ;;  %v1902_v13 = vrot.slane %v1900_v46, 7  ;;  %v17208_v48 = vld [vmem:[#allocation2 + $0x90] sm:$0xf] }
 0x2f8   :  { %v1880_v18 = vsel %vm16048_vm6, %v1872_v59, %v1879_v49  ;;  %v16994_v20 = vor.u32 %v1886_v0, %v1885_v3  ;;  %v1889_v39 = vrot.slane %v1885_v3, 4  ;;  %v1917_v34 = vshrl.u32 %v16668_v21, 16 }
 0x2f9   :  { %21025 = vst [vmem:[#allocation68_spill] sm:$0xff] %v16987_v23  ;;  %v1896_v42 = vor.u32 %v1894_v16, %v16987_v23  ;;  %v16999_v27 = vrot.slane %v1908_v17, 7  ;;  %2370 = vst [vmem:[#allocation2 + $0xb8] sm:$0xf] %v1880_v18  ;;  %v1920_v56 = vshll.u32 %v16668_v21, 16  ;;  %v1925_v47 = vshrl.u32 %v16673_v37, 16 }
 0x2fa   :  { %21026 = vst [vmem:[#allocation69_spill] sm:$0xff] %v16994_v20  ;;  %v1928_v0 = vshll.u32 %v16673_v37, 16  ;;  %v17007_v62 = vor.u32 %v1903_v54, %v1902_v13  ;;  %v1906_v49 = vrot.slane %v1902_v13, 4  ;;  %v1919_v46 = vrot.slane %v1917_v34, 7  ;;  %v21030_v18 = vld [vmem:[#allocation51_spill] sm:$0xff]  ;;  %v21031_v23 = vld [vmem:[#allocation52_spill] sm:$0xff] }
 0x2fb   :  { %21027 = vst [vmem:[#allocation70_spill] sm:$0xff] %v16999_v27  ;;  %v1897_v59 = vsel %vm16048_vm6, %v1889_v39, %v1896_v42  ;;  %v1913_v3 = vor.u32 %v1911_v40, %v16999_v27  ;;  %v17011_v17 = vrot.slane %v1925_v47, 7  ;;  %v1934_v10 = vshrl.u32 %v21030_v18, 16  ;;  %v17206_v20 = vld [vmem:[#allocation2 + $0x80] sm:$0x1] }
 0x2fc   :  { %21028 = vst [vmem:[#allocation71_spill] sm:$0xff] %v17007_v62  ;;  %2377 = vst [vmem:[#allocation2 + $0xc4] sm:$0xf] %v1897_v59  ;;  %v1937_v37 = vshll.u32 %v21030_v18, 16  ;;  %v1942_v39 = vshrl.u32 %v21031_v23, 16  ;;  %v1945_v54 = vshll.u32 %v21031_v23, 16  ;;  %v17019_v42 = vor.u32 %v1920_v56, %v1919_v46 }
 0x2fd   :  { %21029 = vst [vmem:[#allocation72_spill] sm:$0xff] %v17011_v17  ;;  %v1914_v21 = vsel %vm16048_vm6, %v1906_v49, %v1913_v3  ;;  %v1923_v40 = vrot.slane %v1919_v46, 4  ;;  %v1930_v13 = vor.u32 %v1928_v0, %v17011_v17  ;;  %v1936_v34 = vrot.slane %v1934_v10, 7  ;;  %v21034_v59 = vld [vmem:[#allocation53_spill] sm:$0xff]  ;;  %v21076_v62 = vld [vmem:[#allocation66_spill] sm:$0xff] }
 0x2fe   :  { %21032 = vst [vmem:[#allocation73_spill] sm:$0xff] %v17019_v42  ;;  %2384 = vst [vmem:[#allocation2 + $0xe8] sm:$0xf] %v1914_v21  ;;  %v17023_v16 = vrot.slane %v1942_v39, 7  ;;  %v1951_v27 = vshrl.u32 %v21034_v59, 16  ;;  %v1954_v49 = vshll.u32 %v21034_v59, 16 }
 0x2ff   :  { %v1931_v3 = vsel %vm16048_vm6, %v1923_v40, %v1930_v13  ;;  %v1959_v23 = vshrl.u32 %v16693_v2, 16  ;;  %v1962_v56 = vshll.u32 %v16693_v2, 16  ;;  %v1968_v46 = vshrl.u32 %v16698_v4, 16  ;;  %v21041_v21 = vld [vmem:[#allocation55_spill] sm:$0xff] }
 0x300   :  { %21033 = vst [vmem:[#allocation74_spill] sm:$0xff] %v17023_v16  ;;  %v17032_v0 = vor.u32 %v1937_v37, %v1936_v34  ;;  %v1940_v18 = vrot.slane %v1936_v34, 4  ;;  %v1947_v10 = vor.u32 %v1945_v54, %v17023_v16  ;;  %2391 = vst [vmem:[#allocation2 + $0xf4] sm:$0xf] %v1931_v3  ;;  %v1953_v39 = vrot.slane %v1951_v27, 7 }
 0x301   :  { %v17036_v47 = vrot.slane %v1959_v23, 7  ;;  %v1970_v59 = vrot.slane %v1968_v46, 7  ;;  %v1971_v40 = vshll.u32 %v16698_v4, 16  ;;  %v1976_v2 = vshrl.u32 %v16703_v19, 16 }
 0x302   :  { %21035 = vst [vmem:[#allocation75_spill] sm:$0xff] %v17032_v0  ;;  %v1948_v13 = vsel %vm16048_vm6, %v1940_v18, %v1947_v10  ;;  %v1979_v37 = vshll.u32 %v16703_v19, 16  ;;  %v21037_v0 = vld [vmem:[#allocation54_spill] sm:$0xff]  ;;  %v17044_v17 = vor.u32 %v1954_v49, %v1953_v39  ;;  %v1957_v54 = vrot.slane %v1953_v39, 4 }
 0x303   :  { %21036 = vst [vmem:[#allocation76_spill] sm:$0xff] %v17036_v47  ;;  %v1985_v34 = vshrl.u32 %v21037_v0, 16  ;;  %v1964_v3 = vor.u32 %v1962_v56, %v17036_v47  ;;  %2398 = vst [vmem:[#allocation2 + $0x100] sm:$0xf] %v1948_v13  ;;  %v17048_v23 = vor.u32 %v1971_v40, %v1970_v59  ;;  %v1974_v4 = vrot.slane %v1970_v59, 4  ;;  %v21042_v40 = vld [vmem:[#allocation56_spill] sm:$0xff] }
 0x304   :  { %21038 = vst [vmem:[#allocation77_spill] sm:$0xff] %v17044_v17  ;;  %v17050_v46 = vrot.slane %v1976_v2, 7  ;;  %v1988_v19 = vshll.u32 %v21037_v0, 16  ;;  %v1993_v49 = vshrl.u32 %v21041_v21, 16  ;;  %v1996_v39 = vshll.u32 %v21041_v21, 16 }
 0x305   :  { %21039 = vst [vmem:[#allocation19_spill] sm:$0xff] %v17048_v23  ;;  %v1987_v18 = vrot.slane %v1985_v34, 7  ;;  %v1965_v10 = vsel %vm16048_vm6, %v1957_v54, %v1964_v3  ;;  %v2002_v23 = vshrl.u32 %v21042_v40, 16  ;;  %v2005_v34 = vshll.u32 %v21042_v40, 16  ;;  %v21045_v54 = vld [vmem:[#allocation57_spill] sm:$0xff] }
 0x306   :  { %21040 = vst [vmem:[#allocation21_spill] sm:$0xff] %v17050_v46  ;;  %v1981_v56 = vor.u32 %v1979_v37, %v17050_v46  ;;  %2405 = vst [vmem:[#allocation2 + $0x10c] sm:$0xf] %v1965_v10  ;;  %v17062_v2 = vrot.slane %v1993_v49, 7  ;;  %v2010_v0 = vshrl.u32 %v21045_v54, 16  ;;  %v2013_v37 = vshll.u32 %v21045_v54, 16 }
 0x307   :  { %v1991_v13 = vrot.slane %v1987_v18, 4  ;;  %v17060_v59 = vor.u32 %v1988_v19, %v1987_v18  ;;  %v2004_v21 = vrot.slane %v2002_v23, 7  ;;  %v2019_v27 = vshrl.u32 %v16728_v7, 16  ;;  %v2308_v47 = vld [vmem:[#allocation2 + $0x50] sm:$0x1] }
 0x308   :  { %21044 = vst [vmem:[#allocation20_spill] sm:$0xff] %v17062_v2  ;;  %v1982_v3 = vsel %vm16048_vm6, %v1974_v4, %v1981_v56  ;;  %v1998_v46 = vor.u32 %v1996_v39, %v17062_v2  ;;  %v17072_v18 = vrot.slane %v2010_v0, 7  ;;  %v2022_v19 = vshll.u32 %v16728_v7, 16  ;;  %v2297_v2 = vld [vmem:[#allocation2 + $0x3c] sm:$0xf] }
 0x309   :  { %21043 = vst [vmem:[#allocation18_spill] sm:$0xff] %v17060_v59  ;;  %2412 = vst [vmem:[#allocation2 + $0x118] sm:$0xf] %v1982_v3  ;;  %v17075_v49 = vor.u32 %v2005_v34, %v2004_v21  ;;  %v2008_v40 = vrot.slane %v2004_v21, 4  ;;  %v2021_v59 = vrot.slane %v2019_v27, 7  ;;  %v2027_v4 = vshrl.u32 %v16733_v29, 16 }
 0x30a   :  { %21046 = vst [vmem:[#allocation23_spill] sm:$0xff] %v17072_v18  ;;  %v1999_v23 = vsel %vm16048_vm6, %v1991_v13, %v1998_v46  ;;  %v2015_v56 = vor.u32 %v2013_v37, %v17072_v18  ;;  %v2030_v54 = vshll.u32 %v16733_v29, 16  ;;  %v2036_v34 = vshrl.u32 %v16738_v30, 16  ;;  %v21073_v18 = vld [vmem:[#allocation64_spill] sm:$0xff] }
 0x30b   :  { %21047 = vst [vmem:[#allocation25_spill] sm:$0xff] %v17075_v49  ;;  %v17083_v0 = vor.u32 %v2022_v19, %v2021_v59  ;;  %v2025_v10 = vrot.slane %v2021_v59, 4  ;;  %v17085_v7 = vrot.slane %v2027_v4, 7  ;;  %2419 = vst [vmem:[#allocation2 + $0x124] sm:$0xf] %v1999_v23  ;;  %v2039_v3 = vshll.u32 %v16738_v30, 16 }
 0x30c   :  { %v2016_v27 = vsel %vm16048_vm6, %v2008_v40, %v2015_v56  ;;  %v2044_v46 = vshrl.u32 %v16743_v32, 16  ;;  %v2047_v13 = vshll.u32 %v16743_v32, 16  ;;  %v2038_v37 = vrot.slane %v2036_v34, 7 }
 0x30d   :  { %21048 = vst [vmem:[#allocation78_spill] sm:$0xff] %v17083_v0  ;;  %21049 = vst [vmem:[#allocation79_spill] sm:$0xff] %v17085_v7  ;;  %v2032_v21 = vor.u32 %v2030_v54, %v17085_v7  ;;  %v2053_v59 = vshrl.u32 %v16748_v31, 16  ;;  %v2056_v4 = vshll.u32 %v16748_v31, 16  ;;  %v2061_v40 = vshrl.u32 %v16753_v63, 16  ;;  %v21070_v7 = vld [vmem:[#allocation29_spill] sm:$0xff] }
 0x30e   :  { %2426 = vst [vmem:[#allocation2 + $0x130] sm:$0xf] %v2016_v27  ;;  %v17096_v19 = vrot.slane %v2044_v46, 7  ;;  %v2064_v30 = vshll.u32 %v16753_v63, 16  ;;  %v17103_v32 = vor.u32 %v2039_v3, %v2038_v37  ;;  %v2042_v56 = vrot.slane %v2038_v37, 4 }
 0x30f   :  { %v2033_v23 = vsel %vm16048_vm6, %v2025_v10, %v2032_v21  ;;  %v2055_v54 = vrot.slane %v2053_v59, 7  ;;  %v17107_v46 = vrot.slane %v2061_v40, 7  ;;  %v2070_v31 = vshrl.u32 %v16758_v61, 16 }
 0x310   :  { %21050 = vst [vmem:[#allocation80_spill] sm:$0xff] %v17096_v19  ;;  %21051 = vst [vmem:[#allocation81_spill] sm:$0xff] %v17103_v32  ;;  %v2049_v34 = vor.u32 %v2047_v13, %v17096_v19  ;;  %v2073_v39 = vshll.u32 %v16758_v61, 16  ;;  %v2078_v10 = vshrl.u32 %v16763_v14, 16  ;;  %v2081_v40 = vshll.u32 %v16763_v14, 16  ;;  %v21064_v32 = vld [vmem:[#allocation63_spill] sm:$0xff] }
 0x311   :  { %21052 = vst [vmem:[#allocation22_spill] sm:$0xff] %v17107_v46  ;;  %2433 = vst [vmem:[#allocation2 + $0x13c] sm:$0xf] %v2033_v23  ;;  %v17110_v29 = vor.u32 %v2056_v4, %v2055_v54  ;;  %v2059_v63 = vrot.slane %v2055_v54, 4  ;;  %v2066_v21 = vor.u32 %v2064_v30, %v17107_v46  ;;  %v2072_v37 = vrot.slane %v2070_v31, 7  ;;  %v21055_v23 = vld [vmem:[#allocation58_spill] sm:$0xff] }
 0x312   :  { %v2050_v3 = vsel %vm16048_vm6, %v2042_v56, %v2049_v34  ;;  %v17118_v59 = vrot.slane %v2078_v10, 7  ;;  %v2087_v4 = vshrl.u32 %v21055_v23, 16  ;;  %v2090_v54 = vshll.u32 %v21055_v23, 16  ;;  %v21057_v34 = vld [vmem:[#allocation59_spill] sm:$0xff]  ;;  %v21059_v23 = vld [vmem:[#allocation60_spill] sm:$0xff] }
 0x313   :  { %21053 = vst [vmem:[#allocation82_spill] sm:$0xff] %v17110_v29  ;;  %2440 = vst [vmem:[#allocation2 + $0x148] sm:$0xf] %v2050_v3  ;;  %v2067_v61 = vsel %vm16048_vm6, %v2059_v63, %v2066_v21  ;;  %v17125_v27 = vor.u32 %v2073_v39, %v2072_v37  ;;  %v2076_v56 = vrot.slane %v2072_v37, 4  ;;  %v2095_v30 = vshrl.u32 %v21057_v34, 16  ;;  %v21060_v63 = vld [vmem:[#allocation61_spill] sm:$0xff] }
 0x314   :  { %21054 = vst [vmem:[#allocation26_spill] sm:$0xff] %v17118_v59  ;;  %v2083_v13 = vor.u32 %v2081_v40, %v17118_v59  ;;  %v2089_v10 = vrot.slane %v2087_v4, 7  ;;  %v2098_v14 = vshll.u32 %v21057_v34, 16  ;;  %2447 = vst [vmem:[#allocation2 + $0x154] sm:$0xf] %v2067_v61  ;;  %v2104_v3 = vshrl.u32 %v21059_v23, 16 }
 0x315   :  { %21056 = vst [vmem:[#allocation27_spill] sm:$0xff] %v17125_v27  ;;  %v17131_v46 = vrot.slane %v2095_v30, 7  ;;  %v2107_v29 = vshll.u32 %v21059_v23, 16  ;;  %v2112_v39 = vshrl.u32 %v21060_v63, 16  ;;  %v2115_v31 = vshll.u32 %v21060_v63, 16  ;;  %v21063_v23 = vld [vmem:[#allocation62_spill] sm:$0xff] }
 0x316   :  { %v2084_v21 = vsel %vm16048_vm6, %v2076_v56, %v2083_v13  ;;  %v17138_v37 = vor.u32 %v2090_v54, %v2089_v10  ;;  %v2093_v40 = vrot.slane %v2089_v10, 4  ;;  %v2106_v34 = vrot.slane %v2104_v3, 7  ;;  %v2269_v59 = vld [vmem:[#allocation2 + $0xc] sm:$0xf]  ;;  %v2276_v56 = vld [vmem:[#allocation2 + $0x18] sm:$0xf] }
 0x317   :  { %21058 = vst [vmem:[#allocation31_spill] sm:$0xff] %v17131_v46  ;;  %v2100_v4 = vor.u32 %v2098_v14, %v17131_v46  ;;  %v17143_v30 = vrot.slane %v2112_v39, 7  ;;  %2454 = vst [vmem:[#allocation2 + $0x160] sm:$0xf] %v2084_v21  ;;  %v2121_v27 = vshrl.u32 %v21063_v23, 16  ;;  %v2124_v19 = vshll.u32 %v21063_v23, 16 }
 0x318   :  { %21061 = vst [vmem:[#allocation32_spill] sm:$0xff] %v17138_v37  ;;  %v2129_v13 = vshrl.u32 %v21064_v32, 16  ;;  %v2132_v54 = vshll.u32 %v21064_v32, 16  ;;  %v2280_v10 = vld [vmem:[#allocation2 + $0x20] sm:$0x1]  ;;  %v17151_v63 = vor.u32 %v2107_v29, %v2106_v34  ;;  %v2110_v3 = vrot.slane %v2106_v34, 4 }
 0x319   :  { %21062 = vst [vmem:[#allocation33_spill] sm:$0xff] %v17143_v30  ;;  %v2101_v14 = vsel %vm16048_vm6, %v2093_v40, %v2100_v4  ;;  %v2117_v39 = vor.u32 %v2115_v31, %v17143_v30  ;;  %v2273_v23 = vld [vmem:[#allocation2 + $0x14] sm:$0x1]  ;;  %v2123_v32 = vrot.slane %v2121_v27, 7  ;;  %v21069_v37 = vld [vmem:[#allocation17_spill] sm:$0xff]  ;;  %v21071_v40 = vshll.u32 %v21070_v7, 16 }
 0x31a   :  { %21065 = vst [vmem:[#allocation34_spill] sm:$0xff] %v17151_v63  ;;  %v17161_v46 = vrot.slane %v2129_v13, 7  ;;  %2461 = vst [vmem:[#allocation2 + $0x16c] sm:$0xf] %v2101_v14  ;;  %v2290_v4 = vld [vmem:[#allocation2 + $0x30] sm:$0xf] }
 0x31b   :  { %v17166_v29 = vor.u32 %v21071_v40, %v21069_v37  ;;  %v2283_v31 = vld [vmem:[#allocation2 + $0x24] sm:$0xf]  ;;  %v2294_v34 = vld [vmem:[#allocation2 + $0x38] sm:$0x1]  ;;  %v2287_v63 = vld [vmem:[#allocation2 + $0x2c] sm:$0x1]  ;;  %v2118_v0 = vsel %vm16048_vm6, %v2110_v3, %v2117_v39  ;;  %v17175_v37 = vor.u32 %v2124_v19, %v2123_v32  ;;  %v2270_v19 = vsel %vm17156_vm8, %v21076_v62, %v2269_v59 }
 0x31c   :  { %21068 = vst [vmem:[#allocation28_spill] sm:$0xff] %v17161_v46  ;;  %v2155_v49 = vshrl.u32 %v21073_v18, 16  ;;  %v2158_v61 = vshll.u32 %v21073_v18, 16  ;;  %v21074_v27 = vld [vmem:[#allocation65_spill] sm:$0xff]  ;;  %v17173_v30 = vld [vmem:[#allocation2 + $0x48] sm:$0xf]  ;;  %v2134_v40 = vor.u32 %v2132_v54, %v17161_v46 }
 0x31d   :  { %21072 = vst [vmem:[#allocation38_spill] sm:$0xff] %v17166_v29  ;;  %v2163_v13 = vshrl.u32 %v21074_v27, 16  ;;  %v2301_v7 = vld [vmem:[#allocation2 + $0x44] sm:$0x1]  ;;  %21075 = vst [vmem:[#allocation43_spill] sm:$0xff] %v17175_v37  ;;  %v2127_v14 = vrot.slane %v2123_v32, 4 }
 0x31e   :  { %2468 = vst [vmem:[#allocation2 + $0x178] sm:$0xf] %v2118_v0  ;;  %v17179_v3 = vld [vmem:[#allocation2 + $0x60] sm:$0xf]  ;;  %v17181_v39 = vld [vmem:[#allocation2 + $0x54] sm:$0xf] }
 0x31f   :  { %v2315_v18 = vld [vmem:[#allocation2 + $0x5c] sm:$0x1]  ;;  %v2157_v17 = vrot.slane %v2155_v49, 7  ;;  %v17183_v16 = vrot.slane %v2163_v13, 7  ;;  %v2166_v42 = vshll.u32 %v21074_v27, 16  ;;  %v2135_v46 = vsel %vm16048_vm6, %v2127_v14, %v2134_v40 }
 0x320   :  { %v2322_v32 = vld [vmem:[#allocation2 + $0x68] sm:$0x1]  ;;  %v17189_v54 = vld [vmem:[#allocation2 + $0x78] sm:$0xf]  ;;  %v17191_v29 = vld [vmem:[#allocation2 + $0x6c] sm:$0xf]  ;;  %v2277_v27 = vsel %vm17156_vm8, %v16824_v11, %v2276_v56 }
 0x321   :  { %v2329_v0 = vld [vmem:[#allocation2 + $0x74] sm:$0x1]  ;;  %2271 = vst [vmem:[#allocation2 + $0xc] sm:$0xf] %v2270_v19  ;;  %v21077_v49 = vrot.slane %v16813_v5, 4  ;;  %v21079_v62 = vrot.slane %v16819_v45, 4  ;;  %v17214_v5 = vor.u32 %v2158_v61, %v2157_v17  ;;  %v2168_v19 = vor.u32 %v2166_v42, %v17183_v16 }
 0x322   :  { %v17210_v14 = vld [vmem:[#allocation2 + $0x84] sm:$0xf]  ;;  %v17212_v40 = vld [vmem:[#allocation2 + $0x8c] sm:$0x1]  ;;  %2278 = vst [vmem:[#allocation2 + $0x18] sm:$0xf] %v2277_v27  ;;  %v2284_v61 = vsel %vm17156_vm8, %v16837_v43, %v2283_v31 }
 0x323   :  { %v2274_v37 = vsel %vm14952_vm3, %v21077_v49, %v2273_v23  ;;  %v2281_v59 = vsel %vm14952_vm3, %v21079_v62, %v2280_v10  ;;  %v2161_v23 = vrot.slane %v2157_v17, 4  ;;  %2475 = vst [vmem:[#allocation2 + $0x184] sm:$0xf] %v2135_v46  ;;  %v17218_v45 = vld [vmem:[#allocation2 + $0x98] sm:$0x1]  ;;  %v21080_v17 = vrot.slane %v16828_v33, 4 }
 0x324   :  { %2275 = vst [vmem:[#allocation2 + $0x14] sm:$0x1] %v2274_v37  ;;  %2282 = vst [vmem:[#allocation2 + $0x20] sm:$0x1] %v2281_v59  ;;  %v17220_v56 = vld [vmem:[#allocation2 + $0xa8] sm:$0xf]  ;;  %v2291_v46 = vsel %vm17156_vm8, %v16849_v60, %v2290_v4  ;;  %v2298_v60 = vsel %vm17156_vm8, %v16861_v26, %v2297_v2  ;;  %v2305_v4 = vsel %vm17156_vm8, %v16875_v35, %v17173_v30 }
 0x325   :  { %v17222_v10 = vld [vmem:[#allocation2 + $0x9c] sm:$0xf]  ;;  %v2357_v49 = vld [vmem:[#allocation2 + $0xa4] sm:$0x1]  ;;  %v2288_v42 = vsel %vm14952_vm3, %v21080_v17, %v2287_v63  ;;  %v21081_v37 = vrot.slane %v16851_v36, 4  ;;  %v2169_v33 = vsel %vm16048_vm6, %v2161_v23, %v2168_v19  ;;  %v21082_v36 = vrot.slane %v16853_v58, 4 }
 0x326   :  { %v17238_v62 = vld [vmem:[#allocation2 + $0xb0] sm:$0x1]  ;;  %v17240_v59 = vld [vmem:[#allocation2 + $0xc0] sm:$0xf]  ;;  %v17242_v11 = vld [vmem:[#allocation2 + $0xb4] sm:$0xf]  ;;  %v2312_v35 = vsel %vm17156_vm8, %v16888_v41, %v17181_v39 }
 0x327   :  { %v2295_v27 = vsel %vm14952_vm3, %v21081_v37, %v2294_v34  ;;  %v17244_v43 = vld [vmem:[#allocation2 + $0xbc] sm:$0x1]  ;;  %2285 = vst [vmem:[#allocation2 + $0x24] sm:$0xf] %v2284_v61  ;;  %2289 = vst [vmem:[#allocation2 + $0x2c] sm:$0x1] %v2288_v42  ;;  %v2302_v63 = vsel %vm14952_vm3, %v21082_v36, %v2301_v7  ;;  %v2319_v7 = vsel %vm17156_vm8, %v16900_v57, %v17179_v3 }
 0x328   :  { %2292 = vst [vmem:[#allocation2 + $0x30] sm:$0xf] %v2291_v46  ;;  %2296 = vst [vmem:[#allocation2 + $0x38] sm:$0x1] %v2295_v27  ;;  %v17261_v31 = vld [vmem:[#allocation2 + $0xf0] sm:$0xf]  ;;  %v2326_v57 = vsel %vm17156_vm8, %v16904_v9, %v17191_v29 }
 0x329   :  { %v17263_v34 = vld [vmem:[#allocation2 + $0xe4] sm:$0xf]  ;;  %v17265_v23 = vld [vmem:[#allocation2 + $0xec] sm:$0x1]  ;;  %2299 = vst [vmem:[#allocation2 + $0x3c] sm:$0xf] %v2298_v60 }
 0x32a   :  { %2303 = vst [vmem:[#allocation2 + $0x44] sm:$0x1] %v2302_v63  ;;  %2306 = vst [vmem:[#allocation2 + $0x48] sm:$0xf] %v2305_v4  ;;  %v21083_v58 = vrot.slane %v16867_v22, 4  ;;  %v21084_v2 = vrot.slane %v16879_v52, 4 }
 0x32b   :  { %2489 = vst [vmem:[#allocation2 + $0x19c] sm:$0xf] %v2169_v33  ;;  %v17283_v22 = vld [vmem:[#allocation2 + $0xf8] sm:$0x1]  ;;  %v17285_v19 = vld [vmem:[#allocation2 + $0x108] sm:$0xf] }
 0x32c   :  { %v2309_v26 = vsel %vm14952_vm3, %v21083_v58, %v2308_v47  ;;  %v2316_v30 = vsel %vm14952_vm3, %v21084_v2, %v2315_v18  ;;  %v17287_v47 = vld [vmem:[#allocation2 + $0xfc] sm:$0xf]  ;;  %2313 = vst [vmem:[#allocation2 + $0x54] sm:$0xf] %v2312_v35  ;;  %2320 = vst [vmem:[#allocation2 + $0x60] sm:$0xf] %v2319_v7  ;;  %v2333_v18 = vsel %vm17156_vm8, %v16916_v50, %v17189_v54 }
 0x32d   :  { %2310 = vst [vmem:[#allocation2 + $0x50] sm:$0x1] %v2309_v26  ;;  %2317 = vst [vmem:[#allocation2 + $0x5c] sm:$0x1] %v2316_v30  ;;  %v21085_v52 = vrot.slane %v16892_v1, 4  ;;  %v21086_v3 = vrot.slane %v16906_v55, 4  ;;  %v2340_v50 = vsel %vm17156_vm8, %v16931_v25, %v17210_v14 }
 0x32e   :  { %v17305_v61 = vld [vmem:[#allocation2 + $0x110] sm:$0x1]  ;;  %v2399_v1 = vld [vmem:[#allocation2 + $0x104] sm:$0x1]  ;;  %v17307_v17 = vld [vmem:[#allocation2 + $0x120] sm:$0xf] }
 0x32f   :  { %v2323_v41 = vsel %vm14952_vm3, %v21085_v52, %v2322_v32  ;;  %v2330_v39 = vsel %vm14952_vm3, %v21086_v3, %v2329_v0  ;;  %v17309_v32 = vld [vmem:[#allocation2 + $0x114] sm:$0xf]  ;;  %2327 = vst [vmem:[#allocation2 + $0x6c] sm:$0xf] %v2326_v57  ;;  %2334 = vst [vmem:[#allocation2 + $0x78] sm:$0xf] %v2333_v18  ;;  %v2347_v0 = vsel %vm17156_vm8, %v16939_v8, %v17208_v48 }
 0x330   :  { %2324 = vst [vmem:[#allocation2 + $0x68] sm:$0x1] %v2323_v41  ;;  %2331 = vst [vmem:[#allocation2 + $0x74] sm:$0x1] %v2330_v39  ;;  %v21087_v9 = vrot.slane %v16918_v28, 4  ;;  %v21088_v29 = vrot.slane %v16928_v6, 4  ;;  %v2354_v8 = vsel %vm17156_vm8, %v16959_v53, %v17222_v10 }
 0x331   :  { %v17329_v28 = vld [vmem:[#allocation2 + $0x128] sm:$0x1]  ;;  %v2413_v42 = vld [vmem:[#allocation2 + $0x11c] sm:$0x1]  ;;  %2341 = vst [vmem:[#allocation2 + $0x84] sm:$0xf] %v2340_v50 }
 0x332   :  { %v2337_v55 = vsel %vm14952_vm3, %v21087_v9, %v17206_v20  ;;  %v2344_v54 = vsel %vm14952_vm3, %v21088_v29, %v17212_v40  ;;  %v17331_v20 = vld [vmem:[#allocation2 + $0x138] sm:$0xf]  ;;  %2348 = vst [vmem:[#allocation2 + $0x90] sm:$0xf] %v2347_v0  ;;  %v21089_v6 = vrot.slane %v16941_v24, 4  ;;  %v21090_v48 = vrot.slane %v16952_v12, 4 }
 0x333   :  { %2338 = vst [vmem:[#allocation2 + $0x80] sm:$0x1] %v2337_v55  ;;  %2345 = vst [vmem:[#allocation2 + $0x8c] sm:$0x1] %v2344_v54  ;;  %v2361_v40 = vsel %vm17156_vm8, %v16966_v44, %v17220_v56  ;;  %v2423_v46 = vld [vmem:[#allocation2 + $0x12c] sm:$0xf] }
 0x334   :  { %v2351_v25 = vsel %vm14952_vm3, %v21089_v6, %v17218_v45  ;;  %v2358_v14 = vsel %vm14952_vm3, %v21090_v48, %v2357_v49  ;;  %v2434_v24 = vld [vmem:[#allocation2 + $0x140] sm:$0x1]  ;;  %v2427_v37 = vld [vmem:[#allocation2 + $0x134] sm:$0x1]  ;;  %2355 = vst [vmem:[#allocation2 + $0x9c] sm:$0xf] %v2354_v8  ;;  %v2368_v45 = vsel %vm17156_vm8, %v16981_v38, %v17242_v11 }
 0x335   :  { %2352 = vst [vmem:[#allocation2 + $0x98] sm:$0x1] %v2351_v25  ;;  %2359 = vst [vmem:[#allocation2 + $0xa4] sm:$0x1] %v2358_v14  ;;  %v21091_v53 = vrot.slane %v16963_v51, 4  ;;  %v21092_v44 = vld [vmem:[#allocation67_spill] sm:$0xff] }
 0x336   :  { %2362 = vst [vmem:[#allocation2 + $0xa8] sm:$0xf] %v2361_v40  ;;  %v21093_v56 = vrot.slane %v21092_v44, 4  ;;  %v21094_v49 = vld [vmem:[#allocation69_spill] sm:$0xff]  ;;  %v2444_v51 = vld [vmem:[#allocation2 + $0x150] sm:$0xf] }
 0x337   :  { %v2365_v12 = vsel %vm14952_vm3, %v21091_v53, %v17238_v62  ;;  %v2375_v27 = vsel %vm17156_vm8, %v21094_v49, %v17240_v59  ;;  %v2437_v33 = vld [vmem:[#allocation2 + $0x144] sm:$0xf]  ;;  %v2448_v60 = vld [vmem:[#allocation2 + $0x158] sm:$0x1]  ;;  %2369 = vst [vmem:[#allocation2 + $0xb4] sm:$0xf] %v2368_v45 }
 0x338   :  { %v2372_v10 = vsel %vm14952_vm3, %v21093_v56, %v17244_v43  ;;  %2366 = vst [vmem:[#allocation2 + $0xb0] sm:$0x1] %v2365_v12  ;;  %2376 = vst [vmem:[#allocation2 + $0xc0] sm:$0xf] %v2375_v27  ;;  %v21095_v38 = vld [vmem:[#allocation68_spill] sm:$0xff]  ;;  %v21097_v43 = vld [vmem:[#allocation71_spill] sm:$0xff] }
 0x339   :  { %2373 = vst [vmem:[#allocation2 + $0xbc] sm:$0x1] %v2372_v10  ;;  %v21096_v11 = vrot.slane %v21095_v38, 4  ;;  %v2382_v36 = vsel %vm17156_vm8, %v21097_v43, %v17263_v34  ;;  %v21098_v59 = vld [vmem:[#allocation70_spill] sm:$0xff]  ;;  %v21100_v58 = vld [vmem:[#allocation73_spill] sm:$0xff]  ;;  %v21116_v12 = vld [vmem:[#allocation23_spill] sm:$0xff] }
 0x33a   :  { %v21099_v63 = vrot.slane %v21098_v59, 4  ;;  %v2389_v26 = vsel %vm17156_vm8, %v21100_v58, %v17261_v31  ;;  %v2441_v35 = vld [vmem:[#allocation2 + $0x14c] sm:$0x1]  ;;  %v2458_v2 = vld [vmem:[#allocation2 + $0x168] sm:$0xf]  ;;  %v21104_v41 = vld [vmem:[#allocation74_spill] sm:$0xff] }
 0x33b   :  { %v2379_v62 = vsel %vm14952_vm3, %v21096_v11, %v17259_v15  ;;  %v2451_v30 = vld [vmem:[#allocation2 + $0x15c] sm:$0xf]  ;;  %2383 = vst [vmem:[#allocation2 + $0xe4] sm:$0xf] %v2382_v36  ;;  %2390 = vst [vmem:[#allocation2 + $0xf0] sm:$0xf] %v2389_v26 }
 0x33c   :  { %v2386_v4 = vsel %vm14952_vm3, %v21099_v63, %v17265_v23  ;;  %2380 = vst [vmem:[#allocation2 + $0xc8] sm:$0x1] %v2379_v62  ;;  %v21101_v15 = vld [vmem:[#allocation72_spill] sm:$0xff]  ;;  %v21103_v23 = vld [vmem:[#allocation75_spill] sm:$0xff]  ;;  %v21105_v31 = vrot.slane %v21104_v41, 4  ;;  %v21106_v3 = vld [vmem:[#allocation77_spill] sm:$0xff] }
 0x33d   :  { %2387 = vst [vmem:[#allocation2 + $0xec] sm:$0x1] %v2386_v4  ;;  %v21102_v34 = vrot.slane %v21101_v15, 4  ;;  %v2396_v52 = vsel %vm17156_vm8, %v21103_v23, %v17287_v47  ;;  %v2403_v39 = vsel %vm17156_vm8, %v21106_v3, %v17285_v19  ;;  %v2462_v18 = vld [vmem:[#allocation2 + $0x170] sm:$0x1]  ;;  %v21110_v54 = vld [vmem:[#allocation21_spill] sm:$0xff] }
 0x33e   :  { %v2400_v57 = vsel %vm14952_vm3, %v21105_v31, %v2399_v1  ;;  %v2455_v9 = vld [vmem:[#allocation2 + $0x164] sm:$0x1]  ;;  %v2472_v55 = vld [vmem:[#allocation2 + $0x180] sm:$0xf]  ;;  %2397 = vst [vmem:[#allocation2 + $0xfc] sm:$0xf] %v2396_v52 }
 0x33f   :  { %v2393_v7 = vsel %vm14952_vm3, %v21102_v34, %v17283_v22  ;;  %2401 = vst [vmem:[#allocation2 + $0x104] sm:$0x1] %v2400_v57  ;;  %2404 = vst [vmem:[#allocation2 + $0x108] sm:$0xf] %v2403_v39  ;;  %v21107_v22 = vld [vmem:[#allocation76_spill] sm:$0xff]  ;;  %v21109_v1 = vld [vmem:[#allocation19_spill] sm:$0xff] }
 0x340   :  { %2394 = vst [vmem:[#allocation2 + $0xf8] sm:$0x1] %v2393_v7  ;;  %v21108_v47 = vrot.slane %v21107_v22, 4  ;;  %v2410_v29 = vsel %vm17156_vm8, %v21109_v1, %v17309_v32  ;;  %v21111_v19 = vrot.slane %v21110_v54, 4  ;;  %v21112_v6 = vld [vmem:[#allocation18_spill] sm:$0xff]  ;;  %v21115_v53 = vld [vmem:[#allocation25_spill] sm:$0xff] }
 0x341   :  { %v2417_v25 = vsel %vm17156_vm8, %v21112_v6, %v17307_v17  ;;  %v2465_v8 = vld [vmem:[#allocation2 + $0x174] sm:$0xf]  ;;  %v2476_v48 = vld [vmem:[#allocation2 + $0x188] sm:$0x1]  ;;  %v2469_v14 = vld [vmem:[#allocation2 + $0x17c] sm:$0x1] }
 0x342   :  { %v2407_v50 = vsel %vm14952_vm3, %v21108_v47, %v17305_v61  ;;  %v2414_v0 = vsel %vm14952_vm3, %v21111_v19, %v2413_v42  ;;  %2411 = vst [vmem:[#allocation2 + $0x114] sm:$0xf] %v2410_v29  ;;  %2418 = vst [vmem:[#allocation2 + $0x120] sm:$0xf] %v2417_v25  ;;  %v21113_v61 = vld [vmem:[#allocation20_spill] sm:$0xff]  ;;  %v2424_v42 = vsel %vm17156_vm8, %v21115_v53, %v2423_v46  ;;  %v21117_v45 = vrot.slane %v21116_v12, 4 }
 0x343   :  { %2408 = vst [vmem:[#allocation2 + $0x110] sm:$0x1] %v2407_v50  ;;  %2415 = vst [vmem:[#allocation2 + $0x11c] sm:$0x1] %v2414_v0  ;;  %v21114_v32 = vrot.slane %v21113_v61, 4  ;;  %v21118_v44 = vld [vmem:[#allocation78_spill] sm:$0xff] }
 0x344   :  { %v2428_v17 = vsel %vm14952_vm3, %v21117_v45, %v2427_v37  ;;  %v2431_v56 = vsel %vm17156_vm8, %v21118_v44, %v17331_v20  ;;  %v2486_v10 = vld [vmem:[#allocation2 + $0x198] sm:$0xf]  ;;  %v2479_v49 = vld [vmem:[#allocation2 + $0x18c] sm:$0xf]  ;;  %v2490_v27 = vld [vmem:[#allocation2 + $0x1a0] sm:$0x1] }
 0x345   :  { %v2421_v40 = vsel %vm14952_vm3, %v21114_v32, %v17329_v28  ;;  %2425 = vst [vmem:[#allocation2 + $0x12c] sm:$0xf] %v2424_v42  ;;  %2429 = vst [vmem:[#allocation2 + $0x134] sm:$0x1] %v2428_v17  ;;  %v21119_v28 = vld [vmem:[#allocation79_spill] sm:$0xff]  ;;  %v21121_v11 = vld [vmem:[#allocation81_spill] sm:$0xff]  ;;  %v2487_v54 = vsel %vm17156_vm8, %v17214_v5, %v2486_v10 }
 0x346   :  { %2422 = vst [vmem:[#allocation2 + $0x128] sm:$0x1] %v2421_v40  ;;  %2432 = vst [vmem:[#allocation2 + $0x138] sm:$0xf] %v2431_v56  ;;  %v21120_v38 = vrot.slane %v21119_v28, 4  ;;  %v2438_v37 = vsel %vm17156_vm8, %v21121_v11, %v2437_v33  ;;  %v21122_v62 = vld [vmem:[#allocation80_spill] sm:$0xff] }
 0x347   :  { %v21123_v43 = vrot.slane %v21122_v62, 4  ;;  %v21124_v36 = vld [vmem:[#allocation82_spill] sm:$0xff]  ;;  %2439 = vst [vmem:[#allocation2 + $0x144] sm:$0xf] %v2438_v37  ;;  %v21127_v58 = vld [vmem:[#allocation27_spill] sm:$0xff]  ;;  %v21130_v34 = vld [vmem:[#allocation32_spill] sm:$0xff] }
 0x348   :  { %v2435_v46 = vsel %vm14952_vm3, %v21120_v38, %v2434_v24  ;;  %v2445_v59 = vsel %vm17156_vm8, %v21124_v36, %v2444_v51  ;;  %v21125_v63 = vld [vmem:[#allocation22_spill] sm:$0xff]  ;;  %v2452_v33 = vsel %vm17156_vm8, %v21127_v58, %v2451_v30  ;;  %v2459_v51 = vsel %vm17156_vm8, %v21130_v34, %v2458_v2  ;;  %v2495_v7 = vld [vmem:[#allocation2 + $0xc] sm:$0xf]  ;;  %v21134_v31 = vld [vmem:[#allocation33_spill] sm:$0xff]  ;;  %2488 = vst [vmem:[#allocation2 + $0x198] sm:$0xf] %v2487_v54 }
 0x349   :  { %v2442_v20 = vsel %vm14952_vm3, %v21123_v43, %v2441_v35  ;;  %2436 = vst [vmem:[#allocation2 + $0x140] sm:$0x1] %v2435_v46  ;;  %2446 = vst [vmem:[#allocation2 + $0x150] sm:$0xf] %v2445_v59  ;;  %v21126_v4 = vrot.slane %v21125_v63, 4  ;;  %v21128_v26 = vld [vmem:[#allocation26_spill] sm:$0xff] }
 0x34a   :  { %2443 = vst [vmem:[#allocation2 + $0x14c] sm:$0x1] %v2442_v20  ;;  %v21129_v15 = vrot.slane %v21128_v26, 4  ;;  %2453 = vst [vmem:[#allocation2 + $0x15c] sm:$0xf] %v2452_v33  ;;  %v21131_v23 = vld [vmem:[#allocation31_spill] sm:$0xff] }
 0x34b   :  { %v2449_v24 = vsel %vm14952_vm3, %v21126_v4, %v2448_v60  ;;  %2460 = vst [vmem:[#allocation2 + $0x168] sm:$0xf] %v2459_v51  ;;  %v21132_v60 = vrot.slane %v21131_v23, 4  ;;  %v21133_v30 = vld [vmem:[#allocation34_spill] sm:$0xff]  ;;  %v21135_v57 = vrot.slane %v21134_v31, 4  ;;  %v21136_v2 = vld [vmem:[#allocation43_spill] sm:$0xff] }
 0x34c   :  { %v2456_v35 = vsel %vm14952_vm3, %v21129_v15, %v2455_v9  ;;  %2450 = vst [vmem:[#allocation2 + $0x158] sm:$0x1] %v2449_v24  ;;  %v2466_v41 = vsel %vm17156_vm8, %v21133_v30, %v2465_v8  ;;  %v2473_v39 = vsel %vm17156_vm8, %v21136_v2, %v2472_v55  ;;  %v2496_v9 = vld [vmem:[#allocation2 + $0x10] sm:$0xf]  ;;  %v2574_v22 = vld [vmem:[#allocation2 + $0x14] sm:$0x1] }
 0x34d   :  { %2457 = vst [vmem:[#allocation2 + $0x164] sm:$0x1] %v2456_v35  ;;  %v2463_v52 = vsel %vm14952_vm3, %v21132_v60, %v2462_v18  ;;  %v2470_v3 = vsel %vm14952_vm3, %v21135_v57, %v2469_v14  ;;  %2467 = vst [vmem:[#allocation2 + $0x174] sm:$0xf] %v2466_v41  ;;  %v21137_v18 = vld [vmem:[#allocation28_spill] sm:$0xff]  ;;  %v21139_v1 = vld [vmem:[#allocation38_spill] sm:$0xff] }
 0x34e   :  { %2464 = vst [vmem:[#allocation2 + $0x170] sm:$0x1] %v2463_v52  ;;  %2471 = vst [vmem:[#allocation2 + $0x17c] sm:$0x1] %v2470_v3  ;;  %v21138_v47 = vrot.slane %v21137_v18, 4  ;;  %v2480_v29 = vsel %vm17156_vm8, %v21139_v1, %v2479_v49  ;;  %v21140_v55 = vrot.slane %v17183_v16, 4 }
 0x34f   :  { %2474 = vst [vmem:[#allocation2 + $0x180] sm:$0xf] %v2473_v39  ;;  %v5930_v0 = vld [vmem:[#allocation2 + $0xc] sm:$0xf]  ;;  %v5931_v6 = vld [vmem:[#allocation2 + $0x10] sm:$0xf] }
 0x350   :  { %v2477_v50 = vsel %vm14952_vm3, %v21138_v47, %v2476_v48  ;;  %v2491_v19 = vsel %vm14952_vm3, %v21140_v55, %v2490_v27  ;;  %2481 = vst [vmem:[#allocation2 + $0x18c] sm:$0xf] %v2480_v29  ;;  %v2633_v25 = vshrl.u32 %v2495_v7, 16  ;;  %v14845_v8 = vmov 0   ;;  %v5932_v48 = vld [vmem:[#allocation2 + $0x14] sm:$0x1] }
 0x351   :  { %2478 = vst [vmem:[#allocation2 + $0x188] sm:$0x1] %v2477_v50  ;;  %2492 = vst [vmem:[#allocation2 + $0x1a0] sm:$0x1] %v2491_v19  ;;  %v2636_v16 = vshll.u32 %v2495_v7, 16  ;;  %v2642_v21 = vshll.u32 %v2496_v9, 16 }
 0x352   :  { %1222 = vst [vmem:[#allocation2] sm:$0xf] %v14845_v8  ;;  %1223 = vst [vmem:[#allocation2 + $0x4] sm:$0xf] %v14845_v8  ;;  %v2646_v13 = vshrl.u32 %v2496_v9, 16  ;;  %v2652_v5 = vshll.u32 %v2574_v22, 16 }
 0x353   :  { %1224 = vst [vmem:[#allocation2 + $0x8] sm:$0x1] %v14845_v8  ;;  %1225 = vst [vmem:[#allocation2 + $0xd8] sm:$0xf] %v14845_v8  ;;  %v2635_v14 = vrot.slane %v2633_v25, 4  ;;  %v6027_v61 = vshrl.u32 %v5930_v0, 16 }
 0x354   :  { %1226 = vst [vmem:[#allocation2 + $0xdc] sm:$0xf] %v14845_v8  ;;  %1227 = vst [vmem:[#allocation2 + $0xe0] sm:$0x1] %v14845_v8  ;;  %v6030_v32 = vshll.u32 %v5930_v0, 16  ;;  %v6036_v40 = vshll.u32 %v5931_v6, 16 }
 0x355   :  { %1229 = vst [vmem:[#allocation2 + $0xcc] sm:$0xf] %v14845_v8  ;;  %1230 = vst [vmem:[#allocation2 + $0xd0] sm:$0xf] %v14845_v8  ;;  %v2497_v53 = vld [vmem:[#allocation2 + $0x18] sm:$0xf] }
 0x356   :  { %1231 = vst [vmem:[#allocation2 + $0xd4] sm:$0x1] %v14845_v8  ;;  %1232 = vst [vmem:[#allocation2 + $0x1a4] sm:$0xf] %v14845_v8  ;;  %v2638_v42 = vrot.slane %v2636_v16, 5  ;;  %v2644_v12 = vrot.slane %v2642_v21, 5 }
 0x357   :  { %1233 = vst [vmem:[#allocation2 + $0x1a8] sm:$0xf] %v14845_v8  ;;  %1234 = vst [vmem:[#allocation2 + $0x1ac] sm:$0x1] %v14845_v8  ;;  %v2648_v45 = vrot.slane %v2646_v13, 4  ;;  %v6029_v17 = vrot.slane %v6027_v61, 4 }
 0x358   :  { %v6032_v44 = vrot.slane %v6030_v32, 5  ;;  %v6038_v56 = vrot.slane %v6036_v40, 5  ;;  %v6040_v10 = vshrl.u32 %v5931_v6, 16  ;;  %v2498_v49 = vld [vmem:[#allocation2 + $0x1c] sm:$0xf]  ;;  %v2639_v27 = vor.u32 %v2638_v42, %v2635_v14 }
 0x359   :  { %v2649_v28 = vor.u32 %v2648_v45, %v2644_v12  ;;  %v2654_v38 = vrot.slane %v2652_v5, 5  ;;  %v6046_v37 = vshll.u32 %v5932_v48, 16  ;;  %v2657_v62 = vshrl.u32 %v2497_v53, 16  ;;  %v2493_v4 = vld [vmem:[#allocation2] sm:$0xf] }
 0x35a   :  { %v6033_v46 = vor.u32 %v6032_v44, %v6029_v17  ;;  %v6042_v11 = vrot.slane %v6040_v10, 4  ;;  %v2640_v20 = vrot.slane %v2639_v27, 4  ;;  %v2660_v59 = vshll.u32 %v2497_v53, 16  ;;  %v2494_v24 = vld [vmem:[#allocation2 + $0x4] sm:$0xf] }
 0x35b   :  { %v2650_v36 = vrot.slane %v2649_v28, 4  ;;  %v2666_v63 = vshll.u32 %v2498_v49, 16  ;;  %v2573_v58 = vld [vmem:[#allocation2 + $0x8] sm:$0x1]  ;;  %v2609_v26 = vshrl.u32 %v2493_v4, 16  ;;  %v2612_v15 = vshll.u32 %v2493_v4, 16 }
 0x35c   :  { %v6043_v33 = vor.u32 %v6042_v11, %v6038_v56  ;;  %v2618_v35 = vshll.u32 %v2494_v24, 16  ;;  %v2622_v34 = vshrl.u32 %v2494_v24, 16  ;;  %v2628_v51 = vshll.u32 %v2573_v58, 16  ;;  %v2575_v18 = vld [vmem:[#allocation2 + $0x20] sm:$0x1] }
 0x35d   :  { %v2645_v7 = vsel %vm17494_vm11, %v2640_v20, %v2644_v12  ;;  %v2655_v23 = vsel %vm17494_vm11, %v2650_v36, %v2654_v38  ;;  %v6034_v60 = vrot.slane %v6033_v46, 4  ;;  %v2611_v52 = vrot.slane %v2609_v26, 4  ;;  %v5933_v1 = vld [vmem:[#allocation2 + $0x18] sm:$0xf]  ;;  %v17506_v0 = vld [vmem:[#allocation2 + $0x1c] sm:$0xf] }
 0x35e   :  { %v2614_v30 = vrot.slane %v2612_v15, 5  ;;  %v2620_v41 = vrot.slane %v2618_v35, 5  ;;  %v2624_v31 = vrot.slane %v2622_v34, 4  ;;  %v2630_v57 = vrot.slane %v2628_v51, 5  ;;  %v5935_v5 = vld [vmem:[#allocation2 + $0x20] sm:$0x1] }
 0x35f   :  { %v6039_v3 = vsel %vm17494_vm11, %v6034_v60, %v6038_v56  ;;  %v6044_v2 = vrot.slane %v6043_v33, 4  ;;  %v6048_v39 = vrot.slane %v6046_v37, 5  ;;  %v2659_v47 = vrot.slane %v2657_v62, 4  ;;  %v5936_v44 = vld [vmem:[#allocation2 + $0x24] sm:$0xf] }
 0x360   :  { %v2615_v9 = vor.u32 %v2614_v30, %v2611_v52  ;;  %v2625_v22 = vor.u32 %v2624_v31, %v2620_v41  ;;  %v2662_v50 = vrot.slane %v2660_v59, 5  ;;  %v12075_v29 = vcombine.low %v2645_v7, %v2655_v23  ;;  %v5937_v27 = vld [vmem:[#allocation2 + $0x28] sm:$0xf]  ;;  %v5938_v20 = vld [vmem:[#allocation2 + $0x2c] sm:$0x1] }
 0x361   :  { %v6049_v54 = vsel %vm17494_vm11, %v6044_v2, %v6048_v39  ;;  %v2668_v55 = vrot.slane %v2666_v63, 5  ;;  %v2670_v19 = vshrl.u32 %v2498_v49, 16  ;;  %v2676_v13 = vshll.u32 %v2575_v18, 16  ;;  %v2499_v33 = vld [vmem:[#allocation2 + $0x24] sm:$0xf] }
 0x362   :  { %v2616_v6 = vrot.slane %v2615_v9, 4  ;;  %v2626_v25 = vrot.slane %v2625_v22, 4  ;;  %v12266_v8 = vcombine.low %v6039_v3, %v6049_v54  ;;  %v2663_v16 = vor.u32 %v2662_v50, %v2659_v47  ;;  %v2500_v51 = vld [vmem:[#allocation2 + $0x28] sm:$0xf]  ;;  %v2576_v31 = vld [vmem:[#allocation2 + $0x2c] sm:$0x1] }
 0x363   :  { %v2672_v21 = vrot.slane %v2670_v19, 4  ;;  %v6051_v48 = vshrl.u32 %v5933_v1, 16  ;;  %v6054_v14 = vshll.u32 %v5933_v1, 16  ;;  %v6060_v53 = vshll.u32 %v17506_v0, 16  ;;  %v2501_v18 = vld [vmem:[#allocation2 + $0x30] sm:$0xf] }
 0x364   :  { %v2621_v61 = vsel %vm17494_vm11, %v2616_v6, %v2620_v41  ;;  %v2631_v32 = vsel %vm17494_vm11, %v2626_v25, %v2630_v57  ;;  %13412 = vmatprep.mubr.bf16.mxu1 %v12266_v8  ;;  %v2664_v40 = vrot.slane %v2663_v16, 4  ;;  %v6064_v10 = vshrl.u32 %v17506_v0, 16  ;;  %v2502_v54 = vld [vmem:[#allocation2 + $0x34] sm:$0xf]  ;;  %v14375_v8 = vld [vmem:[#allocation8 + $0x148] sm:$0xff]  }
 0x365   :  { %v12074_v42 = vcombine.low %v2621_v61, %v2631_v32  ;;  %v2673_v12 = vor.u32 %v2672_v21, %v2668_v55  ;;  %v6053_v45 = vrot.slane %v6051_v48, 4  ;;  %v6056_v17 = vrot.slane %v6054_v14, 5  ;;  %v2577_v61 = vld [vmem:[#allocation2 + $0x38] sm:$0x1] }
 0x366   :  { %v6062_v56 = vrot.slane %v6060_v53, 5  ;;  %v6070_v49 = vshll.u32 %v5935_v5, 16  ;;  %v2669_v28 = vsel %vm17494_vm11, %v2664_v40, %v2668_v55  ;;  %v2678_v46 = vrot.slane %v2676_v13, 5  ;;  %v14530_v53 = vld [vmem:[#allocation8 + $0x140] sm:$0xff]  }
 0x367   :  { %13092 = vmatprep.mubr.bf16.mxu0 %v12074_v42  ;;  %v2674_v38 = vrot.slane %v2673_v12, 4  ;;  %v6057_v11 = vor.u32 %v6056_v17, %v6053_v45  ;;  %v6066_v37 = vrot.slane %v6064_v10, 4  ;;  %v7477_v62 = vrot.slane %v17506_v0, 5  ;;  %v14425_v0 = vld [vmem:[#allocation8 + $0x88] sm:$0xff]  }
 0x368   :  { %13093 = vmatmul.mubr.bf16.vlgmr.msra.gmra.mrb[64].mxu0 %v12075_v29  ;;  %v6075_v36 = vshrl.u32 %v5936_v44, 16  ;;  %v6078_v59 = vshll.u32 %v5936_v44, 16  ;;  %v6072_v24 = vrot.slane %v6070_v49, 5  ;;  %v6084_v58 = vshll.u32 %v5937_v27, 16  ;;  %v5939_v44 = vld [vmem:[#allocation2 + $0x30] sm:$0xf] }
 0x369   :  { %v2679_v63 = vsel %vm17494_vm11, %v2674_v38, %v2678_v46  ;;  %v6058_v4 = vrot.slane %v6057_v11, 4  ;;  %v6067_v15 = vor.u32 %v6066_v37, %v6062_v56  ;;  %v6088_v60 = vshrl.u32 %v5937_v27, 16  ;;  %v14376_v38 = vld [vmem:[#allocation8 + $0x150] sm:$0xff]  }
 0x36a   :  { %v12076_v26 = vcombine.low %v2669_v28, %v2679_v63  ;;  %v6077_v35 = vrot.slane %v6075_v36, 4  ;;  %v6080_v34 = vrot.slane %v6078_v59, 5  ;;  %v6086_v23 = vrot.slane %v6084_v58, 5  ;;  %v5940_v28 = vld [vmem:[#allocation2 + $0x34] sm:$0xf] }
 0x36b   :  { %v6063_v7 = vsel %vm17494_vm11, %v6058_v4, %v6062_v56  ;;  %v6094_v52 = vshll.u32 %v5938_v20, 16  ;;  %v6068_v30 = vrot.slane %v6067_v15, 4  ;;  %v2681_v57 = vshrl.u32 %v2499_v33, 16  ;;  %v5941_v63 = vld [vmem:[#allocation2 + $0x38] sm:$0x1] }
 0x36c   :  { %13096 = vmatprep.mubr.bf16.mxu0 %v12076_v26  ;;  %v6081_v41 = vor.u32 %v6080_v34, %v6077_v35  ;;  %v2684_v3 = vshll.u32 %v2499_v33, 16  ;;  %v6090_v2 = vrot.slane %v6088_v60, 4  ;;  %v2690_v9 = vshll.u32 %v2500_v51, 16  ;;  %v5942_v58 = vld [vmem:[#allocation2 + $0x3c] sm:$0xf] }
 0x36d   :  { %v6096_v39 = vrot.slane %v6094_v52, 5  ;;  %v2694_v22 = vshrl.u32 %v2500_v51, 16  ;;  %v6073_v47 = vsel %vm17494_vm11, %v6068_v30, %v6072_v24  ;;  %v2683_v1 = vrot.slane %v2681_v57, 4  ;;  %v5943_v34 = vld [vmem:[#allocation2 + $0x40] sm:$0xf]  ;;  %v14377_v52 = vld [vmem:[#allocation8 + $0x158] sm:$0xff]  }
 0x36e   :  { %v6082_v50 = vrot.slane %v6081_v41, 4  ;;  %v2686_v29 = vrot.slane %v2684_v3, 5  ;;  %v12267_v55 = vcombine.low %v6063_v7, %v6073_v47  ;;  %v6091_v19 = vor.u32 %v6090_v2, %v6086_v23 }
 0x36f   :  { %v2692_v6 = vrot.slane %v2690_v9, 5  ;;  %v2696_v25 = vrot.slane %v2694_v22, 4  ;;  %v2700_v13 = vshll.u32 %v2576_v31, 16  ;;  %v2705_v5 = vshrl.u32 %v2501_v18, 16  ;;  %v5944_v9 = vld [vmem:[#allocation2 + $0x44] sm:$0x1] }
 0x370   :  { %v6087_v16 = vsel %vm17494_vm11, %v6082_v50, %v6086_v23  ;;  %v2687_v21 = vor.u32 %v2686_v29, %v2683_v1  ;;  %13413 = vmatmul.mubr.bf16.vlgmr.msra.gmra.mrb[0].mxu1 %v12267_v55  ;;  %v6092_v48 = vrot.slane %v6091_v19, 4  ;;  %v2708_v32 = vshll.u32 %v2501_v18, 16  ;;  %v2503_v18 = vld [vmem:[#allocation2 + $0x3c] sm:$0xf] }
 0x371   :  { %v2697_v14 = vor.u32 %v2696_v25, %v2692_v6  ;;  %v2714_v40 = vshll.u32 %v2502_v54, 16  ;;  %13477 = vmatpush3.bf16.msra.mxu1 %v14530_v53  ;;  %v2702_v12 = vrot.slane %v2700_v13, 5  ;;  %v2707_v45 = vrot.slane %v2705_v5, 4  ;;  %v2504_v25 = vld [vmem:[#allocation2 + $0x40] sm:$0xf] }
 0x372   :  { %v2688_v42 = vrot.slane %v2687_v21, 4  ;;  %v2718_v17 = vshrl.u32 %v2502_v54, 16  ;;  %v6097_v56 = vsel %vm17494_vm11, %v6092_v48, %v6096_v39  ;;  %v2710_v49 = vrot.slane %v2708_v32, 5  ;;  %13478 = vmatprep.subr.bf16.mxu1 %v14375_v8  ;;  %v2578_v32 = vld [vmem:[#allocation2 + $0x44] sm:$0x1] }
 0x373   :  { %v2698_v10 = vrot.slane %v2697_v14, 4  ;;  %v2716_v27 = vrot.slane %v2714_v40, 5  ;;  %v12268_v46 = vcombine.low %v6087_v16, %v6097_v56  ;;  %v2724_v20 = vshll.u32 %v2577_v61, 16 }
 0x374   :  { %v2693_v11 = vsel %vm17494_vm11, %v2688_v42, %v2692_v6  ;;  %v2720_v37 = vrot.slane %v2718_v17, 4  ;;  %v2711_v59 = vor.u32 %v2710_v49, %v2707_v45  ;;  %v6099_v4 = vshrl.u32 %v5939_v44, 16  ;;  %v2505_v17 = vld [vmem:[#allocation2 + $0x48] sm:$0xf] }
 0x375   :  { %v2703_v36 = vsel %vm17494_vm11, %v2698_v10, %v2702_v12  ;;  %v6102_v24 = vshll.u32 %v5939_v44, 16  ;;  %13416 = vmatprep.mubr.bf16.mxu1 %v12268_v46  ;;  %v2726_v15 = vrot.slane %v2724_v20, 5  ;;  %v6108_v35 = vshll.u32 %v5940_v28, 16  ;;  %13479 = vmatpush3.bf16.msra.mxu1 %v14375_v8  ;;  %v14378_v8 = vld [vmem:[#allocation8 + $0x160] sm:$0xff]  }
 0x376   :  { %v12077_v33 = vcombine.low %v2693_v11, %v2703_v36  ;;  %v2721_v26 = vor.u32 %v2720_v37, %v2716_v27  ;;  %v2712_v51 = vrot.slane %v2711_v59, 4  ;;  %v6101_v7 = vrot.slane %v6099_v4, 4  ;;  %13480 = vmatprep.subr.bf16.mxu1 %v14376_v38  ;;  %v2579_v59 = vld [vmem:[#allocation2 + $0x50] sm:$0x1] }
 0x377   :  { %v6104_v23 = vrot.slane %v6102_v24, 5  ;;  %v6112_v60 = vshrl.u32 %v5940_v28, 16  ;;  %v6110_v41 = vrot.slane %v6108_v35, 5  ;;  %v6118_v31 = vshll.u32 %v5941_v63, 16 }
 0x378   :  { %13097 = vmatmul.mubr.bf16.gmra.mrb[68].mxu0 %v12077_v33  ;;  %v2722_v30 = vrot.slane %v2721_v26, 4  ;;  %v6123_v57 = vshrl.u32 %v5942_v58, 16  ;;  %v2717_v3 = vsel %vm17494_vm11, %v2712_v51, %v2716_v27  ;;  %v6126_v22 = vshll.u32 %v5942_v58, 16  ;;  %v2506_v27 = vld [vmem:[#allocation2 + $0x4c] sm:$0xf] }
 0x379   :  { %v6105_v2 = vor.u32 %v6104_v23, %v6101_v7  ;;  %v6114_v39 = vrot.slane %v6112_v60, 4  ;;  %v6120_v50 = vrot.slane %v6118_v31, 5  ;;  %v6132_v29 = vshll.u32 %v5943_v34, 16  ;;  %13481 = vmatpush3.bf16.msra.mxu1 %v14376_v38  ;;  %v5945_v51 = vld [vmem:[#allocation2 + $0x48] sm:$0xf] }
 0x37a   :  { %v2727_v47 = vsel %vm17494_vm11, %v2722_v30, %v2726_v15  ;;  %v6125_v1 = vrot.slane %v6123_v57, 4  ;;  %v6128_v6 = vrot.slane %v6126_v22, 5  ;;  %13482 = vmatprep.subr.bf16.mxu1 %v14377_v52  ;;  %v6136_v21 = vshrl.u32 %v5943_v34, 16  ;;  %v5946_v30 = vld [vmem:[#allocation2 + $0x4c] sm:$0xf] }
 0x37b   :  { %v12078_v54 = vcombine.low %v2717_v3, %v2727_v47  ;;  %v6106_v55 = vrot.slane %v6105_v2, 4  ;;  %v6115_v19 = vor.u32 %v6114_v39, %v6110_v41  ;;  %v6134_v16 = vrot.slane %v6132_v29, 5  ;;  %v5947_v2 = vld [vmem:[#allocation2 + $0x50] sm:$0x1]  ;;  %v5948_v47 = vld [vmem:[#allocation2 + $0x54] sm:$0xf] }
 0x37c   :  { %v6142_v13 = vshll.u32 %v5944_v9, 16  ;;  %v2729_v5 = vshrl.u32 %v2503_v18, 16  ;;  %v6129_v61 = vor.u32 %v6128_v6, %v6125_v1  ;;  %v2732_v40 = vshll.u32 %v2503_v18, 16 }
 0x37d   :  { %13100 = vmatprep.mubr.bf16.mxu0 %v12078_v54  ;;  %v6111_v48 = vsel %vm17494_vm11, %v6106_v55, %v6110_v41  ;;  %v6116_v14 = vrot.slane %v6115_v19, 4  ;;  %v6138_v53 = vrot.slane %v6136_v21, 4  ;;  %v2738_v45 = vshll.u32 %v2504_v25, 16  ;;  %13483 = vmatpush3.bf16.msra.mxu1 %v14377_v52 }
 0x37e   :  { %v6144_v42 = vrot.slane %v6142_v13, 5  ;;  %v2731_v12 = vrot.slane %v2729_v5, 4  ;;  %v6130_v56 = vrot.slane %v6129_v61, 4  ;;  %v2734_v10 = vrot.slane %v2732_v40, 5  ;;  %13484 = vmatprep.subr.bf16.mxu1 %v14378_v8 }
 0x37f   :  { %v6121_v44 = vsel %vm17494_vm11, %v6116_v14, %v6120_v50  ;;  %v2742_v49 = vshrl.u32 %v2504_v25, 16  ;;  %v6139_v38 = vor.u32 %v6138_v53, %v6134_v16  ;;  %v2740_v46 = vrot.slane %v2738_v45, 5  ;;  %v2507_v53 = vld [vmem:[#allocation2 + $0x54] sm:$0xf] }
 0x380   :  { %v12269_v28 = vcombine.low %v6111_v48, %v6121_v44  ;;  %v2748_v11 = vshll.u32 %v2578_v32, 16  ;;  %v6135_v37 = vsel %vm17494_vm11, %v6130_v56, %v6134_v16  ;;  %v2735_v20 = vor.u32 %v2734_v10, %v2731_v12  ;;  %v5950_v48 = vld [vmem:[#allocation2 + $0x5c] sm:$0x1] }
 0x381   :  { %v2744_v36 = vrot.slane %v2742_v49, 4  ;;  %v2753_v63 = vshrl.u32 %v2505_v17, 16  ;;  %v6140_v4 = vrot.slane %v6139_v38, 4  ;;  %v2756_v58 = vshll.u32 %v2505_v17, 16  ;;  %13485 = vmatpush3.bf16.msra.mxu1 %v14378_v8  ;;  %v5949_v8 = vld [vmem:[#allocation2 + $0x58] sm:$0xf] }
 0x382   :  { %13417 = vmatmul.mubr.bf16.gmra.mrb[4].mxu1 %v12269_v28  ;;  %v2750_v24 = vrot.slane %v2748_v11, 5  ;;  %v2762_v33 = vshll.u32 %v2506_v27, 16  ;;  %v2736_v26 = vrot.slane %v2735_v20, 4  ;;  %v2766_v34 = vshrl.u32 %v2506_v27, 16  ;;  %v2508_v27 = vld [vmem:[#allocation2 + $0x58] sm:$0xf] }
 0x383   :  { %v2745_v15 = vor.u32 %v2744_v36, %v2740_v46  ;;  %v2755_v35 = vrot.slane %v2753_v63, 4  ;;  %v6145_v7 = vsel %vm17494_vm11, %v6140_v4, %v6144_v42  ;;  %v2758_v23 = vrot.slane %v2756_v58, 5  ;;  %v2509_v4 = vld [vmem:[#allocation2 + $0x60] sm:$0xf] }
 0x384   :  { %v2764_v60 = vrot.slane %v2762_v33, 5  ;;  %v2772_v52 = vshll.u32 %v2579_v59, 16  ;;  %v12270_v41 = vcombine.low %v6135_v37, %v6145_v7  ;;  %v2741_v31 = vsel %vm17494_vm11, %v2736_v26, %v2740_v46  ;;  %v2580_v37 = vld [vmem:[#allocation2 + $0x5c] sm:$0x1]  ;;  %v2510_v7 = vld [vmem:[#allocation2 + $0x64] sm:$0xf] }
 0x385   :  { %v2746_v57 = vrot.slane %v2745_v15, 4  ;;  %v2768_v3 = vrot.slane %v2766_v34, 4  ;;  %v2759_v39 = vor.u32 %v2758_v23, %v2755_v35  ;;  %v6147_v22 = vshrl.u32 %v5945_v51, 16 }
 0x386   :  { %v2774_v9 = vrot.slane %v2772_v52, 5  ;;  %v6150_v18 = vshll.u32 %v5945_v51, 16  ;;  %13420 = vmatprep.mubr.bf16.mxu1 %v12270_v41  ;;  %v6156_v29 = vshll.u32 %v5946_v30, 16  ;;  %v6160_v54 = vshrl.u32 %v5946_v30, 16 }
 0x387   :  { %v2751_v50 = vsel %vm17494_vm11, %v2746_v57, %v2750_v24  ;;  %v2769_v1 = vor.u32 %v2768_v3, %v2764_v60  ;;  %v2760_v19 = vrot.slane %v2759_v39, 4  ;;  %v6149_v6 = vrot.slane %v6147_v22, 4  ;;  %v2581_v57 = vld [vmem:[#allocation2 + $0x68] sm:$0x1]  ;;  %v14379_v39 = vld [vmem:[#allocation8 + $0x168] sm:$0xff]  }
 0x388   :  { %v12079_v55 = vcombine.low %v2741_v31, %v2751_v50  ;;  %v6152_v25 = vrot.slane %v6150_v18, 5  ;;  %v6158_v21 = vrot.slane %v6156_v29, 5  ;;  %v6162_v13 = vrot.slane %v6160_v54, 4  ;;  %13486 = vmatprep.subr.bf16.mxu1 %v14379_v39 }
 0x389   :  { %v2770_v16 = vrot.slane %v2769_v1, 4  ;;  %v6166_v5 = vshll.u32 %v5947_v2, 16  ;;  %v2765_v14 = vsel %vm17494_vm11, %v2760_v19, %v2764_v60  ;;  %v6171_v32 = vshrl.u32 %v5948_v47, 16  ;;  %13487 = vmatpush3.bf16.msra.mxu1 %v14379_v39 }
 0x38a   :  { %13101 = vmatmul.mubr.bf16.gmra.mrb[72].mxu0 %v12079_v55  ;;  %v6153_v61 = vor.u32 %v6152_v25, %v6149_v6  ;;  %v6174_v40 = vshll.u32 %v5948_v47, 16  ;;  %v6163_v12 = vor.u32 %v6162_v13, %v6158_v21  ;;  %v6180_v17 = vshll.u32 %v5949_v8, 16  ;;  %v5951_v55 = vld [vmem:[#allocation2 + $0x60] sm:$0xf] }
 0x38b   :  { %v2775_v42 = vsel %vm17494_vm11, %v2770_v16, %v2774_v9  ;;  %v6168_v45 = vrot.slane %v6166_v5, 5  ;;  %v6173_v10 = vrot.slane %v6171_v32, 4  ;;  %v6184_v46 = vshrl.u32 %v5949_v8, 16  ;;  %v5952_v16 = vld [vmem:[#allocation2 + $0x64] sm:$0xf] }
 0x38c   :  { %v12080_v44 = vcombine.low %v2765_v14, %v2775_v42  ;;  %v6154_v56 = vrot.slane %v6153_v61, 4  ;;  %v6176_v49 = vrot.slane %v6174_v40, 5  ;;  %v6164_v28 = vrot.slane %v6163_v12, 4  ;;  %v5955_v42 = vld [vmem:[#allocation2 + $0x70] sm:$0xf] }
 0x38d   :  { %v6182_v38 = vrot.slane %v6180_v17, 5  ;;  %v6190_v11 = vshll.u32 %v5950_v48, 16  ;;  %v2777_v59 = vshrl.u32 %v2507_v53, 16  ;;  %v2780_v63 = vshll.u32 %v2507_v53, 16 }
 0x38e   :  { %13104 = vmatprep.mubr.bf16.mxu0 %v12080_v44  ;;  %v6159_v20 = vsel %vm17494_vm11, %v6154_v56, %v6158_v21  ;;  %v6177_v36 = vor.u32 %v6176_v49, %v6173_v10  ;;  %v6169_v24 = vsel %vm17494_vm11, %v6164_v28, %v6168_v45  ;;  %v6186_v58 = vrot.slane %v6184_v46, 4  ;;  %v5953_v21 = vld [vmem:[#allocation2 + $0x68] sm:$0x1]  ;;  %v5954_v56 = vld [vmem:[#allocation2 + $0x6c] sm:$0xf] }
 0x38f   :  { %v6192_v33 = vrot.slane %v6190_v11, 5  ;;  %v2786_v26 = vshll.u32 %v2508_v27, 16  ;;  %v12271_v15 = vcombine.low %v6159_v20, %v6169_v24  ;;  %v2779_v34 = vrot.slane %v2777_v59, 4 }
 0x390   :  { %v6178_v35 = vrot.slane %v6177_v36, 4  ;;  %v2782_v51 = vrot.slane %v2780_v63, 5  ;;  %v6187_v23 = vor.u32 %v6186_v58, %v6182_v38  ;;  %v2790_v52 = vshrl.u32 %v2508_v27, 16  ;;  %v2511_v36 = vld [vmem:[#allocation2 + $0x6c] sm:$0xf] }
 0x391   :  { %v2788_v60 = vrot.slane %v2786_v26, 5  ;;  %v2796_v30 = vshll.u32 %v2580_v37, 16  ;;  %13421 = vmatmul.mubr.bf16.gmra.mrb[8].mxu1 %v12271_v15  ;;  %v2801_v3 = vshrl.u32 %v2509_v4, 16  ;;  %v2804_v2 = vshll.u32 %v2509_v4, 16 }
 0x392   :  { %v6183_v41 = vsel %vm17494_vm11, %v6178_v35, %v6182_v38  ;;  %v2783_v31 = vor.u32 %v2782_v51, %v2779_v34  ;;  %v6188_v9 = vrot.slane %v6187_v23, 4  ;;  %v2792_v22 = vrot.slane %v2790_v52, 4  ;;  %v5956_v38 = vld [vmem:[#allocation2 + $0x74] sm:$0x1]  ;;  %v2512_v23 = vld [vmem:[#allocation2 + $0x70] sm:$0xf] }
 0x393   :  { %v2798_v18 = vrot.slane %v2796_v30, 5  ;;  %v2810_v47 = vshll.u32 %v2510_v7, 16  ;;  %v2803_v1 = vrot.slane %v2801_v3, 4  ;;  %v2806_v29 = vrot.slane %v2804_v2, 5 }
 0x394   :  { %v2784_v50 = vrot.slane %v2783_v31, 4  ;;  %v2814_v54 = vshrl.u32 %v2510_v7, 16  ;;  %v6193_v19 = vsel %vm17494_vm11, %v6188_v9, %v6192_v33  ;;  %v2793_v6 = vor.u32 %v2792_v22, %v2788_v60  ;;  %v2582_v31 = vld [vmem:[#allocation2 + $0x74] sm:$0x1] }
 0x395   :  { %v2812_v25 = vrot.slane %v2810_v47, 5  ;;  %v2820_v8 = vshll.u32 %v2581_v57, 16  ;;  %v12272_v13 = vcombine.low %v6183_v41, %v6193_v19  ;;  %v2807_v48 = vor.u32 %v2806_v29, %v2803_v1  ;;  %v2513_v57 = vld [vmem:[#allocation2 + $0x78] sm:$0xf]  ;;  %v2514_v19 = vld [vmem:[#allocation2 + $0x7c] sm:$0xf] }
 0x396   :  { %v2789_v5 = vsel %vm17494_vm11, %v2784_v50, %v2788_v60  ;;  %v2816_v14 = vrot.slane %v2814_v54, 4  ;;  %v2794_v61 = vrot.slane %v2793_v6, 4  ;;  %v6195_v40 = vshrl.u32 %v5951_v55, 16 }
 0x397   :  { %v2822_v32 = vrot.slane %v2820_v8, 5  ;;  %v6198_v53 = vshll.u32 %v5951_v55, 16  ;;  %13424 = vmatprep.mubr.bf16.mxu1 %v12272_v13  ;;  %v2808_v12 = vrot.slane %v2807_v48, 4  ;;  %v6204_v17 = vshll.u32 %v5952_v16, 16 }
 0x398   :  { %v2817_v45 = vor.u32 %v2816_v14, %v2812_v25  ;;  %v6208_v44 = vshrl.u32 %v5952_v16, 16  ;;  %v2799_v10 = vsel %vm17494_vm11, %v2794_v61, %v2798_v18  ;;  %v6197_v49 = vrot.slane %v6195_v40, 4  ;;  %v5957_v61 = vld [vmem:[#allocation2 + $0x78] sm:$0xf] }
 0x399   :  { %v6200_v27 = vrot.slane %v6198_v53, 5  ;;  %v6214_v28 = vshll.u32 %v5953_v21, 16  ;;  %v12081_v46 = vcombine.low %v2789_v5, %v2799_v10  ;;  %v2813_v11 = vsel %vm17494_vm11, %v2808_v12, %v2812_v25  ;;  %v2583_v21 = vld [vmem:[#allocation2 + $0x80] sm:$0x1] }
 0x39a   :  { %v2818_v37 = vrot.slane %v2817_v45, 4  ;;  %v6206_v20 = vrot.slane %v6204_v17, 5  ;;  %v6210_v63 = vrot.slane %v6208_v44, 4  ;;  %v6219_v24 = vshrl.u32 %v5954_v56, 16 }
 0x39b   :  { %v6201_v59 = vor.u32 %v6200_v27, %v6197_v49  ;;  %v6216_v4 = vrot.slane %v6214_v28, 5  ;;  %13105 = vmatmul.mubr.bf16.gmra.mrb[76].mxu0 %v12081_v46  ;;  %v6222_v33 = vshll.u32 %v5954_v56, 16  ;;  %v6228_v26 = vshll.u32 %v5955_v42, 16  ;;  %v5958_v56 = vld [vmem:[#allocation2 + $0x7c] sm:$0xf] }
 0x39c   :  { %v2823_v58 = vsel %vm17494_vm11, %v2818_v37, %v2822_v32  ;;  %v6232_v15 = vshrl.u32 %v5955_v42, 16  ;;  %v6211_v51 = vor.u32 %v6210_v63, %v6206_v20  ;;  %v6221_v7 = vrot.slane %v6219_v24, 4  ;;  %v5960_v46 = vld [vmem:[#allocation2 + $0x84] sm:$0xf] }
 0x39d   :  { %v12082_v35 = vcombine.low %v2813_v11, %v2823_v58  ;;  %v6202_v34 = vrot.slane %v6201_v59, 4  ;;  %v6224_v60 = vrot.slane %v6222_v33, 5  ;;  %v6230_v52 = vrot.slane %v6228_v26, 5 }
 0x39e   :  { %v6234_v30 = vrot.slane %v6232_v15, 4  ;;  %v6238_v41 = vshll.u32 %v5956_v38, 16  ;;  %v6212_v2 = vrot.slane %v6211_v51, 4  ;;  %v2825_v39 = vshrl.u32 %v2511_v36, 16  ;;  %v5959_v38 = vld [vmem:[#allocation2 + $0x80] sm:$0x1] }
 0x39f   :  { %13108 = vmatprep.mubr.bf16.mxu0 %v12082_v35  ;;  %v6207_v3 = vsel %vm17494_vm11, %v6202_v34, %v6206_v20  ;;  %v2828_v9 = vshll.u32 %v2511_v36, 16  ;;  %v6225_v22 = vor.u32 %v6224_v60, %v6221_v7  ;;  %v2834_v50 = vshll.u32 %v2512_v23, 16  ;;  %v5962_v60 = vld [vmem:[#allocation2 + $0x8c] sm:$0x1] }
 0x3a0   :  { %v6235_v18 = vor.u32 %v6234_v30, %v6230_v52  ;;  %v6240_v47 = vrot.slane %v6238_v41, 5  ;;  %v6217_v1 = vsel %vm17494_vm11, %v6212_v2, %v6216_v4  ;;  %v2827_v29 = vrot.slane %v2825_v39, 4 }
 0x3a1   :  { %v2830_v54 = vrot.slane %v2828_v9, 5  ;;  %v2838_v55 = vshrl.u32 %v2512_v23, 16  ;;  %v12273_v6 = vcombine.low %v6207_v3, %v6217_v1  ;;  %v6226_v25 = vrot.slane %v6225_v22, 4  ;;  %v5961_v23 = vld [vmem:[#allocation2 + $0x88] sm:$0xf] }
 0x3a2   :  { %v6236_v8 = vrot.slane %v6235_v18, 4  ;;  %v2836_v16 = vrot.slane %v2834_v50, 5  ;;  %v2844_v48 = vshll.u32 %v2582_v31, 16  ;;  %v2849_v14 = vshrl.u32 %v2513_v57, 16 }
 0x3a3   :  { %v2831_v13 = vor.u32 %v2830_v54, %v2827_v29  ;;  %v2840_v5 = vrot.slane %v2838_v55, 4  ;;  %13425 = vmatmul.mubr.bf16.gmra.mrb[12].mxu1 %v12273_v6  ;;  %v6231_v32 = vsel %vm17494_vm11, %v6226_v25, %v6230_v52  ;;  %v2852_v53 = vshll.u32 %v2513_v57, 16  ;;  %v2515_v57 = vld [vmem:[#allocation2 + $0x84] sm:$0xf] }
 0x3a4   :  { %v6241_v40 = vsel %vm17494_vm11, %v6236_v8, %v6240_v47  ;;  %v2858_v42 = vshll.u32 %v2514_v19, 16  ;;  %v2846_v44 = vrot.slane %v2844_v48, 5  ;;  %v2851_v10 = vrot.slane %v2849_v14, 4 }
 0x3a5   :  { %v12274_v12 = vcombine.low %v6231_v32, %v6241_v40  ;;  %v2832_v45 = vrot.slane %v2831_v13, 4  ;;  %v2841_v17 = vor.u32 %v2840_v5, %v2836_v16  ;;  %v2854_v49 = vrot.slane %v2852_v53, 5 }
 0x3a6   :  { %v2860_v27 = vrot.slane %v2858_v42, 5  ;;  %v2862_v28 = vshrl.u32 %v2514_v19, 16  ;;  %v2868_v20 = vshll.u32 %v2583_v21, 16  ;;  %v6243_v36 = vshrl.u32 %v5957_v61, 16  ;;  %v2516_v19 = vld [vmem:[#allocation2 + $0x88] sm:$0xf] }
 0x3a7   :  { %13428 = vmatprep.mubr.bf16.mxu1 %v12274_v12  ;;  %v2837_v11 = vsel %vm17494_vm11, %v2832_v45, %v2836_v16  ;;  %v2842_v37 = vrot.slane %v2841_v17, 4  ;;  %v2855_v59 = vor.u32 %v2854_v49, %v2851_v10  ;;  %v6246_v4 = vshll.u32 %v5957_v61, 16  ;;  %v2584_v21 = vld [vmem:[#allocation2 + $0x8c] sm:$0x1]  ;;  %v2517_v61 = vld [vmem:[#allocation2 + $0x90] sm:$0xf] }
 0x3a8   :  { %v2864_v63 = vrot.slane %v2862_v28, 4  ;;  %v6252_v24 = vshll.u32 %v5958_v56, 16  ;;  %v2870_v33 = vrot.slane %v2868_v20, 5  ;;  %v6245_v26 = vrot.slane %v6243_v36, 4 }
 0x3a9   :  { %v2847_v58 = vsel %vm17494_vm11, %v2842_v37, %v2846_v44  ;;  %v6256_v15 = vshrl.u32 %v5958_v56, 16  ;;  %v2856_v34 = vrot.slane %v2855_v59, 4  ;;  %v6248_v7 = vrot.slane %v6246_v4, 5  ;;  %v2518_v56 = vld [vmem:[#allocation2 + $0x94] sm:$0xf] }
 0x3aa   :  { %v12083_v35 = vcombine.low %v2837_v11, %v2847_v58  ;;  %v2865_v51 = vor.u32 %v2864_v63, %v2860_v27  ;;  %v6254_v52 = vrot.slane %v6252_v24, 5  ;;  %v6262_v41 = vshll.u32 %v5959_v38, 16  ;;  %v2585_v38 = vld [vmem:[#allocation2 + $0x98] sm:$0x1]  ;;  %v14380_v59 = vld [vmem:[#allocation8] sm:$0xff]   ;;  %v14381_v63 = vld [vmem:[#allocation8 + $0x170] sm:$0xff]  }
 0x3ab   :  { %v6258_v30 = vrot.slane %v6256_v15, 4  ;;  %v6267_v31 = vshrl.u32 %v5960_v46, 16  ;;  %v2861_v3 = vsel %vm17494_vm11, %v2856_v34, %v2860_v27  ;;  %v6249_v39 = vor.u32 %v6248_v7, %v6245_v26  ;;  %13156 = vmatprep.subr.bf16.mxu0 %v14380_v59  ;;  %13488 = vmatprep.subr.bf16.mxu1 %v14381_v63 }
 0x3ac   :  { %13109 = vmatmul.mubr.bf16.gmra.mrb[80].mxu0 %v12083_v35  ;;  %v2866_v2 = vrot.slane %v2865_v51, 4  ;;  %v6270_v9 = vshll.u32 %v5960_v46, 16  ;;  %v6264_v18 = vrot.slane %v6262_v41, 5  ;;  %v6276_v50 = vshll.u32 %v5961_v23, 16  ;;  %v5963_v46 = vld [vmem:[#allocation2 + $0x90] sm:$0xf]  ;;  %13489 = vmatpush3.bf16.msra.mxu1 %v14381_v63 }
 0x3ad   :  { %v6259_v22 = vor.u32 %v6258_v30, %v6254_v52  ;;  %v6269_v47 = vrot.slane %v6267_v31, 4  ;;  %v6250_v29 = vrot.slane %v6249_v39, 4  ;;  %v6280_v55 = vshrl.u32 %v5961_v23, 16  ;;  %v5964_v51 = vld [vmem:[#allocation2 + $0x94] sm:$0xf]  ;;  %13157 = vmatpush3.bf16.msra.mxu0 %v14380_v59 }
 0x3ae   :  { %v2871_v1 = vsel %vm17494_vm11, %v2866_v2, %v2870_v33  ;;  %v6272_v54 = vrot.slane %v6270_v9, 5  ;;  %v6278_v8 = vrot.slane %v6276_v50, 5  ;;  %v6286_v16 = vshll.u32 %v5962_v60, 16  ;;  %v5965_v30 = vld [vmem:[#allocation2 + $0x98] sm:$0x1] }
 0x3af   :  { %v12084_v6 = vcombine.low %v2861_v3, %v2871_v1  ;;  %v6260_v25 = vrot.slane %v6259_v22, 4  ;;  %v6255_v13 = vsel %vm17494_vm11, %v6250_v29, %v6254_v52  ;;  %v6282_v48 = vrot.slane %v6280_v55, 4 }
 0x3b0   :  { %v6273_v5 = vor.u32 %v6272_v54, %v6269_v47  ;;  %v2873_v14 = vshrl.u32 %v2515_v57, 16  ;;  %v6288_v40 = vrot.slane %v6286_v16, 5  ;;  %v2876_v53 = vshll.u32 %v2515_v57, 16  ;;  %v5966_v54 = vld [vmem:[#allocation2 + $0x9c] sm:$0xf] }
 0x3b1   :  { %13112 = vmatprep.mubr.bf16.mxu0 %v12084_v6  ;;  %v6265_v32 = vsel %vm17494_vm11, %v6260_v25, %v6264_v18  ;;  %v2882_v42 = vshll.u32 %v2516_v19, 16  ;;  %v6283_v17 = vor.u32 %v6282_v48, %v6278_v8  ;;  %v2886_v27 = vshrl.u32 %v2516_v19, 16  ;;  %v5967_v18 = vld [vmem:[#allocation2 + $0xa0] sm:$0xf]  ;;  %v2519_v48 = vld [vmem:[#allocation2 + $0x9c] sm:$0xf] }
 0x3b2   :  { %v12275_v12 = vcombine.low %v6255_v13, %v6265_v32  ;;  %v6274_v45 = vrot.slane %v6273_v5, 4  ;;  %v2875_v44 = vrot.slane %v2873_v14, 4  ;;  %v2878_v10 = vrot.slane %v2876_v53, 5 }
 0x3b3   :  { %v2884_v49 = vrot.slane %v2882_v42, 5  ;;  %v2892_v28 = vshll.u32 %v2584_v21, 16  ;;  %v6284_v37 = vrot.slane %v6283_v17, 4  ;;  %v2897_v20 = vshrl.u32 %v2517_v61, 16 }
 0x3b4   :  { %13429 = vmatmul.mubr.bf16.gmra.mrb[16].mxu1 %v12275_v12  ;;  %v6279_v11 = vsel %vm17494_vm11, %v6274_v45, %v6278_v8  ;;  %v2900_v36 = vshll.u32 %v2517_v61, 16  ;;  %v2879_v4 = vor.u32 %v2878_v10, %v2875_v44  ;;  %v2888_v24 = vrot.slane %v2886_v27, 4  ;;  %v5968_v8 = vld [vmem:[#allocation2 + $0xa4] sm:$0x1] }
 0x3b5   :  { %v2894_v58 = vrot.slane %v2892_v28, 5  ;;  %v2906_v33 = vshll.u32 %v2518_v56, 16  ;;  %v6289_v26 = vsel %vm17494_vm11, %v6284_v37, %v6288_v40  ;;  %v2899_v15 = vrot.slane %v2897_v20, 4  ;;  %v2521_v37 = vld [vmem:[#allocation2 + $0xa8] sm:$0xf] }
 0x3b6   :  { %v2902_v35 = vrot.slane %v2900_v36, 5  ;;  %v2910_v34 = vshrl.u32 %v2518_v56, 16  ;;  %v12276_v7 = vcombine.low %v6279_v11, %v6289_v26  ;;  %v2880_v23 = vrot.slane %v2879_v4, 4  ;;  %v2586_v11 = vld [vmem:[#allocation2 + $0xa4] sm:$0x1]  ;;  %v14382_v4 = vld [vmem:[#allocation8 + $0x8] sm:$0xff]  }
 0x3b7   :  { %v2889_v60 = vor.u32 %v2888_v24, %v2884_v49  ;;  %v2908_v52 = vrot.slane %v2906_v33, 5  ;;  %v2916_v57 = vshll.u32 %v2585_v38, 16  ;;  %v6291_v3 = vshrl.u32 %v5963_v46, 16  ;;  %13158 = vmatprep.subr.bf16.mxu0 %v14382_v4 }
 0x3b8   :  { %v2903_v41 = vor.u32 %v2902_v35, %v2899_v15  ;;  %v2912_v31 = vrot.slane %v2910_v34, 4  ;;  %13432 = vmatprep.mubr.bf16.mxu1 %v12276_v7  ;;  %v2885_v2 = vsel %vm17494_vm11, %v2880_v23, %v2884_v49  ;;  %v6294_v9 = vshll.u32 %v5963_v46, 16  ;;  %v2520_v49 = vld [vmem:[#allocation2 + $0xa0] sm:$0xf]  ;;  %v2522_v7 = vld [vmem:[#allocation2 + $0xac] sm:$0xf]  ;;  %13159 = vmatpush3.bf16.msra.mxu0 %v14382_v4 }
 0x3b9   :  { %v2890_v39 = vrot.slane %v2889_v60, 4  ;;  %v6300_v22 = vshll.u32 %v5964_v51, 16  ;;  %v2918_v1 = vrot.slane %v2916_v57, 5  ;;  %v6293_v29 = vrot.slane %v6291_v3, 4 }
 0x3ba   :  { %v2904_v47 = vrot.slane %v2903_v41, 4  ;;  %v2913_v50 = vor.u32 %v2912_v31, %v2908_v52  ;;  %v6296_v19 = vrot.slane %v6294_v9, 5  ;;  %v6304_v25 = vshrl.u32 %v5964_v51, 16  ;;  %v2587_v41 = vld [vmem:[#allocation2 + $0xb0] sm:$0x1] }
 0x3bb   :  { %v2895_v55 = vsel %vm17494_vm11, %v2890_v39, %v2894_v58  ;;  %v6302_v6 = vrot.slane %v6300_v22, 5  ;;  %v6310_v5 = vshll.u32 %v5965_v30, 16  ;;  %v6315_v32 = vshrl.u32 %v5966_v54, 16  ;;  %v5969_v39 = vld [vmem:[#allocation2 + $0xa8] sm:$0xf] }
 0x3bc   :  { %v12085_v16 = vcombine.low %v2885_v2, %v2895_v55  ;;  %v2909_v21 = vsel %vm17494_vm11, %v2904_v47, %v2908_v52  ;;  %v2914_v13 = vrot.slane %v2913_v50, 4  ;;  %v6297_v14 = vor.u32 %v6296_v19, %v6293_v29  ;;  %v14383_v50 = vld [vmem:[#allocation8 + $0x10] sm:$0xff]   ;;  %v5970_v19 = vld [vmem:[#allocation2 + $0xac] sm:$0xf] }
 0x3bd   :  { %v6306_v61 = vrot.slane %v6304_v25, 4  ;;  %v6318_v40 = vshll.u32 %v5966_v54, 16  ;;  %v6312_v42 = vrot.slane %v6310_v5, 5  ;;  %v6324_v12 = vshll.u32 %v5967_v18, 16  ;;  %13160 = vmatprep.subr.bf16.mxu0 %v14383_v50 }
 0x3be   :  { %13113 = vmatmul.mubr.bf16.gmra.mrb[84].mxu0 %v12085_v16  ;;  %v2919_v53 = vsel %vm17494_vm11, %v2914_v13, %v2918_v1  ;;  %v6328_v45 = vshrl.u32 %v5967_v18, 16  ;;  %v6298_v44 = vrot.slane %v6297_v14, 4  ;;  %v6317_v10 = vrot.slane %v6315_v32, 4  ;;  %v5972_v13 = vld [vmem:[#allocation2 + $0xb4] sm:$0xf] }
 0x3bf   :  { %v12086_v17 = vcombine.low %v2909_v21, %v2919_v53  ;;  %v6307_v56 = vor.u32 %v6306_v61, %v6302_v6  ;;  %v6320_v27 = vrot.slane %v6318_v40, 5  ;;  %v6326_v28 = vrot.slane %v6324_v12, 5  ;;  %v5971_v21 = vld [vmem:[#allocation2 + $0xb0] sm:$0x1]  ;;  %13161 = vmatpush3.bf16.msra.mxu0 %v14383_v50 }
 0x3c0   :  { %v6330_v38 = vrot.slane %v6328_v45, 4  ;;  %v6334_v46 = vshll.u32 %v5968_v8, 16  ;;  %v6303_v20 = vsel %vm17494_vm11, %v6298_v44, %v6302_v6  ;;  %v2921_v59 = vshrl.u32 %v2519_v48, 16 }
 0x3c1   :  { %13116 = vmatprep.mubr.bf16.mxu0 %v12086_v17  ;;  %v6308_v36 = vrot.slane %v6307_v56, 4  ;;  %v2924_v63 = vshll.u32 %v2519_v48, 16  ;;  %v6321_v24 = vor.u32 %v6320_v27, %v6317_v10  ;;  %v2930_v26 = vshll.u32 %v2520_v49, 16 }
 0x3c2   :  { %v6331_v58 = vor.u32 %v6330_v38, %v6326_v28  ;;  %v6336_v33 = vrot.slane %v6334_v46, 5  ;;  %v2923_v35 = vrot.slane %v2921_v59, 4  ;;  %v2934_v51 = vshrl.u32 %v2520_v49, 16  ;;  %v5974_v38 = vld [vmem:[#allocation2 + $0xbc] sm:$0x1] }
 0x3c3   :  { %v6313_v15 = vsel %vm17494_vm11, %v6308_v36, %v6312_v42  ;;  %v2926_v34 = vrot.slane %v2924_v63, 5  ;;  %v6322_v60 = vrot.slane %v6321_v24, 4  ;;  %v2932_v30 = vrot.slane %v2930_v26, 5  ;;  %v2523_v36 = vld [vmem:[#allocation2 + $0xb4] sm:$0xf] }
 0x3c4   :  { %v12277_v23 = vcombine.low %v6303_v20, %v6313_v15  ;;  %v6332_v52 = vrot.slane %v6331_v58, 4  ;;  %v2936_v57 = vrot.slane %v2934_v51, 4  ;;  %v2940_v3 = vshll.u32 %v2586_v11, 16 }
 0x3c5   :  { %v2927_v31 = vor.u32 %v2926_v34, %v2923_v35  ;;  %v2945_v2 = vshrl.u32 %v2521_v37, 16  ;;  %v6327_v9 = vsel %vm17494_vm11, %v6322_v60, %v6326_v28  ;;  %v2948_v18 = vshll.u32 %v2521_v37, 16  ;;  %v5973_v28 = vld [vmem:[#allocation2 + $0xb8] sm:$0xf] }
 0x3c6   :  { %13433 = vmatmul.mubr.bf16.gmra.mrb[20].mxu1 %v12277_v23  ;;  %v6337_v22 = vsel %vm17494_vm11, %v6332_v52, %v6336_v33  ;;  %v2954_v47 = vshll.u32 %v2522_v7, 16  ;;  %v2937_v54 = vor.u32 %v2936_v57, %v2932_v30  ;;  %v2942_v55 = vrot.slane %v2940_v3, 5  ;;  %v2524_v23 = vld [vmem:[#allocation2 + $0xb8] sm:$0xf]  ;;  %v14384_v57 = vld [vmem:[#allocation8 + $0x18] sm:$0xff]  }
 0x3c7   :  { %v12278_v1 = vcombine.low %v6327_v9, %v6337_v22  ;;  %v2928_v29 = vrot.slane %v2927_v31, 4  ;;  %v2947_v6 = vrot.slane %v2945_v2, 4  ;;  %v2950_v25 = vrot.slane %v2948_v18, 5  ;;  %v2588_v31 = vld [vmem:[#allocation2 + $0xbc] sm:$0x1]  ;;  %13162 = vmatprep.subr.bf16.mxu0 %v14384_v57 }
 0x3c8   :  { %v2956_v8 = vrot.slane %v2954_v47, 5  ;;  %v2958_v16 = vshrl.u32 %v2522_v7, 16  ;;  %v2938_v48 = vrot.slane %v2937_v54, 4  ;;  %v2964_v14 = vshll.u32 %v2587_v41, 16  ;;  %v5975_v22 = vld [vmem:[#allocation2 + $0xc0] sm:$0xf]  ;;  %13163 = vmatpush3.bf16.msra.mxu0 %v14384_v57 }
 0x3c9   :  { %13436 = vmatprep.mubr.bf16.mxu1 %v12278_v1  ;;  %v2933_v5 = vsel %vm17494_vm11, %v2928_v29, %v2932_v30  ;;  %v6339_v61 = vshrl.u32 %v5969_v39, 16  ;;  %v2951_v32 = vor.u32 %v2950_v25, %v2947_v6  ;;  %v6342_v53 = vshll.u32 %v5969_v39, 16  ;;  %v5976_v6 = vld [vmem:[#allocation2 + $0xc4] sm:$0xf] }
 0x3ca   :  { %v2960_v40 = vrot.slane %v2958_v16, 4  ;;  %v6348_v42 = vshll.u32 %v5970_v19, 16  ;;  %v2943_v12 = vsel %vm17494_vm11, %v2938_v48, %v2942_v55  ;;  %v2966_v45 = vrot.slane %v2964_v14, 5 }
 0x3cb   :  { %v6341_v17 = vrot.slane %v6339_v61, 4  ;;  %v6352_v44 = vshrl.u32 %v5970_v19, 16  ;;  %v12087_v56 = vcombine.low %v2933_v5, %v2943_v12  ;;  %v2952_v10 = vrot.slane %v2951_v32, 4  ;;  %v5978_v5 = vld [vmem:[#allocation2 + $0xe4] sm:$0xf] }
 0x3cc   :  { %v2961_v49 = vor.u32 %v2960_v40, %v2956_v8  ;;  %v6344_v27 = vrot.slane %v6342_v53, 5  ;;  %v6350_v46 = vrot.slane %v6348_v42, 5  ;;  %v6358_v37 = vshll.u32 %v5971_v21, 16  ;;  %v14385_v40 = vld [vmem:[#allocation8 + $0x20] sm:$0xff]   ;;  %v14386_v53 = vld [vmem:[#allocation8 + $0x178] sm:$0xff]  }
 0x3cd   :  { %v6354_v11 = vrot.slane %v6352_v44, 4  ;;  %v6363_v20 = vshrl.u32 %v5972_v13, 16  ;;  %13117 = vmatmul.mubr.bf16.gmra.mrb[88].mxu0 %v12087_v56  ;;  %v2957_v59 = vsel %vm17494_vm11, %v2952_v10, %v2956_v8  ;;  %v6366_v24 = vshll.u32 %v5972_v13, 16  ;;  %v5977_v13 = vld [vmem:[#allocation2 + $0xc8] sm:$0x1]  ;;  %13164 = vmatprep.subr.bf16.mxu0 %v14385_v40 }
 0x3ce   :  { %v2962_v63 = vrot.slane %v2961_v49, 4  ;;  %v6345_v4 = vor.u32 %v6344_v27, %v6341_v17  ;;  %v6360_v33 = vrot.slane %v6358_v37, 5  ;;  %v6372_v15 = vshll.u32 %v5973_v28, 16  ;;  %v5979_v27 = vld [vmem:[#allocation2 + $0xe8] sm:$0xf]  ;;  %13490 = vmatprep.subr.bf16.mxu1 %v14386_v53  ;;  %13165 = vmatpush3.bf16.msra.mxu0 %v14385_v40 }
 0x3cf   :  { %v6355_v58 = vor.u32 %v6354_v11, %v6350_v46  ;;  %v6365_v26 = vrot.slane %v6363_v20, 4  ;;  %v6368_v51 = vrot.slane %v6366_v24, 5  ;;  %v6376_v7 = vshrl.u32 %v5973_v28, 16  ;;  %v5980_v37 = vld [vmem:[#allocation2 + $0xec] sm:$0x1]  ;;  %13491 = vmatpush3.bf16.msra.mxu1 %v14386_v53 }
 0x3d0   :  { %v2967_v35 = vsel %vm17494_vm11, %v2962_v63, %v2966_v45  ;;  %v6346_v34 = vrot.slane %v6345_v4, 4  ;;  %v6374_v30 = vrot.slane %v6372_v15, 5  ;;  %v6382_v41 = vshll.u32 %v5974_v38, 16  ;;  %v2525_v4 = vld [vmem:[#allocation2 + $0xd8] sm:$0xf] }
 0x3d1   :  { %v12088_v60 = vcombine.low %v2957_v59, %v2967_v35  ;;  %v6356_v52 = vrot.slane %v6355_v58, 4  ;;  %v6369_v2 = vor.u32 %v6368_v51, %v6365_v26  ;;  %v6378_v39 = vrot.slane %v6376_v7, 4  ;;  %v2526_v7 = vld [vmem:[#allocation2 + $0xdc] sm:$0xf] }
 0x3d2   :  { %v6351_v3 = vsel %vm17494_vm11, %v6346_v34, %v6350_v46  ;;  %v2969_v9 = vshrl.u32 %v2523_v36, 16  ;;  %v6384_v47 = vrot.slane %v6382_v41, 5  ;;  %v2972_v50 = vshll.u32 %v2523_v36, 16  ;;  %v2589_v41 = vld [vmem:[#allocation2 + $0xe0] sm:$0x1] }
 0x3d3   :  { %13120 = vmatprep.mubr.bf16.mxu0 %v12088_v60  ;;  %v6361_v18 = vsel %vm17494_vm11, %v6356_v52, %v6360_v33  ;;  %v2978_v1 = vshll.u32 %v2524_v23, 16  ;;  %v6370_v54 = vrot.slane %v6369_v2, 4  ;;  %v6379_v55 = vor.u32 %v6378_v39, %v6374_v30  ;;  %v2527_v39 = vld [vmem:[#allocation2 + $0xe4] sm:$0xf] }
 0x3d4   :  { %v12279_v29 = vcombine.low %v6351_v3, %v6361_v18  ;;  %v2971_v19 = vrot.slane %v2969_v9, 4  ;;  %v2974_v25 = vrot.slane %v2972_v50, 5  ;;  %v2982_v16 = vshrl.u32 %v2524_v23, 16  ;;  %v2528_v50 = vld [vmem:[#allocation2 + $0xe8] sm:$0xf] }
 0x3d5   :  { %v2980_v8 = vrot.slane %v2978_v1, 5  ;;  %v2988_v21 = vshll.u32 %v2588_v31, 16  ;;  %v6375_v48 = vsel %vm17494_vm11, %v6370_v54, %v6374_v30  ;;  %v6380_v14 = vrot.slane %v6379_v55, 4 }
 0x3d6   :  { %13437 = vmatmul.mubr.bf16.gmra.mrb[24].mxu1 %v12279_v29  ;;  %v6387_v61 = vshrl.u32 %v5975_v22, 16  ;;  %v6390_v32 = vshll.u32 %v5975_v22, 16  ;;  %v2975_v42 = vor.u32 %v2974_v25, %v2971_v19  ;;  %v2984_v12 = vrot.slane %v2982_v16, 4 }
 0x3d7   :  { %v2990_v45 = vrot.slane %v2988_v21, 5  ;;  %v6396_v17 = vshll.u32 %v5976_v6, 16  ;;  %v6385_v44 = vsel %vm17494_vm11, %v6380_v14, %v6384_v47  ;;  %v6400_v49 = vshrl.u32 %v5976_v6, 16  ;;  %v2529_v14 = vld [vmem:[#allocation2 + $0xf0] sm:$0xf] }
 0x3d8   :  { %v6389_v56 = vrot.slane %v6387_v61, 4  ;;  %v6392_v10 = vrot.slane %v6390_v32, 5  ;;  %v12280_v28 = vcombine.low %v6375_v48, %v6385_v44  ;;  %v2976_v38 = vrot.slane %v2975_v42, 4  ;;  %v2590_v48 = vld [vmem:[#allocation2 + $0xec] sm:$0x1]  ;;  %v14387_v42 = vld [vmem:[#allocation8 + $0x28] sm:$0xff]  }
 0x3d9   :  { %v2985_v46 = vor.u32 %v2984_v12, %v2980_v8  ;;  %v6398_v11 = vrot.slane %v6396_v17, 5  ;;  %v6402_v36 = vrot.slane %v6400_v49, 4  ;;  %v6406_v59 = vshll.u32 %v5977_v13, 16  ;;  %13166 = vmatprep.subr.bf16.mxu0 %v14387_v42 }
 0x3da   :  { %v6393_v20 = vor.u32 %v6392_v10, %v6389_v56  ;;  %v6411_v63 = vshrl.u32 %v5978_v5, 16  ;;  %13440 = vmatprep.mubr.bf16.mxu1 %v12280_v28  ;;  %v2981_v24 = vsel %vm17494_vm11, %v2976_v38, %v2980_v8  ;;  %v6414_v33 = vshll.u32 %v5978_v5, 16  ;;  %v2530_v56 = vld [vmem:[#allocation2 + $0xf4] sm:$0xf]  ;;  %13167 = vmatpush3.bf16.msra.mxu0 %v14387_v42 }
 0x3db   :  { %v2986_v58 = vrot.slane %v2985_v46, 4  ;;  %v6420_v26 = vshll.u32 %v5979_v27, 16  ;;  %v6403_v35 = vor.u32 %v6402_v36, %v6398_v11  ;;  %v6408_v34 = vrot.slane %v6406_v59, 5  ;;  %v5981_v36 = vld [vmem:[#allocation2 + $0xf0] sm:$0xf] }
 0x3dc   :  { %v6394_v15 = vrot.slane %v6393_v20, 4  ;;  %v6413_v51 = vrot.slane %v6411_v63, 4  ;;  %v6416_v60 = vrot.slane %v6414_v33, 5  ;;  %v6424_v30 = vshrl.u32 %v5979_v27, 16  ;;  %v2591_v20 = vld [vmem:[#allocation2 + $0xf8] sm:$0x1] }
 0x3dd   :  { %v2991_v23 = vsel %vm17494_vm11, %v2986_v58, %v2990_v45  ;;  %v6422_v52 = vrot.slane %v6420_v26, 5  ;;  %v6404_v3 = vrot.slane %v6403_v35, 4  ;;  %v6430_v2 = vshll.u32 %v5980_v37, 16  ;;  %v5982_v35 = vld [vmem:[#allocation2 + $0xf4] sm:$0xf] }
 0x3de   :  { %v12089_v31 = vcombine.low %v2981_v24, %v2991_v23  ;;  %v6399_v57 = vsel %vm17494_vm11, %v6394_v15, %v6398_v11  ;;  %v6417_v9 = vor.u32 %v6416_v60, %v6413_v51  ;;  %v6426_v22 = vrot.slane %v6424_v30, 4 }
 0x3df   :  { %v2993_v18 = vshrl.u32 %v2525_v4, 16  ;;  %v2996_v47 = vshll.u32 %v2525_v4, 16  ;;  %v6409_v1 = vsel %vm17494_vm11, %v6404_v3, %v6408_v34  ;;  %v6432_v29 = vrot.slane %v6430_v2, 5  ;;  %v14388_v34 = vld [vmem:[#allocation8 + $0x30] sm:$0xff]   ;;  %v5984_v3 = vld [vmem:[#allocation2 + $0xfc] sm:$0xf] }
 0x3e0   :  { %13121 = vmatmul.mubr.bf16.gmra.mrb[92].mxu0 %v12089_v31  ;;  %v3002_v54 = vshll.u32 %v2526_v7, 16  ;;  %v3006_v55 = vshrl.u32 %v2526_v7, 16  ;;  %v12281_v19 = vcombine.low %v6399_v57, %v6409_v1  ;;  %v6418_v6 = vrot.slane %v6417_v9, 4  ;;  %v5983_v57 = vld [vmem:[#allocation2 + $0xf8] sm:$0x1]  ;;  %13168 = vmatprep.subr.bf16.mxu0 %v14388_v34 }
 0x3e1   :  { %v6427_v25 = vor.u32 %v6426_v22, %v6422_v52  ;;  %v2995_v8 = vrot.slane %v2993_v18, 4  ;;  %v2998_v16 = vrot.slane %v2996_v47, 5  ;;  %v3012_v5 = vshll.u32 %v2589_v41, 16  ;;  %13169 = vmatpush3.bf16.msra.mxu0 %v14388_v34 }
 0x3e2   :  { %v3004_v21 = vrot.slane %v3002_v54, 5  ;;  %v3008_v13 = vrot.slane %v3006_v55, 4  ;;  %13441 = vmatmul.mubr.bf16.gmra.mrb[28].mxu1 %v12281_v19  ;;  %v6423_v61 = vsel %vm17494_vm11, %v6418_v6, %v6422_v52  ;;  %v3017_v40 = vshrl.u32 %v2527_v39, 16  ;;  %v14389_v54 = vld [vmem:[#allocation8 + $0x38] sm:$0xff]  }
 0x3e3   :  { %v6428_v32 = vrot.slane %v6427_v25, 4  ;;  %v3020_v53 = vshll.u32 %v2527_v39, 16  ;;  %v2999_v12 = vor.u32 %v2998_v16, %v2995_v8  ;;  %v3014_v17 = vrot.slane %v3012_v5, 5  ;;  %v5986_v5 = vld [vmem:[#allocation2 + $0x104] sm:$0x1]  ;;  %13170 = vmatprep.subr.bf16.mxu0 %v14389_v54 }
 0x3e4   :  { %v3009_v45 = vor.u32 %v3008_v13, %v3004_v21  ;;  %v3026_v44 = vshll.u32 %v2528_v50, 16  ;;  %v3019_v49 = vrot.slane %v3017_v40, 4  ;;  %v3030_v28 = vshrl.u32 %v2528_v50, 16  ;;  %v2531_v40 = vld [vmem:[#allocation2 + $0xfc] sm:$0xf] }
 0x3e5   :  { %v6433_v10 = vsel %vm17494_vm11, %v6428_v32, %v6432_v29  ;;  %v3022_v27 = vrot.slane %v3020_v53, 5  ;;  %v3000_v46 = vrot.slane %v2999_v12, 4  ;;  %v3036_v4 = vshll.u32 %v2590_v48, 16  ;;  %v5985_v29 = vld [vmem:[#allocation2 + $0x100] sm:$0xf]  ;;  %13171 = vmatpush3.bf16.msra.mxu0 %v14389_v54 }
 0x3e6   :  { %v12282_v38 = vcombine.low %v6423_v61, %v6433_v10  ;;  %v3010_v11 = vrot.slane %v3009_v45, 4  ;;  %v3028_v37 = vrot.slane %v3026_v44, 5  ;;  %v3032_v63 = vrot.slane %v3030_v28, 4  ;;  %v5987_v54 = vld [vmem:[#allocation2 + $0x108] sm:$0xf] }
 0x3e7   :  { %v3023_v59 = vor.u32 %v3022_v27, %v3019_v49  ;;  %v3041_v24 = vshrl.u32 %v2529_v14, 16  ;;  %v3005_v58 = vsel %vm17494_vm11, %v3000_v46, %v3004_v21  ;;  %v3044_v26 = vshll.u32 %v2529_v14, 16  ;;  %v2532_v27 = vld [vmem:[#allocation2 + $0x100] sm:$0xf] }
 0x3e8   :  { %13444 = vmatprep.mubr.bf16.mxu1 %v12282_v38  ;;  %v3015_v33 = vsel %vm17494_vm11, %v3010_v11, %v3014_v17  ;;  %v3050_v15 = vshll.u32 %v2530_v56, 16  ;;  %v3033_v23 = vor.u32 %v3032_v63, %v3028_v37  ;;  %v3038_v60 = vrot.slane %v3036_v4, 5  ;;  %v14392_v17 = vld [vmem:[#allocation8 + $0x180] sm:$0xff]  }
 0x3e9   :  { %v12090_v51 = vcombine.low %v3005_v58, %v3015_v33  ;;  %v3024_v7 = vrot.slane %v3023_v59, 4  ;;  %v3043_v52 = vrot.slane %v3041_v24, 4  ;;  %v3046_v30 = vrot.slane %v3044_v26, 5  ;;  %13556 = vmatprep.subr.bf16.mxu1 %v14392_v17  ;;  %v2533_v26 = vld [vmem:[#allocation2 + $0x108] sm:$0xf] }
 0x3ea   :  { %v3052_v41 = vrot.slane %v3050_v15, 5  ;;  %v3054_v31 = vshrl.u32 %v2530_v56, 16  ;;  %v3034_v39 = vrot.slane %v3033_v23, 4  ;;  %v3060_v9 = vshll.u32 %v2591_v20, 16 }
 0x3eb   :  { %13124 = vmatprep.mubr.bf16.mxu0 %v12090_v51  ;;  %v3029_v2 = vsel %vm17494_vm11, %v3024_v7, %v3028_v37  ;;  %v6435_v22 = vshrl.u32 %v5981_v36, 16  ;;  %v3047_v18 = vor.u32 %v3046_v30, %v3043_v52  ;;  %v6438_v50 = vshll.u32 %v5981_v36, 16  ;;  %v2592_v37 = vld [vmem:[#allocation2 + $0x104] sm:$0x1]  ;;  %v2534_v30 = vld [vmem:[#allocation2 + $0x10c] sm:$0xf] }
 0x3ec   :  { %v3056_v47 = vrot.slane %v3054_v31, 4  ;;  %v6444_v1 = vshll.u32 %v5982_v35, 16  ;;  %v3039_v55 = vsel %vm17494_vm11, %v3034_v39, %v3038_v60  ;;  %v3062_v19 = vrot.slane %v3060_v9, 5  ;;  %v2593_v9 = vld [vmem:[#allocation2 + $0x110] sm:$0x1] }
 0x3ed   :  { %v6437_v6 = vrot.slane %v6435_v22, 4  ;;  %v6448_v25 = vshrl.u32 %v5982_v35, 16  ;;  %v12091_v8 = vcombine.low %v3029_v2, %v3039_v55  ;;  %v3048_v16 = vrot.slane %v3047_v18, 4 }
 0x3ee   :  { %v3057_v21 = vor.u32 %v3056_v47, %v3052_v41  ;;  %v6440_v13 = vrot.slane %v6438_v50, 5  ;;  %v6446_v48 = vrot.slane %v6444_v1, 5  ;;  %v6454_v61 = vshll.u32 %v5983_v57, 16 }
 0x3ef   :  { %v6450_v14 = vrot.slane %v6448_v25, 4  ;;  %v6459_v32 = vshrl.u32 %v5984_v3, 16  ;;  %13125 = vmatmul.mubr.bf16.gmra.mrb[96].mxu0 %v12091_v8  ;;  %v3053_v53 = vsel %vm17494_vm11, %v3048_v16, %v3052_v41  ;;  %v6462_v45 = vshll.u32 %v5984_v3, 16  ;;  %v5988_v8 = vld [vmem:[#allocation2 + $0x10c] sm:$0xf] }
 0x3f0   :  { %v3058_v42 = vrot.slane %v3057_v21, 4  ;;  %v6441_v12 = vor.u32 %v6440_v13, %v6437_v6  ;;  %v6456_v56 = vrot.slane %v6454_v61, 5  ;;  %v6468_v49 = vshll.u32 %v5985_v29, 16 }
 0x3f1   :  { %v6451_v44 = vor.u32 %v6450_v14, %v6446_v48  ;;  %v6461_v10 = vrot.slane %v6459_v32, 4  ;;  %v6464_v46 = vrot.slane %v6462_v45, 5  ;;  %v6472_v11 = vshrl.u32 %v5985_v29, 16 }
 0x3f2   :  { %v3063_v28 = vsel %vm17494_vm11, %v3058_v42, %v3062_v19  ;;  %v6442_v38 = vrot.slane %v6441_v12, 4  ;;  %v6470_v59 = vrot.slane %v6468_v49, 5  ;;  %v6478_v63 = vshll.u32 %v5986_v5, 16  ;;  %v5989_v42 = vld [vmem:[#allocation2 + $0x110] sm:$0x1] }
 0x3f3   :  { %v12092_v20 = vcombine.low %v3053_v53, %v3063_v28  ;;  %v6452_v36 = vrot.slane %v6451_v44, 4  ;;  %v6465_v24 = vor.u32 %v6464_v46, %v6461_v10  ;;  %v6474_v58 = vrot.slane %v6472_v11, 4  ;;  %v5990_v49 = vld [vmem:[#allocation2 + $0x114] sm:$0xf]  ;;  %v5991_v11 = vld [vmem:[#allocation2 + $0x118] sm:$0xf] }
 0x3f4   :  { %v6447_v4 = vsel %vm17494_vm11, %v6442_v38, %v6446_v48  ;;  %v3065_v33 = vshrl.u32 %v2531_v40, 16  ;;  %v6480_v35 = vrot.slane %v6478_v63, 5  ;;  %v3068_v34 = vshll.u32 %v2531_v40, 16 }
 0x3f5   :  { %13128 = vmatprep.mubr.bf16.mxu0 %v12092_v20  ;;  %v6457_v15 = vsel %vm17494_vm11, %v6452_v36, %v6456_v56  ;;  %v3074_v51 = vshll.u32 %v2532_v27, 16  ;;  %v6466_v23 = vrot.slane %v6465_v24, 4  ;;  %v6475_v60 = vor.u32 %v6474_v58, %v6470_v59  ;;  %v5992_v24 = vld [vmem:[#allocation2 + $0x11c] sm:$0x1] }
 0x3f6   :  { %v12283_v7 = vcombine.low %v6447_v4, %v6457_v15  ;;  %v3067_v52 = vrot.slane %v3065_v33, 4  ;;  %v3070_v41 = vrot.slane %v3068_v34, 5  ;;  %v3078_v57 = vshrl.u32 %v2532_v27, 16 }
 0x3f7   :  { %v3076_v31 = vrot.slane %v3074_v51, 5  ;;  %v3084_v3 = vshll.u32 %v2592_v37, 16  ;;  %v6471_v2 = vsel %vm17494_vm11, %v6466_v23, %v6470_v59  ;;  %v6476_v39 = vrot.slane %v6475_v60, 4  ;;  %v2535_v51 = vld [vmem:[#allocation2 + $0x114] sm:$0xf] }
 0x3f8   :  { %13445 = vmatmul.mubr.bf16.gmra.mrb[32].mxu1 %v12283_v7  ;;  %v3089_v22 = vshrl.u32 %v2533_v26, 16  ;;  %v3092_v18 = vshll.u32 %v2533_v26, 16  ;;  %v3071_v47 = vor.u32 %v3070_v41, %v3067_v52  ;;  %v3080_v50 = vrot.slane %v3078_v57, 4 }
 0x3f9   :  { %v3086_v1 = vrot.slane %v3084_v3, 5  ;;  %v3098_v29 = vshll.u32 %v2534_v30, 16  ;;  %v6481_v55 = vsel %vm17494_vm11, %v6476_v39, %v6480_v35  ;;  %v3102_v25 = vshrl.u32 %v2534_v30, 16  ;;  %v2536_v30 = vld [vmem:[#allocation2 + $0x118] sm:$0xf] }
 0x3fa   :  { %v3091_v19 = vrot.slane %v3089_v22, 4  ;;  %v3094_v6 = vrot.slane %v3092_v18, 5  ;;  %v12284_v16 = vcombine.low %v6471_v2, %v6481_v55  ;;  %v3072_v21 = vrot.slane %v3071_v47, 4 }
 0x3fb   :  { %v3081_v13 = vor.u32 %v3080_v50, %v3076_v31  ;;  %v3100_v5 = vrot.slane %v3098_v29, 5  ;;  %v3104_v14 = vrot.slane %v3102_v25, 4  ;;  %v3108_v61 = vshll.u32 %v2593_v9, 16 }
 0x3fc   :  { %v3095_v48 = vor.u32 %v3094_v6, %v3091_v19  ;;  %v6483_v32 = vshrl.u32 %v5987_v54, 16  ;;  %13448 = vmatprep.mubr.bf16.mxu1 %v12284_v16  ;;  %v3077_v40 = vsel %vm17494_vm11, %v3072_v21, %v3076_v31  ;;  %v6486_v12 = vshll.u32 %v5987_v54, 16  ;;  %v2537_v54 = vld [vmem:[#allocation2 + $0x120] sm:$0xf] }
 0x3fd   :  { %v3082_v53 = vrot.slane %v3081_v13, 4  ;;  %v6492_v45 = vshll.u32 %v5988_v8, 16  ;;  %v3105_v44 = vor.u32 %v3104_v14, %v3100_v5  ;;  %v3110_v56 = vrot.slane %v3108_v61, 5 }
 0x3fe   :  { %v3096_v17 = vrot.slane %v3095_v48, 4  ;;  %v6485_v10 = vrot.slane %v6483_v32, 4  ;;  %v6488_v28 = vrot.slane %v6486_v12, 5  ;;  %v6496_v46 = vshrl.u32 %v5988_v8, 16  ;;  %v2538_v8 = vld [vmem:[#allocation2 + $0x124] sm:$0xf] }
 0x3ff   :  { %v3087_v27 = vsel %vm17494_vm11, %v3082_v53, %v3086_v1  ;;  %v6494_v38 = vrot.slane %v6492_v45, 5  ;;  %v3106_v36 = vrot.slane %v3105_v44, 4  ;;  %v6502_v59 = vshll.u32 %v5989_v42, 16  ;;  %v2594_v1 = vld [vmem:[#allocation2 + $0x11c] sm:$0x1] }
 0x400   :  { %v12093_v37 = vcombine.low %v3077_v40, %v3087_v27  ;;  %v3101_v20 = vsel %vm17494_vm11, %v3096_v17, %v3100_v5  ;;  %v6489_v63 = vor.u32 %v6488_v28, %v6485_v10  ;;  %v6498_v4 = vrot.slane %v6496_v46, 4  ;;  %v2595_v42 = vld [vmem:[#allocation2 + $0x128] sm:$0x1]  ;;  %v5993_v17 = vld [vmem:[#allocation2 + $0x120] sm:$0xf] }
 0x401   :  { %v6507_v58 = vshrl.u32 %v5990_v49, 16  ;;  %v6510_v33 = vshll.u32 %v5990_v49, 16  ;;  %v3111_v26 = vsel %vm17494_vm11, %v3106_v36, %v3110_v56  ;;  %v6504_v15 = vrot.slane %v6502_v59, 5  ;;  %v5994_v27 = vld [vmem:[#allocation2 + $0x124] sm:$0xf] }
 0x402   :  { %13129 = vmatmul.mubr.bf16.gmra.mrb[100].mxu0 %v12093_v37  ;;  %v6516_v35 = vshll.u32 %v5991_v11, 16  ;;  %v6520_v34 = vshrl.u32 %v5991_v11, 16  ;;  %v12094_v7 = vcombine.low %v3101_v20, %v3111_v26  ;;  %v6490_v23 = vrot.slane %v6489_v63, 4  ;;  %v5995_v59 = vld [vmem:[#allocation2 + $0x128] sm:$0x1] }
 0x403   :  { %v6499_v60 = vor.u32 %v6498_v4, %v6494_v38  ;;  %v6509_v52 = vrot.slane %v6507_v58, 4  ;;  %v6512_v41 = vrot.slane %v6510_v33, 5  ;;  %v6526_v3 = vshll.u32 %v5992_v24, 16  ;;  %v5996_v26 = vld [vmem:[#allocation2 + $0x12c] sm:$0xf] }
 0x404   :  { %v6518_v31 = vrot.slane %v6516_v35, 5  ;;  %v6522_v57 = vrot.slane %v6520_v34, 4  ;;  %13132 = vmatprep.mubr.bf16.mxu0 %v12094_v7  ;;  %v6495_v2 = vsel %vm17494_vm11, %v6490_v23, %v6494_v38  ;;  %v3113_v9 = vshrl.u32 %v2535_v51, 16 }
 0x405   :  { %v6500_v39 = vrot.slane %v6499_v60, 4  ;;  %v3116_v22 = vshll.u32 %v2535_v51, 16  ;;  %v6513_v18 = vor.u32 %v6512_v41, %v6509_v52  ;;  %v6528_v50 = vrot.slane %v6526_v3, 5 }
 0x406   :  { %v6523_v47 = vor.u32 %v6522_v57, %v6518_v31  ;;  %v3122_v29 = vshll.u32 %v2536_v30, 16  ;;  %v3115_v19 = vrot.slane %v3113_v9, 4  ;;  %v3126_v25 = vshrl.u32 %v2536_v30, 16  ;;  %v5997_v30 = vld [vmem:[#allocation2 + $0x130] sm:$0xf] }
 0x407   :  { %v6505_v55 = vsel %vm17494_vm11, %v6500_v39, %v6504_v15  ;;  %v3118_v6 = vrot.slane %v3116_v22, 5  ;;  %v6514_v21 = vrot.slane %v6513_v18, 4  ;;  %v3132_v61 = vshll.u32 %v2594_v1, 16  ;;  %v5998_v22 = vld [vmem:[#allocation2 + $0x134] sm:$0x1] }
 0x408   :  { %v12285_v16 = vcombine.low %v6495_v2, %v6505_v55  ;;  %v6524_v13 = vrot.slane %v6523_v47, 4  ;;  %v3124_v5 = vrot.slane %v3122_v29, 5  ;;  %v3128_v14 = vrot.slane %v3126_v25, 4 }
 0x409   :  { %v3119_v48 = vor.u32 %v3118_v6, %v3115_v19  ;;  %v3137_v32 = vshrl.u32 %v2537_v54, 16  ;;  %v6519_v40 = vsel %vm17494_vm11, %v6514_v21, %v6518_v31  ;;  %v3140_v12 = vshll.u32 %v2537_v54, 16  ;;  %v2539_v54 = vld [vmem:[#allocation2 + $0x12c] sm:$0xf] }
 0x40a   :  { %13449 = vmatmul.mubr.bf16.gmra.mrb[36].mxu1 %v12285_v16  ;;  %v6529_v53 = vsel %vm17494_vm11, %v6524_v13, %v6528_v50  ;;  %v3146_v45 = vshll.u32 %v2538_v8, 16  ;;  %v3129_v10 = vor.u32 %v3128_v14, %v3124_v5  ;;  %v3134_v49 = vrot.slane %v3132_v61, 5 }
 0x40b   :  { %v12286_v44 = vcombine.low %v6519_v40, %v6529_v53  ;;  %v3120_v56 = vrot.slane %v3119_v48, 4  ;;  %v3139_v28 = vrot.slane %v3137_v32, 4  ;;  %v3142_v38 = vrot.slane %v3140_v12, 5  ;;  %v2596_v32 = vld [vmem:[#allocation2 + $0x134] sm:$0x1] }
 0x40c   :  { %v3148_v46 = vrot.slane %v3146_v45, 5  ;;  %v3150_v11 = vshrl.u32 %v2538_v8, 16  ;;  %v3130_v20 = vrot.slane %v3129_v10, 4  ;;  %v3156_v36 = vshll.u32 %v2595_v42, 16  ;;  %v2540_v8 = vld [vmem:[#allocation2 + $0x130] sm:$0xf] }
 0x40d   :  { %13452 = vmatprep.mubr.bf16.mxu1 %v12286_v44  ;;  %v3125_v37 = vsel %vm17494_vm11, %v3120_v56, %v3124_v5  ;;  %v6531_v63 = vshrl.u32 %v5993_v17, 16  ;;  %v3143_v4 = vor.u32 %v3142_v38, %v3139_v28  ;;  %v6534_v58 = vshll.u32 %v5993_v17, 16  ;;  %v2541_v17 = vld [vmem:[#allocation2 + $0x138] sm:$0xf] }
 0x40e   :  { %v3152_v24 = vrot.slane %v3150_v11, 4  ;;  %v6540_v33 = vshll.u32 %v5994_v27, 16  ;;  %v3135_v15 = vsel %vm17494_vm11, %v3130_v20, %v3134_v49  ;;  %v3158_v35 = vrot.slane %v3156_v36, 5  ;;  %v2597_v36 = vld [vmem:[#allocation2 + $0x140] sm:$0x1] }
 0x40f   :  { %v6533_v34 = vrot.slane %v6531_v63, 4  ;;  %v6544_v51 = vshrl.u32 %v5994_v27, 16  ;;  %v12095_v7 = vcombine.low %v3125_v37, %v3135_v15  ;;  %v3144_v23 = vrot.slane %v3143_v4, 4  ;;  %v2542_v27 = vld [vmem:[#allocation2 + $0x13c] sm:$0xf] }
 0x410   :  { %v3153_v60 = vor.u32 %v3152_v24, %v3148_v46  ;;  %v6536_v52 = vrot.slane %v6534_v58, 5  ;;  %v6542_v41 = vrot.slane %v6540_v33, 5  ;;  %v6550_v57 = vshll.u32 %v5995_v59, 16 }
 0x411   :  { %v6546_v31 = vrot.slane %v6544_v51, 4  ;;  %v6555_v3 = vshrl.u32 %v5996_v26, 16  ;;  %13133 = vmatmul.mubr.bf16.gmra.mrb[104].mxu0 %v12095_v7  ;;  %v3149_v2 = vsel %vm17494_vm11, %v3144_v23, %v3148_v46  ;;  %v6558_v18 = vshll.u32 %v5996_v26, 16  ;;  %v5999_v26 = vld [vmem:[#allocation2 + $0x138] sm:$0xf] }
 0x412   :  { %v3154_v39 = vrot.slane %v3153_v60, 4  ;;  %v6537_v9 = vor.u32 %v6536_v52, %v6533_v34  ;;  %v6552_v50 = vrot.slane %v6550_v57, 5  ;;  %v6564_v29 = vshll.u32 %v5997_v30, 16  ;;  %v6000_v7 = vld [vmem:[#allocation2 + $0x13c] sm:$0xf] }
 0x413   :  { %v6547_v47 = vor.u32 %v6546_v31, %v6542_v41  ;;  %v6557_v1 = vrot.slane %v6555_v3, 4  ;;  %v6560_v6 = vrot.slane %v6558_v18, 5  ;;  %v6568_v25 = vshrl.u32 %v5997_v30, 16 }
 0x414   :  { %v3159_v55 = vsel %vm17494_vm11, %v3154_v39, %v3158_v35  ;;  %v6538_v19 = vrot.slane %v6537_v9, 4  ;;  %v6566_v13 = vrot.slane %v6564_v29, 5  ;;  %v6574_v5 = vshll.u32 %v5998_v22, 16  ;;  %v6001_v9 = vld [vmem:[#allocation2 + $0x140] sm:$0x1] }
 0x415   :  { %v12096_v16 = vcombine.low %v3149_v2, %v3159_v55  ;;  %v6548_v21 = vrot.slane %v6547_v47, 4  ;;  %v6561_v14 = vor.u32 %v6560_v6, %v6557_v1  ;;  %v6570_v61 = vrot.slane %v6568_v25, 4 }
 0x416   :  { %v6543_v48 = vsel %vm17494_vm11, %v6538_v19, %v6542_v41  ;;  %v3161_v40 = vshrl.u32 %v2539_v54, 16  ;;  %v6576_v42 = vrot.slane %v6574_v5, 5  ;;  %v3164_v12 = vshll.u32 %v2539_v54, 16  ;;  %v6002_v54 = vld [vmem:[#allocation2 + $0x144] sm:$0xf] }
 0x417   :  { %13136 = vmatprep.mubr.bf16.mxu0 %v12096_v16  ;;  %v6553_v53 = vsel %vm17494_vm11, %v6548_v21, %v6552_v50  ;;  %v3170_v45 = vshll.u32 %v2540_v8, 16  ;;  %v6562_v56 = vrot.slane %v6561_v14, 4  ;;  %v6571_v10 = vor.u32 %v6570_v61, %v6566_v13  ;;  %v6004_v61 = vld [vmem:[#allocation2 + $0x14c] sm:$0x1] }
 0x418   :  { %v12287_v44 = vcombine.low %v6543_v48, %v6553_v53  ;;  %v3163_v49 = vrot.slane %v3161_v40, 4  ;;  %v3166_v28 = vrot.slane %v3164_v12, 5  ;;  %v3174_v46 = vshrl.u32 %v2540_v8, 16  ;;  %v6003_v8 = vld [vmem:[#allocation2 + $0x148] sm:$0xf] }
 0x419   :  { %v3172_v38 = vrot.slane %v3170_v45, 5  ;;  %v3180_v11 = vshll.u32 %v2596_v32, 16  ;;  %v6567_v37 = vsel %vm17494_vm11, %v6562_v56, %v6566_v13  ;;  %v6572_v20 = vrot.slane %v6571_v10, 4 }
 0x41a   :  { %13453 = vmatmul.mubr.bf16.gmra.mrb[40].mxu1 %v12287_v44  ;;  %v3185_v59 = vshrl.u32 %v2541_v17, 16  ;;  %v3188_v63 = vshll.u32 %v2541_v17, 16  ;;  %v3167_v4 = vor.u32 %v3166_v28, %v3163_v49  ;;  %v3176_v24 = vrot.slane %v3174_v46, 4  ;;  %v2543_v17 = vld [vmem:[#allocation2 + $0x144] sm:$0xf] }
 0x41b   :  { %v3182_v58 = vrot.slane %v3180_v11, 5  ;;  %v3194_v33 = vshll.u32 %v2542_v27, 16  ;;  %v6577_v15 = vsel %vm17494_vm11, %v6572_v20, %v6576_v42  ;;  %v3198_v51 = vshrl.u32 %v2542_v27, 16  ;;  %v2544_v27 = vld [vmem:[#allocation2 + $0x148] sm:$0xf] }
 0x41c   :  { %v3187_v35 = vrot.slane %v3185_v59, 4  ;;  %v3190_v34 = vrot.slane %v3188_v63, 5  ;;  %v12288_v23 = vcombine.low %v6567_v37, %v6577_v15  ;;  %v3168_v60 = vrot.slane %v3167_v4, 4 }
 0x41d   :  { %v3177_v52 = vor.u32 %v3176_v24, %v3172_v38  ;;  %v3196_v30 = vrot.slane %v3194_v33, 5  ;;  %v3200_v31 = vrot.slane %v3198_v51, 4  ;;  %v3204_v57 = vshll.u32 %v2597_v36, 16 }
 0x41e   :  { %v3191_v41 = vor.u32 %v3190_v34, %v3187_v35  ;;  %v6579_v3 = vshrl.u32 %v5999_v26, 16  ;;  %13456 = vmatprep.mubr.bf16.mxu1 %v12288_v23  ;;  %v3173_v2 = vsel %vm17494_vm11, %v3168_v60, %v3172_v38  ;;  %v6582_v22 = vshll.u32 %v5999_v26, 16  ;;  %v2545_v26 = vld [vmem:[#allocation2 + $0x150] sm:$0xf] }
 0x41f   :  { %v3178_v39 = vrot.slane %v3177_v52, 4  ;;  %v6588_v18 = vshll.u32 %v6000_v7, 16  ;;  %v3201_v50 = vor.u32 %v3200_v31, %v3196_v30  ;;  %v3206_v1 = vrot.slane %v3204_v57, 5 }
 0x420   :  { %v3192_v47 = vrot.slane %v3191_v41, 4  ;;  %v6581_v29 = vrot.slane %v6579_v3, 4  ;;  %v6584_v19 = vrot.slane %v6582_v22, 5  ;;  %v6592_v25 = vshrl.u32 %v6000_v7, 16  ;;  %v2546_v7 = vld [vmem:[#allocation2 + $0x154] sm:$0xf] }
 0x421   :  { %v3183_v55 = vsel %vm17494_vm11, %v3178_v39, %v3182_v58  ;;  %v6590_v6 = vrot.slane %v6588_v18, 5  ;;  %v3202_v13 = vrot.slane %v3201_v50, 4  ;;  %v6598_v5 = vshll.u32 %v6001_v9, 16  ;;  %v2598_v58 = vld [vmem:[#allocation2 + $0x14c] sm:$0x1] }
 0x422   :  { %v12097_v16 = vcombine.low %v3173_v2, %v3183_v55  ;;  %v3197_v21 = vsel %vm17494_vm11, %v3192_v47, %v3196_v30  ;;  %v6585_v48 = vor.u32 %v6584_v19, %v6581_v29  ;;  %v6594_v14 = vrot.slane %v6592_v25, 4  ;;  %v2599_v9 = vld [vmem:[#allocation2 + $0x158] sm:$0x1]  ;;  %v6005_v47 = vld [vmem:[#allocation2 + $0x150] sm:$0xf] }
 0x423   :  { %v6603_v32 = vshrl.u32 %v6002_v54, 16  ;;  %v6606_v40 = vshll.u32 %v6002_v54, 16  ;;  %v3207_v53 = vsel %vm17494_vm11, %v3202_v13, %v3206_v1  ;;  %v6600_v42 = vrot.slane %v6598_v5, 5  ;;  %v6006_v55 = vld [vmem:[#allocation2 + $0x154] sm:$0xf] }
 0x424   :  { %13137 = vmatmul.mubr.bf16.gmra.mrb[108].mxu0 %v12097_v16  ;;  %v6612_v12 = vshll.u32 %v6003_v8, 16  ;;  %v6616_v45 = vshrl.u32 %v6003_v8, 16  ;;  %v12098_v44 = vcombine.low %v3197_v21, %v3207_v53  ;;  %v6586_v56 = vrot.slane %v6585_v48, 4  ;;  %v6007_v5 = vld [vmem:[#allocation2 + $0x158] sm:$0x1] }
 0x425   :  { %v6595_v10 = vor.u32 %v6594_v14, %v6590_v6  ;;  %v6605_v49 = vrot.slane %v6603_v32, 4  ;;  %v6608_v28 = vrot.slane %v6606_v40, 5  ;;  %v6622_v11 = vshll.u32 %v6004_v61, 16  ;;  %v6008_v53 = vld [vmem:[#allocation2 + $0x15c] sm:$0xf] }
 0x426   :  { %v6614_v38 = vrot.slane %v6612_v12, 5  ;;  %v6618_v46 = vrot.slane %v6616_v45, 4  ;;  %13140 = vmatprep.mubr.bf16.mxu0 %v12098_v44  ;;  %v6591_v37 = vsel %vm17494_vm11, %v6586_v56, %v6590_v6  ;;  %v3209_v36 = vshrl.u32 %v2543_v17, 16 }
 0x427   :  { %v6596_v20 = vrot.slane %v6595_v10, 4  ;;  %v3212_v59 = vshll.u32 %v2543_v17, 16  ;;  %v6609_v63 = vor.u32 %v6608_v28, %v6605_v49  ;;  %v6624_v24 = vrot.slane %v6622_v11, 5 }
 0x428   :  { %v6619_v4 = vor.u32 %v6618_v46, %v6614_v38  ;;  %v3218_v33 = vshll.u32 %v2544_v27, 16  ;;  %v3211_v35 = vrot.slane %v3209_v36, 4  ;;  %v3222_v51 = vshrl.u32 %v2544_v27, 16  ;;  %v6009_v27 = vld [vmem:[#allocation2 + $0x160] sm:$0xf] }
 0x429   :  { %v6601_v15 = vsel %vm17494_vm11, %v6596_v20, %v6600_v42  ;;  %v3214_v34 = vrot.slane %v3212_v59, 5  ;;  %v6610_v60 = vrot.slane %v6609_v63, 4  ;;  %v3228_v57 = vshll.u32 %v2598_v58, 16  ;;  %v6010_v59 = vld [vmem:[#allocation2 + $0x164] sm:$0x1] }
 0x42a   :  { %v12289_v23 = vcombine.low %v6591_v37, %v6601_v15  ;;  %v6620_v52 = vrot.slane %v6619_v4, 4  ;;  %v3220_v30 = vrot.slane %v3218_v33, 5  ;;  %v3224_v31 = vrot.slane %v3222_v51, 4 }
 0x42b   :  { %v3215_v41 = vor.u32 %v3214_v34, %v3211_v35  ;;  %v3233_v3 = vshrl.u32 %v2545_v26, 16  ;;  %v6615_v2 = vsel %vm17494_vm11, %v6610_v60, %v6614_v38  ;;  %v3236_v22 = vshll.u32 %v2545_v26, 16  ;;  %v2547_v26 = vld [vmem:[#allocation2 + $0x15c] sm:$0xf] }
 0x42c   :  { %13457 = vmatmul.mubr.bf16.gmra.mrb[44].mxu1 %v12289_v23  ;;  %v6625_v39 = vsel %vm17494_vm11, %v6620_v52, %v6624_v24  ;;  %v3242_v18 = vshll.u32 %v2546_v7, 16  ;;  %v3225_v29 = vor.u32 %v3224_v31, %v3220_v30  ;;  %v3230_v54 = vrot.slane %v3228_v57, 5 }
 0x42d   :  { %v12290_v50 = vcombine.low %v6615_v2, %v6625_v39  ;;  %v3216_v1 = vrot.slane %v3215_v41, 4  ;;  %v3235_v19 = vrot.slane %v3233_v3, 4  ;;  %v3238_v6 = vrot.slane %v3236_v22, 5  ;;  %v2600_v3 = vld [vmem:[#allocation2 + $0x164] sm:$0x1] }
 0x42e   :  { %v3244_v25 = vrot.slane %v3242_v18, 5  ;;  %v3246_v8 = vshrl.u32 %v2546_v7, 16  ;;  %v3226_v21 = vrot.slane %v3225_v29, 4  ;;  %v3252_v13 = vshll.u32 %v2599_v9, 16  ;;  %v2548_v7 = vld [vmem:[#allocation2 + $0x160] sm:$0xf] }
 0x42f   :  { %13460 = vmatprep.mubr.bf16.mxu1 %v12290_v50  ;;  %v3221_v16 = vsel %vm17494_vm11, %v3216_v1, %v3220_v30  ;;  %v6627_v48 = vshrl.u32 %v6005_v47, 16  ;;  %v3239_v14 = vor.u32 %v3238_v6, %v3235_v19  ;;  %v6630_v32 = vshll.u32 %v6005_v47, 16  ;;  %v2549_v47 = vld [vmem:[#allocation2 + $0x168] sm:$0xf] }
 0x430   :  { %v3248_v61 = vrot.slane %v3246_v8, 4  ;;  %v6636_v40 = vshll.u32 %v6006_v55, 16  ;;  %v3231_v42 = vsel %vm17494_vm11, %v3226_v21, %v3230_v54  ;;  %v3254_v12 = vrot.slane %v3252_v13, 5  ;;  %v2601_v13 = vld [vmem:[#allocation2 + $0x170] sm:$0x1] }
 0x431   :  { %v6629_v45 = vrot.slane %v6627_v48, 4  ;;  %v6640_v17 = vshrl.u32 %v6006_v55, 16  ;;  %v12099_v44 = vcombine.low %v3221_v16, %v3231_v42  ;;  %v3240_v56 = vrot.slane %v3239_v14, 4  ;;  %v2550_v55 = vld [vmem:[#allocation2 + $0x16c] sm:$0xf] }
 0x432   :  { %v3249_v10 = vor.u32 %v3248_v61, %v3244_v25  ;;  %v6632_v49 = vrot.slane %v6630_v32, 5  ;;  %v6638_v28 = vrot.slane %v6636_v40, 5  ;;  %v6646_v46 = vshll.u32 %v6007_v5, 16 }
 0x433   :  { %v6642_v38 = vrot.slane %v6640_v17, 4  ;;  %v6651_v11 = vshrl.u32 %v6008_v53, 16  ;;  %13141 = vmatmul.mubr.bf16.gmra.mrb[112].mxu0 %v12099_v44  ;;  %v3245_v37 = vsel %vm17494_vm11, %v3240_v56, %v3244_v25  ;;  %v6654_v63 = vshll.u32 %v6008_v53, 16  ;;  %v6011_v53 = vld [vmem:[#allocation2 + $0x168] sm:$0xf] }
 0x434   :  { %v3250_v20 = vrot.slane %v3249_v10, 4  ;;  %v6633_v36 = vor.u32 %v6632_v49, %v6629_v45  ;;  %v6648_v24 = vrot.slane %v6646_v46, 5  ;;  %v6660_v33 = vshll.u32 %v6009_v27, 16  ;;  %v6012_v44 = vld [vmem:[#allocation2 + $0x16c] sm:$0xf] }
 0x435   :  { %v6643_v4 = vor.u32 %v6642_v38, %v6638_v28  ;;  %v6653_v58 = vrot.slane %v6651_v11, 4  ;;  %v6656_v34 = vrot.slane %v6654_v63, 5  ;;  %v6664_v51 = vshrl.u32 %v6009_v27, 16 }
 0x436   :  { %v3255_v15 = vsel %vm17494_vm11, %v3250_v20, %v3254_v12  ;;  %v6634_v35 = vrot.slane %v6633_v36, 4  ;;  %v6662_v52 = vrot.slane %v6660_v33, 5  ;;  %v6670_v30 = vshll.u32 %v6010_v59, 16  ;;  %v6013_v36 = vld [vmem:[#allocation2 + $0x170] sm:$0x1] }
 0x437   :  { %v12100_v23 = vcombine.low %v3245_v37, %v3255_v15  ;;  %v6644_v60 = vrot.slane %v6643_v4, 4  ;;  %v6657_v31 = vor.u32 %v6656_v34, %v6653_v58  ;;  %v6666_v57 = vrot.slane %v6664_v51, 4 }
 0x438   :  { %v6639_v41 = vsel %vm17494_vm11, %v6634_v35, %v6638_v28  ;;  %v3257_v2 = vshrl.u32 %v2547_v26, 16  ;;  %v6672_v9 = vrot.slane %v6670_v30, 5  ;;  %v3260_v22 = vshll.u32 %v2547_v26, 16  ;;  %v6014_v26 = vld [vmem:[#allocation2 + $0x174] sm:$0xf] }
 0x439   :  { %13144 = vmatprep.mubr.bf16.mxu0 %v12100_v23  ;;  %v6649_v39 = vsel %vm17494_vm11, %v6644_v60, %v6648_v24  ;;  %v3266_v18 = vshll.u32 %v2548_v7, 16  ;;  %v6658_v1 = vrot.slane %v6657_v31, 4  ;;  %v6667_v29 = vor.u32 %v6666_v57, %v6662_v52  ;;  %v6016_v57 = vld [vmem:[#allocation2 + $0x17c] sm:$0x1] }
 0x43a   :  { %v12291_v50 = vcombine.low %v6639_v41, %v6649_v39  ;;  %v3259_v54 = vrot.slane %v3257_v2, 4  ;;  %v3262_v19 = vrot.slane %v3260_v22, 5  ;;  %v3270_v25 = vshrl.u32 %v2548_v7, 16  ;;  %v17723_v7 = vld [vmem:[#allocation2 + $0x178] sm:$0xf] }
 0x43b   :  { %v3268_v6 = vrot.slane %v3266_v18, 5  ;;  %v3276_v8 = vshll.u32 %v2600_v3, 16  ;;  %v6663_v16 = vsel %vm17494_vm11, %v6658_v1, %v6662_v52  ;;  %v6668_v21 = vrot.slane %v6667_v29, 4 }
 0x43c   :  { %13461 = vmatmul.mubr.bf16.gmra.mrb[48].mxu1 %v12291_v50  ;;  %v3281_v5 = vshrl.u32 %v2549_v47, 16  ;;  %v3284_v48 = vshll.u32 %v2549_v47, 16  ;;  %v3263_v14 = vor.u32 %v3262_v19, %v3259_v54  ;;  %v3272_v61 = vrot.slane %v3270_v25, 4  ;;  %v2551_v47 = vld [vmem:[#allocation2 + $0x174] sm:$0xf] }
 0x43d   :  { %v3278_v32 = vrot.slane %v3276_v8, 5  ;;  %v3290_v40 = vshll.u32 %v2550_v55, 16  ;;  %v6673_v42 = vsel %vm17494_vm11, %v6668_v21, %v6672_v9  ;;  %v3294_v17 = vshrl.u32 %v2550_v55, 16  ;;  %v2552_v55 = vld [vmem:[#allocation2 + $0x178] sm:$0xf] }
 0x43e   :  { %v3283_v12 = vrot.slane %v3281_v5, 4  ;;  %v3286_v45 = vrot.slane %v3284_v48, 5  ;;  %v12292_v56 = vcombine.low %v6663_v16, %v6673_v42  ;;  %v3264_v10 = vrot.slane %v3263_v14, 4 }
 0x43f   :  { %v3273_v49 = vor.u32 %v3272_v61, %v3268_v6  ;;  %v3292_v27 = vrot.slane %v3290_v40, 5  ;;  %v3296_v38 = vrot.slane %v3294_v17, 4  ;;  %v3300_v46 = vshll.u32 %v2601_v13, 16 }
 0x440   :  { %v3287_v28 = vor.u32 %v3286_v45, %v3283_v12  ;;  %v6675_v11 = vshrl.u32 %v6011_v53, 16  ;;  %13464 = vmatprep.mubr.bf16.mxu1 %v12292_v56  ;;  %v3269_v37 = vsel %vm17494_vm11, %v3264_v10, %v3268_v6  ;;  %v6678_v59 = vshll.u32 %v6011_v53, 16  ;;  %v2553_v53 = vld [vmem:[#allocation2 + $0x180] sm:$0xf] }
 0x441   :  { %v3274_v20 = vrot.slane %v3273_v49, 4  ;;  %v6684_v63 = vshll.u32 %v6012_v44, 16  ;;  %v3297_v24 = vor.u32 %v3296_v38, %v3292_v27  ;;  %v3302_v58 = vrot.slane %v3300_v46, 5 }
 0x442   :  { %v3288_v4 = vrot.slane %v3287_v28, 4  ;;  %v6677_v33 = vrot.slane %v6675_v11, 4  ;;  %v6680_v35 = vrot.slane %v6678_v59, 5  ;;  %v6688_v51 = vshrl.u32 %v6012_v44, 16  ;;  %v2554_v44 = vld [vmem:[#allocation2 + $0x184] sm:$0xf] }
 0x443   :  { %v3279_v15 = vsel %vm17494_vm11, %v3274_v20, %v3278_v32  ;;  %v6686_v34 = vrot.slane %v6684_v63, 5  ;;  %v3298_v52 = vrot.slane %v3297_v24, 4  ;;  %v6694_v30 = vshll.u32 %v6013_v36, 16  ;;  %v2602_v32 = vld [vmem:[#allocation2 + $0x17c] sm:$0x1] }
 0x444   :  { %v12101_v23 = vcombine.low %v3269_v37, %v3279_v15  ;;  %v3293_v60 = vsel %vm17494_vm11, %v3288_v4, %v3292_v27  ;;  %v6681_v41 = vor.u32 %v6680_v35, %v6677_v33  ;;  %v6690_v31 = vrot.slane %v6688_v51, 4  ;;  %v2603_v36 = vld [vmem:[#allocation2 + $0x188] sm:$0x1]  ;;  %v6017_v4 = vld [vmem:[#allocation2 + $0x180] sm:$0xf] }
 0x445   :  { %v6699_v3 = vshrl.u32 %v6014_v26, 16  ;;  %v6702_v2 = vshll.u32 %v6014_v26, 16  ;;  %v3303_v39 = vsel %vm17494_vm11, %v3298_v52, %v3302_v58  ;;  %v6696_v9 = vrot.slane %v6694_v30, 5  ;;  %v17739_v15 = vld [vmem:[#allocation2 + $0x184] sm:$0xf] }
 0x446   :  { %13145 = vmatmul.mubr.bf16.gmra.mrb[116].mxu0 %v12101_v23  ;;  %v6708_v22 = vshll.u32 %v17723_v7, 16  ;;  %v6712_v18 = vshrl.u32 %v17723_v7, 16  ;;  %v12102_v50 = vcombine.low %v3293_v60, %v3303_v39  ;;  %v6682_v1 = vrot.slane %v6681_v41, 4  ;;  %v17741_v60 = vld [vmem:[#allocation8 + $0x80] sm:$0xff]  }
 0x447   :  { %v6691_v29 = vor.u32 %v6690_v31, %v6686_v34  ;;  %v6701_v54 = vrot.slane %v6699_v3, 4  ;;  %v6704_v19 = vrot.slane %v6702_v2, 5  ;;  %v6718_v8 = vshll.u32 %v6016_v57, 16  ;;  %v17745_v31 = vld [vmem:[#allocation2 + $0x188] sm:$0x1]  ;;  %13236 = vmatprep.subr.bf16.mxu0 %v17741_v60 }
 0x448   :  { %v6710_v6 = vrot.slane %v6708_v22, 5  ;;  %v6714_v25 = vrot.slane %v6712_v18, 4  ;;  %13148 = vmatprep.mubr.bf16.mxu0 %v12102_v50  ;;  %v6687_v16 = vsel %vm17494_vm11, %v6682_v1, %v6686_v34  ;;  %v3305_v13 = vshrl.u32 %v2551_v47, 16  ;;  %v6020_v22 = vld [vmem:[#allocation2 + $0x18c] sm:$0xf] }
 0x449   :  { %v6692_v21 = vrot.slane %v6691_v29, 4  ;;  %v3308_v5 = vshll.u32 %v2551_v47, 16  ;;  %v6705_v48 = vor.u32 %v6704_v19, %v6701_v54  ;;  %v6720_v61 = vrot.slane %v6718_v8, 5 }
 0x44a   :  { %v6715_v14 = vor.u32 %v6714_v25, %v6710_v6  ;;  %v3314_v40 = vshll.u32 %v2552_v55, 16  ;;  %v3307_v12 = vrot.slane %v3305_v13, 4  ;;  %v3318_v17 = vshrl.u32 %v2552_v55, 16 }
 0x44b   :  { %v6697_v42 = vsel %vm17494_vm11, %v6692_v21, %v6696_v9  ;;  %v3310_v45 = vrot.slane %v3308_v5, 5  ;;  %v6706_v10 = vrot.slane %v6705_v48, 4  ;;  %v3324_v46 = vshll.u32 %v2602_v32, 16 }
 0x44c   :  { %v12293_v56 = vcombine.low %v6687_v16, %v6697_v42  ;;  %v6716_v49 = vrot.slane %v6715_v14, 4  ;;  %v3316_v27 = vrot.slane %v3314_v40, 5  ;;  %v3320_v38 = vrot.slane %v3318_v17, 4  ;;  %v17757_v14 = vld [vmem:[#allocation2 + $0x194] sm:$0x1] }
 0x44d   :  { %v3311_v28 = vor.u32 %v3310_v45, %v3307_v12  ;;  %v3329_v11 = vshrl.u32 %v2553_v53, 16  ;;  %v6711_v37 = vsel %vm17494_vm11, %v6706_v10, %v6710_v6  ;;  %v3332_v59 = vshll.u32 %v2553_v53, 16  ;;  %v17752_v6 = vld [vmem:[#allocation2 + $0x190] sm:$0xf]  ;;  %v17760_v12 = vld [vmem:[#allocation2 + $0x18c] sm:$0xf] }
 0x44e   :  { %13465 = vmatmul.mubr.bf16.gmra.mrb[52].mxu1 %v12293_v56  ;;  %v6721_v20 = vsel %vm17494_vm11, %v6716_v49, %v6720_v61  ;;  %v3338_v63 = vshll.u32 %v2554_v44, 16  ;;  %v3321_v33 = vor.u32 %v3320_v38, %v3316_v27  ;;  %v3326_v26 = vrot.slane %v3324_v46, 5  ;;  %v17765_v10 = vld [vmem:[#allocation2 + $0x190] sm:$0xf] }
 0x44f   :  { %v12294_v24 = vcombine.low %v6711_v37, %v6721_v20  ;;  %v3312_v58 = vrot.slane %v3311_v28, 4  ;;  %v3331_v35 = vrot.slane %v3329_v11, 4  ;;  %v3334_v34 = vrot.slane %v3332_v59, 5  ;;  %v2604_v20 = vld [vmem:[#allocation2 + $0x194] sm:$0x1] }
 0x450   :  { %v3340_v51 = vrot.slane %v3338_v63, 5  ;;  %v3342_v23 = vshrl.u32 %v2554_v44, 16  ;;  %v3322_v30 = vrot.slane %v3321_v33, 4  ;;  %v3348_v41 = vshll.u32 %v2603_v36, 16 }
 0x451   :  { %13468 = vmatprep.mubr.bf16.mxu1 %v12294_v24  ;;  %v3317_v52 = vsel %vm17494_vm11, %v3312_v58, %v3316_v27  ;;  %v6723_v57 = vshrl.u32 %v6017_v4, 16  ;;  %v3335_v3 = vor.u32 %v3334_v34, %v3331_v35  ;;  %v6726_v39 = vshll.u32 %v6017_v4, 16  ;;  %v6023_v58 = vld [vmem:[#allocation2 + $0x198] sm:$0xf] }
 0x452   :  { %v3344_v2 = vrot.slane %v3342_v23, 4  ;;  %v6732_v9 = vshll.u32 %v17739_v15, 16  ;;  %v3327_v18 = vsel %vm17494_vm11, %v3322_v30, %v3326_v26  ;;  %v3350_v47 = vrot.slane %v3348_v41, 5 }
 0x453   :  { %v6725_v50 = vrot.slane %v6723_v57, 4  ;;  %v6736_v1 = vshrl.u32 %v17739_v15, 16  ;;  %v12103_v29 = vcombine.low %v3317_v52, %v3327_v18  ;;  %v3336_v54 = vrot.slane %v3335_v3, 4 }
 0x454   :  { %v3345_v55 = vor.u32 %v3344_v2, %v3340_v51  ;;  %v6728_v19 = vrot.slane %v6726_v39, 5  ;;  %v6734_v25 = vrot.slane %v6732_v9, 5  ;;  %v6742_v16 = vshll.u32 %v17745_v31, 16 }
 0x455   :  { %v6738_v8 = vrot.slane %v6736_v1, 4  ;;  %v6747_v21 = vshrl.u32 %v6020_v22, 16  ;;  %13149 = vmatmul.mubr.bf16.gmra.mrb[120].mxu0 %v12103_v29  ;;  %v3341_v13 = vsel %vm17494_vm11, %v3336_v54, %v3340_v51  ;;  %v6750_v61 = vshll.u32 %v6020_v22, 16  ;;  %v17775_v51 = vld [vmem:[#allocation2 + $0x19c] sm:$0xf] }
 0x456   :  { %v3346_v5 = vrot.slane %v3345_v55, 4  ;;  %v6729_v48 = vor.u32 %v6728_v19, %v6725_v50  ;;  %v6744_v40 = vrot.slane %v6742_v16, 5  ;;  %v6756_v42 = vshll.u32 %v17752_v6, 16 }
 0x457   :  { %v6739_v32 = vor.u32 %v6738_v8, %v6734_v25  ;;  %v6749_v53 = vrot.slane %v6747_v21, 4  ;;  %v6752_v44 = vrot.slane %v6750_v61, 5  ;;  %v6760_v56 = vshrl.u32 %v17752_v6, 16  ;;  %v7340_v61 = vld [vmem:[#allocation2 + $0xc] sm:$0xe] }
 0x458   :  { %v3351_v45 = vsel %vm17494_vm11, %v3346_v5, %v3350_v47  ;;  %v6730_v17 = vrot.slane %v6729_v48, 4  ;;  %v6758_v28 = vrot.slane %v6756_v42, 5  ;;  %v6766_v38 = vshll.u32 %v17757_v14, 16  ;;  %v17782_v47 = vld [vmem:[#allocation2 + $0x1a0] sm:$0x1] }
 0x459   :  { %v12104_v49 = vcombine.low %v3341_v13, %v3351_v45  ;;  %v6740_v27 = vrot.slane %v6739_v32, 4  ;;  %v6753_v11 = vor.u32 %v6752_v44, %v6749_v53  ;;  %v6762_v37 = vrot.slane %v6760_v56, 4  ;;  %v14531_v45 = vld [vmem:[#allocation2 + $0x10] sm:$0xf]  ;;  %v7341_v44 = vld [vmem:[#allocation2 + $0x18] sm:$0xe] }
 0x45a   :  { %v6735_v46 = vsel %vm17494_vm11, %v6730_v17, %v6734_v25  ;;  %v3353_v36 = vshrl.u32 %v17760_v12, 16  ;;  %v6768_v63 = vrot.slane %v6766_v38, 5  ;;  %v3356_v4 = vshll.u32 %v17760_v12, 16  ;;  %v14532_v56 = vld [vmem:[#allocation2 + $0x20] sm:$0x1] }
 0x45b   :  { %13152 = vmatprep.mubr.bf16.mxu0 %v12104_v49  ;;  %v6745_v59 = vsel %vm17494_vm11, %v6740_v27, %v6744_v40  ;;  %v3362_v24 = vshll.u32 %v17765_v10, 16  ;;  %v6754_v26 = vrot.slane %v6753_v11, 4  ;;  %v6763_v35 = vor.u32 %v6762_v37, %v6758_v28  ;;  %v14533_v38 = vld [vmem:[#allocation2] sm:$0xf] }
 0x45c   :  { %v12295_v33 = vcombine.low %v6735_v46, %v6745_v59  ;;  %v3355_v34 = vrot.slane %v3353_v36, 4  ;;  %v3358_v23 = vrot.slane %v3356_v4, 5  ;;  %v3366_v30 = vshrl.u32 %v17765_v10, 16  ;;  %v17793_v46 = vld [vmem:[#allocation2 + $0x4] sm:$0xf] }
 0x45d   :  { %v3364_v52 = vrot.slane %v3362_v24, 5  ;;  %v3372_v41 = vshll.u32 %v2604_v20, 16  ;;  %v6759_v57 = vsel %vm17494_vm11, %v6754_v26, %v6758_v28  ;;  %v6764_v3 = vrot.slane %v6763_v35, 4  ;;  %v14535_v4 = vld [vmem:[#allocation2 + $0x14] sm:$0x1] }
 0x45e   :  { %13469 = vmatmul.mubr.bf16.gmra.mrb[56].mxu1 %v12295_v33  ;;  %v6771_v2 = vshrl.u32 %v6023_v58, 16  ;;  %v6774_v39 = vshll.u32 %v6023_v58, 16  ;;  %v7479_v9 = vrot.slane %v7477_v62, 4  ;;  %v3359_v22 = vor.u32 %v3358_v23, %v3355_v34  ;;  %v14536_v34 = vld [vmem:[#allocation2 + $0x28] sm:$0xf] }
 0x45f   :  { %v3368_v18 = vrot.slane %v3366_v30, 4  ;;  %v6780_v50 = vshll.u32 %v17775_v51, 16  ;;  %v6769_v1 = vsel %vm17494_vm11, %v6764_v3, %v6768_v63  ;;  %v6784_v55 = vshrl.u32 %v17775_v51, 16 }
 0x460   :  { %v6773_v29 = vrot.slane %v6771_v2, 4  ;;  %v6776_v54 = vrot.slane %v6774_v39, 5  ;;  %v12296_v19 = vcombine.low %v6759_v57, %v6769_v1  ;;  %v3360_v25 = vrot.slane %v3359_v22, 4  ;;  %v7342_v39 = vld [vmem:[#allocation2 + $0x24] sm:$0xe] }
 0x461   :  { %v3369_v8 = vor.u32 %v3368_v18, %v3364_v52  ;;  %v6782_v16 = vrot.slane %v6780_v50, 5  ;;  %v3374_v21 = vrot.slane %v3372_v41, 5  ;;  %v6786_v5 = vrot.slane %v6784_v55, 4  ;;  %v14537_v18 = vld [vmem:[#allocation2 + $0x2c] sm:$0x1] }
 0x462   :  { %v6777_v13 = vor.u32 %v6776_v54, %v6773_v29  ;;  %v6790_v48 = vshll.u32 %v17782_v47, 16  ;;  %13472 = vmatprep.mubr.bf16.mxu1 %v12296_v19  ;;  %v3365_v32 = vsel %vm17494_vm11, %v3360_v25, %v3364_v52  ;;  %v7470_v17 = vrot.slane %v14531_v45, 5  ;;  %v14538_v1 = vld [vmem:[#allocation2 + $0xc] sm:$0xf]  ;;  %v17816_v29 = vld [vmem:[#allocation2 + $0x10] sm:$0xf] }
 0x463   :  { %v3370_v40 = vrot.slane %v3369_v8, 4  ;;  %v6787_v42 = vor.u32 %v6786_v5, %v6782_v16  ;;  %v7480_v49 = vrot.slane %v14532_v56, 5  ;;  %v12306_v28 = vrot.slane %v7340_v61, 9  ;;  %v14540_v55 = vld [vmem:[#allocation2 + $0x34] sm:$0xf]  ;;  %v14397_v61 = vld [vmem:[#allocation8 + $0x188] sm:$0xff]  }
 0x464   :  { %v6778_v53 = vrot.slane %v6777_v13, 4  ;;  %v12114_v11 = vcombine.low %v14533_v38, %v17793_v46  ;;  %v6792_v59 = vrot.slane %v6790_v48, 5  ;;  %v7473_v24 = vrot.slane %v14535_v4, 5  ;;  %v14541_v25 = vld [vmem:[#allocation2 + $0x18] sm:$0xf] }
 0x465   :  { %v3375_v27 = vsel %vm17494_vm11, %v3370_v40, %v3374_v21  ;;  %v6788_v36 = vrot.slane %v6787_v42, 4  ;;  %v7472_v58 = vrot.slane %v7470_v17, 4  ;;  %v12307_v33 = vrot.slane %v7341_v44, 9  ;;  %v17819_v8 = vld [vmem:[#allocation2 + $0x1c] sm:$0xf]  ;;  %v14427_v42 = vld [vmem:[#allocation8 + $0x90] sm:$0xff]  }
 0x466   :  { %v12105_v37 = vcombine.low %v3365_v32, %v3375_v27  ;;  %v6783_v20 = vsel %vm17494_vm11, %v6778_v53, %v6782_v16  ;;  %v7481_v26 = vsel %vm17800_vm14, %v7479_v9, %v7480_v49  ;;  %v7484_v23 = vrot.slane %v14536_v34, 5  ;;  %v14543_v21 = vld [vmem:[#allocation2 + $0x40] sm:$0xf]  ;;  %v7343_v48 = vld [vmem:[#allocation2 + $0x30] sm:$0xe] }
 0x467   :  { %v6793_v35 = vsel %vm17494_vm11, %v6788_v36, %v6792_v59  ;;  %v7471_v30 = vsel %vm17800_vm14, %v12306_v28, %v7470_v17  ;;  %v7474_v41 = vsel %vm17800_vm14, %v7472_v58, %v7473_v24  ;;  %v7478_v57 = vsel %vm17800_vm14, %v12307_v33, %v7477_v62  ;;  %v7344_v53 = vld [vmem:[#allocation2 + $0x3c] sm:$0xe]  ;;  %v14544_v17 = vld [vmem:[#allocation8 + $0x180] sm:$0xff]   ;;  %v14545_v56 = vld [vmem:[#allocation2 + $0x38] sm:$0x1] }
 0x468   :  { %13153 = vmatmul.mubr.bf16.gmra.mrb[124].mxu0 %v12105_v37  ;;  %v12297_v52 = vcombine.low %v6783_v20, %v6793_v35  ;;  %v12338_v3 = vcombine.low %v7471_v30, %v7474_v41  ;;  %v12339_v2 = vcombine.low %v7478_v57, %v7481_v26  ;;  %v7486_v9 = vrot.slane %v7484_v23, 4  ;;  %v14546_v28 = vld [vmem:[#allocation2 + $0x44] sm:$0x1]  ;;  %v17827_v37 = vld [vmem:[#allocation2 + $0x28] sm:$0xf] }
 0x469   :  { %13172 = vmatprep.mubr.bf16.mxu0 %v12114_v11  ;;  %v12308_v22 = vrot.slane %v7342_v39, 9  ;;  %v7487_v50 = vrot.slane %v14537_v18, 5  ;;  %v12115_v54 = vcombine.low %v14538_v1, %v17816_v29  ;;  %v7491_v19 = vrot.slane %v14540_v55, 5  ;;  %v14402_v11 = vld [vmem:[#allocation8 + $0x190] sm:$0xff]   ;;  %v14549_v59 = vld [vmem:[#allocation2 + $0x4c] sm:$0xf] }
 0x46a   :  { %13473 = vmatmul.mubr.bf16.gmra.mrb[60].mxu1 %v12297_v52  ;;  %v12116_v62 = vcombine.low %v14541_v25, %v17819_v8  ;;  %v7498_v13 = vrot.slane %v14543_v21, 5  ;;  %v12309_v44 = vrot.slane %v7343_v48, 9  ;;  %v7494_v49 = vrot.slane %v14545_v56, 5  ;;  %v14550_v24 = vld [vmem:[#allocation2 + $0x30] sm:$0xf] }
 0x46b   :  { %13492 = vmatprep.mubr.bf16.mxu1 %v12338_v3  ;;  %v7488_v16 = vsel %vm17800_vm14, %v7486_v9, %v7487_v50  ;;  %v7485_v5 = vsel %vm17800_vm14, %v12308_v22, %v7484_v23  ;;  %v7493_v40 = vrot.slane %v7491_v19, 4  ;;  %v12310_v27 = vrot.slane %v7344_v53, 9  ;;  %v17832_v58 = vld [vmem:[#allocation2 + $0x34] sm:$0xf]  ;;  %v14552_v35 = vld [vmem:[#allocation2 + $0x58] sm:$0xf] }
 0x46c   :  { %v12340_v32 = vcombine.low %v7485_v5, %v7488_v16  ;;  %v7500_v45 = vrot.slane %v7498_v13, 4  ;;  %v7501_v38 = vrot.slane %v14546_v28, 5  ;;  %v7505_v4 = vrot.slane %v14549_v59, 5  ;;  %v14429_v23 = vld [vmem:[#allocation8 + $0x98] sm:$0xff]   ;;  %v7346_v9 = vld [vmem:[#allocation2 + $0x54] sm:$0xe] }
 0x46d   :  { %v7495_v36 = vsel %vm17800_vm14, %v7493_v40, %v7494_v49  ;;  %v12118_v33 = vcombine.low %v14550_v24, %v17832_v58  ;;  %v7512_v34 = vrot.slane %v14552_v35, 5  ;;  %v7492_v52 = vsel %vm17800_vm14, %v12309_v44, %v7491_v19  ;;  %v7345_v57 = vld [vmem:[#allocation2 + $0x48] sm:$0xe]  ;;  %v14431_v18 = vld [vmem:[#allocation8 + $0xa0] sm:$0xff]   ;;  %v14554_v19 = vld [vmem:[#allocation2 + $0x5c] sm:$0x1] }
 0x46e   :  { %v7502_v26 = vsel %vm17800_vm14, %v7500_v45, %v7501_v38  ;;  %v12341_v30 = vcombine.low %v7492_v52, %v7495_v36  ;;  %v7499_v41 = vsel %vm17800_vm14, %v12310_v27, %v7498_v13  ;;  %v14407_v3 = vld [vmem:[#allocation8 + $0x198] sm:$0xff]   ;;  %v7507_v39 = vrot.slane %v7505_v4, 4  ;;  %v14553_v1 = vld [vmem:[#allocation2 + $0x50] sm:$0x1]  ;;  %v17841_v16 = vld [vmem:[#allocation2 + $0x40] sm:$0xf] }
 0x46f   :  { %v7514_v22 = vrot.slane %v7512_v34, 4  ;;  %v12311_v50 = vrot.slane %v7345_v57, 9  ;;  %v12312_v55 = vrot.slane %v7346_v9, 9  ;;  %v14412_v25 = vld [vmem:[#allocation8 + $0x1a0] sm:$0xff]   ;;  %v14557_v5 = vld [vmem:[#allocation2 + $0x64] sm:$0xf] }
 0x470   :  { %13173 = vmatmul.mubr.bf16.vlgmr.msra.gmra.mrb[64].mxu0 %v12115_v54  ;;  %v7508_v54 = vrot.slane %v14553_v1, 5  ;;  %v7519_v48 = vrot.slane %v14557_v5, 5  ;;  %v7347_v27 = vld [vmem:[#allocation2 + $0x60] sm:$0xe]  ;;  %v14417_v28 = vld [vmem:[#allocation8 + $0x1a8] sm:$0xff]   ;;  %v14438_v1 = vld [vmem:[#allocation8 + $0xb8] sm:$0xff]  }
 0x471   :  { %13176 = vmatprep.mubr.bf16.mxu0 %v12116_v62  ;;  %13237 = vmatpush3.bf16.msra.mxu0 %v17741_v60  ;;  %v14547_v60 = vld [vmem:[#allocation2 + $0x24] sm:$0xf]  ;;  %v14555_v62 = vld [vmem:[#allocation2 + $0x3c] sm:$0xf]  ;;  %v7506_v44 = vsel %vm17800_vm14, %v12311_v50, %v7505_v4  ;;  %v7513_v49 = vsel %vm17800_vm14, %v12312_v55, %v7512_v34  ;;  %v12313_v59 = vrot.slane %v7347_v27, 9 }
 0x472   :  { %13238 = vmatprep.subr.bf16.mxu0 %v14425_v0  ;;  %13493 = vmatmul.mubr.bf16.vlgmr.msra.gmra.mrb[0].mxu1 %v12339_v2  ;;  %v12117_v20 = vcombine.low %v14547_v60, %v17827_v37  ;;  %v12342_v2 = vcombine.low %v7499_v41, %v7502_v26  ;;  %v12119_v21 = vcombine.low %v14555_v62, %v17841_v16  ;;  %v7348_v60 = vld [vmem:[#allocation2 + $0x6c] sm:$0xe]  ;;  %v14436_v36 = vld [vmem:[#allocation8 + $0xb0] sm:$0xff]   ;;  %v14561_v4 = vld [vmem:[#allocation2 + $0x68] sm:$0x1] }
 0x473   :  { %13557 = vmatpush3.bf16.msra.mxu1 %v14544_v17  ;;  %13496 = vmatprep.mubr.bf16.mxu1 %v12340_v32  ;;  %v7509_v13 = vsel %vm17800_vm14, %v7507_v39, %v7508_v54  ;;  %v17846_v32 = vld [vmem:[#allocation2 + $0x4c] sm:$0xf]  ;;  %v14434_v17 = vld [vmem:[#allocation8 + $0xa8] sm:$0xff]   ;;  %v7522_v24 = vrot.slane %v14561_v4, 5  ;;  %v14562_v26 = vld [vmem:[#allocation2 + $0x74] sm:$0x1]  ;;  %v7520_v54 = vsel %vm17800_vm14, %v12313_v59, %v7519_v48 }
 0x474   :  { %13558 = vmatprep.subr.bf16.mxu1 %v14397_v61  ;;  %v12343_v56 = vcombine.low %v7506_v44, %v7509_v13  ;;  %v7529_v35 = vrot.slane %v14562_v26, 5  ;;  %v14423_v34 = vld [vmem:[#allocation8 + $0x1b0] sm:$0xff]   ;;  %v17855_v52 = vld [vmem:[#allocation2 + $0x58] sm:$0xf]  ;;  %v14565_v57 = vld [vmem:[#allocation2 + $0x7c] sm:$0xf] }
 0x475   :  { %13239 = vmatpush3.bf16.msra.mxu0 %v14425_v0  ;;  %v7515_v0 = vrot.slane %v14554_v19, 5  ;;  %v17860_v39 = vld [vmem:[#allocation2 + $0x64] sm:$0xf]  ;;  %v14571_v44 = vld [vmem:[#allocation2 + $0x6c] sm:$0xf] }
 0x476   :  { %13240 = vmatprep.subr.bf16.mxu0 %v14427_v42  ;;  %v7350_v13 = vld [vmem:[#allocation2 + $0x84] sm:$0xe]  ;;  %v14576_v59 = vld [vmem:[#allocation2 + $0xa0] sm:$0xf] }
 0x477   :  { %13559 = vmatpush3.bf16.msra.mxu1 %v14397_v61  ;;  %v14558_v61 = vld [vmem:[#allocation2 + $0x48] sm:$0xf]  ;;  %v7516_v53 = vsel %vm17800_vm14, %v7514_v22, %v7515_v0  ;;  %v7349_v0 = vld [vmem:[#allocation2 + $0x78] sm:$0xe]  ;;  %v7554_v4 = vrot.slane %v14576_v59, 5 }
 0x478   :  { %13177 = vmatmul.mubr.bf16.gmra.mrb[68].mxu0 %v12117_v20  ;;  %13560 = vmatprep.subr.bf16.mxu1 %v14402_v11  ;;  %v12120_v40 = vcombine.low %v14558_v61, %v17846_v32  ;;  %v12344_v38 = vcombine.low %v7513_v49, %v7516_v53  ;;  %v12315_v61 = vrot.slane %v7349_v0, 9  ;;  %v12316_v53 = vrot.slane %v7350_v13, 9  ;;  %v14586_v59 = vld [vmem:[#allocation2 + $0xbc] sm:$0x1] }
 0x479   :  { %13180 = vmatprep.mubr.bf16.mxu0 %v12118_v33  ;;  %13241 = vmatpush3.bf16.msra.mxu0 %v14427_v42  ;;  %v14560_v42 = vld [vmem:[#allocation2 + $0x70] sm:$0xf]  ;;  %v12314_v33 = vrot.slane %v7348_v60, 9  ;;  %v17876_v60 = vld [vmem:[#allocation2 + $0x7c] sm:$0xf] }
 0x47a   :  { %13497 = vmatmul.mubr.bf16.gmra.mrb[4].mxu1 %v12341_v30  ;;  %13242 = vmatprep.subr.bf16.mxu0 %v14429_v23  ;;  %v7526_v45 = vrot.slane %v14560_v42, 5  ;;  %v14570_v42 = vld [vmem:[#allocation2 + $0x8c] sm:$0x1] }
 0x47b   :  { %13500 = vmatprep.mubr.bf16.mxu1 %v12342_v2  ;;  %13561 = vmatpush3.bf16.msra.mxu1 %v14402_v11  ;;  %v7521_v11 = vrot.slane %v7519_v48, 4  ;;  %v14566_v2 = vld [vmem:[#allocation2 + $0x60] sm:$0xf] }
 0x47c   :  { %13562 = vmatprep.subr.bf16.mxu1 %v14407_v3  ;;  %v7528_v20 = vrot.slane %v7526_v45, 4  ;;  %v12122_v9 = vcombine.low %v14566_v2, %v17860_v39  ;;  %v7527_v19 = vsel %vm17800_vm14, %v12314_v33, %v7526_v45  ;;  %v17869_v45 = vld [vmem:[#allocation8 + $0x1c0] sm:$0xff]   ;;  %v14577_v2 = vld [vmem:[#allocation2 + $0x98] sm:$0x1] }
 0x47d   :  { %13243 = vmatpush3.bf16.msra.mxu0 %v14429_v23  ;;  %v14563_v23 = vld [vmem:[#allocation2 + $0x54] sm:$0xf]  ;;  %v7523_v41 = vsel %vm17800_vm14, %v7521_v11, %v7522_v24  ;;  %v14574_v11 = vld [vmem:[#allocation2 + $0x78] sm:$0xf] }
 0x47e   :  { %13244 = vmatprep.subr.bf16.mxu0 %v14431_v18  ;;  %v12121_v30 = vcombine.low %v14563_v23, %v17855_v52  ;;  %v7530_v22 = vsel %vm17800_vm14, %v7528_v20, %v7529_v35  ;;  %v12345_v55 = vcombine.low %v7520_v54, %v7523_v41  ;;  %v12124_v20 = vcombine.low %v14574_v11, %v17876_v60  ;;  %v7351_v35 = vld [vmem:[#allocation2 + $0x90] sm:$0xe]  ;;  %v17886_v54 = vld [vmem:[#allocation2 + $0x88] sm:$0xf]  ;;  %v14585_v11 = vld [vmem:[#allocation2 + $0xb0] sm:$0x1] }
 0x47f   :  { %13563 = vmatpush3.bf16.msra.mxu1 %v14407_v3  ;;  %v7533_v3 = vrot.slane %v14565_v57, 5  ;;  %v12346_v62 = vcombine.low %v7527_v19, %v7530_v22  ;;  %v7556_v41 = vrot.slane %v7554_v4, 4  ;;  %v12317_v57 = vrot.slane %v7351_v35, 9  ;;  %v14581_v19 = vld [vmem:[#allocation2 + $0xac] sm:$0xf] }
 0x480   :  { %13181 = vmatmul.mubr.bf16.gmra.mrb[72].mxu0 %v12119_v21  ;;  %13564 = vmatprep.subr.bf16.mxu1 %v14412_v25  ;;  %v7561_v0 = vrot.slane %v14581_v19, 5  ;;  %v14589_v35 = vld [vmem:[#allocation2 + $0xc4] sm:$0xf] }
 0x481   :  { %13184 = vmatprep.mubr.bf16.mxu0 %v12120_v40  ;;  %13245 = vmatpush3.bf16.msra.mxu0 %v14431_v18  ;;  %v14568_v18 = vld [vmem:[#allocation2 + $0x88] sm:$0xf]  ;;  %v7535_v21 = vrot.slane %v7533_v3, 4  ;;  %v14569_v40 = vld [vmem:[#allocation2 + $0x80] sm:$0x1]  ;;  %v7534_v24 = vsel %vm17800_vm14, %v12315_v61, %v7533_v3 }
 0x482   :  { %13501 = vmatmul.mubr.bf16.gmra.mrb[8].mxu1 %v12343_v56  ;;  %13246 = vmatprep.subr.bf16.mxu0 %v14434_v17  ;;  %v7540_v50 = vrot.slane %v14568_v18, 5  ;;  %v7536_v48 = vrot.slane %v14569_v40, 5  ;;  %v17871_v56 = vld [vmem:[#allocation2 + $0x70] sm:$0xf]  ;;  %v14578_v3 = vld [vmem:[#allocation2 + $0xa4] sm:$0x1] }
 0x483   :  { %13504 = vmatprep.mubr.bf16.mxu1 %v12344_v38  ;;  %13565 = vmatpush3.bf16.msra.mxu1 %v14412_v25  ;;  %v14432_v25 = vld [vmem:[#allocation8 + $0x1b8] sm:$0xff]   ;;  %v12123_v49 = vcombine.low %v14571_v44, %v17871_v56  ;;  %v7557_v18 = vrot.slane %v14578_v3, 5  ;;  %v7563_v44 = vrot.slane %v7561_v0, 4  ;;  %v7356_v19 = vld [vmem:[#allocation2 + $0xe4] sm:$0xe] }
 0x484   :  { %13566 = vmatprep.subr.bf16.mxu1 %v14417_v28  ;;  %v7542_v5 = vrot.slane %v7540_v50, 4  ;;  %v7537_v27 = vsel %vm17800_vm14, %v7535_v21, %v7536_v48  ;;  %v7541_v26 = vsel %vm17800_vm14, %v12316_v53, %v7540_v50 }
 0x485   :  { %13247 = vmatpush3.bf16.msra.mxu0 %v14434_v17  ;;  %v7543_v17 = vrot.slane %v14570_v42, 5  ;;  %v12347_v33 = vcombine.low %v7534_v24, %v7537_v27  ;;  %v7558_v13 = vsel %vm17800_vm14, %v7556_v41, %v7557_v18  ;;  %v7353_v42 = vld [vmem:[#allocation2 + $0xa8] sm:$0xe]  ;;  %v7571_v24 = vrot.slane %v14586_v59, 5 }
 0x486   :  { %13248 = vmatprep.subr.bf16.mxu0 %v14436_v36 }
 0x487   :  { %13567 = vmatpush3.bf16.msra.mxu1 %v14417_v28  ;;  %v14573_v28 = vld [vmem:[#allocation2 + $0x94] sm:$0xf] }
 0x488   :  { %13185 = vmatmul.mubr.bf16.gmra.mrb[76].mxu0 %v12121_v30  ;;  %13568 = vmatprep.subr.bf16.mxu1 %v14423_v34  ;;  %v7547_v38 = vrot.slane %v14573_v28, 5  ;;  %v7352_v30 = vld [vmem:[#allocation2 + $0x9c] sm:$0xe]  ;;  %v12319_v28 = vrot.slane %v7353_v42, 9  ;;  %v14595_v42 = vld [vmem:[#allocation2 + $0xd8] sm:$0xf] }
 0x489   :  { %13188 = vmatprep.mubr.bf16.mxu0 %v12122_v9  ;;  %13249 = vmatpush3.bf16.msra.mxu0 %v14436_v36  ;;  %v7544_v36 = vsel %vm17800_vm14, %v7542_v5, %v7543_v17  ;;  %v7550_v9 = vrot.slane %v14577_v2, 5  ;;  %v12318_v22 = vrot.slane %v7352_v30, 9  ;;  %v14584_v5 = vld [vmem:[#allocation2 + $0xb8] sm:$0xf]  ;;  %v17905_v30 = vld [vmem:[#allocation2 + $0xac] sm:$0xf] }
 0x48a   :  { %13505 = vmatmul.mubr.bf16.gmra.mrb[12].mxu1 %v12345_v55  ;;  %13250 = vmatprep.subr.bf16.mxu0 %v14438_v1  ;;  %v7549_v23 = vrot.slane %v7547_v38, 4  ;;  %v7568_v61 = vrot.slane %v14584_v5, 5  ;;  %v7548_v40 = vsel %vm17800_vm14, %v12317_v57, %v7547_v38  ;;  %v17900_v38 = vld [vmem:[#allocation2 + $0xa0] sm:$0xf]  ;;  %v14592_v2 = vld [vmem:[#allocation2 + $0xe8] sm:$0xf] }
 0x48b   :  { %13508 = vmatprep.mubr.bf16.mxu1 %v12346_v62  ;;  %13569 = vmatpush3.bf16.msra.mxu1 %v14423_v34  ;;  %v12348_v34 = vcombine.low %v7541_v26, %v7544_v36  ;;  %v17891_v62 = vld [vmem:[#allocation2 + $0x94] sm:$0xf]  ;;  %v7555_v53 = vsel %vm17800_vm14, %v12318_v22, %v7554_v4  ;;  %v7562_v22 = vsel %vm17800_vm14, %v12319_v28, %v7561_v0  ;;  %v17914_v0 = vld [vmem:[#allocation2 + $0xdc] sm:$0xf] }
 0x48c   :  { %13570 = vmatprep.subr.bf16.mxu1 %v14432_v25  ;;  %v7551_v55 = vsel %vm17800_vm14, %v7549_v23, %v7550_v9  ;;  %v12350_v17 = vcombine.low %v7555_v53, %v7558_v13  ;;  %v7570_v27 = vrot.slane %v7568_v61, 4  ;;  %v14590_v23 = vld [vmem:[#allocation2 + $0xa8] sm:$0xf]  ;;  %v7582_v9 = vrot.slane %v14592_v2, 5  ;;  %v14599_v28 = vld [vmem:[#allocation2 + $0xf4] sm:$0xf] }
 0x48d   :  { %13251 = vmatpush3.bf16.msra.mxu0 %v14438_v1  ;;  %v14579_v1 = vld [vmem:[#allocation2 + $0x84] sm:$0xf]  ;;  %v12349_v48 = vcombine.low %v7548_v40, %v7551_v55  ;;  %v12128_v41 = vcombine.low %v14590_v23, %v17905_v30  ;;  %v14593_v13 = vld [vmem:[#allocation2 + $0xc8] sm:$0x1]  ;;  %v12322_v40 = vrot.slane %v7356_v19, 9 }
 0x48e   :  { %v12125_v50 = vcombine.low %v14579_v1, %v17886_v54  ;;  %v7572_v57 = vsel %vm17800_vm14, %v7570_v27, %v7571_v24  ;;  %v7355_v1 = vld [vmem:[#allocation2 + $0xc0] sm:$0xe]  ;;  %v7578_v5 = vrot.slane %v14593_v13, 5  ;;  %v14606_v13 = vld [vmem:[#allocation2 + $0xf0] sm:$0xf] }
 0x48f   :  { %13571 = vmatpush3.bf16.msra.mxu1 %v14432_v25  ;;  %v14582_v25 = vld [vmem:[#allocation2 + $0x90] sm:$0xf] }
 0x490   :  { %13189 = vmatmul.mubr.bf16.gmra.mrb[80].mxu0 %v12123_v49  ;;  %13636 = vmatprep.subr.bf16.mxu1 %v17869_v45  ;;  %v12126_v21 = vcombine.low %v14582_v25, %v17891_v62  ;;  %v7354_v49 = vld [vmem:[#allocation2 + $0xb4] sm:$0xe]  ;;  %v7584_v25 = vrot.slane %v7582_v9, 4 }
 0x491   :  { %13192 = vmatprep.mubr.bf16.mxu0 %v12124_v20  ;;  %v7564_v20 = vrot.slane %v14585_v11, 5  ;;  %v12320_v36 = vrot.slane %v7354_v49, 9  ;;  %v7589_v11 = vrot.slane %v14599_v28, 5 }
 0x492   :  { %13509 = vmatmul.mubr.bf16.gmra.mrb[16].mxu1 %v12347_v33  ;;  %v14587_v33 = vld [vmem:[#allocation2 + $0x9c] sm:$0xf] }
 0x493   :  { %13512 = vmatprep.mubr.bf16.mxu1 %v12348_v34  ;;  %v12127_v26 = vcombine.low %v14587_v33, %v17900_v38  ;;  %v7565_v4 = vsel %vm17800_vm14, %v7563_v44, %v7564_v20  ;;  %v7575_v34 = vrot.slane %v14589_v35, 5  ;;  %v7569_v18 = vsel %vm17800_vm14, %v12320_v36, %v7568_v61  ;;  %v14597_v44 = vld [vmem:[#allocation2 + $0xb4] sm:$0xf]  ;;  %v17917_v61 = vld [vmem:[#allocation2 + $0xb8] sm:$0xf] }
 0x494   :  { %v12351_v3 = vcombine.low %v7562_v22, %v7565_v4  ;;  %v12129_v49 = vcombine.low %v14597_v44, %v17917_v61  ;;  %v14600_v36 = vld [vmem:[#allocation2 + $0x100] sm:$0xf]  ;;  %v7357_v4 = vld [vmem:[#allocation2 + $0xf0] sm:$0xe]  ;;  %v7591_v23 = vrot.slane %v7589_v11, 4 }
 0x495   :  { %v7577_v55 = vrot.slane %v7575_v34, 4  ;;  %v7596_v59 = vrot.slane %v14600_v36, 5  ;;  %v12323_v2 = vrot.slane %v7357_v4, 9  ;;  %v14601_v22 = vld [vmem:[#allocation2 + $0xf8] sm:$0x1] }
 0x496   :  { %v7360_v36 = vld [vmem:[#allocation2 + $0x114] sm:$0xe] }
 0x497   :  { %v7579_v27 = vsel %vm17800_vm14, %v7577_v55, %v7578_v5  ;;  %v14603_v55 = vld [vmem:[#allocation2 + $0xe4] sm:$0xf]  ;;  %v17933_v5 = vld [vmem:[#allocation2 + $0xf4] sm:$0xf] }
 0x498   :  { %13193 = vmatmul.mubr.bf16.gmra.mrb[84].mxu0 %v12125_v50  ;;  %v12352_v50 = vcombine.low %v7569_v18, %v7572_v57  ;;  %v7598_v57 = vrot.slane %v7596_v59, 4 }
 0x499   :  { %13196 = vmatprep.mubr.bf16.mxu0 %v12126_v21  ;;  %v12321_v21 = vrot.slane %v7355_v1, 9  ;;  %v14602_v1 = vld [vmem:[#allocation2 + $0x104] sm:$0x1] }
 0x49a   :  { %13513 = vmatmul.mubr.bf16.gmra.mrb[20].mxu1 %v12349_v48  ;;  %v14594_v48 = vld [vmem:[#allocation2 + $0xec] sm:$0x1] }
 0x49b   :  { %13516 = vmatprep.mubr.bf16.mxu1 %v12350_v17  ;;  %v7585_v53 = vrot.slane %v14594_v48, 5  ;;  %v12130_v17 = vcombine.low %v14595_v42, %v17914_v0  ;;  %v7576_v24 = vsel %vm17800_vm14, %v12321_v21, %v7575_v34  ;;  %v17928_v34 = vld [vmem:[#allocation2 + $0xe8] sm:$0xf] }
 0x49c   :  { %v12353_v33 = vcombine.low %v7576_v24, %v7579_v27  ;;  %v12131_v19 = vcombine.low %v14603_v55, %v17928_v34  ;;  %v7359_v27 = vld [vmem:[#allocation2 + $0x108] sm:$0xe] }
 0x49d   :  { %v7586_v20 = vsel %vm17800_vm14, %v7584_v25, %v7585_v53  ;;  %v14605_v25 = vld [vmem:[#allocation2 + $0x10c] sm:$0xf]  ;;  %v14608_v53 = vld [vmem:[#allocation2 + $0x118] sm:$0xf] }
 0x49e   :  { %v7603_v21 = vrot.slane %v14605_v25, 5  ;;  %v7610_v42 = vrot.slane %v14608_v53, 5 }
 0x4a0   :  { %13197 = vmatmul.mubr.bf16.gmra.mrb[88].mxu0 %v12127_v26  ;;  %v7583_v26 = vsel %vm17800_vm14, %v12322_v40, %v7582_v9  ;;  %v12132_v40 = vcombine.low %v14606_v13, %v17933_v5  ;;  %v7612_v24 = vrot.slane %v7610_v42, 4 }
 0x4a1   :  { %13200 = vmatprep.mubr.bf16.mxu0 %v12128_v41  ;;  %v12354_v35 = vcombine.low %v7583_v26, %v7586_v20  ;;  %v7358_v41 = vld [vmem:[#allocation2 + $0xfc] sm:$0xe]  ;;  %v7605_v20 = vrot.slane %v7603_v21, 4  ;;  %v14609_v26 = vld [vmem:[#allocation2 + $0x110] sm:$0x1] }
 0x4a2   :  { %13517 = vmatmul.mubr.bf16.gmra.mrb[24].mxu1 %v12351_v3  ;;  %v7592_v3 = vrot.slane %v14601_v22, 5  ;;  %v12324_v18 = vrot.slane %v7358_v41, 9  ;;  %v7606_v4 = vrot.slane %v14609_v26, 5  ;;  %v14613_v22 = vld [vmem:[#allocation2 + $0x124] sm:$0xf] }
 0x4a3   :  { %13520 = vmatprep.mubr.bf16.mxu1 %v12352_v50  ;;  %v7599_v50 = vrot.slane %v14602_v1, 5  ;;  %v17947_v1 = vld [vmem:[#allocation2 + $0x10c] sm:$0xf] }
 0x4a4   :  { %v7593_v9 = vsel %vm17800_vm14, %v7591_v23, %v7592_v3  ;;  %v14610_v23 = vld [vmem:[#allocation2 + $0x11c] sm:$0x1]  ;;  %v7617_v3 = vrot.slane %v14613_v22, 5  ;;  %v14624_v22 = vld [vmem:[#allocation2 + $0x148] sm:$0xf] }
 0x4a5   :  { %v7600_v48 = vsel %vm17800_vm14, %v7598_v57, %v7599_v50  ;;  %v7613_v41 = vrot.slane %v14610_v23, 5  ;;  %v14611_v57 = vld [vmem:[#allocation2 + $0xfc] sm:$0xf] }
 0x4a7   :  { %v7614_v55 = vsel %vm17800_vm14, %v7612_v24, %v7613_v41  ;;  %v14618_v24 = vld [vmem:[#allocation2 + $0x134] sm:$0x1]  ;;  %v14622_v41 = vld [vmem:[#allocation2 + $0x120] sm:$0xf] }
 0x4a8   :  { %13201 = vmatmul.mubr.bf16.gmra.mrb[92].mxu0 %v12129_v49  ;;  %v7597_v49 = vsel %vm17800_vm14, %v12324_v18, %v7596_v59  ;;  %v7607_v59 = vsel %vm17800_vm14, %v7605_v20, %v7606_v4  ;;  %v14614_v18 = vld [vmem:[#allocation2 + $0x108] sm:$0xf]  ;;  %v7627_v26 = vrot.slane %v14618_v24, 5  ;;  %v14619_v4 = vld [vmem:[#allocation2 + $0x114] sm:$0xf] }
 0x4a9   :  { %13204 = vmatprep.mubr.bf16.mxu0 %v12130_v17  ;;  %v7590_v17 = vsel %vm17800_vm14, %v12323_v2, %v7589_v11  ;;  %v12356_v28 = vcombine.low %v7597_v49, %v7600_v48  ;;  %v17942_v11 = vld [vmem:[#allocation2 + $0x100] sm:$0xf]  ;;  %v12134_v50 = vcombine.low %v14614_v18, %v17947_v1  ;;  %v7638_v18 = vrot.slane %v14624_v22, 5 }
 0x4aa   :  { %13521 = vmatmul.mubr.bf16.gmra.mrb[28].mxu1 %v12353_v33  ;;  %v12355_v44 = vcombine.low %v7590_v17, %v7593_v9  ;;  %v12325_v33 = vrot.slane %v7359_v27, 9  ;;  %v12133_v2 = vcombine.low %v14611_v57, %v17942_v11  ;;  %v7361_v48 = vld [vmem:[#allocation2 + $0x120] sm:$0xe]  ;;  %v7619_v17 = vrot.slane %v7617_v3, 4  ;;  %v17961_v57 = vld [vmem:[#allocation2 + $0x124] sm:$0xf] }
 0x4ab   :  { %13524 = vmatprep.mubr.bf16.mxu1 %v12354_v35  ;;  %v12326_v35 = vrot.slane %v7360_v36, 9  ;;  %v12327_v27 = vrot.slane %v7361_v48, 9  ;;  %v7364_v48 = vld [vmem:[#allocation2 + $0x144] sm:$0xe] }
 0x4ac   :  { %v7604_v25 = vsel %vm17800_vm14, %v12325_v33, %v7603_v21  ;;  %v17956_v21 = vld [vmem:[#allocation2 + $0x118] sm:$0xf] }
 0x4ad   :  { %v12357_v13 = vcombine.low %v7604_v25, %v7607_v59  ;;  %v12135_v33 = vcombine.low %v14619_v4, %v17956_v21  ;;  %v7363_v25 = vld [vmem:[#allocation2 + $0x138] sm:$0xe] }
 0x4b0   :  { %13205 = vmatmul.mubr.bf16.gmra.mrb[96].mxu0 %v12131_v19  ;;  %v14616_v19 = vld [vmem:[#allocation2 + $0x130] sm:$0xf] }
 0x4b1   :  { %13208 = vmatprep.mubr.bf16.mxu0 %v12132_v40  ;;  %v7624_v9 = vrot.slane %v14616_v19, 5  ;;  %v7611_v40 = vsel %vm17800_vm14, %v12326_v35, %v7610_v42  ;;  %v14621_v35 = vld [vmem:[#allocation2 + $0x13c] sm:$0xf] }
 0x4b2   :  { %13525 = vmatmul.mubr.bf16.gmra.mrb[32].mxu1 %v12355_v44  ;;  %v12358_v53 = vcombine.low %v7611_v40, %v7614_v55  ;;  %v7362_v44 = vld [vmem:[#allocation2 + $0x12c] sm:$0xe]  ;;  %v7631_v23 = vrot.slane %v14621_v35, 5 }
 0x4b3   :  { %13528 = vmatprep.mubr.bf16.mxu1 %v12356_v28  ;;  %v7626_v49 = vrot.slane %v7624_v9, 4  ;;  %v14617_v28 = vld [vmem:[#allocation2 + $0x128] sm:$0x1]  ;;  %v12328_v36 = vrot.slane %v7362_v44, 9  ;;  %v14625_v44 = vld [vmem:[#allocation2 + $0x140] sm:$0x1] }
 0x4b4   :  { %v7620_v20 = vrot.slane %v14617_v28, 5  ;;  %v7633_v40 = vrot.slane %v7631_v23, 4  ;;  %v12330_v28 = vrot.slane %v7364_v48, 9 }
 0x4b5   :  { %v7628_v59 = vsel %vm17800_vm14, %v7626_v49, %v7627_v26  ;;  %v7625_v19 = vsel %vm17800_vm14, %v12328_v36, %v7624_v9  ;;  %v7634_v49 = vrot.slane %v14625_v44, 5  ;;  %v14627_v26 = vld [vmem:[#allocation2 + $0x12c] sm:$0xf]  ;;  %v14629_v36 = vld [vmem:[#allocation2 + $0x154] sm:$0xf] }
 0x4b6   :  { %v7621_v42 = vsel %vm17800_vm14, %v7619_v17, %v7620_v20  ;;  %v12329_v17 = vrot.slane %v7363_v25, 9  ;;  %v14626_v20 = vld [vmem:[#allocation2 + $0x14c] sm:$0x1]  ;;  %v7645_v4 = vrot.slane %v14629_v36, 5  ;;  %v14638_v36 = vld [vmem:[#allocation2 + $0x150] sm:$0xf] }
 0x4b7   :  { %v7641_v24 = vrot.slane %v14626_v20, 5  ;;  %v7635_v9 = vsel %vm17800_vm14, %v7633_v40, %v7634_v49  ;;  %v7366_v40 = vld [vmem:[#allocation2 + $0x15c] sm:$0xe] }
 0x4b8   :  { %13209 = vmatmul.mubr.bf16.gmra.mrb[100].mxu0 %v12133_v2  ;;  %v12136_v2 = vcombine.low %v14622_v41, %v17961_v57  ;;  %v7632_v22 = vsel %vm17800_vm14, %v12329_v17, %v7631_v23  ;;  %v12332_v20 = vrot.slane %v7366_v40, 9  ;;  %v17984_v23 = vld [vmem:[#allocation2 + $0x148] sm:$0xf] }
 0x4b9   :  { %13212 = vmatprep.mubr.bf16.mxu0 %v12134_v50  ;;  %v7618_v50 = vsel %vm17800_vm14, %v12327_v27, %v7617_v3  ;;  %v17970_v3 = vld [vmem:[#allocation2 + $0x130] sm:$0xf] }
 0x4ba   :  { %13529 = vmatmul.mubr.bf16.gmra.mrb[36].mxu1 %v12357_v13  ;;  %v12359_v55 = vcombine.low %v7618_v50, %v7621_v42  ;;  %v12360_v13 = vcombine.low %v7625_v19, %v7628_v59  ;;  %v12137_v27 = vcombine.low %v14627_v26, %v17970_v3  ;;  %v17975_v42 = vld [vmem:[#allocation2 + $0x13c] sm:$0xf]  ;;  %v12361_v50 = vcombine.low %v7632_v22, %v7635_v9  ;;  %v7365_v19 = vld [vmem:[#allocation2 + $0x150] sm:$0xe] }
 0x4bb   :  { %13532 = vmatprep.mubr.bf16.mxu1 %v12358_v53  ;;  %v7640_v53 = vrot.slane %v7638_v18, 4  ;;  %v12331_v44 = vrot.slane %v7365_v19, 9 }
 0x4bd   :  { %v7642_v41 = vsel %vm17800_vm14, %v7640_v53, %v7641_v24  ;;  %v14633_v53 = vld [vmem:[#allocation2 + $0x158] sm:$0x1]  ;;  %v14634_v24 = vld [vmem:[#allocation2 + $0x164] sm:$0x1]  ;;  %v7646_v22 = vsel %vm17800_vm14, %v12331_v44, %v7645_v4  ;;  %v14641_v44 = vld [vmem:[#allocation2 + $0x17c] sm:$0x1] }
 0x4be   :  { %v7648_v49 = vrot.slane %v14633_v53, 5  ;;  %v7655_v26 = vrot.slane %v14634_v24, 5  ;;  %v7368_v53 = vld [vmem:[#allocation2 + $0x174] sm:$0xe] }
 0x4c0   :  { %13213 = vmatmul.mubr.bf16.gmra.mrb[104].mxu0 %v12135_v33  ;;  %v14630_v33 = vld [vmem:[#allocation2 + $0x138] sm:$0xf] }
 0x4c1   :  { %13216 = vmatprep.mubr.bf16.mxu0 %v12136_v2  ;;  %v12138_v35 = vcombine.low %v14630_v33, %v17975_v42  ;;  %v14632_v2 = vld [vmem:[#allocation2 + $0x160] sm:$0xf]  ;;  %v17989_v33 = vld [vmem:[#allocation2 + $0x154] sm:$0xf] }
 0x4c2   :  { %13533 = vmatmul.mubr.bf16.gmra.mrb[40].mxu1 %v12359_v55  ;;  %v7652_v59 = vrot.slane %v14632_v2, 5  ;;  %v7639_v55 = vsel %vm17800_vm14, %v12330_v28, %v7638_v18  ;;  %v14637_v28 = vld [vmem:[#allocation2 + $0x16c] sm:$0xf]  ;;  %v7666_v2 = vrot.slane %v17723_v7, 5 }
 0x4c3   :  { %13536 = vmatprep.mubr.bf16.mxu1 %v12360_v13  ;;  %v12362_v25 = vcombine.low %v7639_v55, %v7642_v41  ;;  %v7647_v13 = vrot.slane %v7645_v4, 4  ;;  %v7659_v9 = vrot.slane %v14637_v28, 5  ;;  %v12334_v4 = vrot.slane %v7368_v53, 9  ;;  %v14644_v28 = vld [vmem:[#allocation2 + $0x168] sm:$0xf] }
 0x4c4   :  { %v7654_v48 = vrot.slane %v7652_v59, 4  ;;  %v7653_v19 = vsel %vm17800_vm14, %v12332_v20, %v7652_v59  ;;  %v7370_v53 = vld [vmem:[#allocation2 + $0x18c] sm:$0xe] }
 0x4c5   :  { %v7649_v18 = vsel %vm17800_vm14, %v7647_v13, %v7648_v49  ;;  %v7661_v40 = vrot.slane %v7659_v9, 4  ;;  %v14640_v49 = vld [vmem:[#allocation2 + $0x170] sm:$0x1] }
 0x4c6   :  { %v7656_v41 = vsel %vm17800_vm14, %v7654_v48, %v7655_v26  ;;  %v12363_v55 = vcombine.low %v7646_v22, %v7649_v18  ;;  %v7668_v48 = vrot.slane %v7666_v2, 4  ;;  %v7662_v24 = vrot.slane %v14640_v49, 5 }
 0x4c7   :  { %v12364_v13 = vcombine.low %v7653_v19, %v7656_v41  ;;  %v7669_v26 = vrot.slane %v14641_v44, 5  ;;  %v7673_v18 = vrot.slane %v17739_v15, 5  ;;  %v7680_v22 = vrot.slane %v17752_v6, 5  ;;  %v7369_v15 = vld [vmem:[#allocation2 + $0x180] sm:$0xe] }
 0x4c8   :  { %13217 = vmatmul.mubr.bf16.gmra.mrb[108].mxu0 %v12137_v27  ;;  %v14635_v27 = vld [vmem:[#allocation2 + $0x144] sm:$0xf]  ;;  %v7663_v20 = vsel %vm17800_vm14, %v7661_v40, %v7662_v24  ;;  %v4488_v49 = vrot.slane %v17793_v46, 5  ;;  %v12335_v6 = vrot.slane %v7369_v15, 9  ;;  %v7676_v44 = vrot.slane %v17745_v31, 5 }
 0x4c9   :  { %13220 = vmatprep.mubr.bf16.mxu0 %v12138_v35  ;;  %v12139_v17 = vcombine.low %v14635_v27, %v17984_v23  ;;  %v12140_v35 = vcombine.low %v14638_v36, %v17989_v33  ;;  %v14642_v27 = vld [vmem:[#allocation2 + $0x15c] sm:$0xf]  ;;  %v18008_v36 = vld [vmem:[#allocation2 + $0x16c] sm:$0xf]  ;;  %v7670_v41 = vsel %vm17800_vm14, %v7668_v48, %v7669_v26  ;;  %v7675_v40 = vrot.slane %v7673_v18, 4 }
 0x4ca   :  { %13537 = vmatmul.mubr.bf16.gmra.mrb[44].mxu1 %v12361_v50  ;;  %v17997_v50 = vld [vmem:[#allocation8 + $0xc0] sm:$0xff]   ;;  %v7682_v24 = vrot.slane %v7680_v22, 4  ;;  %v4387_v48 = vld [vmem:[#allocation2] sm:$0xe]  ;;  %v7371_v15 = vld [vmem:[#allocation2 + $0x198] sm:$0xe] }
 0x4cb   :  { %13540 = vmatprep.mubr.bf16.mxu1 %v12362_v25  ;;  %v7367_v25 = vld [vmem:[#allocation2 + $0x168] sm:$0xe]  ;;  %13316 = vmatprep.subr.bf16.mxu0 %v17997_v50  ;;  %v14646_v26 = vld [vmem:[#allocation2 + $0x174] sm:$0xf]  ;;  %v7677_v46 = vsel %vm17800_vm14, %v7675_v40, %v7676_v44  ;;  %v12337_v44 = vrot.slane %v7371_v15, 9 }
 0x4cc   :  { %v12333_v7 = vrot.slane %v7367_v25, 9  ;;  %v7667_v25 = vsel %vm17800_vm14, %v12334_v4, %v7666_v2  ;;  %v7683_v2 = vrot.slane %v17757_v14, 5  ;;  %v7687_v4 = vrot.slane %v17775_v51, 5  ;;  %v4390_v15 = vld [vmem:[#allocation2 + $0x24] sm:$0xe] }
 0x4cd   :  { %v7674_v14 = vsel %vm17800_vm14, %v12335_v6, %v7673_v18  ;;  %v7690_v18 = vrot.slane %v17782_v47, 5  ;;  %v4502_v6 = vrot.slane %v17819_v8, 5 }
 0x4ce   :  { %v12367_v51 = vcombine.low %v7674_v14, %v7677_v46  ;;  %v7689_v40 = vrot.slane %v7687_v4, 4 }
 0x4cf   :  { %v4504_v46 = vrot.slane %v4502_v6, 4 }
 0x4d0   :  { %13221 = vmatmul.mubr.bf16.gmra.mrb[112].mxu0 %v12139_v17  ;;  %v18002_v17 = vld [vmem:[#allocation2 + $0x160] sm:$0xf] }
 0x4d1   :  { %13224 = vmatprep.mubr.bf16.mxu0 %v12140_v35  ;;  %v12141_v59 = vcombine.low %v14642_v27, %v18002_v17  ;;  %v12142_v35 = vcombine.low %v14644_v28, %v18008_v36  ;;  %v12336_v27 = vrot.slane %v7370_v53, 9  ;;  %v14648_v28 = vld [vmem:[#allocation2 + $0x8] sm:$0x1] }
 0x4d2   :  { %13541 = vmatmul.mubr.bf16.gmra.mrb[48].mxu1 %v12363_v55  ;;  %v7660_v55 = vsel %vm17800_vm14, %v12333_v7, %v7659_v9  ;;  %v18020_v9 = vld [vmem:[#allocation2 + $0x178] sm:$0xf] }
 0x4d3   :  { %13544 = vmatprep.mubr.bf16.mxu1 %v12364_v13  ;;  %v12365_v19 = vcombine.low %v7660_v55, %v7663_v20  ;;  %v12366_v13 = vcombine.low %v7667_v25, %v7670_v41  ;;  %v12143_v7 = vcombine.low %v14646_v26, %v18020_v9  ;;  %v4490_v20 = vrot.slane %v4488_v49, 4  ;;  %v14649_v41 = vld [vmem:[#allocation2 + $0x180] sm:$0xf]  ;;  %v18027_v55 = vld [vmem:[#allocation2 + $0x184] sm:$0xf] }
 0x4d4   :  { %v12144_v31 = vcombine.low %v14649_v41, %v18027_v55  ;;  %v7681_v25 = vsel %vm17800_vm14, %v12336_v27, %v7680_v22  ;;  %v12145_v22 = vcombine.low %v17760_v12, %v17765_v10  ;;  %v14652_v41 = vld [vmem:[#allocation2 + $0x20] sm:$0x1] }
 0x4d5   :  { %v4505_v12 = vrot.slane %v14652_v41, 5  ;;  %v14477_v41 = vld [vmem:[#allocation8 + $0xd8] sm:$0xff]  }
 0x4d8   :  { %13225 = vmatmul.mubr.bf16.gmra.mrb[116].mxu0 %v12141_v59  ;;  %v12154_v59 = vrot.slane %v4387_v48, 9 }
 0x4d9   :  { %13228 = vmatprep.mubr.bf16.mxu0 %v12142_v35  ;;  %v4491_v35 = vrot.slane %v14648_v28, 5  ;;  %v14437_v28 = vld [vmem:[#allocation2 + $0x18] sm:$0xff]  }
 0x4da   :  { %13545 = vmatmul.mubr.bf16.gmra.mrb[52].mxu1 %v12365_v19  ;;  %v7684_v19 = vsel %vm17800_vm14, %v7682_v24, %v7683_v2  ;;  %v4489_v53 = vsel %vm17800_vm14, %v12154_v59, %v4488_v49  ;;  %v4495_v24 = vrot.slane %v17816_v29, 5  ;;  %v4388_v49 = vld [vmem:[#allocation2 + $0xc] sm:$0xe]  ;;  %v4389_v2 = vld [vmem:[#allocation2 + $0x18] sm:$0xe]  ;;  %v7688_v29 = vsel %vm17800_vm14, %v12337_v44, %v7687_v4  ;;  %v14440_v44 = vld [vmem:[#allocation2 + $0x24] sm:$0xff]  }
 0x4db   :  { %13548 = vmatprep.mubr.bf16.mxu1 %v12366_v13  ;;  %v12368_v13 = vcombine.low %v7681_v25, %v7684_v19  ;;  %v4492_v48 = vsel %vm17800_vm14, %v4490_v20, %v4491_v35  ;;  %v12155_v47 = vrot.slane %v4388_v49, 9  ;;  %v14651_v20 = vld [vmem:[#allocation2 + $0x14] sm:$0x1]  ;;  %v12156_v35 = vrot.slane %v4389_v2, 9  ;;  %v14654_v49 = vld [vmem:[#allocation2 + $0x38] sm:$0x1] }
 0x4dc   :  { %v12186_v26 = vcombine.low %v4489_v53, %v4492_v48  ;;  %v4497_v27 = vrot.slane %v4495_v24, 4  ;;  %v4498_v8 = vrot.slane %v14651_v20, 5  ;;  %v4506_v4 = vsel %vm17800_vm14, %v4504_v46, %v4505_v12  ;;  %v4391_v48 = vld [vmem:[#allocation2 + $0x30] sm:$0xe] }
 0x4dd   :  { %v4516_v19 = vrot.slane %v17832_v58, 5  ;;  %v4496_v14 = vsel %vm17800_vm14, %v12155_v47, %v4495_v24  ;;  %v4503_v25 = vsel %vm17800_vm14, %v12156_v35, %v4502_v6  ;;  %v14444_v58 = vld [vmem:[#allocation8 + $0x1c8] sm:$0xff]   ;;  %v14441_v24 = vld [vmem:[#allocation2 + $0x30] sm:$0xff]   ;;  %v14474_v6 = vld [vmem:[#allocation8 + $0xd0] sm:$0xff]  }
 0x4de   :  { %v4499_v10 = vsel %vm17800_vm14, %v4497_v27, %v4498_v8  ;;  %v4519_v27 = vrot.slane %v14654_v49, 5  ;;  %v14449_v47 = vld [vmem:[#allocation8 + $0x1d0] sm:$0xff]   ;;  %v4393_v35 = vld [vmem:[#allocation2 + $0x48] sm:$0xe]  ;;  %v14482_v49 = vld [vmem:[#allocation8 + $0xe8] sm:$0xff]  }
 0x4e0   :  { %13229 = vmatmul.mubr.bf16.gmra.mrb[120].mxu0 %v12143_v7  ;;  %v7691_v7 = vsel %vm17800_vm14, %v7689_v40, %v7690_v18  ;;  %v12188_v40 = vcombine.low %v4503_v25, %v4506_v4  ;;  %v12157_v18 = vrot.slane %v4390_v15, 9  ;;  %v12160_v25 = vrot.slane %v4393_v35, 9  ;;  %v14656_v15 = vld [vmem:[#allocation2 + $0x50] sm:$0x1] }
 0x4e1   :  { %13232 = vmatprep.mubr.bf16.mxu0 %v12144_v31  ;;  %v12369_v59 = vcombine.low %v7688_v29, %v7691_v7  ;;  %v4509_v31 = vrot.slane %v17827_v37, 5  ;;  %v4518_v37 = vrot.slane %v4516_v19, 4  ;;  %v12158_v7 = vrot.slane %v4391_v48, 9 }
 0x4e2   :  { %13549 = vmatmul.mubr.bf16.gmra.mrb[56].mxu1 %v12367_v51  ;;  %v12187_v51 = vcombine.low %v4496_v14, %v4499_v10  ;;  %v4523_v29 = vrot.slane %v17841_v16, 5  ;;  %v14454_v14 = vld [vmem:[#allocation8 + $0x1d8] sm:$0xff]   ;;  %v4558_v35 = vrot.slane %v17876_v60, 5 }
 0x4e3   :  { %13552 = vmatprep.mubr.bf16.mxu1 %v12368_v13  ;;  %v14473_v13 = vld [vmem:[#allocation8 + $0xc8] sm:$0xff]   ;;  %v4511_v53 = vrot.slane %v4509_v31, 4  ;;  %v4520_v46 = vsel %vm17800_vm14, %v4518_v37, %v4519_v27  ;;  %v4517_v8 = vsel %vm17800_vm14, %v12158_v7, %v4516_v19  ;;  %v4533_v19 = vrot.slane %v14656_v15, 5  ;;  %v4395_v7 = vld [vmem:[#allocation2 + $0x60] sm:$0xe]  ;;  %v14447_v60 = vld [vmem:[#allocation2 + $0x6c] sm:$0xff]  }
 0x4e4   :  { %v12190_v16 = vcombine.low %v4517_v8, %v4520_v46  ;;  %v4544_v37 = vrot.slane %v17860_v39, 5  ;;  %v14445_v39 = vld [vmem:[#allocation2 + $0x54] sm:$0xff]  }
 0x4e5   :  { %v14464_v46 = vld [vmem:[#allocation8 + $0x1e8] sm:$0xff]  }
 0x4e6   :  { %v4546_v27 = vrot.slane %v4544_v37, 4 }
 0x4e8   :  { %13233 = vmatmul.mubr.bf16.gmra.mrb[124].mxu0 %v12145_v22 }
 0x4e9   :  { %13252 = vmatprep.mubr.bf16.mxu0 %v12186_v26  ;;  %v14653_v26 = vld [vmem:[#allocation2 + $0x2c] sm:$0x1] }
 0x4ea   :  { %13553 = vmatmul.mubr.bf16.gmra.mrb[60].mxu1 %v12369_v59  ;;  %v4512_v22 = vrot.slane %v14653_v26, 5  ;;  %v4510_v59 = vsel %vm17800_vm14, %v12157_v18, %v4509_v31  ;;  %v14655_v31 = vld [vmem:[#allocation2 + $0x44] sm:$0x1]  ;;  %v14459_v18 = vld [vmem:[#allocation8 + $0x1e0] sm:$0xff]  }
 0x4eb   :  { %13572 = vmatprep.mubr.bf16.mxu1 %v14437_v28  ;;  %v4392_v28 = vld [vmem:[#allocation2 + $0x3c] sm:$0xe]  ;;  %v4526_v4 = vrot.slane %v14655_v31, 5  ;;  %v4396_v31 = vld [vmem:[#allocation2 + $0x6c] sm:$0xe] }
 0x4ec   :  { %v4513_v2 = vsel %vm17800_vm14, %v4511_v53, %v4512_v22  ;;  %v12159_v10 = vrot.slane %v4392_v28, 9  ;;  %v14478_v53 = vld [vmem:[#allocation8 + $0xe0] sm:$0xff]   ;;  %v4551_v28 = vrot.slane %v17871_v56, 5  ;;  %v12163_v15 = vrot.slane %v4396_v31, 9  ;;  %v4401_v31 = vld [vmem:[#allocation2 + $0xa8] sm:$0xe] }
 0x4ed   :  { %v12189_v20 = vcombine.low %v4510_v59, %v4513_v2  ;;  %v14657_v2 = vld [vmem:[#allocation2 + $0x5c] sm:$0x1]  ;;  %v14446_v59 = vld [vmem:[#allocation2 + $0x60] sm:$0xff]  }
 0x4f0   :  { %13253 = vmatmul.mubr.bf16.vlgmr.msra.gmra.mrb[64].mxu0 %v12187_v51  ;;  %v14443_v51 = vld [vmem:[#allocation2 + $0x48] sm:$0xff]  }
 0x4f1   :  { %13256 = vmatprep.mubr.bf16.mxu0 %v12188_v40  ;;  %13317 = vmatpush3.bf16.msra.mxu0 %v17997_v50  ;;  %v4530_v50 = vrot.slane %v17846_v32, 5  ;;  %v14442_v32 = vld [vmem:[#allocation2 + $0x3c] sm:$0xff]   ;;  %v4537_v40 = vrot.slane %v17855_v52, 5 }
 0x4f2   :  { %13318 = vmatprep.subr.bf16.mxu0 %v14473_v13  ;;  %13573 = vmatmul.mubr.bf16.vlgmr.msra.gmra.mrb[0].mxu1 %v14440_v44  ;;  %v4524_v44 = vsel %vm17800_vm14, %v12159_v10, %v4523_v29 }
 0x4f3   :  { %13637 = vmatpush3.bf16.msra.mxu1 %v17869_v45  ;;  %13576 = vmatprep.mubr.bf16.mxu1 %v14441_v24  ;;  %v4525_v45 = vrot.slane %v4523_v29, 4  ;;  %v4532_v12 = vrot.slane %v4530_v50, 4  ;;  %v4531_v22 = vsel %vm17800_vm14, %v12160_v25, %v4530_v50  ;;  %v4539_v24 = vrot.slane %v4537_v40, 4  ;;  %v14658_v50 = vld [vmem:[#allocation2 + $0x68] sm:$0x1] }
 0x4f4   :  { %13638 = vmatprep.subr.bf16.mxu1 %v14444_v58  ;;  %v4540_v29 = vrot.slane %v14657_v2, 5  ;;  %v4560_v25 = vrot.slane %v4558_v35, 4 }
 0x4f5   :  { %13319 = vmatpush3.bf16.msra.mxu0 %v14473_v13  ;;  %v4527_v13 = vsel %vm17800_vm14, %v4525_v45, %v4526_v4  ;;  %v4534_v48 = vsel %vm17800_vm14, %v4532_v12, %v4533_v19  ;;  %v14470_v12 = vld [vmem:[#allocation8 + $0x1f0] sm:$0xff]   ;;  %v4553_v4 = vrot.slane %v4551_v28, 4  ;;  %v14659_v19 = vld [vmem:[#allocation2 + $0x74] sm:$0x1] }
 0x4f6   :  { %13320 = vmatprep.subr.bf16.mxu0 %v14474_v6  ;;  %v12191_v26 = vcombine.low %v4524_v44, %v4527_v13  ;;  %v12192_v52 = vcombine.low %v4531_v22, %v4534_v48  ;;  %v4541_v8 = vsel %vm17800_vm14, %v4539_v24, %v4540_v29  ;;  %v4554_v13 = vrot.slane %v14659_v19, 5  ;;  %v18099_v24 = vld [vmem:[#allocation8 + $0x200] sm:$0xff]  }
 0x4f7   :  { %13639 = vmatpush3.bf16.msra.mxu1 %v14444_v58  ;;  %v4394_v58 = vld [vmem:[#allocation2 + $0x54] sm:$0xe]  ;;  %v14664_v19 = vld [vmem:[#allocation2 + $0xb0] sm:$0x1] }
 0x4f8   :  { %13257 = vmatmul.mubr.bf16.gmra.mrb[68].mxu0 %v12189_v20  ;;  %13640 = vmatprep.subr.bf16.mxu1 %v14449_v47  ;;  %v4547_v20 = vrot.slane %v14658_v50, 5 }
 0x4f9   :  { %13260 = vmatprep.mubr.bf16.mxu0 %v12190_v16  ;;  %13321 = vmatpush3.bf16.msra.mxu0 %v14474_v6  ;;  %v12161_v6 = vrot.slane %v4394_v58, 9  ;;  %v14483_v16 = vld [vmem:[#allocation8 + $0xf0] sm:$0xff]   ;;  %v4572_v58 = vrot.slane %v17891_v62, 5 }
 0x4fa   :  { %13577 = vmatmul.mubr.bf16.gmra.mrb[4].mxu1 %v14442_v32  ;;  %13322 = vmatprep.subr.bf16.mxu0 %v14477_v41  ;;  %v4548_v45 = vsel %vm17800_vm14, %v4546_v27, %v4547_v20  ;;  %v4398_v27 = vld [vmem:[#allocation2 + $0x84] sm:$0xe]  ;;  %v14662_v20 = vld [vmem:[#allocation2 + $0x98] sm:$0x1] }
 0x4fb   :  { %13580 = vmatprep.mubr.bf16.mxu1 %v14443_v51  ;;  %13641 = vmatpush3.bf16.msra.mxu1 %v14449_v47  ;;  %v12162_v47 = vrot.slane %v4395_v7, 9  ;;  %v14486_v51 = vld [vmem:[#allocation8 + $0xf8] sm:$0xff]   ;;  %v4574_v2 = vrot.slane %v4572_v58, 4  ;;  %v12165_v29 = vrot.slane %v4398_v27, 9 }
 0x4fc   :  { %13642 = vmatprep.subr.bf16.mxu1 %v14454_v14  ;;  %v14450_v62 = vld [vmem:[#allocation2 + $0x84] sm:$0xff]  }
 0x4fd   :  { %13323 = vmatpush3.bf16.msra.mxu0 %v14477_v41  ;;  %v4538_v41 = vsel %vm17800_vm14, %v12161_v6, %v4537_v40  ;;  %v4545_v10 = vsel %vm17800_vm14, %v12162_v47, %v4544_v37  ;;  %v14479_v40 = vld [vmem:[#allocation8 + $0x1f8] sm:$0xff]   ;;  %v14660_v37 = vld [vmem:[#allocation2 + $0x80] sm:$0x1]  ;;  %v4399_v6 = vld [vmem:[#allocation2 + $0x90] sm:$0xe] }
 0x4fe   :  { %13324 = vmatprep.subr.bf16.mxu0 %v14478_v53  ;;  %v12193_v32 = vcombine.low %v4538_v41, %v4541_v8  ;;  %v12194_v56 = vcombine.low %v4545_v10, %v4548_v45  ;;  %v4561_v44 = vrot.slane %v14660_v37, 5  ;;  %v14451_v47 = vld [vmem:[#allocation2 + $0x90] sm:$0xff]   ;;  %v12166_v50 = vrot.slane %v4399_v6, 9  ;;  %v4400_v10 = vld [vmem:[#allocation2 + $0x9c] sm:$0xe] }
 0x4ff   :  { %13643 = vmatpush3.bf16.msra.mxu1 %v14454_v14  ;;  %v4397_v14 = vld [vmem:[#allocation2 + $0x78] sm:$0xe]  ;;  %v4575_v8 = vrot.slane %v14662_v20, 5  ;;  %v14666_v6 = vld [vmem:[#allocation2 + $0xbc] sm:$0x1] }
 0x500   :  { %13261 = vmatmul.mubr.bf16.gmra.mrb[72].mxu0 %v12191_v26  ;;  %13644 = vmatprep.subr.bf16.mxu1 %v14459_v18  ;;  %v12164_v48 = vrot.slane %v4397_v14, 9  ;;  %v4565_v26 = vrot.slane %v17886_v54, 5  ;;  %v4562_v22 = vsel %vm17800_vm14, %v4560_v25, %v4561_v44  ;;  %v14663_v25 = vld [vmem:[#allocation2 + $0xa4] sm:$0x1]  ;;  %v4403_v37 = vld [vmem:[#allocation2 + $0xd8] sm:$0xe] }
 0x501   :  { %13264 = vmatprep.mubr.bf16.mxu0 %v12192_v52  ;;  %13325 = vmatpush3.bf16.msra.mxu0 %v14478_v53  ;;  %v14448_v53 = vld [vmem:[#allocation2 + $0x78] sm:$0xff]   ;;  %v4552_v52 = vsel %vm17800_vm14, %v12163_v15, %v4551_v28  ;;  %v4576_v45 = vsel %vm17800_vm14, %v4574_v2, %v4575_v8  ;;  %v12168_v15 = vrot.slane %v4401_v31, 9  ;;  %v4596_v2 = vrot.slane %v14666_v6, 5 }
 0x502   :  { %13581 = vmatmul.mubr.bf16.gmra.mrb[8].mxu1 %v14445_v39  ;;  %13326 = vmatprep.subr.bf16.mxu0 %v14482_v49  ;;  %v4567_v39 = vrot.slane %v4565_v26, 4  ;;  %v4566_v41 = vsel %vm17800_vm14, %v12165_v29, %v4565_v26 }
 0x503   :  { %13584 = vmatprep.mubr.bf16.mxu1 %v14446_v59  ;;  %13645 = vmatpush3.bf16.msra.mxu1 %v14459_v18  ;;  %v4555_v18 = vsel %vm17800_vm14, %v4553_v4, %v4554_v13  ;;  %v4589_v13 = vrot.slane %v14664_v19, 5  ;;  %v4406_v19 = vld [vmem:[#allocation2 + $0xfc] sm:$0xe] }
 0x504   :  { %13646 = vmatprep.subr.bf16.mxu1 %v14464_v46  ;;  %v12195_v7 = vcombine.low %v4552_v52, %v4555_v18 }
 0x505   :  { %13327 = vmatpush3.bf16.msra.mxu0 %v14482_v49  ;;  %v4559_v49 = vsel %vm17800_vm14, %v12164_v48, %v4558_v35  ;;  %v4586_v35 = vrot.slane %v17905_v30, 5  ;;  %v14453_v30 = vld [vmem:[#allocation2 + $0xa8] sm:$0xff]   ;;  %v4593_v48 = vrot.slane %v17917_v61, 5  ;;  %v14455_v61 = vld [vmem:[#allocation2 + $0xb4] sm:$0xff]  }
 0x506   :  { %13328 = vmatprep.subr.bf16.mxu0 %v14483_v16  ;;  %v12196_v54 = vcombine.low %v4559_v49, %v4562_v22 }
 0x507   :  { %13647 = vmatpush3.bf16.msra.mxu1 %v14464_v46  ;;  %v14661_v46 = vld [vmem:[#allocation2 + $0x8c] sm:$0x1]  ;;  %v4588_v14 = vrot.slane %v4586_v35, 4  ;;  %v4587_v26 = vsel %vm17800_vm14, %v12168_v15, %v4586_v35 }
 0x508   :  { %13265 = vmatmul.mubr.bf16.gmra.mrb[76].mxu0 %v12193_v32  ;;  %13648 = vmatprep.subr.bf16.mxu1 %v14470_v12  ;;  %v4568_v59 = vrot.slane %v14661_v46, 5  ;;  %v4573_v32 = vsel %vm17800_vm14, %v12166_v50, %v4572_v58  ;;  %v4402_v58 = vld [vmem:[#allocation2 + $0xb4] sm:$0xe]  ;;  %v4614_v50 = vrot.slane %v17933_v5, 5 }
 0x509   :  { %13268 = vmatprep.mubr.bf16.mxu0 %v12194_v56  ;;  %13329 = vmatpush3.bf16.msra.mxu0 %v14483_v16  ;;  %v4579_v16 = vrot.slane %v17900_v38, 5  ;;  %v12198_v56 = vcombine.low %v4573_v32, %v4576_v45  ;;  %v14452_v38 = vld [vmem:[#allocation2 + $0x9c] sm:$0xff]   ;;  %v4590_v44 = vsel %vm17800_vm14, %v4588_v14, %v4589_v13  ;;  %v14457_v45 = vld [vmem:[#allocation2 + $0xcc] sm:$0xff]  }
 0x50a   :  { %13585 = vmatmul.mubr.bf16.gmra.mrb[12].mxu1 %v14447_v60  ;;  %13330 = vmatprep.subr.bf16.mxu0 %v14486_v51  ;;  %v4569_v28 = vsel %vm17800_vm14, %v4567_v39, %v4568_v59  ;;  %v4582_v60 = vrot.slane %v14663_v25, 5  ;;  %v12200_v27 = vcombine.low %v4587_v26, %v4590_v44  ;;  %v12169_v39 = vrot.slane %v4402_v58, 9  ;;  %v14669_v44 = vld [vmem:[#allocation2 + $0x104] sm:$0x1]  ;;  %v14461_v26 = vld [vmem:[#allocation2 + $0x108] sm:$0xff]  }
 0x50b   :  { %13588 = vmatprep.mubr.bf16.mxu1 %v14448_v53  ;;  %13649 = vmatpush3.bf16.msra.mxu1 %v14470_v12  ;;  %v12197_v12 = vcombine.low %v4566_v41, %v4569_v28  ;;  %v4581_v4 = vrot.slane %v4579_v16, 4  ;;  %v4405_v41 = vld [vmem:[#allocation2 + $0xf0] sm:$0xe]  ;;  %v4628_v25 = vrot.slane %v17947_v1, 5 }
 0x50c   :  { %13650 = vmatprep.subr.bf16.mxu1 %v14479_v40  ;;  %v4594_v20 = vsel %vm17800_vm14, %v12169_v39, %v4593_v48  ;;  %v4408_v39 = vld [vmem:[#allocation2 + $0x114] sm:$0xe] }
 0x50d   :  { %13331 = vmatpush3.bf16.msra.mxu0 %v14486_v51  ;;  %v12167_v51 = vrot.slane %v4400_v10, 9  ;;  %v4583_v53 = vsel %vm17800_vm14, %v4581_v4, %v4582_v60  ;;  %v14667_v10 = vld [vmem:[#allocation2 + $0xec] sm:$0x1]  ;;  %v14668_v4 = vld [vmem:[#allocation2 + $0xf8] sm:$0x1] }
 0x50e   :  { %v4610_v31 = vrot.slane %v14667_v10, 5  ;;  %v4617_v14 = vrot.slane %v14668_v4, 5 }
 0x50f   :  { %13651 = vmatpush3.bf16.msra.mxu1 %v14479_v40  ;;  %v4600_v40 = vrot.slane %v17914_v0, 5  ;;  %v4580_v18 = vsel %vm17800_vm14, %v12167_v51, %v4579_v16  ;;  %v12170_v0 = vrot.slane %v4403_v37, 9  ;;  %v4404_v16 = vld [vmem:[#allocation2 + $0xe4] sm:$0xe]  ;;  %v12173_v37 = vrot.slane %v4406_v19, 9 }
 0x510   :  { %13269 = vmatmul.mubr.bf16.gmra.mrb[80].mxu0 %v12195_v7  ;;  %13716 = vmatprep.subr.bf16.mxu1 %v18099_v24  ;;  %v12199_v22 = vcombine.low %v4580_v18, %v4583_v53  ;;  %v14665_v7 = vld [vmem:[#allocation2 + $0xe0] sm:$0x1]  ;;  %v12171_v32 = vrot.slane %v4404_v16, 9  ;;  %v4407_v53 = vld [vmem:[#allocation2 + $0x108] sm:$0xe]  ;;  %v4624_v18 = vrot.slane %v14669_v44, 5 }
 0x511   :  { %13272 = vmatprep.mubr.bf16.mxu0 %v12196_v54  ;;  %v4602_v52 = vrot.slane %v4600_v40, 4  ;;  %v4603_v49 = vrot.slane %v14665_v7, 5  ;;  %v4595_v54 = vrot.slane %v4593_v48, 4  ;;  %v4601_v29 = vsel %vm17800_vm14, %v12170_v0, %v4600_v40 }
 0x512   :  { %13589 = vmatmul.mubr.bf16.gmra.mrb[16].mxu1 %v14450_v62  ;;  %v14456_v62 = vld [vmem:[#allocation2 + $0xc0] sm:$0xff]   ;;  %v4630_v48 = vrot.slane %v4628_v25, 4  ;;  %v12174_v1 = vrot.slane %v4407_v53, 9 }
 0x513   :  { %13592 = vmatprep.mubr.bf16.mxu1 %v14451_v47  ;;  %v4604_v46 = vsel %vm17800_vm14, %v4602_v52, %v4603_v49  ;;  %v4597_v59 = vsel %vm17800_vm14, %v4595_v54, %v4596_v2  ;;  %v4607_v47 = vrot.slane %v17928_v34, 5  ;;  %v12172_v34 = vrot.slane %v4405_v41, 9 }
 0x514   :  { %v12202_v8 = vcombine.low %v4601_v29, %v4604_v46  ;;  %v12201_v28 = vcombine.low %v4594_v20, %v4597_v59  ;;  %v4635_v52 = vrot.slane %v17956_v21, 5  ;;  %v4642_v49 = vrot.slane %v17961_v57, 5  ;;  %v14462_v21 = vld [vmem:[#allocation2 + $0x114] sm:$0xff]   ;;  %v14671_v59 = vld [vmem:[#allocation2 + $0x11c] sm:$0x1] }
 0x515   :  { %v4609_v35 = vrot.slane %v4607_v47, 4  ;;  %v4608_v60 = vsel %vm17800_vm14, %v12171_v32, %v4607_v47  ;;  %v12175_v46 = vrot.slane %v4408_v39, 9  ;;  %v4638_v47 = vrot.slane %v14671_v59, 5  ;;  %v14672_v20 = vld [vmem:[#allocation2 + $0x128] sm:$0x1] }
 0x516   :  { %v4637_v2 = vrot.slane %v4635_v52, 4  ;;  %v4644_v29 = vrot.slane %v4642_v49, 4  ;;  %v4656_v41 = vrot.slane %v17975_v42, 5  ;;  %v4663_v32 = vrot.slane %v17984_v23, 5  ;;  %v4413_v23 = vld [vmem:[#allocation2 + $0x150] sm:$0xe] }
 0x517   :  { %v4611_v5 = vsel %vm17800_vm14, %v4609_v35, %v4610_v31  ;;  %v4410_v35 = vld [vmem:[#allocation2 + $0x12c] sm:$0xe]  ;;  %v4684_v39 = vrot.slane %v18008_v36, 5  ;;  %v8913_v59 = vld [vmem:[#allocation2 + $0x18] sm:$0xf] }
 0x518   :  { %13273 = vmatmul.mubr.bf16.gmra.mrb[84].mxu0 %v12197_v12  ;;  %v4616_v12 = vrot.slane %v4614_v50, 4  ;;  %v12203_v15 = vcombine.low %v4608_v60, %v4611_v5  ;;  %v4639_v16 = vsel %vm17800_vm14, %v4637_v2, %v4638_v47  ;;  %v14465_v5 = vld [vmem:[#allocation2 + $0x12c] sm:$0xff]   ;;  %v4658_v42 = vrot.slane %v4656_v41, 4  ;;  %v4412_v60 = vld [vmem:[#allocation2 + $0x144] sm:$0xe] }
 0x519   :  { %13276 = vmatprep.mubr.bf16.mxu0 %v12198_v56  ;;  %v14458_v56 = vld [vmem:[#allocation2 + $0xf0] sm:$0xff]   ;;  %v8914_v47 = vld [vmem:[#allocation2 + $0x1c] sm:$0xf] }
 0x51a   :  { %13593 = vmatmul.mubr.bf16.gmra.mrb[20].mxu1 %v14452_v38  ;;  %v4621_v38 = vrot.slane %v17942_v11, 5  ;;  %v4618_v51 = vsel %vm17800_vm14, %v4616_v12, %v4617_v14  ;;  %v14460_v11 = vld [vmem:[#allocation2 + $0xfc] sm:$0xff]   ;;  %v4636_v12 = vsel %vm17800_vm14, %v12175_v46, %v4635_v52  ;;  %v12177_v14 = vrot.slane %v4410_v35, 9  ;;  %v18182_v2 = vld [vmem:[#allocation2 + $0x174] sm:$0xe] }
 0x51b   :  { %13596 = vmatprep.mubr.bf16.mxu1 %v14453_v30  ;;  %v4615_v30 = vsel %vm17800_vm14, %v12172_v34, %v4614_v50  ;;  %v14463_v50 = vld [vmem:[#allocation2 + $0x120] sm:$0xff]   ;;  %v12207_v10 = vcombine.low %v4636_v12, %v4639_v16  ;;  %v4670_v34 = vrot.slane %v17989_v33, 5  ;;  %v4414_v33 = vld [vmem:[#allocation2 + $0x15c] sm:$0xe]  ;;  %v14468_v35 = vld [vmem:[#allocation2 + $0x150] sm:$0xff]  }
 0x51c   :  { %v12204_v13 = vcombine.low %v4615_v30, %v4618_v51  ;;  %v4623_v40 = vrot.slane %v4621_v38, 4  ;;  %v14466_v30 = vld [vmem:[#allocation2 + $0x138] sm:$0xff]   ;;  %v8916_v16 = vld [vmem:[#allocation2 + $0x24] sm:$0xf] }
 0x51d   :  { %v4672_v53 = vrot.slane %v4670_v34, 4 }
 0x51e   :  { %v4625_v0 = vsel %vm17800_vm14, %v4623_v40, %v4624_v18  ;;  %v4415_v18 = vld [vmem:[#allocation2 + $0x168] sm:$0xe] }
 0x520   :  { %13277 = vmatmul.mubr.bf16.gmra.mrb[88].mxu0 %v12199_v22  ;;  %v14670_v22 = vld [vmem:[#allocation2 + $0x110] sm:$0x1] }
 0x521   :  { %13280 = vmatprep.mubr.bf16.mxu0 %v12200_v27  ;;  %v4631_v58 = vrot.slane %v14670_v22, 5  ;;  %v4622_v27 = vsel %vm17800_vm14, %v12173_v37, %v4621_v38  ;;  %v14673_v38 = vld [vmem:[#allocation2 + $0x134] sm:$0x1]  ;;  %v14675_v37 = vld [vmem:[#allocation2 + $0x14c] sm:$0x1]  ;;  %v12180_v22 = vrot.slane %v4413_v23, 9 }
 0x522   :  { %13597 = vmatmul.mubr.bf16.gmra.mrb[24].mxu1 %v14455_v61  ;;  %v12205_v54 = vcombine.low %v4622_v27, %v4625_v0  ;;  %v4629_v61 = vsel %vm17800_vm14, %v12174_v1, %v4628_v25  ;;  %v4652_v51 = vrot.slane %v14673_v38, 5  ;;  %v4666_v44 = vrot.slane %v14675_v37, 5  ;;  %v14471_v37 = vld [vmem:[#allocation2 + $0x15c] sm:$0xff]  }
 0x523   :  { %13600 = vmatprep.mubr.bf16.mxu1 %v14456_v62  ;;  %v4632_v7 = vsel %vm17800_vm14, %v4630_v48, %v4631_v58  ;;  %v4409_v62 = vld [vmem:[#allocation2 + $0x120] sm:$0xe]  ;;  %v4677_v48 = vrot.slane %v18002_v17, 5  ;;  %v12179_v1 = vrot.slane %v4412_v60, 9  ;;  %v14676_v58 = vld [vmem:[#allocation2 + $0x158] sm:$0x1] }
 0x524   :  { %v12206_v6 = vcombine.low %v4629_v61, %v4632_v7  ;;  %v12176_v57 = vrot.slane %v4409_v62, 9  ;;  %v4673_v0 = vrot.slane %v14676_v58, 5  ;;  %v12182_v61 = vrot.slane %v4415_v18, 9  ;;  %v14679_v60 = vld [vmem:[#allocation2 + $0x17c] sm:$0x1] }
 0x525   :  { %v4664_v62 = vsel %vm17800_vm14, %v12179_v1, %v4663_v32 }
 0x526   :  { %v18179_v27 = vsel %vm17800_vm14, %v4672_v53, %v4673_v0  ;;  %v18199_v12 = vsel %vm17800_vm14, %v12182_v61, %v4684_v39  ;;  %v14472_v61 = vld [vmem:[#allocation2 + $0x168] sm:$0xff]  }
 0x528   :  { %13281 = vmatmul.mubr.bf16.gmra.mrb[92].mxu0 %v12201_v28  ;;  %v4649_v28 = vrot.slane %v17970_v3, 5  ;;  %v4643_v3 = vsel %vm17800_vm14, %v12176_v57, %v4642_v49  ;;  %v12181_v49 = vrot.slane %v4414_v33, 9  ;;  %v14681_v33 = vld [vmem:[#allocation2 + $0x190] sm:$0xf] }
 0x529   :  { %13284 = vmatprep.mubr.bf16.mxu0 %v12202_v8  ;;  %v4645_v8 = vrot.slane %v14672_v20, 5 }
 0x52a   :  { %13601 = vmatmul.mubr.bf16.gmra.mrb[28].mxu1 %v14457_v45  ;;  %v4651_v31 = vrot.slane %v4649_v28, 4  ;;  %v18191_v36 = vsel %vm17800_vm14, %v12181_v49, %v4677_v48 }
 0x52b   :  { %13604 = vmatprep.mubr.bf16.mxu1 %v14458_v56  ;;  %v4646_v45 = vsel %vm17800_vm14, %v4644_v29, %v4645_v8  ;;  %v4411_v56 = vld [vmem:[#allocation2 + $0x138] sm:$0xe]  ;;  %v4671_v29 = vsel %vm17800_vm14, %v12180_v22, %v4670_v34  ;;  %v14678_v8 = vld [vmem:[#allocation2 + $0x170] sm:$0x1]  ;;  %v9019_v34 = vshll.u32 %v8914_v47, 16 }
 0x52c   :  { %v12208_v4 = vcombine.low %v4643_v3, %v4646_v45  ;;  %v12178_v25 = vrot.slane %v4411_v56, 9  ;;  %v4653_v19 = vsel %vm17800_vm14, %v4651_v31, %v4652_v51  ;;  %v12212_v20 = vcombine.low %v4671_v29, %v18179_v27  ;;  %v8917_v45 = vld [vmem:[#allocation2 + $0x28] sm:$0xf]  ;;  %v18202_v3 = vld [vmem:[#allocation2 + $0x180] sm:$0xe] }
 0x52d   :  { %v9010_v31 = vshrl.u32 %v8913_v59, 16  ;;  %v9013_v56 = vshll.u32 %v8913_v59, 16  ;;  %v9043_v38 = vshll.u32 %v8917_v45, 16  ;;  %v9047_v51 = vshrl.u32 %v8917_v45, 16  ;;  %v8915_v22 = vld [vmem:[#allocation2 + $0x20] sm:$0x1] }
 0x52e   :  { %v4657_v7 = vsel %vm17800_vm14, %v12178_v25, %v4656_v41  ;;  %v4691_v25 = vrot.slane %v18020_v9, 5  ;;  %v12184_v23 = vrot.slane %v18202_v3, 9  ;;  %v18211_v9 = vrot.slane %v9019_v34, 5 }
 0x52f   :  { %v9012_v18 = vrot.slane %v9010_v31, 4  ;;  %v9029_v59 = vshll.u32 %v8915_v22, 16 }
 0x530   :  { %13285 = vmatmul.mubr.bf16.gmra.mrb[96].mxu0 %v12203_v15  ;;  %v4665_v15 = vrot.slane %v4663_v32, 4  ;;  %v4686_v32 = vrot.slane %v4684_v39, 4 }
 0x531   :  { %13288 = vmatprep.mubr.bf16.mxu0 %v12204_v13  ;;  %v14674_v13 = vld [vmem:[#allocation2 + $0x140] sm:$0x1] }
 0x532   :  { %13605 = vmatmul.mubr.bf16.gmra.mrb[32].mxu1 %v14460_v11  ;;  %v4659_v40 = vrot.slane %v14674_v13, 5  ;;  %v4650_v11 = vsel %vm17800_vm14, %v12177_v14, %v4649_v28  ;;  %v4667_v17 = vsel %vm17800_vm14, %v4665_v15, %v4666_v44  ;;  %v4687_v28 = vrot.slane %v14678_v8, 5  ;;  %v4418_v44 = vld [vmem:[#allocation2 + $0x18c] sm:$0xe] }
 0x533   :  { %13608 = vmatprep.mubr.bf16.mxu1 %v14461_v26  ;;  %v12209_v52 = vcombine.low %v4650_v11, %v4653_v19  ;;  %v12211_v57 = vcombine.low %v4664_v62, %v4667_v17  ;;  %v9034_v14 = vshrl.u32 %v8916_v16, 16  ;;  %v4694_v15 = vrot.slane %v14679_v60, 5  ;;  %v8920_v11 = vld [vmem:[#allocation2 + $0x34] sm:$0xf] }
 0x534   :  { %v4660_v26 = vsel %vm17800_vm14, %v4658_v42, %v4659_v40  ;;  %v4688_v19 = vsel %vm17800_vm14, %v4686_v32, %v4687_v28  ;;  %v4698_v13 = vrot.slane %v18027_v55, 5  ;;  %v14680_v40 = vld [vmem:[#allocation2 + $0x188] sm:$0x1]  ;;  %v8918_v55 = vld [vmem:[#allocation2 + $0x2c] sm:$0x1]  ;;  %v9067_v27 = vshll.u32 %v8920_v11, 16 }
 0x535   :  { %v4701_v53 = vrot.slane %v14680_v40, 5  ;;  %v9036_v58 = vrot.slane %v9034_v14, 4  ;;  %v12214_v39 = vcombine.low %v18199_v12, %v4688_v19  ;;  %v12185_v62 = vrot.slane %v4418_v44, 9  ;;  %v14475_v14 = vld [vmem:[#allocation2 + $0x174] sm:$0xff]   ;;  %v8924_v40 = vld [vmem:[#allocation2 + $0x44] sm:$0x1] }
 0x536   :  { %v4700_v29 = vrot.slane %v4698_v13, 4 }
 0x538   :  { %13289 = vmatmul.mubr.bf16.gmra.mrb[100].mxu0 %v12205_v54  ;;  %v4679_v54 = vrot.slane %v4677_v48, 4  ;;  %v4705_v48 = vrot.slane %v14681_v33, 5  ;;  %v4702_v31 = vsel %vm17800_vm14, %v4700_v29, %v4701_v53 }
 0x539   :  { %13292 = vmatprep.mubr.bf16.mxu0 %v12206_v6  ;;  %v12210_v6 = vcombine.low %v4657_v7, %v4660_v26  ;;  %v9015_v26 = vrot.slane %v9013_v56, 5  ;;  %v9049_v7 = vrot.slane %v9047_v51, 4 }
 0x53a   :  { %13609 = vmatmul.mubr.bf16.gmra.mrb[36].mxu1 %v14462_v21  ;;  %v14677_v21 = vld [vmem:[#allocation2 + $0x164] sm:$0x1]  ;;  %v18232_v56 = vsel %vm17800_vm14, %v12185_v62, %v4705_v48 }
 0x53b   :  { %13612 = vmatprep.mubr.bf16.mxu1 %v14463_v50  ;;  %v4680_v46 = vrot.slane %v14677_v21, 5  ;;  %v14467_v50 = vld [vmem:[#allocation2 + $0x144] sm:$0xff]   ;;  %v4707_v21 = vrot.slane %v4705_v48, 4 }
 0x53d   :  { %v18195_v41 = vsel %vm17800_vm14, %v4679_v54, %v4680_v46  ;;  %v9071_v54 = vshrl.u32 %v8920_v11, 16  ;;  %v9016_v46 = vor.u32 %v9015_v26, %v9012_v18  ;;  %v8925_v11 = vld [vmem:[#allocation2 + $0x48] sm:$0xf] }
 0x53e   :  { %v12213_v42 = vcombine.low %v18191_v36, %v18195_v41  ;;  %v9053_v36 = vshll.u32 %v8918_v55, 16  ;;  %v14682_v41 = vld [vmem:[#allocation2 + $0x194] sm:$0x1] }
 0x53f   :  { %v9073_v45 = vrot.slane %v9071_v54, 4  ;;  %v4708_v12 = vrot.slane %v14682_v41, 5  ;;  %v9017_v34 = vrot.slane %v9016_v46, 4  ;;  %v8928_v55 = vld [vmem:[#allocation2 + $0x54] sm:$0xf]  ;;  %v9106_v54 = vshrl.u32 %v8925_v11, 16 }
 0x540   :  { %13293 = vmatmul.mubr.bf16.gmra.mrb[104].mxu0 %v12207_v10  ;;  %v12183_v10 = vrot.slane %v18182_v2, 9  ;;  %v4693_v2 = vrot.slane %v4691_v25, 4  ;;  %v14480_v46 = vld [vmem:[#allocation2 + $0x18c] sm:$0xff]   ;;  %v8931_v41 = vld [vmem:[#allocation2 + $0x60] sm:$0xf] }
 0x541   :  { %13296 = vmatprep.mubr.bf16.mxu0 %v12208_v4  ;;  %v9023_v4 = vshrl.u32 %v8914_v47, 16  ;;  %v8922_v47 = vld [vmem:[#allocation2 + $0x3c] sm:$0xf]  ;;  %v9022_v26 = vsel %vm17494_vm11, %v9017_v34, %v18211_v9  ;;  %v8934_v34 = vld [vmem:[#allocation2 + $0x6c] sm:$0xf] }
 0x542   :  { %13613 = vmatmul.mubr.bf16.gmra.mrb[40].mxu1 %v14465_v5  ;;  %v9037_v5 = vshll.u32 %v8916_v16, 16  ;;  %v18222_v16 = vrot.slane %v9067_v27, 5  ;;  %v9082_v32 = vshrl.u32 %v8922_v47, 16  ;;  %v4695_v3 = vsel %vm17800_vm14, %v4693_v2, %v4694_v15 }
 0x543   :  { %13616 = vmatprep.mubr.bf16.mxu1 %v14466_v30  ;;  %v8919_v30 = vld [vmem:[#allocation2 + $0x30] sm:$0xf]  ;;  %v9025_v1 = vrot.slane %v9023_v4, 4  ;;  %v8923_v4 = vld [vmem:[#allocation2 + $0x40] sm:$0xf]  ;;  %v9031_v15 = vrot.slane %v9029_v59, 5 }
 0x544   :  { %v9039_v0 = vrot.slane %v9037_v5, 5  ;;  %v9058_v17 = vshrl.u32 %v8919_v30, 16  ;;  %v9061_v49 = vshll.u32 %v8919_v30, 16  ;;  %v14476_v5 = vld [vmem:[#allocation2 + $0x180] sm:$0xff]   ;;  %v8921_v30 = vld [vmem:[#allocation2 + $0x38] sm:$0x1] }
 0x545   :  { %v9084_v53 = vrot.slane %v9082_v32, 4  ;;  %v9095_v48 = vshrl.u32 %v8923_v4, 16  ;;  %v9101_v27 = vshll.u32 %v8924_v40, 16  ;;  %v9109_v2 = vshll.u32 %v8925_v11, 16  ;;  %v14481_v59 = vld [vmem:[#allocation2 + $0x198] sm:$0xff]   ;;  %v14484_v11 = vld [vmem:[#allocation2 + $0xc] sm:$0xff]  }
 0x546   :  { %v9060_v8 = vrot.slane %v9058_v17, 4  ;;  %v9063_v28 = vrot.slane %v9061_v49, 5  ;;  %v9181_v40 = vshll.u32 %v8934_v34, 16 }
 0x548   :  { %13297 = vmatmul.mubr.bf16.gmra.mrb[108].mxu0 %v12209_v52  ;;  %v18213_v52 = vrot.slane %v9043_v38, 5  ;;  %v18236_v38 = vsel %vm17800_vm14, %v4707_v21, %v4708_v12  ;;  %v9064_v19 = vor.u32 %v9063_v28, %v9060_v8  ;;  %v9130_v21 = vshrl.u32 %v8928_v55, 16 }
 0x549   :  { %13300 = vmatprep.mubr.bf16.mxu0 %v12210_v6  ;;  %v18218_v6 = vsel %vm17800_vm14, %v12183_v10, %v4691_v25  ;;  %v9085_v10 = vshll.u32 %v8922_v47, 16  ;;  %v12217_v18 = vcombine.low %v18232_v56, %v18236_v38  ;;  %v18261_v28 = vrot.slane %v9101_v27, 5 }
 0x54a   :  { %13617 = vmatmul.mubr.bf16.gmra.mrb[44].mxu1 %v14467_v50  ;;  %v9026_v50 = vor.u32 %v9025_v1, %v18211_v9  ;;  %v9065_v17 = vrot.slane %v9064_v19, 4 }
 0x54b   :  { %13620 = vmatprep.mubr.bf16.mxu1 %v14468_v35  ;;  %v4699_v35 = vsel %vm17800_vm14, %v12184_v23, %v4698_v13  ;;  %v9055_v23 = vrot.slane %v9053_v36, 5  ;;  %v9074_v13 = vor.u32 %v9073_v45, %v18222_v16  ;;  %v9087_v33 = vrot.slane %v9085_v10, 5  ;;  %v8927_v45 = vld [vmem:[#allocation2 + $0x50] sm:$0x1] }
 0x54c   :  { %v9027_v51 = vrot.slane %v9026_v50, 4  ;;  %v12216_v44 = vcombine.low %v4699_v35, %v4702_v31  ;;  %v9070_v8 = vsel %vm17494_vm11, %v9065_v17, %v18222_v16  ;;  %v9108_v35 = vrot.slane %v9106_v54, 4  ;;  %v8932_v31 = vld [vmem:[#allocation2 + $0x64] sm:$0xf] }
 0x54d   :  { %v9075_v49 = vrot.slane %v9074_v13, 4  ;;  %v9088_v9 = vor.u32 %v9087_v33, %v9084_v53  ;;  %v9132_v16 = vrot.slane %v9130_v21, 4  ;;  %v9167_v19 = vshrl.u32 %v8932_v31, 16 }
 0x54e   :  { %v9032_v1 = vsel %vm17494_vm11, %v9027_v51, %v9031_v15  ;;  %v8935_v51 = vld [vmem:[#allocation2 + $0x70] sm:$0xf]  ;;  %v9154_v15 = vshrl.u32 %v8931_v41, 16  ;;  %v9178_v13 = vshrl.u32 %v8934_v34, 16  ;;  %v9125_v33 = vshll.u32 %v8927_v45, 16 }
 0x54f   :  { %v18254_v47 = vcombine.low %v9022_v26, %v9032_v1  ;;  %v18265_v32 = vrot.slane %v9088_v9, 4  ;;  %v9169_v54 = vrot.slane %v9167_v19, 4  ;;  %v9183_v9 = vrot.slane %v9181_v40, 5  ;;  %v14493_v40 = vld [vmem:[#allocation8 + $0x208] sm:$0xff]  }
 0x550   :  { %13301 = vmatmul.mubr.bf16.gmra.mrb[112].mxu0 %v12211_v57  ;;  %v9040_v57 = vor.u32 %v9039_v0, %v9036_v58  ;;  %v9077_v0 = vshll.u32 %v8921_v30, 16  ;;  %v9163_v30 = vshll.u32 %v8932_v31, 16  ;;  %v9156_v17 = vrot.slane %v9154_v15, 4 }
 0x551   :  { %13304 = vmatprep.mubr.bf16.mxu0 %v12212_v20  ;;  %v9050_v20 = vor.u32 %v9049_v7, %v18213_v52  ;;  %v8926_v7 = vld [vmem:[#allocation2 + $0x4c] sm:$0xf] }
 0x552   :  { %13621 = vmatmul.mubr.bf16.gmra.mrb[48].mxu1 %v14471_v37  ;;  %v9041_v25 = vrot.slane %v9040_v57, 4  ;;  %v12215_v37 = vcombine.low %v18218_v6, %v4695_v3  ;;  %v9097_v6 = vrot.slane %v9095_v48, 4  ;;  %v9115_v62 = vshll.u32 %v8926_v7, 16 }
 0x553   :  { %13624 = vmatprep.mubr.bf16.mxu1 %v14472_v61  ;;  %v9051_v60 = vrot.slane %v9050_v20, 4  ;;  %v8929_v61 = vld [vmem:[#allocation2 + $0x58] sm:$0xf]  ;;  %v9119_v29 = vshrl.u32 %v8926_v7, 16  ;;  %v9079_v50 = vrot.slane %v9077_v0, 5  ;;  %v9111_v3 = vrot.slane %v9109_v2, 5 }
 0x554   :  { %v9046_v22 = vsel %vm17494_vm11, %v9041_v25, %v18213_v52  ;;  %v9133_v52 = vshll.u32 %v8928_v55, 16  ;;  %v9139_v57 = vshll.u32 %v8929_v61, 16  ;;  %v9143_v20 = vshrl.u32 %v8929_v61, 16  ;;  %v8930_v0 = vld [vmem:[#allocation2 + $0x5c] sm:$0x1] }
 0x555   :  { %v9056_v58 = vsel %vm17494_vm11, %v9051_v60, %v9055_v23  ;;  %v9080_v12 = vsel %vm17494_vm11, %v9075_v49, %v9079_v50  ;;  %v9157_v23 = vshll.u32 %v8931_v41, 16  ;;  %v9191_v48 = vshrl.u32 %v8935_v51, 16  ;;  %v8933_v2 = vld [vmem:[#allocation2 + $0x68] sm:$0x1] }
 0x556   :  { %v18256_v36 = vcombine.low %v9046_v22, %v9056_v58  ;;  %v18270_v25 = vrot.slane %v9139_v57, 5  ;;  %v9145_v60 = vrot.slane %v9143_v20, 4  ;;  %v18272_v53 = vcombine.low %v9070_v8, %v9080_v12  ;;  %v8937_v58 = vld [vmem:[#allocation2 + $0x78] sm:$0xf]  ;;  %v8940_v8 = vld [vmem:[#allocation2 + $0x84] sm:$0xf] }
 0x557   :  { %v9112_v1 = vor.u32 %v9111_v3, %v9108_v35  ;;  %v9159_v49 = vrot.slane %v9157_v23, 5  ;;  %v18285_v27 = vrot.slane %v9163_v30, 5  ;;  %v9180_v61 = vrot.slane %v9178_v13, 4  ;;  %v14487_v3 = vld [vmem:[#allocation2 + $0x18] sm:$0xff]   ;;  %v8941_v13 = vld [vmem:[#allocation2 + $0x88] sm:$0xf] }
 0x558   :  { %13305 = vmatmul.mubr.bf16.gmra.mrb[116].mxu0 %v12213_v42  ;;  %v9091_v42 = vshll.u32 %v8923_v4, 16  ;;  %v18268_v4 = vrot.slane %v9115_v62, 5  ;;  %v9146_v55 = vor.u32 %v9145_v60, %v18270_v25  ;;  %v9202_v21 = vshrl.u32 %v8937_v58, 16 }
 0x559   :  { %13308 = vmatprep.mubr.bf16.mxu0 %v12214_v39  ;;  %v9205_v56 = vshll.u32 %v8937_v58, 16  ;;  %v9149_v50 = vshll.u32 %v8930_v0, 16  ;;  %v9160_v35 = vor.u32 %v9159_v49, %v9156_v17  ;;  %v9170_v41 = vor.u32 %v9169_v54, %v18285_v27  ;;  %v8943_v54 = vld [vmem:[#allocation2 + $0x90] sm:$0xf] }
 0x55a   :  { %13625 = vmatmul.mubr.bf16.gmra.mrb[52].mxu1 %v14475_v14  ;;  %v18252_v39 = vrot.slane %v9091_v42, 5  ;;  %v9121_v14 = vrot.slane %v9119_v29, 4  ;;  %v9187_v42 = vshll.u32 %v8935_v51, 16  ;;  %v9193_v29 = vrot.slane %v9191_v48, 4 }
 0x55b   :  { %13628 = vmatprep.mubr.bf16.mxu1 %v14476_v5  ;;  %v9135_v5 = vrot.slane %v9133_v52, 5  ;;  %v9147_v45 = vrot.slane %v9146_v55, 4  ;;  %v9173_v12 = vshll.u32 %v8933_v2, 16  ;;  %v9184_v31 = vor.u32 %v9183_v9, %v9180_v61  ;;  %v8944_v2 = vld [vmem:[#allocation2 + $0x94] sm:$0xf] }
 0x55c   :  { %v9098_v10 = vor.u32 %v9097_v6, %v18252_v39  ;;  %v9122_v22 = vor.u32 %v9121_v14, %v18268_v4  ;;  %v8938_v6 = vld [vmem:[#allocation2 + $0x7c] sm:$0xf]  ;;  %v18287_v62 = vrot.slane %v9187_v42, 5  ;;  %v9204_v34 = vrot.slane %v9202_v21, 4 }
 0x55d   :  { %v9136_v7 = vor.u32 %v9135_v5, %v9132_v16  ;;  %v9211_v57 = vshll.u32 %v8938_v6, 16  ;;  %v9215_v20 = vshrl.u32 %v8938_v6, 16  ;;  %v9207_v14 = vrot.slane %v9205_v56, 5  ;;  %v14489_v16 = vld [vmem:[#allocation2 + $0x24] sm:$0xff]   ;;  %v8946_v21 = vld [vmem:[#allocation2 + $0x9c] sm:$0xf] }
 0x55e   :  { %v18278_v26 = vrot.slane %v9098_v10, 4  ;;  %v9123_v52 = vrot.slane %v9122_v22, 4  ;;  %v8936_v10 = vld [vmem:[#allocation2 + $0x74] sm:$0x1]  ;;  %v9226_v51 = vshrl.u32 %v8940_v8, 16  ;;  %v9229_v60 = vshll.u32 %v8940_v8, 16 }
 0x55f   :  { %v9151_v15 = vrot.slane %v9149_v50, 5  ;;  %v9197_v23 = vshll.u32 %v8936_v10, 16  ;;  %v18301_v30 = vrot.slane %v9211_v57, 5  ;;  %v9217_v19 = vrot.slane %v9215_v20, 4  ;;  %v8939_v22 = vld [vmem:[#allocation2 + $0x80] sm:$0x1] }
 0x560   :  { %13309 = vmatmul.mubr.bf16.gmra.mrb[120].mxu0 %v12215_v37  ;;  %v14485_v37 = vld [vmem:[#allocation2 + $0x1a4] sm:$0xff]   ;;  %v9104_v38 = vsel %vm17494_vm11, %v18278_v26, %v18261_v28  ;;  %v9194_v28 = vor.u32 %v9193_v29, %v18287_v62  ;;  %v9161_v42 = vrot.slane %v9160_v35, 4  ;;  %v9175_v48 = vrot.slane %v9173_v12, 5  ;;  %v8947_v56 = vld [vmem:[#allocation2 + $0xa0] sm:$0xf] }
 0x561   :  { %13312 = vmatprep.mubr.bf16.mxu0 %v12216_v44  ;;  %v9094_v44 = vsel %vm17494_vm11, %v18265_v32, %v18252_v39  ;;  %v9228_v58 = vrot.slane %v9226_v51, 4  ;;  %v9231_v0 = vrot.slane %v9229_v60, 5  ;;  %v9239_v55 = vshrl.u32 %v8941_v13, 16  ;;  %v14498_v6 = vld [vmem:[#allocation8 + $0x210] sm:$0xff]   ;;  %v14503_v12 = vld [vmem:[#allocation8 + $0x218] sm:$0xff]  }
 0x562   :  { %13629 = vmatmul.mubr.bf16.gmra.mrb[56].mxu1 %v14480_v46  ;;  %v9127_v46 = vrot.slane %v9125_v33, 5  ;;  %v9195_v26 = vrot.slane %v9194_v28, 4  ;;  %v9199_v17 = vrot.slane %v9197_v23, 5  ;;  %v9218_v49 = vor.u32 %v9217_v19, %v18301_v30  ;;  %v8950_v51 = vld [vmem:[#allocation2 + $0xac] sm:$0xf] }
 0x563   :  { %13632 = vmatprep.mubr.bf16.mxu1 %v14481_v59  ;;  %v9137_v59 = vrot.slane %v9136_v7, 4  ;;  %v9235_v7 = vshll.u32 %v8941_v13, 16  ;;  %v9221_v29 = vshll.u32 %v8939_v22, 16  ;;  %v9253_v57 = vshll.u32 %v8943_v54, 16  ;;  %v8952_v60 = vld [vmem:[#allocation2 + $0xb4] sm:$0xf] }
 0x564   :  { %v9128_v5 = vsel %vm17494_vm11, %v9123_v52, %v9127_v46  ;;  %v9200_v32 = vsel %vm17494_vm11, %v9195_v26, %v9199_v17  ;;  %v9232_v52 = vor.u32 %v9231_v0, %v9228_v58  ;;  %v18331_v46 = vrot.slane %v9239_v55, 4  ;;  %v14494_v0 = vld [vmem:[#allocation2 + $0x54] sm:$0xff]  }
 0x565   :  { %v9142_v33 = vsel %vm17494_vm11, %v9137_v59, %v18270_v25  ;;  %v12421_v25 = vcombine.low %v9094_v44, %v9104_v38  ;;  %v14491_v38 = vld [vmem:[#allocation2 + $0x3c] sm:$0xff]   ;;  %v9250_v59 = vshrl.u32 %v8943_v54, 16  ;;  %v9219_v50 = vrot.slane %v9218_v49, 4 }
 0x566   :  { %v9263_v20 = vshrl.u32 %v8944_v2, 16  ;;  %v9274_v8 = vshrl.u32 %v8946_v21, 16  ;;  %v9283_v35 = vshll.u32 %v8947_v56, 16  ;;  %v9255_v23 = vrot.slane %v9253_v57, 5  ;;  %v8951_v57 = vld [vmem:[#allocation2 + $0xb0] sm:$0x1] }
 0x567   :  { %v9307_v22 = vshll.u32 %v8950_v51, 16  ;;  %v9311_v58 = vshrl.u32 %v8950_v51, 16  ;;  %v9322_v55 = vshrl.u32 %v8952_v60, 16 }
 0x568   :  { %13313 = vmatmul.mubr.bf16.gmra.mrb[124].mxu0 %v12217_v18  ;;  %v9113_v18 = vrot.slane %v9112_v1, 4  ;;  %v9208_v1 = vor.u32 %v9207_v14, %v9204_v34  ;;  %v8949_v34 = vld [vmem:[#allocation2 + $0xa8] sm:$0xf]  ;;  %v9265_v13 = vrot.slane %v9263_v20, 4 }
 0x569   :  { %13332 = vmatprep.mubr.bf16.mxu0 %v14484_v11  ;;  %v9152_v11 = vsel %vm17494_vm11, %v9147_v45, %v9151_v15  ;;  %v9277_v45 = vshll.u32 %v8946_v21, 16  ;;  %v9298_v26 = vshrl.u32 %v8949_v34, 16 }
 0x56a   :  { %13633 = vmatmul.mubr.bf16.gmra.mrb[60].mxu1 %v14485_v37  ;;  %v9185_v37 = vrot.slane %v9184_v31, 4  ;;  %v18317_v9 = vcombine.low %v9142_v33, %v9152_v11  ;;  %v9209_v44 = vrot.slane %v9208_v1, 4  ;;  %v9223_v31 = vrot.slane %v9221_v29, 5  ;;  %v14492_v33 = vld [vmem:[#allocation2 + $0x48] sm:$0xff]   ;;  %v14508_v11 = vld [vmem:[#allocation8 + $0x220] sm:$0xff]  }
 0x56b   :  { %13652 = vmatprep.mubr.bf16.mxu1 %v18254_v47  ;;  %v9118_v47 = vsel %vm17494_vm11, %v9113_v18, %v18268_v4  ;;  %v9171_v4 = vrot.slane %v9170_v41, 4  ;;  %v8942_v18 = vld [vmem:[#allocation2 + $0x8c] sm:$0x1]  ;;  %v9287_v41 = vshrl.u32 %v8947_v56, 16  ;;  %v9301_v1 = vshll.u32 %v8949_v34, 16  ;;  %v14495_v34 = vld [vmem:[#allocation2 + $0x60] sm:$0xff]  }
 0x56c   :  { %v12422_v61 = vcombine.low %v9118_v47, %v9128_v5  ;;  %v9190_v39 = vsel %vm17494_vm11, %v9185_v37, %v18287_v62  ;;  %v9259_v62 = vshll.u32 %v8944_v2, 16  ;;  %v9245_v28 = vshll.u32 %v8942_v18, 16  ;;  %v8945_v37 = vld [vmem:[#allocation2 + $0x98] sm:$0x1]  ;;  %v8948_v29 = vld [vmem:[#allocation2 + $0xa4] sm:$0x1] }
 0x56d   :  { %v9214_v14 = vsel %vm17494_vm11, %v9209_v44, %v18301_v30  ;;  %v9252_v5 = vrot.slane %v9250_v59, 4  ;;  %v9224_v15 = vsel %vm17494_vm11, %v9219_v50, %v9223_v31  ;;  %v9276_v30 = vrot.slane %v9274_v8, 4  ;;  %v14513_v44 = vld [vmem:[#allocation8 + $0x228] sm:$0xff]  }
 0x56e   :  { %v18344_v19 = vrot.slane %v9259_v62, 5  ;;  %v18350_v49 = vcombine.low %v9214_v14, %v9224_v15  ;;  %v9300_v21 = vrot.slane %v9298_v26, 4  ;;  %v9303_v56 = vrot.slane %v9301_v1, 5  ;;  %v14496_v15 = vld [vmem:[#allocation2 + $0x6c] sm:$0xff]  }
 0x56f   :  { %v9313_v18 = vrot.slane %v9311_v58, 4  ;;  %v9293_v31 = vshll.u32 %v8948_v29, 16 }
 0x570   :  { %13333 = vmatmul.mubr.bf16.vlgmr.msra.gmra.mrb[64].mxu0 %v14487_v3  ;;  %v18333_v3 = vcombine.low %v9190_v39, %v9200_v32  ;;  %v8956_v32 = vld [vmem:[#allocation2 + $0xc4] sm:$0xf]  ;;  %v9304_v51 = vor.u32 %v9303_v56, %v9300_v21 }
 0x571   :  { %13336 = vmatprep.mubr.bf16.mxu0 %v14489_v16  ;;  %v18338_v16 = vrot.slane %v9232_v52, 4  ;;  %v9324_v52 = vrot.slane %v9322_v55, 4  ;;  %v9355_v8 = vshll.u32 %v8956_v32, 16 }
 0x572   :  { %13653 = vmatmul.mubr.bf16.vlgmr.msra.gmra.mrb[0].mxu1 %v18256_v36  ;;  %v14490_v36 = vld [vmem:[#allocation2 + $0x30] sm:$0xff]  }
 0x573   :  { %13717 = vmatpush3.bf16.msra.mxu1 %v18099_v24  ;;  %13656 = vmatprep.mubr.bf16.mxu1 %v18272_v53  ;;  %v9166_v24 = vsel %vm17494_vm11, %v9161_v42, %v18285_v27  ;;  %v9176_v53 = vsel %vm17494_vm11, %v9171_v4, %v9175_v48  ;;  %v18329_v27 = vrot.slane %v9235_v7, 5  ;;  %v9279_v42 = vrot.slane %v9277_v45, 5 }
 0x574   :  { %13718 = vmatprep.subr.bf16.mxu1 %v14493_v40  ;;  %v12424_v10 = vcombine.low %v9166_v24, %v9176_v53  ;;  %v18346_v4 = vrot.slane %v9283_v35, 5  ;;  %v9289_v48 = vrot.slane %v9287_v41, 4  ;;  %v18348_v7 = vrot.slane %v9245_v28, 5  ;;  %v8955_v24 = vld [vmem:[#allocation2 + $0xc0] sm:$0xf] }
 0x575   :  { %v9242_v47 = vor.u32 %v18331_v46, %v18329_v27  ;;  %v9238_v54 = vsel %vm17494_vm11, %v18338_v16, %v18329_v27  ;;  %v9266_v53 = vor.u32 %v9265_v13, %v18344_v19  ;;  %v9280_v2 = vor.u32 %v9279_v42, %v9276_v30  ;;  %v14518_v28 = vld [vmem:[#allocation8 + $0x230] sm:$0xff]   ;;  %v8954_v13 = vld [vmem:[#allocation2 + $0xbc] sm:$0x1] }
 0x576   :  { %v9290_v39 = vor.u32 %v9289_v48, %v18346_v4  ;;  %v9346_v50 = vshrl.u32 %v8955_v24, 16  ;;  %v9349_v20 = vshll.u32 %v8955_v24, 16  ;;  %v9359_v45 = vshrl.u32 %v8956_v32, 16 }
 0x577   :  { %13719 = vmatpush3.bf16.msra.mxu1 %v14493_v40  ;;  %v8953_v40 = vld [vmem:[#allocation2 + $0xb8] sm:$0xf]  ;;  %v9243_v35 = vrot.slane %v9242_v47, 4  ;;  %v9281_v14 = vrot.slane %v9280_v2, 4  ;;  %v18365_v42 = vrot.slane %v9355_v8, 5 }
 0x578   :  { %13337 = vmatmul.mubr.bf16.gmra.mrb[68].mxu0 %v14490_v36  ;;  %13720 = vmatprep.subr.bf16.mxu1 %v14498_v6  ;;  %v9331_v17 = vshll.u32 %v8953_v40, 16  ;;  %v9256_v36 = vor.u32 %v9255_v23, %v9252_v5  ;;  %v9291_v5 = vrot.slane %v9290_v39, 4  ;;  %v9317_v23 = vshll.u32 %v8951_v57, 16  ;;  %v8965_v8 = vld [vmem:[#allocation2 + $0x100] sm:$0xf] }
 0x579   :  { %13340 = vmatprep.mubr.bf16.mxu0 %v14491_v38  ;;  %v18358_v38 = vrot.slane %v9307_v22, 5  ;;  %v9351_v30 = vrot.slane %v9349_v20, 5  ;;  %v9361_v48 = vrot.slane %v9359_v45, 4  ;;  %v14523_v22 = vld [vmem:[#allocation8 + $0x238] sm:$0xff]   ;;  %v9286_v55 = vsel %vm17494_vm11, %v9281_v14, %v18346_v4  ;;  %v8964_v20 = vld [vmem:[#allocation2 + $0xfc] sm:$0xf] }
 0x57a   :  { %13657 = vmatmul.mubr.bf16.gmra.mrb[4].mxu1 %v12421_v25  ;;  %v9325_v25 = vshll.u32 %v8952_v60, 16  ;;  %v18361_v59 = vrot.slane %v9331_v17, 5  ;;  %v9257_v41 = vrot.slane %v9256_v36, 4  ;;  %v8961_v60 = vld [vmem:[#allocation2 + $0xf0] sm:$0xf]  ;;  %v9305_v36 = vrot.slane %v9304_v51, 4 }
 0x57b   :  { %13660 = vmatprep.mubr.bf16.mxu1 %v12422_v61  ;;  %13721 = vmatpush3.bf16.msra.mxu1 %v14498_v6  ;;  %v9335_v61 = vshrl.u32 %v8953_v40, 16  ;;  %v9269_v6 = vshll.u32 %v8945_v37, 16  ;;  %v9295_v37 = vrot.slane %v9293_v31, 5  ;;  %v9394_v26 = vshrl.u32 %v8961_v60, 16  ;;  %v8962_v17 = vld [vmem:[#allocation2 + $0xf4] sm:$0xf] }
 0x57c   :  { %13722 = vmatprep.subr.bf16.mxu1 %v14503_v12  ;;  %v9327_v46 = vrot.slane %v9325_v25, 5  ;;  %v9397_v1 = vshll.u32 %v8961_v60, 16  ;;  %v9262_v58 = vsel %vm17494_vm11, %v9257_v41, %v18344_v19  ;;  %v9341_v25 = vshll.u32 %v8954_v13, 16  ;;  %v14500_v13 = vld [vmem:[#allocation2 + $0x90] sm:$0xff]  }
 0x57d   :  { %v9337_v62 = vrot.slane %v9335_v61, 4  ;;  %v9319_v24 = vrot.slane %v9317_v23, 5  ;;  %v9362_v39 = vor.u32 %v9361_v48, %v18365_v42  ;;  %v9396_v4 = vrot.slane %v9394_v26, 4  ;;  %v18414_v23 = vld [vmem:[#allocation2 + $0x190] sm:$0xf] }
 0x57e   :  { %v9328_v40 = vor.u32 %v9327_v46, %v9324_v52  ;;  %v9399_v32 = vrot.slane %v9397_v1, 5  ;;  %v9407_v29 = vshrl.u32 %v8962_v17, 16  ;;  %v9343_v56 = vrot.slane %v9341_v25, 5  ;;  %v14499_v52 = vld [vmem:[#allocation2 + $0x84] sm:$0xff]   ;;  %v18424_v48 = vld [vmem:[#allocation2 + $0x19c] sm:$0xf] }
 0x57f   :  { %13723 = vmatpush3.bf16.msra.mxu1 %v14503_v12  ;;  %v9271_v12 = vrot.slane %v9269_v6, 5  ;;  %v9338_v47 = vor.u32 %v9337_v62, %v18361_v59  ;;  %v9310_v57 = vsel %vm17494_vm11, %v9305_v36, %v18358_v38  ;;  %v18402_v45 = vrot.slane %v9362_v39, 4  ;;  %v18437_v36 = vld [vmem:[#allocation2 + $0x194] sm:$0x1] }
 0x580   :  { %13341 = vmatmul.mubr.bf16.gmra.mrb[72].mxu0 %v14492_v33  ;;  %13724 = vmatprep.subr.bf16.mxu1 %v14508_v11  ;;  %v9348_v33 = vrot.slane %v9346_v50, 4  ;;  %v9329_v19 = vrot.slane %v9328_v40, 4  ;;  %v9400_v41 = vor.u32 %v9399_v32, %v9396_v4  ;;  %v18406_v31 = vrot.slane %v9407_v29, 4 }
 0x581   :  { %13344 = vmatprep.mubr.bf16.mxu0 %v14494_v0  ;;  %v9339_v6 = vrot.slane %v9338_v47, 4  ;;  %v9427_v14 = vshll.u32 %v8965_v8, 16 }
 0x582   :  { %13661 = vmatmul.mubr.bf16.gmra.mrb[8].mxu1 %v18317_v9  ;;  %v9267_v9 = vrot.slane %v9266_v53, 4  ;;  %v8957_v53 = vld [vmem:[#allocation2 + $0xc8] sm:$0x1]  ;;  %v9352_v2 = vor.u32 %v9351_v30, %v9348_v33  ;;  %v9334_v27 = vsel %vm17494_vm11, %v9329_v19, %v18361_v59  ;;  %v9418_v59 = vshrl.u32 %v8964_v20, 16 }
 0x583   :  { %13664 = vmatprep.mubr.bf16.mxu1 %v12424_v10  ;;  %13725 = vmatpush3.bf16.msra.mxu1 %v14508_v11  ;;  %v9314_v10 = vor.u32 %v9313_v18, %v18358_v38  ;;  %v9248_v11 = vsel %vm17494_vm11, %v9243_v35, %v18348_v7  ;;  %v9296_v7 = vsel %vm17494_vm11, %v9291_v5, %v9295_v37  ;;  %v8963_v18 = vld [vmem:[#allocation2 + $0xf8] sm:$0x1]  ;;  %v8958_v35 = vld [vmem:[#allocation2 + $0xcc] sm:$0xf]  ;;  %v8959_v38 = vld [vmem:[#allocation2 + $0xd0] sm:$0xf] }
 0x584   :  { %13726 = vmatprep.subr.bf16.mxu1 %v14513_v44  ;;  %v9272_v0 = vsel %vm17494_vm11, %v9267_v9, %v9271_v12  ;;  %v12427_v21 = vcombine.low %v9238_v54, %v9248_v11  ;;  %v18388_v50 = vcombine.low %v9286_v55, %v9296_v7  ;;  %v9344_v16 = vsel %vm17494_vm11, %v9339_v6, %v9343_v56  ;;  %v10352_v11 = vld [vmem:[#allocation2 + $0x18c] sm:$0xe]  ;;  %v14501_v37 = vld [vmem:[#allocation2 + $0x9c] sm:$0xff]  }
 0x585   :  { %v9315_v61 = vrot.slane %v9314_v10, 4  ;;  %v12428_v46 = vcombine.low %v9262_v58, %v9272_v0  ;;  %v18400_v54 = vrot.slane %v9352_v2, 4  ;;  %v9421_v9 = vshll.u32 %v8964_v20, 16  ;;  %v18412_v10 = vld [vmem:[#allocation2 + $0x108] sm:$0xf] }
 0x586   :  { %v18410_v51 = vcombine.low %v9334_v27, %v9344_v16  ;;  %v9370_v60 = vshrl.u32 %v8958_v35, 16  ;;  %v9379_v47 = vshll.u32 %v8959_v38, 16  ;;  %v9383_v30 = vshrl.u32 %v8959_v38, 16  ;;  %v10353_v0 = vld [vmem:[#allocation2 + $0x198] sm:$0xe] }
 0x587   :  { %13727 = vmatpush3.bf16.msra.mxu1 %v14513_v44  ;;  %v9403_v44 = vshll.u32 %v8962_v17, 16  ;;  %v9320_v62 = vsel %vm17494_vm11, %v9315_v61, %v9319_v24  ;;  %v9358_v40 = vsel %vm17494_vm11, %v18400_v54, %v18365_v42  ;;  %v18426_v26 = vrot.slane %v9400_v41, 4  ;;  %v8968_v42 = vld [vmem:[#allocation2 + $0x10c] sm:$0xf]  ;;  %v18442_v2 = vld [vmem:[#allocation2 + $0xd4] sm:$0x1] }
 0x588   :  { %13345 = vmatmul.mubr.bf16.gmra.mrb[76].mxu0 %v14495_v34  ;;  %13728 = vmatprep.subr.bf16.mxu1 %v14518_v28  ;;  %v12430_v5 = vcombine.low %v9310_v57, %v9320_v62  ;;  %v9431_v58 = vshrl.u32 %v8965_v8, 16  ;;  %v18432_v55 = vrot.slane %v9418_v59, 4  ;;  %v9423_v25 = vrot.slane %v9421_v9, 5  ;;  %v8966_v20 = vld [vmem:[#allocation2 + $0x104] sm:$0x1]  ;;  %v14502_v59 = vld [vmem:[#allocation2 + $0xa8] sm:$0xff]  }
 0x589   :  { %13348 = vmatprep.mubr.bf16.mxu0 %v14496_v15  ;;  %v18404_v12 = vrot.slane %v9403_v44, 5  ;;  %v9373_v15 = vshll.u32 %v8958_v35, 16  ;;  %v18434_v17 = vrot.slane %v9427_v14, 5  ;;  %v9442_v7 = vshrl.u32 %v18412_v10, 16  ;;  %v8970_v54 = vld [vmem:[#allocation2 + $0x114] sm:$0xf] }
 0x58a   :  { %13665 = vmatmul.mubr.bf16.gmra.mrb[12].mxu1 %v18333_v3  ;;  %v14497_v3 = vld [vmem:[#allocation2 + $0x78] sm:$0xff]   ;;  %v9372_v61 = vrot.slane %v9370_v60, 4  ;;  %v12487_v19 = vrot.slane %v10352_v11, 9  ;;  %v10656_v6 = vrot.slane %v18414_v23, 5  ;;  %v18444_v39 = vrot.slane %v9379_v47, 5 }
 0x58b   :  { %13668 = vmatprep.mubr.bf16.mxu1 %v18350_v49  ;;  %13729 = vmatpush3.bf16.msra.mxu1 %v14518_v28  ;;  %v9365_v49 = vshll.u32 %v8957_v53, 16  ;;  %v9413_v28 = vshll.u32 %v8963_v18, 16  ;;  %v9410_v1 = vor.u32 %v18406_v31, %v18404_v12  ;;  %v9375_v24 = vrot.slane %v9373_v15, 5  ;;  %v18439_v53 = vld [vmem:[#allocation2 + $0x1a0] sm:$0x1] }
 0x58c   :  { %13730 = vmatprep.subr.bf16.mxu1 %v14523_v22  ;;  %v9385_v4 = vrot.slane %v9383_v30, 4  ;;  %v12488_v32 = vrot.slane %v10353_v0, 9  ;;  %v10663_v44 = vrot.slane %v18424_v48, 5  ;;  %v9433_v29 = vrot.slane %v9431_v58, 4  ;;  %v8973_v15 = vld [vmem:[#allocation2 + $0x120] sm:$0xf] }
 0x58d   :  { %v18408_v34 = vrot.slane %v9365_v49, 5  ;;  %v10659_v56 = vrot.slane %v18437_v36, 5  ;;  %v9451_v49 = vshll.u32 %v8968_v42, 16  ;;  %v9455_v18 = vshrl.u32 %v8968_v42, 16  ;;  %v18483_v30 = vld [vmem:[#allocation2 + $0x124] sm:$0xf] }
 0x58e   :  { %v9376_v57 = vor.u32 %v9375_v24, %v9372_v61  ;;  %v9389_v62 = vshll.u32 %v18442_v2, 16  ;;  %v18454_v8 = vsel %vm17800_vm14, %v12487_v19, %v10656_v6  ;;  %v9386_v16 = vor.u32 %v9385_v4, %v18444_v39  ;;  %v18485_v58 = vld [vmem:[#allocation2 + $0x110] sm:$0x1] }
 0x58f   :  { %13731 = vmatpush3.bf16.msra.mxu1 %v14523_v22  ;;  %v9368_v33 = vsel %vm17494_vm11, %v18402_v45, %v18408_v34  ;;  %v18430_v22 = vrot.slane %v9413_v28, 5  ;;  %v9411_v41 = vrot.slane %v9410_v1, 4  ;;  %v9424_v31 = vor.u32 %v9423_v25, %v18432_v55  ;;  %v18472_v28 = vld [vmem:[#allocation2 + $0x118] sm:$0xf] }
 0x590   :  { %13349 = vmatmul.mubr.bf16.gmra.mrb[80].mxu0 %v14497_v3  ;;  %v9445_v3 = vshll.u32 %v18412_v10, 16  ;;  %v12432_v38 = vcombine.low %v9358_v40, %v9368_v33  ;;  %v9406_v9 = vsel %vm17494_vm11, %v18426_v26, %v18404_v12  ;;  %v9437_v14 = vshll.u32 %v8966_v20, 16  ;;  %v14504_v10 = vld [vmem:[#allocation2 + $0xb4] sm:$0xff]   ;;  %v18512_v20 = vld [vmem:[#allocation2 + $0x130] sm:$0xf] }
 0x591   :  { %13352 = vmatprep.mubr.bf16.mxu0 %v14499_v52  ;;  %v10665_v52 = vrot.slane %v10663_v44, 4  ;;  %v18481_v40 = vrot.slane %v9451_v49, 5  ;;  %v9457_v33 = vrot.slane %v9455_v18, 4  ;;  %v9466_v47 = vshrl.u32 %v8970_v54, 16  ;;  %v8976_v18 = vld [vmem:[#allocation2 + $0x12c] sm:$0xf] }
 0x592   :  { %13669 = vmatmul.mubr.bf16.gmra.mrb[16].mxu1 %v12427_v21  ;;  %v10658_v21 = vrot.slane %v10656_v6, 4  ;;  %v9447_v60 = vrot.slane %v9445_v3, 5  ;;  %v9377_v11 = vrot.slane %v9376_v57, 4  ;;  %v9391_v1 = vrot.slane %v9389_v62, 5 }
 0x593   :  { %13672 = vmatprep.mubr.bf16.mxu1 %v12428_v46  ;;  %v10666_v46 = vrot.slane %v18439_v53, 5  ;;  %v9469_v12 = vshll.u32 %v8970_v54, 16  ;;  %v9416_v26 = vsel %vm17494_vm11, %v9411_v41, %v18430_v22  ;;  %v18490_v42 = vrot.slane %v9424_v31, 4  ;;  %v18518_v31 = vld [vmem:[#allocation2 + $0x11c] sm:$0x1] }
 0x594   :  { %v18458_v27 = vsel %vm17800_vm14, %v10658_v21, %v10659_v56  ;;  %v9475_v0 = vshll.u32 %v18472_v28, 16  ;;  %v9479_v55 = vshrl.u32 %v18472_v28, 16  ;;  %v9490_v25 = vshrl.u32 %v8973_v15, 16  ;;  %v14505_v21 = vld [vmem:[#allocation2 + $0xc0] sm:$0xff]  }
 0x595   :  { %21145 = vst [vmem:[#allocation48_spill] sm:$0xff] %v18458_v27  ;;  %v18469_v35 = vsel %vm17800_vm14, %v10665_v52, %v10666_v46  ;;  %v9499_v61 = vshll.u32 %v18483_v30, 16  ;;  %v9503_v24 = vshrl.u32 %v18483_v30, 16  ;;  %v9458_v4 = vor.u32 %v9457_v33, %v18481_v40 }
 0x596   :  { %21147 = vst [vmem:[#allocation50_spill] sm:$0xff] %v18469_v35  ;;  %v9461_v22 = vshll.u32 %v18485_v58, 16  ;;  %v9471_v3 = vrot.slane %v9469_v12, 5  ;;  %v18506_v56 = vrot.slane %v9437_v14, 5  ;;  %v9481_v49 = vrot.slane %v9479_v55, 4 }
 0x597   :  { %v9492_v52 = vrot.slane %v9490_v25, 4  ;;  %v18510_v57 = vrot.slane %v9499_v61, 5  ;;  %v9505_v62 = vrot.slane %v9503_v24, 4  ;;  %v12434_v54 = vcombine.low %v9406_v9, %v9416_v26  ;;  %v18526_v9 = vld [vmem:[#allocation2 + $0x128] sm:$0x1] }
 0x598   :  { %13353 = vmatmul.mubr.bf16.gmra.mrb[84].mxu0 %v14500_v13  ;;  %v9434_v13 = vor.u32 %v9433_v29, %v18434_v17  ;;  %v9468_v29 = vrot.slane %v9466_v47, 4  ;;  %v9459_v14 = vrot.slane %v9458_v4, 4  ;;  %v9523_v33 = vshll.u32 %v18512_v20, 16 }
 0x599   :  { %13356 = vmatprep.mubr.bf16.mxu0 %v14501_v37  ;;  %v9387_v37 = vrot.slane %v9386_v16, 4  ;;  %v9527_v47 = vshrl.u32 %v18512_v20, 16  ;;  %v9506_v12 = vor.u32 %v9505_v62, %v18510_v57  ;;  %v9509_v24 = vshll.u32 %v18526_v9, 16 }
 0x59a   :  { %13673 = vmatmul.mubr.bf16.gmra.mrb[20].mxu1 %v18388_v50  ;;  %v18465_v50 = vsel %vm17800_vm14, %v12488_v32, %v10663_v44  ;;  %v18497_v19 = vrot.slane %v9434_v13, 4  ;;  %v9382_v32 = vsel %vm17494_vm11, %v9377_v11, %v18444_v39  ;;  %v14506_v39 = vld [vmem:[#allocation2 + $0xe4] sm:$0xff]   ;;  %v9514_v13 = vshrl.u32 %v8976_v18, 16 }
 0x59b   :  { %13676 = vmatprep.mubr.bf16.mxu1 %v12430_v5  ;;  %21146 = vst [vmem:[#allocation49_spill] sm:$0xff] %v18465_v50  ;;  %v9444_v5 = vrot.slane %v9442_v7, 4  ;;  %v9493_v7 = vshll.u32 %v8973_v15, 16  ;;  %v9392_v44 = vsel %vm17494_vm11, %v9387_v37, %v9391_v1  ;;  %v8979_v15 = vld [vmem:[#allocation2 + $0x138] sm:$0xf]  ;;  %v9485_v37 = vshll.u32 %v18518_v31, 16 }
 0x59c   :  { %v12433_v16 = vcombine.low %v9382_v32, %v9392_v44  ;;  %v9538_v26 = vshrl.u32 %v8979_v15, 16  ;;  %v9529_v32 = vrot.slane %v9527_v47, 4  ;;  %v18543_v44 = vld [vmem:[#allocation2 + $0x148] sm:$0xf] }
 0x59d   :  { %v9448_v6 = vor.u32 %v9447_v60, %v9444_v5  ;;  %v9495_v46 = vrot.slane %v9493_v7, 5  ;;  %v9463_v5 = vrot.slane %v9461_v22, 5  ;;  %v9472_v60 = vor.u32 %v9471_v3, %v9468_v29  ;;  %v14507_v29 = vld [vmem:[#allocation2 + $0xf0] sm:$0xff]  }
 0x59e   :  { %v18541_v22 = vrot.slane %v9523_v33, 5 }
 0x59f   :  { %v9449_v41 = vrot.slane %v9448_v6, 4  ;;  %v9496_v1 = vor.u32 %v9495_v46, %v9492_v52  ;;  %v9464_v7 = vsel %vm17494_vm11, %v9459_v14, %v9463_v5  ;;  %v9473_v61 = vrot.slane %v9472_v60, 4 }
 0x5a0   :  { %13357 = vmatmul.mubr.bf16.gmra.mrb[88].mxu0 %v14502_v59  ;;  %v9440_v59 = vsel %vm17494_vm11, %v18497_v19, %v18506_v56  ;;  %v8982_v19 = vld [vmem:[#allocation2 + $0x144] sm:$0xf]  ;;  %v9516_v6 = vrot.slane %v9514_v13, 4  ;;  %v9575_v14 = vshrl.u32 %v18543_v44, 16  ;;  %v9511_v60 = vrot.slane %v9509_v24, 5  ;;  %v14510_v24 = vld [vmem:[#allocation2 + $0x108] sm:$0xff]  }
 0x5a1   :  { %13360 = vmatprep.mubr.bf16.mxu0 %v14504_v10  ;;  %v18524_v10 = vld [vmem:[#allocation2 + $0x13c] sm:$0xf]  ;;  %v9454_v25 = vsel %vm17494_vm11, %v9449_v41, %v18481_v40  ;;  %v9497_v56 = vrot.slane %v9496_v1, 4  ;;  %v9571_v41 = vshll.u32 %v18543_v44, 16  ;;  %v9530_v13 = vor.u32 %v9529_v32, %v18541_v22 }
 0x5a2   :  { %13677 = vmatmul.mubr.bf16.gmra.mrb[24].mxu1 %v18410_v51  ;;  %v18508_v51 = vrot.slane %v9475_v0, 5  ;;  %v9547_v0 = vshll.u32 %v18524_v10, 16  ;;  %v9551_v55 = vshrl.u32 %v18524_v10, 16  ;;  %v14509_v40 = vld [vmem:[#allocation2 + $0xfc] sm:$0xff]  }
 0x5a3   :  { %13680 = vmatprep.mubr.bf16.mxu1 %v12432_v38  ;;  %v9430_v38 = vsel %vm17494_vm11, %v18490_v42, %v18434_v17  ;;  %v9517_v17 = vshll.u32 %v8976_v18, 16  ;;  %v9541_v42 = vshll.u32 %v8979_v15, 16  ;;  %v9540_v18 = vrot.slane %v9538_v26, 4  ;;  %v8985_v26 = vld [vmem:[#allocation2 + $0x150] sm:$0xf] }
 0x5a4   :  { %v9482_v11 = vor.u32 %v9481_v49, %v18508_v51  ;;  %v9507_v49 = vrot.slane %v9506_v12, 4  ;;  %v18545_v46 = vrot.slane %v9547_v0, 5  ;;  %v9553_v62 = vrot.slane %v9551_v55, 4 }
 0x5a5   :  { %v9519_v4 = vrot.slane %v9517_v17, 5  ;;  %v9543_v52 = vrot.slane %v9541_v42, 5  ;;  %v12435_v5 = vcombine.low %v9430_v38, %v9440_v59  ;;  %v12436_v17 = vcombine.low %v9454_v25, %v9464_v7 }
 0x5a6   :  { %v9483_v3 = vrot.slane %v9482_v11, 4  ;;  %v9478_v33 = vsel %vm17494_vm11, %v9473_v61, %v18508_v51  ;;  %v9502_v11 = vsel %vm17494_vm11, %v9497_v56, %v18510_v57  ;;  %v9512_v38 = vsel %vm17494_vm11, %v9507_v49, %v9511_v60  ;;  %v18566_v51 = vld [vmem:[#allocation2 + $0x154] sm:$0xf] }
 0x5a7   :  { %v9520_v15 = vor.u32 %v9519_v4, %v9516_v6  ;;  %v9544_v1 = vor.u32 %v9543_v52, %v9540_v18  ;;  %v9554_v12 = vor.u32 %v9553_v62, %v18545_v46  ;;  %v18568_v55 = vrot.slane %v9571_v41, 5 }
 0x5a8   :  { %13361 = vmatmul.mubr.bf16.gmra.mrb[92].mxu0 %v14505_v21  ;;  %v9487_v21 = vrot.slane %v9485_v37, 5  ;;  %v18560_v37 = vld [vmem:[#allocation2 + $0x140] sm:$0x1]  ;;  %v9577_v57 = vrot.slane %v9575_v14, 4  ;;  %v9531_v7 = vrot.slane %v9530_v13, 4  ;;  %v9586_v6 = vshrl.u32 %v8985_v26, 16 }
 0x5a9   :  { %13364 = vmatprep.mubr.bf16.mxu0 %v14506_v39  ;;  %v18547_v39 = vld [vmem:[#allocation2 + $0x134] sm:$0x1]  ;;  %v9521_v25 = vrot.slane %v9520_v15, 4  ;;  %v9557_v61 = vshll.u32 %v18560_v37, 16  ;;  %v9589_v4 = vshll.u32 %v8985_v26, 16  ;;  %v9595_v32 = vshll.u32 %v18566_v51, 16 }
 0x5aa   :  { %13681 = vmatmul.mubr.bf16.gmra.mrb[28].mxu1 %v12433_v16  ;;  %v9562_v16 = vshrl.u32 %v8982_v19, 16  ;;  %v9488_v47 = vsel %vm17494_vm11, %v9483_v3, %v9487_v21  ;;  %v9533_v59 = vshll.u32 %v18547_v39, 16  ;;  %v12438_v21 = vcombine.low %v9502_v11, %v9512_v38  ;;  %v8991_v15 = vld [vmem:[#allocation2 + $0x168] sm:$0xf]  ;;  %v18586_v11 = vld [vmem:[#allocation2 + $0x16c] sm:$0xf] }
 0x5ab   :  { %13684 = vmatprep.mubr.bf16.mxu1 %v12434_v54  ;;  %v9565_v54 = vshll.u32 %v8982_v19, 16  ;;  %v18571_v19 = vld [vmem:[#allocation2 + $0x14c] sm:$0x1]  ;;  %v12437_v3 = vcombine.low %v9478_v33, %v9488_v47  ;;  %v9599_v49 = vshrl.u32 %v18566_v51, 16  ;;  %v9545_v18 = vrot.slane %v9544_v1, 4 }
 0x5ac   :  { %v9564_v42 = vrot.slane %v9562_v16, 4  ;;  %v9535_v56 = vrot.slane %v9533_v59, 5  ;;  %v9555_v52 = vrot.slane %v9554_v12, 4  ;;  %v9578_v16 = vor.u32 %v9577_v57, %v18568_v55  ;;  %v18588_v38 = vld [vmem:[#allocation2 + $0x158] sm:$0x1] }
 0x5ad   :  { %v9567_v0 = vrot.slane %v9565_v54, 5  ;;  %v18576_v54 = vld [vmem:[#allocation2 + $0x160] sm:$0xf]  ;;  %v9526_v41 = vsel %vm17494_vm11, %v9521_v25, %v18541_v22  ;;  %v9581_v60 = vshll.u32 %v18571_v19, 16  ;;  %v9588_v13 = vrot.slane %v9586_v6, 4 }
 0x5ae   :  { %v9536_v14 = vsel %vm17494_vm11, %v9531_v7, %v9535_v56  ;;  %v18584_v33 = vrot.slane %v9595_v32, 5  ;;  %v9601_v59 = vrot.slane %v9599_v49, 4  ;;  %v9619_v22 = vshll.u32 %v18576_v54, 16  ;;  %v14512_v6 = vld [vmem:[#allocation2 + $0x120] sm:$0xff]  }
 0x5af   :  { %v9568_v62 = vor.u32 %v9567_v0, %v9564_v42  ;;  %v9623_v12 = vshrl.u32 %v18576_v54, 16  ;;  %v9550_v26 = vsel %vm17494_vm11, %v9545_v18, %v18545_v46  ;;  %v9579_v57 = vrot.slane %v9578_v16, 4  ;;  %v8994_v16 = vld [vmem:[#allocation2 + $0x174] sm:$0xf] }
 0x5b0   :  { %13365 = vmatmul.mubr.bf16.gmra.mrb[96].mxu0 %v14507_v29  ;;  %v14511_v29 = vld [vmem:[#allocation2 + $0x114] sm:$0xff]   ;;  %v9634_v25 = vshrl.u32 %v8991_v15, 16  ;;  %v9637_v7 = vshll.u32 %v8991_v15, 16  ;;  %v9602_v46 = vor.u32 %v9601_v59, %v18584_v33  ;;  %v18601_v49 = vrot.slane %v9619_v22, 5 }
 0x5b1   :  { %13368 = vmatprep.mubr.bf16.mxu0 %v14509_v40  ;;  %v8988_v40 = vld [vmem:[#allocation2 + $0x15c] sm:$0xf]  ;;  %v9569_v0 = vrot.slane %v9568_v62, 4  ;;  %v12439_v18 = vcombine.low %v9526_v41, %v9536_v14  ;;  %v8997_v41 = vld [vmem:[#allocation2 + $0x180] sm:$0xf] }
 0x5b2   :  { %13685 = vmatmul.mubr.bf16.gmra.mrb[32].mxu1 %v12435_v5  ;;  %v9559_v5 = vrot.slane %v9557_v61, 5  ;;  %v9610_v47 = vshrl.u32 %v8988_v40, 16  ;;  %v9613_v1 = vshll.u32 %v8988_v40, 16  ;;  %v9643_v61 = vshll.u32 %v18586_v11, 16 }
 0x5b3   :  { %13688 = vmatprep.mubr.bf16.mxu1 %v12436_v17  ;;  %v9591_v17 = vrot.slane %v9589_v4, 5  ;;  %v9583_v4 = vrot.slane %v9581_v60, 5  ;;  %v9625_v40 = vrot.slane %v9623_v12, 4  ;;  %v9639_v60 = vrot.slane %v9637_v7, 5 }
 0x5b4   :  { %v9560_v42 = vsel %vm17494_vm11, %v9555_v52, %v9559_v5  ;;  %v9615_v56 = vrot.slane %v9613_v1, 5  ;;  %v9574_v52 = vsel %vm17494_vm11, %v9569_v0, %v18568_v55  ;;  %v9636_v5 = vrot.slane %v9634_v25, 4  ;;  %v18612_v55 = vld [vmem:[#allocation2 + $0x164] sm:$0x1]  ;;  %v18617_v25 = vld [vmem:[#allocation2 + $0x170] sm:$0x1] }
 0x5b5   :  { %v9592_v32 = vor.u32 %v9591_v17, %v9588_v13  ;;  %v9584_v62 = vsel %vm17494_vm11, %v9579_v57, %v9583_v4  ;;  %v18608_v15 = vrot.slane %v9643_v61, 5  ;;  %v18610_v17 = vld [vmem:[#allocation2 + $0x178] sm:$0xf]  ;;  %v9603_v22 = vrot.slane %v9602_v46, 4  ;;  %v18615_v57 = vld [vmem:[#allocation2 + $0x184] sm:$0xf] }
 0x5b6   :  { %v12441_v14 = vcombine.low %v9574_v52, %v9584_v62  ;;  %v9626_v0 = vor.u32 %v9625_v40, %v18601_v49  ;;  %v9658_v7 = vshrl.u32 %v8994_v16, 16  ;;  %v9661_v61 = vshll.u32 %v8994_v16, 16  ;;  %v14516_v40 = vld [vmem:[#allocation2 + $0x144] sm:$0xff]  }
 0x5b7   :  { %v9593_v59 = vrot.slane %v9592_v32, 4  ;;  %v9682_v4 = vshrl.u32 %v8997_v41, 16  ;;  %v9685_v32 = vshll.u32 %v8997_v41, 16  ;;  %v9691_v46 = vshll.u32 %v18615_v57, 16  ;;  %v18633_v41 = vld [vmem:[#allocation2 + $0x17c] sm:$0x1] }
 0x5b8   :  { %13369 = vmatmul.mubr.bf16.gmra.mrb[100].mxu0 %v14510_v24  ;;  %v9647_v24 = vshrl.u32 %v18586_v11, 16  ;;  %v9627_v62 = vrot.slane %v9626_v0, 4  ;;  %v9653_v16 = vshll.u32 %v18617_v25, 16 }
 0x5b9   :  { %13372 = vmatprep.mubr.bf16.mxu0 %v14511_v29  ;;  %v9605_v29 = vshll.u32 %v18588_v38, 16  ;;  %v9684_v34 = vrot.slane %v9682_v4, 4  ;;  %v9687_v45 = vrot.slane %v9685_v32, 5  ;;  %v18649_v32 = vld [vmem:[#allocation2 + $0x188] sm:$0x1] }
 0x5ba   :  { %13689 = vmatmul.mubr.bf16.gmra.mrb[36].mxu1 %v12437_v3  ;;  %v9612_v3 = vrot.slane %v9610_v47, 4  ;;  %v9649_v13 = vrot.slane %v9647_v24, 4  ;;  %v12440_v47 = vcombine.low %v9550_v26, %v9560_v42  ;;  %v9667_v26 = vshll.u32 %v18610_v17, 16 }
 0x5bb   :  { %13692 = vmatprep.mubr.bf16.mxu1 %v12438_v21  ;;  %v14514_v21 = vld [vmem:[#allocation2 + $0x12c] sm:$0xff]   ;;  %v9607_v1 = vrot.slane %v9605_v29, 5  ;;  %v9671_v42 = vshrl.u32 %v18610_v17, 16  ;;  %v9640_v24 = vor.u32 %v9639_v60, %v9636_v5  ;;  %v14515_v29 = vld [vmem:[#allocation2 + $0x138] sm:$0xff]   ;;  %v9660_v5 = vrot.slane %v9658_v7, 4 }
 0x5bc   :  { %v9616_v12 = vor.u32 %v9615_v56, %v9612_v3  ;;  %v9598_v3 = vsel %vm17494_vm11, %v9593_v59, %v18584_v33  ;;  %v9695_v56 = vshrl.u32 %v18615_v57, 16  ;;  %v9663_v60 = vrot.slane %v9661_v61, 5 }
 0x5bd   :  { %v9673_v33 = vrot.slane %v9671_v42, 4  ;;  %v9655_v7 = vrot.slane %v9653_v16, 5 }
 0x5be   :  { %v9617_v52 = vrot.slane %v9616_v12, 4  ;;  %v9000_v12 = vld [vmem:[#allocation2 + $0x18c] sm:$0xf] }
 0x5c0   :  { %13373 = vmatmul.mubr.bf16.gmra.mrb[104].mxu0 %v14512_v6  ;;  %v9650_v6 = vor.u32 %v9649_v13, %v18608_v15  ;;  %v18631_v13 = vrot.slane %v9667_v26, 5  ;;  %v9622_v0 = vsel %vm17494_vm11, %v9617_v52, %v18601_v49  ;;  %v9664_v26 = vor.u32 %v9663_v60, %v9660_v5 }
 0x5c1   :  { %13376 = vmatprep.mubr.bf16.mxu0 %v14514_v21  ;;  %v9629_v21 = vshll.u32 %v18612_v55, 16  ;;  %v9688_v49 = vor.u32 %v9687_v45, %v9684_v34  ;;  %v9743_v52 = vshrl.u32 %v18424_v48, 16  ;;  %v9701_v34 = vshll.u32 %v18649_v32, 16 }
 0x5c2   :  { %13693 = vmatmul.mubr.bf16.gmra.mrb[40].mxu1 %v12439_v18  ;;  %v9608_v18 = vsel %vm17494_vm11, %v9603_v22, %v9607_v1  ;;  %v9651_v59 = vrot.slane %v9650_v6, 4  ;;  %v18635_v1 = vrot.slane %v9691_v46, 5  ;;  %v9697_v22 = vrot.slane %v9695_v56, 4  ;;  %v9003_v6 = vld [vmem:[#allocation2 + $0x198] sm:$0xf]  ;;  %v14519_v56 = vld [vmem:[#allocation2 + $0x15c] sm:$0xff]  }
 0x5c3   :  { %13696 = vmatprep.mubr.bf16.mxu1 %v12440_v47  ;;  %v9641_v47 = vrot.slane %v9640_v24, 4  ;;  %v12442_v35 = vcombine.low %v9598_v3, %v9608_v18  ;;  %v9631_v50 = vrot.slane %v9629_v21, 5  ;;  %v9674_v42 = vor.u32 %v9673_v33, %v18631_v13 }
 0x5c4   :  { %v9677_v24 = vshll.u32 %v18633_v41, 16  ;;  %v9709_v3 = vshll.u32 %v9000_v12, 16  ;;  %v9715_v21 = vshll.u32 %v18414_v23, 16  ;;  %v9719_v46 = vshrl.u32 %v18414_v23, 16  ;;  %v18657_v23 = vld [vmem:[#allocation2 + $0x1a8] sm:$0xf] }
 0x5c5   :  { %v9632_v61 = vsel %vm17494_vm11, %v9627_v62, %v9631_v50  ;;  %v9646_v4 = vsel %vm17494_vm11, %v9641_v47, %v18608_v15  ;;  %v9698_v50 = vor.u32 %v9697_v22, %v18635_v1  ;;  %v9733_v18 = vshll.u32 %v9003_v6, 16 }
 0x5c6   :  { %v9739_v15 = vshll.u32 %v18424_v48, 16  ;;  %v9665_v62 = vrot.slane %v9664_v26, 4  ;;  %v9675_v16 = vrot.slane %v9674_v42, 4  ;;  %v9679_v45 = vrot.slane %v9677_v24, 5 }
 0x5c7   :  { %v12443_v5 = vcombine.low %v9622_v0, %v9632_v61  ;;  %v9689_v33 = vrot.slane %v9688_v49, 4  ;;  %v9699_v22 = vrot.slane %v9698_v50, 4  ;;  %v9745_v42 = vrot.slane %v9743_v52, 4  ;;  %v14520_v49 = vld [vmem:[#allocation2 + $0x168] sm:$0xff]  }
 0x5c8   :  { %13377 = vmatmul.mubr.bf16.gmra.mrb[108].mxu0 %v14515_v29  ;;  %v14517_v29 = vld [vmem:[#allocation2 + $0x150] sm:$0xff]   ;;  %v9741_v26 = vrot.slane %v9739_v15, 5  ;;  %v9763_v0 = vshll.u32 %v18657_v23, 16  ;;  %v9767_v61 = vshrl.u32 %v18657_v23, 16 }
 0x5c9   :  { %13380 = vmatprep.mubr.bf16.mxu0 %v14516_v40  ;;  %v9730_v40 = vshrl.u32 %v9003_v6, 16  ;;  %v9721_v6 = vrot.slane %v9719_v46, 4  ;;  %v14521_v46 = vld [vmem:[#allocation2 + $0x174] sm:$0xff]  }
 0x5ca   :  { %13697 = vmatmul.mubr.bf16.gmra.mrb[44].mxu1 %v12441_v14  ;;  %v9656_v14 = vsel %vm17494_vm11, %v9651_v59, %v9655_v7  ;;  %v9006_v59 = vld [vmem:[#allocation2 + $0x1a4] sm:$0xf]  ;;  %v9717_v7 = vrot.slane %v9715_v21, 5  ;;  %v9725_v21 = vshll.u32 %v18437_v36, 16  ;;  %v9746_v15 = vor.u32 %v9745_v42, %v9741_v26  ;;  %v18673_v36 = vld [vmem:[#allocation2 + $0x1ac] sm:$0x1] }
 0x5cb   :  { %13700 = vmatprep.mubr.bf16.mxu1 %v12442_v35  ;;  %v9706_v35 = vshrl.u32 %v9000_v12, 16  ;;  %v12444_v60 = vcombine.low %v9646_v4, %v9656_v14  ;;  %v9711_v12 = vrot.slane %v9709_v3, 5  ;;  %v9732_v48 = vrot.slane %v9730_v40, 4  ;;  %v14524_v42 = vld [vmem:[#allocation2 + $0x18c] sm:$0xff]  }
 0x5cc   :  { %v9754_v24 = vshrl.u32 %v9006_v59, 16  ;;  %v9757_v27 = vshll.u32 %v9006_v59, 16  ;;  %v9670_v4 = vsel %vm17494_vm11, %v9665_v62, %v18631_v13  ;;  %v9703_v14 = vrot.slane %v9701_v34, 5 }
 0x5cd   :  { %v9708_v47 = vrot.slane %v9706_v35, 4  ;;  %v9680_v35 = vsel %vm17494_vm11, %v9675_v16, %v9679_v45  ;;  %v9722_v3 = vor.u32 %v9721_v6, %v9717_v7  ;;  %v9765_v62 = vrot.slane %v9763_v0, 5 }
 0x5ce   :  { %v9704_v40 = vsel %vm17494_vm11, %v9699_v22, %v9703_v14  ;;  %v9756_v13 = vrot.slane %v9754_v24, 4  ;;  %v9759_v52 = vrot.slane %v9757_v27, 5  ;;  %v9769_v34 = vrot.slane %v9767_v61, 4  ;;  %v14683_v61 = vld [vmem:[#allocation2 + $0x1c] sm:$0xf] }
 0x5cf   :  { %v9712_v50 = vor.u32 %v9711_v12, %v9708_v47  ;;  %v12445_v16 = vcombine.low %v9670_v4, %v9680_v35  ;;  %v9749_v45 = vshll.u32 %v18439_v53, 16  ;;  %v9723_v47 = vrot.slane %v9722_v3, 4 }
 0x5d0   :  { %13381 = vmatmul.mubr.bf16.gmra.mrb[112].mxu0 %v14517_v29  ;;  %v9735_v29 = vrot.slane %v9733_v18, 5  ;;  %v9727_v59 = vrot.slane %v9725_v21, 5  ;;  %v9760_v22 = vor.u32 %v9759_v52, %v9756_v13  ;;  %v9770_v12 = vor.u32 %v9769_v34, %v9765_v62  ;;  %v14685_v13 = vld [vmem:[#allocation2 + $0x28] sm:$0xf] }
 0x5d1   :  { %13384 = vmatprep.mubr.bf16.mxu0 %v14519_v56  ;;  %v9694_v56 = vsel %vm17494_vm11, %v9689_v33, %v18635_v1  ;;  %v9747_v33 = vrot.slane %v9746_v15, 4  ;;  %v9773_v27 = vshll.u32 %v18673_v36, 16  ;;  %v9751_v6 = vrot.slane %v9749_v45, 5  ;;  %v14525_v15 = vld [vmem:[#allocation2 + $0x198] sm:$0xff]   ;;  %v14686_v45 = vld [vmem:[#allocation2 + $0x34] sm:$0xf] }
 0x5d2   :  { %13701 = vmatmul.mubr.bf16.gmra.mrb[48].mxu1 %v12443_v5  ;;  %v9736_v18 = vor.u32 %v9735_v29, %v9732_v48  ;;  %v12446_v5 = vcombine.low %v9694_v56, %v9704_v40  ;;  %v14522_v48 = vld [vmem:[#allocation2 + $0x180] sm:$0xff]   ;;  %v9728_v53 = vsel %vm17494_vm11, %v9723_v47, %v9727_v59  ;;  %v10453_v4 = vrot.slane %v14683_v61, 5 }
 0x5d3   :  { %13704 = vmatprep.mubr.bf16.mxu1 %v12444_v60  ;;  %v9713_v60 = vrot.slane %v9712_v50, 4  ;;  %v9752_v0 = vsel %vm17494_vm11, %v9747_v33, %v9751_v6  ;;  %v9761_v14 = vrot.slane %v9760_v22, 4  ;;  %v9775_v35 = vrot.slane %v9773_v27, 5  ;;  %v14684_v40 = vld [vmem:[#allocation2 + $0x20] sm:$0x1] }
 0x5d4   :  { %v9737_v1 = vrot.slane %v9736_v18, 4  ;;  %v10455_v21 = vrot.slane %v10453_v4, 4  ;;  %v10456_v18 = vrot.slane %v14684_v40, 5  ;;  %v10460_v52 = vrot.slane %v14685_v13, 5  ;;  %v14687_v22 = vld [vmem:[#allocation2 + $0x2c] sm:$0x1] }
 0x5d5   :  { %v9718_v29 = vsel %vm17494_vm11, %v9713_v60, %v9717_v7  ;;  %v10323_v7 = vld [vmem:[#allocation2 + $0x18] sm:$0xe]  ;;  %v14688_v6 = vld [vmem:[#allocation2 + $0x38] sm:$0x1] }
 0x5d6   :  { %v9742_v24 = vsel %vm17494_vm11, %v9737_v1, %v9741_v26  ;;  %v12447_v50 = vcombine.low %v9718_v29, %v9728_v53  ;;  %v12458_v56 = vrot.slane %v10323_v7, 9  ;;  %v10462_v43 = vrot.slane %v10460_v52, 4  ;;  %v10325_v1 = vld [vmem:[#allocation2 + $0x30] sm:$0xe]  ;;  %v14689_v53 = vld [vmem:[#allocation2 + $0x40] sm:$0xf] }
 0x5d7   :  { %v12448_v3 = vcombine.low %v9742_v24, %v9752_v0  ;;  %v12460_v27 = vrot.slane %v10325_v1, 9  ;;  %v14690_v0 = vld [vmem:[#allocation2 + $0x4c] sm:$0xf]  ;;  %v10327_v7 = vld [vmem:[#allocation2 + $0x48] sm:$0xe] }
 0x5d8   :  { %13385 = vmatmul.mubr.bf16.gmra.mrb[116].mxu0 %v14520_v49  ;;  %v9771_v49 = vrot.slane %v9770_v12, 4  ;;  %v10454_v60 = vsel %vm17800_vm14, %v12458_v56, %v10453_v4  ;;  %v10463_v12 = vrot.slane %v14687_v22, 5  ;;  %v10481_v61 = vrot.slane %v14690_v0, 5 }
 0x5d9   :  { %13388 = vmatprep.mubr.bf16.mxu0 %v14521_v46  ;;  %v9766_v46 = vsel %vm17494_vm11, %v9761_v14, %v9765_v62  ;;  %v10324_v62 = vld [vmem:[#allocation2 + $0x24] sm:$0xe]  ;;  %v12462_v40 = vrot.slane %v10327_v7, 9 }
 0x5da   :  { %13705 = vmatmul.mubr.bf16.gmra.mrb[52].mxu1 %v12445_v16  ;;  %v9776_v26 = vsel %vm17494_vm11, %v9771_v49, %v9775_v35  ;;  %v10457_v16 = vsel %vm17800_vm14, %v10455_v21, %v10456_v18  ;;  %v12459_v59 = vrot.slane %v10324_v62, 9  ;;  %v10464_v29 = vsel %vm17800_vm14, %v10462_v43, %v10463_v12  ;;  %v10326_v35 = vld [vmem:[#allocation2 + $0x3c] sm:$0xe]  ;;  %v14692_v18 = vld [vmem:[#allocation2 + $0x50] sm:$0x1] }
 0x5db   :  { %13708 = vmatprep.mubr.bf16.mxu1 %v12446_v5  ;;  %v12449_v34 = vcombine.low %v9766_v46, %v9776_v26  ;;  %v10467_v5 = vrot.slane %v14686_v45, 5  ;;  %v12490_v47 = vcombine.low %v10454_v60, %v10457_v16  ;;  %v10483_v21 = vrot.slane %v10481_v61, 4  ;;  %v14691_v26 = vld [vmem:[#allocation2 + $0x44] sm:$0x1]  ;;  %v10328_v43 = vld [vmem:[#allocation2 + $0x54] sm:$0xe] }
 0x5dc   :  { %v10461_v4 = vsel %vm17800_vm14, %v12459_v59, %v10460_v52  ;;  %v12461_v46 = vrot.slane %v10326_v35, 9  ;;  %v10477_v56 = vrot.slane %v14691_v26, 5  ;;  %v14693_v52 = vld [vmem:[#allocation2 + $0x58] sm:$0xf]  ;;  %v14694_v45 = vld [vmem:[#allocation2 + $0x64] sm:$0xf] }
 0x5dd   :  { %v10469_v33 = vrot.slane %v10467_v5, 4  ;;  %v12491_v14 = vcombine.low %v10461_v4, %v10464_v29  ;;  %v10468_v49 = vsel %vm17800_vm14, %v12460_v27, %v10467_v5  ;;  %v10495_v5 = vrot.slane %v14694_v45, 5  ;;  %v10329_v59 = vld [vmem:[#allocation2 + $0x60] sm:$0xe]  ;;  %v14695_v27 = vld [vmem:[#allocation2 + $0x5c] sm:$0x1] }
 0x5de   :  { %v12463_v12 = vrot.slane %v10328_v43, 9  ;;  %v14696_v29 = vld [vmem:[#allocation2 + $0x68] sm:$0x1]  ;;  %v14698_v4 = vld [vmem:[#allocation2 + $0x7c] sm:$0xf] }
 0x5df   :  { %v10497_v22 = vrot.slane %v10495_v5, 4 }
 0x5e0   :  { %13389 = vmatmul.mubr.bf16.gmra.mrb[120].mxu0 %v14522_v48  ;;  %v10470_v48 = vrot.slane %v14688_v6, 5  ;;  %v10491_v6 = vrot.slane %v14695_v27, 5 }
 0x5e1   :  { %13392 = vmatprep.mubr.bf16.mxu0 %v14524_v42  ;;  %v10474_v42 = vrot.slane %v14689_v53, 5  ;;  %v10498_v53 = vrot.slane %v14696_v29, 5 }
 0x5e2   :  { %13709 = vmatmul.mubr.bf16.gmra.mrb[56].mxu1 %v12447_v50  ;;  %v10471_v24 = vsel %vm17800_vm14, %v10469_v33, %v10470_v48  ;;  %v12464_v48 = vrot.slane %v10329_v59, 9 }
 0x5e3   :  { %13712 = vmatprep.mubr.bf16.mxu1 %v12448_v3  ;;  %v12492_v50 = vcombine.low %v10468_v49, %v10471_v24  ;;  %v10476_v3 = vrot.slane %v10474_v42, 4  ;;  %v10475_v60 = vsel %vm17800_vm14, %v12461_v46, %v10474_v42  ;;  %v14697_v24 = vld [vmem:[#allocation2 + $0x70] sm:$0xf]  ;;  %v10331_v46 = vld [vmem:[#allocation2 + $0x78] sm:$0xe] }
 0x5e4   :  { %v10502_v0 = vrot.slane %v14697_v24, 5 }
 0x5e5   :  { %v10478_v13 = vsel %vm17800_vm14, %v10476_v3, %v10477_v56  ;;  %v10330_v3 = vld [vmem:[#allocation2 + $0x6c] sm:$0xe] }
 0x5e6   :  { %v12493_v62 = vcombine.low %v10475_v60, %v10478_v13  ;;  %v12465_v56 = vrot.slane %v10330_v3, 9  ;;  %v14700_v13 = vld [vmem:[#allocation2 + $0x80] sm:$0x1]  ;;  %v14702_v60 = vld [vmem:[#allocation2 + $0x94] sm:$0xf] }
 0x5e8   :  { %13393 = vmatmul.mubr.bf16.gmra.mrb[124].mxu0 %v14525_v15  ;;  %v10484_v15 = vrot.slane %v14692_v18, 5 }
 0x5ea   :  { %13713 = vmatmul.mubr.bf16.gmra.mrb[60].mxu1 %v12449_v34  ;;  %v10488_v34 = vrot.slane %v14693_v52, 5  ;;  %v10485_v16 = vsel %vm17800_vm14, %v10483_v21, %v10484_v15  ;;  %v10504_v21 = vrot.slane %v10502_v0, 4  ;;  %v12466_v15 = vrot.slane %v10331_v46, 9 }
 0x5eb   :  { %13732 = vmatprep.mubr.bf16.mxu1 %v12490_v47  ;;  %v10482_v47 = vsel %vm17800_vm14, %v12462_v40, %v10481_v61  ;;  %v10499_v61 = vsel %vm17800_vm14, %v10497_v22, %v10498_v53  ;;  %v14699_v40 = vld [vmem:[#allocation2 + $0x74] sm:$0x1]  ;;  %v10512_v52 = vrot.slane %v14700_v13, 5 }
 0x5ec   :  { %v12494_v1 = vcombine.low %v10482_v47, %v10485_v16  ;;  %v10490_v33 = vrot.slane %v10488_v34, 4  ;;  %v10489_v49 = vsel %vm17800_vm14, %v12463_v12, %v10488_v34  ;;  %v10505_v18 = vrot.slane %v14699_v40, 5  ;;  %v14701_v16 = vld [vmem:[#allocation2 + $0x88] sm:$0xf]  ;;  %v10333_v12 = vld [vmem:[#allocation2 + $0x90] sm:$0xe] }
 0x5ed   :  { %v10516_v45 = vrot.slane %v14701_v16, 5  ;;  %v10503_v47 = vsel %vm17800_vm14, %v12465_v56, %v10502_v0  ;;  %v12468_v53 = vrot.slane %v10333_v12, 9  ;;  %v10335_v56 = vld [vmem:[#allocation2 + $0xa8] sm:$0xe] }
 0x5ee   :  { %v10492_v42 = vsel %vm17800_vm14, %v10490_v33, %v10491_v6  ;;  %v10506_v34 = vsel %vm17800_vm14, %v10504_v21, %v10505_v18  ;;  %v10332_v33 = vld [vmem:[#allocation2 + $0x84] sm:$0xe]  ;;  %v10334_v21 = vld [vmem:[#allocation2 + $0x9c] sm:$0xe] }
 0x5ef   :  { %v12495_v35 = vcombine.low %v10489_v49, %v10492_v42  ;;  %v12497_v43 = vcombine.low %v10503_v47, %v10506_v34  ;;  %v10518_v22 = vrot.slane %v10516_v45, 4  ;;  %v12467_v6 = vrot.slane %v10332_v33, 9  ;;  %v14704_v42 = vld [vmem:[#allocation2 + $0x98] sm:$0x1]  ;;  %v14706_v49 = vld [vmem:[#allocation2 + $0xac] sm:$0xf] }
 0x5f0   :  { %v10526_v24 = vrot.slane %v14704_v42, 5  ;;  %v12469_v18 = vrot.slane %v10334_v21, 9  ;;  %v14708_v34 = vld [vmem:[#allocation2 + $0xb0] sm:$0x1]  ;;  %v14710_v47 = vld [vmem:[#allocation2 + $0xc4] sm:$0xf] }
 0x5f1   :  { %v10540_v16 = vrot.slane %v14708_v34, 5 }
 0x5f2   :  { %13733 = vmatmul.mubr.bf16.vlgmr.msra.gmra.mrb[0].mxu1 %v12491_v14  ;;  %v10509_v14 = vrot.slane %v14698_v4, 5 }
 0x5f3   :  { %13736 = vmatprep.mubr.bf16.mxu1 %v12492_v50  ;;  %v10496_v50 = vsel %vm17800_vm14, %v12464_v48, %v10495_v5  ;;  %v14703_v48 = vld [vmem:[#allocation2 + $0x8c] sm:$0x1] }
 0x5f4   :  { %v12496_v7 = vcombine.low %v10496_v50, %v10499_v61  ;;  %v10511_v26 = vrot.slane %v10509_v14, 4  ;;  %v10519_v29 = vrot.slane %v14703_v48, 5  ;;  %v14705_v61 = vld [vmem:[#allocation2 + $0xa0] sm:$0xf]  ;;  %v10517_v50 = vsel %vm17800_vm14, %v12467_v6, %v10516_v45 }
 0x5f5   :  { %v10530_v4 = vrot.slane %v14705_v61, 5  ;;  %v10337_v6 = vld [vmem:[#allocation2 + $0xc0] sm:$0xe] }
 0x5f6   :  { %v10513_v5 = vsel %vm17800_vm14, %v10511_v26, %v10512_v52  ;;  %v10520_v0 = vsel %vm17800_vm14, %v10518_v22, %v10519_v29  ;;  %v12470_v52 = vrot.slane %v10335_v56, 9  ;;  %v10336_v22 = vld [vmem:[#allocation2 + $0xb4] sm:$0xe]  ;;  %v12472_v61 = vrot.slane %v10337_v6, 9  ;;  %v10341_v6 = vld [vmem:[#allocation2 + $0x108] sm:$0xe] }
 0x5f7   :  { %v12499_v3 = vcombine.low %v10517_v50, %v10520_v0  ;;  %v10532_v26 = vrot.slane %v10530_v4, 4  ;;  %v12471_v29 = vrot.slane %v10336_v22, 9  ;;  %v10561_v56 = vrot.slane %v18442_v2, 5  ;;  %v10340_v22 = vld [vmem:[#allocation2 + $0xfc] sm:$0xe] }
 0x5fa   :  { %13737 = vmatmul.mubr.bf16.gmra.mrb[4].mxu1 %v12493_v62  ;;  %v10523_v62 = vrot.slane %v14702_v60, 5 }
 0x5fb   :  { %13740 = vmatprep.mubr.bf16.mxu1 %v12494_v1  ;;  %v10510_v1 = vsel %vm17800_vm14, %v12466_v15, %v10509_v14  ;;  %v14707_v15 = vld [vmem:[#allocation2 + $0xa4] sm:$0x1] }
 0x5fc   :  { %v12498_v59 = vcombine.low %v10510_v1, %v10513_v5  ;;  %v10525_v27 = vrot.slane %v10523_v62, 4  ;;  %v10533_v13 = vrot.slane %v14707_v15, 5  ;;  %v14709_v5 = vld [vmem:[#allocation2 + $0xb8] sm:$0xf]  ;;  %v10531_v1 = vsel %vm17800_vm14, %v12469_v18, %v10530_v4  ;;  %v10338_v4 = vld [vmem:[#allocation2 + $0xcc] sm:$0xe] }
 0x5fd   :  { %v10544_v60 = vrot.slane %v14709_v5, 5  ;;  %v14715_v5 = vld [vmem:[#allocation2 + $0xf8] sm:$0x1] }
 0x5fe   :  { %v10527_v14 = vsel %vm17800_vm14, %v10525_v27, %v10526_v24  ;;  %v10534_v45 = vsel %vm17800_vm14, %v10532_v26, %v10533_v13  ;;  %v14712_v24 = vld [vmem:[#allocation2 + $0xd0] sm:$0xf] }
 0x5ff   :  { %v12501_v33 = vcombine.low %v10531_v1, %v10534_v45  ;;  %v10546_v27 = vrot.slane %v10544_v60, 4  ;;  %v10558_v0 = vrot.slane %v14712_v24, 5  ;;  %v10545_v21 = vsel %vm17800_vm14, %v12471_v29, %v10544_v60  ;;  %v10339_v13 = vld [vmem:[#allocation2 + $0xf0] sm:$0xe]  ;;  %v14717_v1 = vld [vmem:[#allocation2 + $0x10c] sm:$0xf] }
 0x600   :  { %v12474_v45 = vrot.slane %v10339_v13, 9  ;;  %v10568_v60 = vrot.slane %v14715_v5, 5  ;;  %v12475_v29 = vrot.slane %v10340_v22, 9  ;;  %v12476_v24 = vrot.slane %v10341_v6, 9 }
 0x601   :  { %v10560_v26 = vrot.slane %v10558_v0, 4 }
 0x602   :  { %13741 = vmatmul.mubr.bf16.gmra.mrb[8].mxu1 %v12495_v35  ;;  %v10537_v35 = vrot.slane %v14706_v49, 5 }
 0x603   :  { %13744 = vmatprep.mubr.bf16.mxu1 %v12496_v7  ;;  %v10524_v7 = vsel %vm17800_vm14, %v12468_v53, %v10523_v62  ;;  %v14711_v53 = vld [vmem:[#allocation2 + $0xbc] sm:$0x1] }
 0x604   :  { %v12500_v46 = vcombine.low %v10524_v7, %v10527_v14  ;;  %v10539_v40 = vrot.slane %v10537_v35, 4  ;;  %v10547_v42 = vrot.slane %v14711_v53, 5  ;;  %v14713_v14 = vld [vmem:[#allocation2 + $0xc8] sm:$0x1]  ;;  %v14718_v53 = vld [vmem:[#allocation2 + $0x104] sm:$0x1] }
 0x605   :  { %v10554_v49 = vrot.slane %v14713_v14, 5  ;;  %v10586_v14 = vrot.slane %v18472_v28, 5 }
 0x606   :  { %v10541_v62 = vsel %vm17800_vm14, %v10539_v40, %v10540_v16  ;;  %v10548_v50 = vsel %vm17800_vm14, %v10546_v27, %v10547_v42  ;;  %v10562_v16 = vsel %vm17800_vm14, %v10560_v26, %v10561_v56  ;;  %v10575_v42 = vrot.slane %v14718_v53, 5 }
 0x607   :  { %v12503_v40 = vcombine.low %v10545_v21, %v10548_v50  ;;  %v10589_v56 = vrot.slane %v18518_v31, 5 }
 0x60a   :  { %13745 = vmatmul.mubr.bf16.gmra.mrb[12].mxu1 %v12497_v43  ;;  %v10551_v43 = vrot.slane %v14710_v47, 5 }
 0x60b   :  { %13748 = vmatprep.mubr.bf16.mxu1 %v12498_v59  ;;  %v10538_v59 = vsel %vm17800_vm14, %v12470_v52, %v10537_v35 }
 0x60c   :  { %v12502_v12 = vcombine.low %v10538_v59, %v10541_v62  ;;  %v10553_v48 = vrot.slane %v10551_v43, 4  ;;  %v10552_v18 = vsel %vm17800_vm14, %v12472_v61, %v10551_v43  ;;  %v14716_v62 = vld [vmem:[#allocation2 + $0x100] sm:$0xf] }
 0x60d   :  { %v10572_v2 = vrot.slane %v14716_v62, 5 }
 0x60e   :  { %v10555_v35 = vsel %vm17800_vm14, %v10553_v48, %v10554_v49 }
 0x60f   :  { %v12504_v15 = vcombine.low %v10552_v18, %v10555_v35  ;;  %v10574_v27 = vrot.slane %v10572_v2, 4  ;;  %v10573_v50 = vsel %vm17800_vm14, %v12475_v29, %v10572_v2  ;;  %v10603_v2 = vrot.slane %v18547_v39, 5 }
 0x611   :  { %v10576_v61 = vsel %vm17800_vm14, %v10574_v27, %v10575_v42  ;;  %v10346_v27 = vld [vmem:[#allocation2 + $0x144] sm:$0xe] }
 0x612   :  { %13749 = vmatmul.mubr.bf16.gmra.mrb[16].mxu1 %v12499_v3  ;;  %v14714_v3 = vld [vmem:[#allocation2 + $0xf4] sm:$0xf]  ;;  %v12507_v35 = vcombine.low %v10573_v50, %v10576_v61  ;;  %v12481_v42 = vrot.slane %v10346_v27, 9  ;;  %v10624_v61 = vrot.slane %v18588_v38, 5  ;;  %v10348_v38 = vld [vmem:[#allocation2 + $0x15c] sm:$0xe] }
 0x613   :  { %13752 = vmatprep.mubr.bf16.mxu1 %v12500_v46  ;;  %v10565_v7 = vrot.slane %v14714_v3, 5  ;;  %v12473_v46 = vrot.slane %v10338_v4, 9  ;;  %v10593_v4 = vrot.slane %v18483_v30, 5  ;;  %v10596_v30 = vrot.slane %v18526_v9, 5 }
 0x615   :  { %v10567_v52 = vrot.slane %v10565_v7, 4  ;;  %v10559_v34 = vsel %vm17800_vm14, %v12473_v46, %v10558_v0  ;;  %v10566_v59 = vsel %vm17800_vm14, %v12474_v45, %v10565_v7  ;;  %v10582_v0 = vrot.slane %v18485_v58, 5  ;;  %v10342_v7 = vld [vmem:[#allocation2 + $0x114] sm:$0xe]  ;;  %v10343_v46 = vld [vmem:[#allocation2 + $0x120] sm:$0xe] }
 0x616   :  { %v12505_v47 = vcombine.low %v10559_v34, %v10562_v16  ;;  %v10588_v58 = vrot.slane %v10586_v14, 4  ;;  %v10595_v26 = vrot.slane %v10593_v4, 4  ;;  %v12477_v28 = vrot.slane %v10342_v7, 9  ;;  %v10344_v45 = vld [vmem:[#allocation2 + $0x12c] sm:$0xe] }
 0x617   :  { %v10569_v43 = vsel %vm17800_vm14, %v10567_v52, %v10568_v60  ;;  %v10607_v52 = vrot.slane %v18524_v10, 5  ;;  %v10345_v60 = vld [vmem:[#allocation2 + $0x138] sm:$0xe]  ;;  %v10610_v10 = vrot.slane %v18560_v37, 5 }
 0x618   :  { %v10590_v18 = vsel %vm17800_vm14, %v10588_v58, %v10589_v56  ;;  %v10597_v13 = vsel %vm17800_vm14, %v10595_v26, %v10596_v30  ;;  %v10587_v34 = vsel %vm17800_vm14, %v12477_v28, %v10586_v14  ;;  %v12483_v56 = vrot.slane %v10348_v38, 9 }
 0x619   :  { %v12509_v16 = vcombine.low %v10587_v34, %v10590_v18  ;;  %v10609_v62 = vrot.slane %v10607_v52, 4  ;;  %v10638_v18 = vrot.slane %v18617_v25, 5  ;;  %v10350_v25 = vld [vmem:[#allocation2 + $0x174] sm:$0xe] }
 0x61a   :  { %13753 = vmatmul.mubr.bf16.gmra.mrb[20].mxu1 %v12501_v33  ;;  %v10579_v33 = vrot.slane %v14717_v1, 5  ;;  %v10614_v1 = vrot.slane %v18543_v44, 5 }
 0x61b   :  { %13756 = vmatprep.mubr.bf16.mxu1 %v12502_v12  ;;  %v12506_v12 = vcombine.low %v10566_v59, %v10569_v43  ;;  %v10621_v59 = vrot.slane %v18566_v51, 5  ;;  %v10617_v51 = vrot.slane %v18571_v19, 5 }
 0x61c   :  { %v10581_v48 = vrot.slane %v10579_v33, 4  ;;  %v10580_v3 = vsel %vm17800_vm14, %v12476_v24, %v10579_v33  ;;  %v10611_v33 = vsel %vm17800_vm14, %v10609_v62, %v10610_v10  ;;  %v10616_v37 = vrot.slane %v10614_v1, 4 }
 0x61d   :  { %v10623_v44 = vrot.slane %v10621_v59, 4  ;;  %v10615_v19 = vsel %vm17800_vm14, %v12481_v42, %v10614_v1 }
 0x61e   :  { %v10583_v49 = vsel %vm17800_vm14, %v10581_v48, %v10582_v0  ;;  %v10347_v48 = vld [vmem:[#allocation2 + $0x150] sm:$0xe] }
 0x61f   :  { %v12508_v21 = vcombine.low %v10580_v3, %v10583_v49  ;;  %v12482_v0 = vrot.slane %v10347_v48, 9  ;;  %v10618_v49 = vsel %vm17800_vm14, %v10616_v37, %v10617_v51  ;;  %v10625_v50 = vsel %vm17800_vm14, %v10623_v44, %v10624_v61  ;;  %v10354_v48 = vld [vmem:[#allocation2 + $0x1a4] sm:$0xe]  ;;  %v21148_v61 = vld [vmem:[#allocation48_spill] sm:$0xff] }
 0x620   :  { %v12513_v3 = vcombine.low %v10615_v19, %v10618_v49  ;;  %v12489_v42 = vrot.slane %v10354_v48, 9  ;;  %v21149_v49 = vcombine.low %v18454_v8, %v21148_v61 }
 0x621   :  { %v10622_v7 = vsel %vm17800_vm14, %v12482_v0, %v10621_v59  ;;  %v10673_v0 = vrot.slane %v18673_v36, 5 }
 0x622   :  { %13757 = vmatmul.mubr.bf16.gmra.mrb[24].mxu1 %v12503_v40  ;;  %v12478_v40 = vrot.slane %v10343_v46, 9  ;;  %v10349_v46 = vld [vmem:[#allocation2 + $0x168] sm:$0xe] }
 0x623   :  { %13760 = vmatprep.mubr.bf16.mxu1 %v12504_v15  ;;  %v10600_v15 = vrot.slane %v18512_v20, 5  ;;  %v12479_v20 = vrot.slane %v10344_v45, 9  ;;  %v12484_v30 = vrot.slane %v10349_v46, 9 }
 0x624   :  { %v10594_v31 = vsel %vm17800_vm14, %v12478_v40, %v10593_v4  ;;  %v10628_v4 = vrot.slane %v18576_v54, 5 }
 0x625   :  { %v12510_v5 = vcombine.low %v10594_v31, %v10597_v13  ;;  %v10602_v9 = vrot.slane %v10600_v15, 4  ;;  %v10601_v22 = vsel %vm17800_vm14, %v12479_v20, %v10600_v15 }
 0x626   :  { %v10630_v58 = vrot.slane %v10628_v4, 4 }
 0x627   :  { %v10604_v43 = vsel %vm17800_vm14, %v10602_v9, %v10603_v2  ;;  %v12485_v2 = vrot.slane %v10350_v25, 9 }
 0x62a   :  { %13761 = vmatmul.mubr.bf16.gmra.mrb[28].mxu1 %v12505_v47  ;;  %v12480_v47 = vrot.slane %v10345_v60, 9  ;;  %v10351_v60 = vld [vmem:[#allocation2 + $0x180] sm:$0xe] }
 0x62b   :  { %13764 = vmatprep.mubr.bf16.mxu1 %v12506_v12  ;;  %v12511_v12 = vcombine.low %v10601_v22, %v10604_v43  ;;  %v12486_v10 = vrot.slane %v10351_v60, 9  ;;  %v10652_v43 = vrot.slane %v18649_v32, 5 }
 0x62c   :  { %v10608_v39 = vsel %vm17800_vm14, %v12480_v47, %v10607_v52  ;;  %v10642_v52 = vrot.slane %v18610_v17, 5 }
 0x62d   :  { %v12512_v6 = vcombine.low %v10608_v39, %v10611_v33 }
 0x62e   :  { %v10644_v9 = vrot.slane %v10642_v52, 4  ;;  %v10643_v22 = vsel %vm17800_vm14, %v12485_v2, %v10642_v52 }
 0x632   :  { %13765 = vmatmul.mubr.bf16.gmra.mrb[32].mxu1 %v12507_v35  ;;  %v10635_v35 = vrot.slane %v18586_v11, 5  ;;  %v10631_v11 = vrot.slane %v18612_v55, 5  ;;  %v10629_v55 = vsel %vm17800_vm14, %v12483_v56, %v10628_v4 }
 0x633   :  { %13768 = vmatprep.mubr.bf16.mxu1 %v12508_v21  ;;  %v12514_v21 = vcombine.low %v10622_v7, %v10625_v50  ;;  %v21150_v50 = vld [vmem:[#allocation49_spill] sm:$0xff] }
 0x634   :  { %v10637_v54 = vrot.slane %v10635_v35, 4  ;;  %v10632_v13 = vsel %vm17800_vm14, %v10630_v58, %v10631_v11  ;;  %v10636_v45 = vsel %vm17800_vm14, %v12484_v30, %v10635_v35  ;;  %v21151_v35 = vld [vmem:[#allocation50_spill] sm:$0xff] }
 0x635   :  { %v12515_v31 = vcombine.low %v10629_v55, %v10632_v13  ;;  %v21152_v19 = vcombine.low %v21150_v50, %v21151_v35 }
 0x636   :  { %v10639_v34 = vsel %vm17800_vm14, %v10637_v54, %v10638_v18 }
 0x63a   :  { %13769 = vmatmul.mubr.bf16.gmra.mrb[36].mxu1 %v12509_v16  ;;  %v10649_v16 = vrot.slane %v18615_v57, 5  ;;  %v10645_v57 = vrot.slane %v18633_v41, 5 }
 0x63b   :  { %13772 = vmatprep.mubr.bf16.mxu1 %v12510_v5  ;;  %v12516_v5 = vcombine.low %v10636_v45, %v10639_v34 }
 0x63c   :  { %v10651_v17 = vrot.slane %v10649_v16, 4  ;;  %v10646_v33 = vsel %vm17800_vm14, %v10644_v9, %v10645_v57  ;;  %v10650_v41 = vsel %vm17800_vm14, %v12486_v10, %v10649_v16 }
 0x63e   :  { %v10653_v59 = vsel %vm17800_vm14, %v10651_v17, %v10652_v43 }
 0x63f   :  { %v12518_v39 = vcombine.low %v10650_v41, %v10653_v59 }
 0x642   :  { %13773 = vmatmul.mubr.bf16.gmra.mrb[40].mxu1 %v12511_v12  ;;  %v12517_v12 = vcombine.low %v10643_v22, %v10646_v33 }
 0x643   :  { %v18792_v29 = vpop.f32.mrb[64].mxu0  ;;  %13776 = vmatprep.mubr.bf16.mxu1 %v12512_v6  ;;  %v10670_v6 = vrot.slane %v18657_v23, 5 }
 0x644   :  { %v18794_v53 = vpop.f32.mrb[65].mxu0 }
 0x645   :  { %v18797_v24 = vpop.f32.mrb[66].mxu0  ;;  %v10672_v51 = vrot.slane %v10670_v6, 4 }
 0x646   :  { %v18800_v14 = vpop.f32.mrb[67].mxu0 }
 0x647   :  { %v10674_v7 = vsel %vm17800_vm14, %v10672_v51, %v10673_v0 }
 0x64a   :  { %13777 = vmatmul.mubr.bf16.gmra.mrb[44].mxu1 %v12513_v3  ;;  %v10671_v3 = vsel %vm17800_vm14, %v12489_v42, %v10670_v6 }
 0x64b   :  { %v18812_v26 = vpop.f32.mrb[68].mxu0  ;;  %13780 = vmatprep.mubr.bf16.mxu1 %v12514_v21  ;;  %v12521_v8 = vcombine.low %v10671_v3, %v10674_v7 }
 0x64c   :  { %v18814_v28 = vpop.f32.mrb[69].mxu0 }
 0x64d   :  { %v18817_v40 = vpop.f32.mrb[70].mxu0 }
 0x64e   :  { %v18820_v15 = vpop.f32.mrb[71].mxu0 }
 0x652   :  { %13781 = vmatmul.mubr.bf16.gmra.mrb[48].mxu1 %v12515_v31 }
 0x653   :  { %v18832_v62 = vpop.f32.mrb[72].mxu0  ;;  %13784 = vmatprep.mubr.bf16.mxu1 %v12516_v5 }
 0x654   :  { %v18834_v20 = vpop.f32.mrb[73].mxu0 }
 0x655   :  { %v18837_v47 = vpop.f32.mrb[74].mxu0 }
 0x656   :  { %v18840_v1 = vpop.f32.mrb[75].mxu0 }
 0x65a   :  { %13785 = vmatmul.mubr.bf16.gmra.mrb[52].mxu1 %v12517_v12 }
 0x65b   :  { %v18850_v27 = vpop.f32.mrb[76].mxu0  ;;  %13788 = vmatprep.mubr.bf16.mxu1 %v12518_v39 }
 0x65c   :  { %v18852_v32 = vpop.f32.mrb[77].mxu0 }
 0x65d   :  { %v18855_v37 = vpop.f32.mrb[78].mxu0 }
 0x65e   :  { %v18857_v44 = vpop.f32.mrb[79].mxu0 }
 0x662   :  { %13789 = vmatmul.mubr.bf16.gmra.mrb[56].mxu1 %v21149_v49 }
 0x663   :  { %v18863_v4 = vpop.f32.mrb[80].mxu0  ;;  %13792 = vmatprep.mubr.bf16.mxu1 %v21152_v19 }
 0x664   :  { %v18868_v23 = vpop.f32.mrb[81].mxu0 }
 0x665   :  { %v18874_v38 = vpop.f32.mrb[82].mxu0 }
 0x666   :  { %v18876_v36 = vpop.f32.mrb[83].mxu0 }
 0x66a   :  { %13793 = vmatmul.mubr.bf16.gmra.mrb[60].mxu1 %v12521_v8 }
 0x66b   :  { %v18878_v21 = vpop.f32.mrb[84].mxu0 }
 0x66c   :  { %v18880_v58 = vpop.f32.mrb[85].mxu0 }
 0x66d   :  { %v18882_v46 = vpop.f32.mrb[86].mxu0 }
 0x66e   :  { %v18884_v54 = vpop.f32.mrb[87].mxu0 }
 0x673   :  { %v18886_v56 = vpop.f32.mrb[88].mxu0 }
 0x674   :  { %v18888_v11 = vpop.f32.mrb[89].mxu0 }
 0x675   :  { %v18890_v63 = vpop.f32.mrb[90].mxu0 }
 0x676   :  { %v18892_v30 = vpop.f32.mrb[91].mxu0 }
 0x67b   :  { %v18894_v18 = vpop.f32.mrb[92].mxu0 }
 0x67c   :  { %v18896_v13 = vpop.f32.mrb[93].mxu0 }
 0x67d   :  { %v18898_v52 = vpop.f32.mrb[94].mxu0 }
 0x67e   :  { %v18900_v34 = vpop.f32.mrb[95].mxu0 }
 0x683   :  { %v18902_v16 = vpop.f32.mrb[96].mxu0 }
 0x684   :  { %v18904_v55 = vpop.f32.mrb[97].mxu0 }
 0x685   :  { %v18906_v31 = vpop.f32.mrb[98].mxu0 }
 0x686   :  { %v18908_v45 = vpop.f32.mrb[99].mxu0 }
 0x68b   :  { %v18910_v25 = vpop.f32.mrb[100].mxu0 }
 0x68c   :  { %v18912_v5 = vpop.f32.mrb[101].mxu0 }
 0x68d   :  { %v18914_v9 = vpop.f32.mrb[102].mxu0 }
 0x68e   :  { %v18916_v60 = vpop.f32.mrb[103].mxu0 }
 0x693   :  { %v18918_v17 = vpop.f32.mrb[104].mxu0 }
 0x694   :  { %v18920_v2 = vpop.f32.mrb[105].mxu0 }
 0x695   :  { %v18922_v57 = vpop.f32.mrb[106].mxu0 }
 0x696   :  { %v18924_v10 = vpop.f32.mrb[107].mxu0 }
 0x69b   :  { %v18926_v43 = vpop.f32.mrb[108].mxu0 }
 0x69c   :  { %v18928_v33 = vpop.f32.mrb[109].mxu0 }
 0x69d   :  { %v18930_v59 = vpop.f32.mrb[110].mxu0 }
 0x69e   :  { %v18932_v22 = vpop.f32.mrb[111].mxu0 }
 0x6a3   :  { %v18934_v12 = vpop.f32.mrb[112].mxu0 }
 0x6a4   :  { %v18936_v41 = vpop.f32.mrb[113].mxu0 }
 0x6a5   :  { %v18938_v39 = vpop.f32.mrb[114].mxu0 }
 0x6a6   :  { %v18940_v6 = vpop.f32.mrb[115].mxu0 }
 0x6ab   :  { %v18942_v48 = vpop.f32.mrb[116].mxu0 }
 0x6ac   :  { %v18944_v42 = vpop.f32.mrb[117].mxu0 }
 0x6ad   :  { %21153 = vst [vmem:[#allocation35_spill] sm:$0xff] %v18944_v42  ;;  %v18946_v51 = vpop.f32.mrb[118].mxu0 }
 0x6ae   :  { %21154 = vst [vmem:[#allocation36_spill] sm:$0xff] %v18946_v51  ;;  %v18948_v0 = vpop.f32.mrb[119].mxu0 }
 0x6af   :  { %21155 = vst [vmem:[#allocation30_spill] sm:$0xff] %v18948_v0 }
 0x6b3   :  { %v18950_v61 = vpop.f32.mrb[120].mxu0 }
 0x6b4   :  { %21156 = vst [vmem:[#allocation37_spill] sm:$0xff] %v18950_v61  ;;  %v18952_v49 = vpop.f32.mrb[121].mxu0 }
 0x6b5   :  { %21157 = vst [vmem:[#allocation39_spill] sm:$0xff] %v18952_v49  ;;  %v18954_v50 = vpop.f32.mrb[122].mxu0 }
 0x6b6   :  { %21158 = vst [vmem:[#allocation40_spill] sm:$0xff] %v18954_v50  ;;  %v18956_v35 = vpop.f32.mrb[123].mxu0 }
 0x6b7   :  { %21159 = vst [vmem:[#allocation41_spill] sm:$0xff] %v18956_v35 }
 0x6bb   :  { %v18958_v19 = vpop.f32.mrb[124].mxu0 }
 0x6bc   :  { %21160 = vst [vmem:[#allocation42_spill] sm:$0xff] %v18958_v19  ;;  %v18960_v3 = vpop.f32.mrb[125].mxu0 }
 0x6bd   :  { %21161 = vst [vmem:[#allocation44_spill] sm:$0xff] %v18960_v3  ;;  %v18962_v7 = vpop.f32.mrb[126].mxu0 }
 0x6be   :  { %21162 = vst [vmem:[#allocation45_spill] sm:$0xff] %v18962_v7  ;;  %v18964_v8 = vpop.f32.mrb[127].mxu0 }
 0x6bf   :  { %21163 = vst [vmem:[#allocation46_spill] sm:$0xff] %v18964_v8 }
 0x6c5   :  { %v13734_v42 = vpop.f32.mrb[0].mxu1 }
 0x6c6   :  { %v18967_v51 = vadd.f32 %v13734_v42, %v18792_v29  ;;  %v10902_v0 = vpop.f32.mrb[1].mxu1 }
 0x6c7   :  { %v18970_v61 = vadd.f32 %v10902_v0, %v18794_v53  ;;  %v13735_v49 = vpop.f32.mrb[2].mxu1 }
 0x6c8   :  { %v18973_v50 = vadd.f32 %v13735_v49, %v18797_v24  ;;  %v10905_v35 = vpop.f32.mrb[3].mxu1 }
 0x6c9   :  { %v18976_v19 = vadd.f32 %v10905_v35, %v18800_v14 }
 0x6cb   :  { %21164 = vst [vmem:[#allocation47_spill] sm:$0xff] %v18976_v19  ;;  %v11223_v7 = vadd.f32 %v18976_v19, %v18970_v61 }
 0x6cd   :  { %v11224_v8 = vadd.f32 %v18967_v51, %v11223_v7  ;;  %v13738_v3 = vpop.f32.mrb[4].mxu1 }
 0x6ce   :  { %v18982_v29 = vadd.f32 %v13738_v3, %v18812_v26  ;;  %v10918_v42 = vpop.f32.mrb[5].mxu1 }
 0x6cf   :  { %v18985_v53 = vadd.f32 %v10918_v42, %v18814_v28  ;;  %v11225_v24 = vadd.f32 %v18973_v50, %v11224_v8  ;;  %v13739_v0 = vpop.f32.mrb[6].mxu1 }
 0x6d0   :  { %v18989_v49 = vadd.f32 %v13739_v0, %v18817_v40  ;;  %v10921_v14 = vpop.f32.mrb[7].mxu1 }
 0x6d1   :  { %v11226_v35 = vadd.f32 %v18985_v53, %v11225_v24  ;;  %v18993_v19 = vadd.f32 %v10921_v14, %v18820_v15 }
 0x6d3   :  { %v11227_v7 = vadd.f32 %v18993_v19, %v11226_v35 }
 0x6d5   :  { %v11228_v26 = vadd.f32 %v18982_v29, %v11227_v7  ;;  %v13742_v3 = vpop.f32.mrb[8].mxu1 }
 0x6d6   :  { %v18998_v28 = vadd.f32 %v13742_v3, %v18832_v62  ;;  %v10934_v42 = vpop.f32.mrb[9].mxu1 }
 0x6d7   :  { %v19001_v8 = vadd.f32 %v10934_v42, %v18834_v20  ;;  %v11229_v40 = vadd.f32 %v18989_v49, %v11228_v26  ;;  %v13743_v0 = vpop.f32.mrb[10].mxu1 }
 0x6d8   :  { %v19005_v24 = vadd.f32 %v13743_v0, %v18837_v47  ;;  %v10937_v15 = vpop.f32.mrb[11].mxu1 }
 0x6d9   :  { %v11230_v14 = vadd.f32 %v19001_v8, %v11229_v40  ;;  %v19009_v35 = vadd.f32 %v10937_v15, %v18840_v1 }
 0x6db   :  { %v11231_v7 = vadd.f32 %v19009_v35, %v11230_v14 }
 0x6dd   :  { %v11232_v62 = vadd.f32 %v18998_v28, %v11231_v7  ;;  %v13746_v3 = vpop.f32.mrb[12].mxu1 }
 0x6de   :  { %v19014_v20 = vadd.f32 %v13746_v3, %v18850_v27  ;;  %v10950_v42 = vpop.f32.mrb[13].mxu1 }
 0x6df   :  { %v19017_v26 = vadd.f32 %v10950_v42, %v18852_v32  ;;  %v11233_v47 = vadd.f32 %v19005_v24, %v11232_v62  ;;  %v13747_v0 = vpop.f32.mrb[14].mxu1 }
 0x6e0   :  { %v19021_v40 = vadd.f32 %v13747_v0, %v18855_v37  ;;  %v10953_v1 = vpop.f32.mrb[15].mxu1 }
 0x6e1   :  { %v11234_v15 = vadd.f32 %v19017_v26, %v11233_v47  ;;  %v19025_v14 = vadd.f32 %v10953_v1, %v18857_v44 }
 0x6e3   :  { %v11235_v7 = vadd.f32 %v19025_v14, %v11234_v15 }
 0x6e5   :  { %v11236_v27 = vadd.f32 %v19014_v20, %v11235_v7  ;;  %v13750_v3 = vpop.f32.mrb[16].mxu1 }
 0x6e6   :  { %v19030_v32 = vadd.f32 %v13750_v3, %v18863_v4  ;;  %v10966_v42 = vpop.f32.mrb[17].mxu1 }
 0x6e7   :  { %v19033_v62 = vadd.f32 %v10966_v42, %v18868_v23  ;;  %v11237_v37 = vadd.f32 %v19021_v40, %v11236_v27  ;;  %v13751_v0 = vpop.f32.mrb[18].mxu1 }
 0x6e8   :  { %v19037_v47 = vadd.f32 %v13751_v0, %v18874_v38  ;;  %v10969_v44 = vpop.f32.mrb[19].mxu1 }
 0x6e9   :  { %v11238_v1 = vadd.f32 %v19033_v62, %v11237_v37  ;;  %v19041_v15 = vadd.f32 %v10969_v44, %v18876_v36 }
 0x6eb   :  { %v11239_v7 = vadd.f32 %v19041_v15, %v11238_v1 }
 0x6ed   :  { %v11240_v4 = vadd.f32 %v19030_v32, %v11239_v7  ;;  %v13754_v3 = vpop.f32.mrb[20].mxu1 }
 0x6ee   :  { %v19046_v23 = vadd.f32 %v13754_v3, %v18878_v21  ;;  %v10982_v42 = vpop.f32.mrb[21].mxu1 }
 0x6ef   :  { %v19049_v27 = vadd.f32 %v10982_v42, %v18880_v58  ;;  %v11241_v38 = vadd.f32 %v19037_v47, %v11240_v4  ;;  %v13755_v0 = vpop.f32.mrb[22].mxu1 }
 0x6f0   :  { %v19053_v37 = vadd.f32 %v13755_v0, %v18882_v46  ;;  %v10985_v36 = vpop.f32.mrb[23].mxu1 }
 0x6f1   :  { %v11242_v44 = vadd.f32 %v19049_v27, %v11241_v38  ;;  %v19057_v1 = vadd.f32 %v10985_v36, %v18884_v54 }
 0x6f3   :  { %v11243_v7 = vadd.f32 %v19057_v1, %v11242_v44 }
 0x6f5   :  { %v11244_v21 = vadd.f32 %v19046_v23, %v11243_v7  ;;  %v13758_v3 = vpop.f32.mrb[24].mxu1 }
 0x6f6   :  { %v19062_v58 = vadd.f32 %v13758_v3, %v18886_v56  ;;  %v10998_v42 = vpop.f32.mrb[25].mxu1 }
 0x6f7   :  { %v19065_v4 = vadd.f32 %v10998_v42, %v18888_v11  ;;  %v11245_v46 = vadd.f32 %v19053_v37, %v11244_v21  ;;  %v13759_v0 = vpop.f32.mrb[26].mxu1 }
 0x6f8   :  { %v19069_v38 = vadd.f32 %v13759_v0, %v18890_v63  ;;  %v11001_v54 = vpop.f32.mrb[27].mxu1 }
 0x6f9   :  { %v11246_v36 = vadd.f32 %v19065_v4, %v11245_v46  ;;  %v19073_v44 = vadd.f32 %v11001_v54, %v18892_v30 }
 0x6fa   :  { %21165 = vst [vmem:[#allocation24_spill] sm:$0xff] %v19069_v38 }
 0x6fb   :  { %v11247_v7 = vadd.f32 %v19073_v44, %v11246_v36 }
 0x6fd   :  { %v11248_v56 = vadd.f32 %v19062_v58, %v11247_v7  ;;  %v13762_v3 = vpop.f32.mrb[28].mxu1 }
 0x6fe   :  { %v19078_v11 = vadd.f32 %v13762_v3, %v18894_v18  ;;  %v11014_v42 = vpop.f32.mrb[29].mxu1 }
 0x6ff   :  { %v19081_v21 = vadd.f32 %v11014_v42, %v18896_v13  ;;  %v11249_v63 = vadd.f32 %v19069_v38, %v11248_v56  ;;  %v13763_v0 = vpop.f32.mrb[30].mxu1 }
 0x700   :  { %21166 = vst [vmem:[#allocation51_spill] sm:$0xff] %v19078_v11  ;;  %v19085_v46 = vadd.f32 %v13763_v0, %v18898_v52  ;;  %v11017_v30 = vpop.f32.mrb[31].mxu1 }
 0x701   :  { %21167 = vst [vmem:[#allocation52_spill] sm:$0xff] %v19081_v21  ;;  %v11250_v54 = vadd.f32 %v19081_v21, %v11249_v63  ;;  %v19089_v36 = vadd.f32 %v11017_v30, %v18900_v34 }
 0x702   :  { %21168 = vst [vmem:[#allocation53_spill] sm:$0xff] %v19085_v46 }
 0x703   :  { %21169 = vst [vmem:[#allocation54_spill] sm:$0xff] %v19089_v36  ;;  %v11251_v7 = vadd.f32 %v19089_v36, %v11250_v54  ;;  %v21193_v36 = vld [vmem:[#allocation46_spill] sm:$0xff] }
 0x705   :  { %v11252_v18 = vadd.f32 %v19078_v11, %v11251_v7  ;;  %v13766_v3 = vpop.f32.mrb[32].mxu1  ;;  %v21192_v11 = vld [vmem:[#allocation45_spill] sm:$0xff] }
 0x706   :  { %v19094_v13 = vadd.f32 %v13766_v3, %v18902_v16  ;;  %v11030_v42 = vpop.f32.mrb[33].mxu1 }
 0x707   :  { %v19097_v56 = vadd.f32 %v11030_v42, %v18904_v55  ;;  %v11253_v52 = vadd.f32 %v19085_v46, %v11252_v18  ;;  %v13767_v0 = vpop.f32.mrb[34].mxu1 }
 0x708   :  { %21170 = vst [vmem:[#allocation55_spill] sm:$0xff] %v19094_v13  ;;  %v19101_v63 = vadd.f32 %v13767_v0, %v18906_v31  ;;  %v11033_v34 = vpop.f32.mrb[35].mxu1 }
 0x709   :  { %21171 = vst [vmem:[#allocation56_spill] sm:$0xff] %v19097_v56  ;;  %v11254_v30 = vadd.f32 %v19097_v56, %v11253_v52  ;;  %v19105_v54 = vadd.f32 %v11033_v34, %v18908_v45 }
 0x70a   :  { %21172 = vst [vmem:[#allocation57_spill] sm:$0xff] %v19101_v63 }
 0x70b   :  { %21173 = vst [vmem:[#allocation58_spill] sm:$0xff] %v19105_v54  ;;  %v11255_v7 = vadd.f32 %v19105_v54, %v11254_v30  ;;  %v21189_v54 = vld [vmem:[#allocation41_spill] sm:$0xff] }
 0x70d   :  { %v11256_v16 = vadd.f32 %v19094_v13, %v11255_v7  ;;  %v13770_v3 = vpop.f32.mrb[36].mxu1  ;;  %v21188_v13 = vld [vmem:[#allocation40_spill] sm:$0xff] }
 0x70e   :  { %v19110_v55 = vadd.f32 %v13770_v3, %v18910_v25  ;;  %v11046_v42 = vpop.f32.mrb[37].mxu1 }
 0x70f   :  { %v19113_v18 = vadd.f32 %v11046_v42, %v18912_v5  ;;  %v11257_v31 = vadd.f32 %v19101_v63, %v11256_v16  ;;  %v13771_v0 = vpop.f32.mrb[38].mxu1 }
 0x710   :  { %21174 = vst [vmem:[#allocation59_spill] sm:$0xff] %v19110_v55  ;;  %v19117_v52 = vadd.f32 %v13771_v0, %v18914_v9  ;;  %v11049_v45 = vpop.f32.mrb[39].mxu1 }
 0x711   :  { %21175 = vst [vmem:[#allocation60_spill] sm:$0xff] %v19113_v18  ;;  %v11258_v34 = vadd.f32 %v19113_v18, %v11257_v31  ;;  %v19121_v30 = vadd.f32 %v11049_v45, %v18916_v60 }
 0x712   :  { %21176 = vst [vmem:[#allocation61_spill] sm:$0xff] %v19117_v52 }
 0x713   :  { %21177 = vst [vmem:[#allocation62_spill] sm:$0xff] %v19121_v30  ;;  %v11259_v7 = vadd.f32 %v19121_v30, %v11258_v34  ;;  %v21185_v30 = vld [vmem:[#allocation30_spill] sm:$0xff] }
 0x715   :  { %v11260_v25 = vadd.f32 %v19110_v55, %v11259_v7  ;;  %v13774_v3 = vpop.f32.mrb[40].mxu1 }
 0x716   :  { %v19126_v5 = vadd.f32 %v13774_v3, %v18918_v17  ;;  %v11062_v42 = vpop.f32.mrb[41].mxu1 }
 0x717   :  { %v19129_v16 = vadd.f32 %v11062_v42, %v18920_v2  ;;  %v11261_v9 = vadd.f32 %v19117_v52, %v11260_v25  ;;  %v13775_v0 = vpop.f32.mrb[42].mxu1 }
 0x718   :  { %21178 = vst [vmem:[#allocation63_spill] sm:$0xff] %v19126_v5  ;;  %v19133_v31 = vadd.f32 %v13775_v0, %v18922_v57  ;;  %v11065_v60 = vpop.f32.mrb[43].mxu1 }
 0x719   :  { %21179 = vst [vmem:[#allocation17_spill] sm:$0xff] %v19129_v16  ;;  %v11262_v45 = vadd.f32 %v19129_v16, %v11261_v9  ;;  %v19137_v34 = vadd.f32 %v11065_v60, %v18924_v10  ;;  %v21183_v16 = vld [vmem:[#allocation35_spill] sm:$0xff] }
 0x71a   :  { %21180 = vst [vmem:[#allocation29_spill] sm:$0xff] %v19133_v31 }
 0x71b   :  { %21181 = vst [vmem:[#allocation64_spill] sm:$0xff] %v19137_v34  ;;  %v11263_v7 = vadd.f32 %v19137_v34, %v11262_v45 }
 0x71d   :  { %v11264_v17 = vadd.f32 %v19126_v5, %v11263_v7  ;;  %v13778_v3 = vpop.f32.mrb[44].mxu1 }
 0x71e   :  { %v19142_v2 = vadd.f32 %v13778_v3, %v18926_v43  ;;  %v11078_v42 = vpop.f32.mrb[45].mxu1 }
 0x71f   :  { %v19145_v25 = vadd.f32 %v11078_v42, %v18928_v33  ;;  %v11265_v57 = vadd.f32 %v19133_v31, %v11264_v17  ;;  %v13779_v0 = vpop.f32.mrb[46].mxu1 }
 0x720   :  { %v19149_v9 = vadd.f32 %v13779_v0, %v18930_v59  ;;  %v11081_v10 = vpop.f32.mrb[47].mxu1 }
 0x721   :  { %21182 = vst [vmem:[#allocation65_spill] sm:$0xff] %v19145_v25  ;;  %v11266_v60 = vadd.f32 %v19145_v25, %v11265_v57  ;;  %v13843_v45 = vadd.f32 %v11081_v10, %v18932_v22 }
 0x723   :  { %v11267_v7 = vadd.f32 %v13843_v45, %v11266_v60 }
 0x725   :  { %v11268_v5 = vadd.f32 %v19142_v2, %v11267_v7  ;;  %v13782_v43 = vpop.f32.mrb[48].mxu1 }
 0x726   :  { %v13844_v3 = vadd.f32 %v13782_v43, %v18934_v12  ;;  %v11094_v34 = vpop.f32.mrb[49].mxu1 }
 0x727   :  { %v13845_v33 = vadd.f32 %v11094_v34, %v18936_v41  ;;  %v11269_v17 = vadd.f32 %v19149_v9, %v11268_v5  ;;  %v13783_v42 = vpop.f32.mrb[50].mxu1  ;;  %v21184_v41 = vld [vmem:[#allocation36_spill] sm:$0xff] }
 0x728   :  { %v13846_v59 = vadd.f32 %v13783_v42, %v18938_v39  ;;  %v11097_v0 = vpop.f32.mrb[51].mxu1 }
 0x729   :  { %v11270_v31 = vadd.f32 %v13845_v33, %v11269_v17  ;;  %v13847_v57 = vadd.f32 %v11097_v0, %v18940_v6  ;;  %v21186_v6 = vld [vmem:[#allocation37_spill] sm:$0xff]  ;;  %v21187_v0 = vld [vmem:[#allocation39_spill] sm:$0xff] }
 0x72b   :  { %v11271_v25 = vadd.f32 %v13847_v57, %v11270_v31 }
 0x72d   :  { %v11272_v22 = vadd.f32 %v13844_v3, %v11271_v25  ;;  %v13786_v10 = vpop.f32.mrb[52].mxu1 }
 0x72e   :  { %v13848_v60 = vadd.f32 %v13786_v10, %v18942_v48  ;;  %v11110_v7 = vpop.f32.mrb[53].mxu1 }
 0x72f   :  { %v13849_v12 = vadd.f32 %v11110_v7, %v21183_v16  ;;  %v11273_v43 = vadd.f32 %v13846_v59, %v11272_v22  ;;  %v13787_v52 = vpop.f32.mrb[54].mxu1 }
 0x730   :  { %v13850_v34 = vadd.f32 %v13787_v52, %v21184_v41  ;;  %v11113_v5 = vpop.f32.mrb[55].mxu1 }
 0x731   :  { %v11274_v55 = vadd.f32 %v13849_v12, %v11273_v43  ;;  %v13851_v39 = vadd.f32 %v11113_v5, %v21185_v30  ;;  %v21190_v30 = vld [vmem:[#allocation42_spill] sm:$0xff] }
 0x733   :  { %v11275_v42 = vadd.f32 %v13851_v39, %v11274_v55 }
 0x735   :  { %v11276_v17 = vadd.f32 %v13848_v60, %v11275_v42  ;;  %v13790_v18 = vpop.f32.mrb[56].mxu1  ;;  %v21191_v42 = vld [vmem:[#allocation44_spill] sm:$0xff] }
 0x736   :  { %v13852_v31 = vadd.f32 %v13790_v18, %v21186_v6  ;;  %v11126_v25 = vpop.f32.mrb[57].mxu1 }
 0x737   :  { %v13853_v63 = vadd.f32 %v11126_v25, %v21187_v0  ;;  %v11277_v48 = vadd.f32 %v13850_v34, %v11276_v17  ;;  %v13791_v10 = vpop.f32.mrb[58].mxu1 }
 0x738   :  { %v13854_v16 = vadd.f32 %v13791_v10, %v21188_v13  ;;  %v11129_v22 = vpop.f32.mrb[59].mxu1 }
 0x739   :  { %v11278_v7 = vadd.f32 %v13853_v63, %v11277_v48  ;;  %v13855_v52 = vadd.f32 %v11129_v22, %v21189_v54 }
 0x73b   :  { %v11279_v41 = vadd.f32 %v13855_v52, %v11278_v7 }
 0x73d   :  { %v11280_v43 = vadd.f32 %v13852_v31, %v11279_v41  ;;  %v13794_v56 = vpop.f32.mrb[60].mxu1 }
 0x73e   :  { %v13856_v55 = vadd.f32 %v13794_v56, %v21190_v30  ;;  %v11142_v5 = vpop.f32.mrb[61].mxu1 }
 0x73f   :  { %v13857_v46 = vadd.f32 %v11142_v5, %v21191_v42  ;;  %v11281_v18 = vadd.f32 %v13854_v16, %v11280_v43  ;;  %v13795_v6 = vpop.f32.mrb[62].mxu1 }
 0x740   :  { %v13858_v25 = vadd.f32 %v13795_v6, %v21192_v11  ;;  %v11145_v17 = vpop.f32.mrb[63].mxu1 }
 0x741   :  { %v11282_v0 = vadd.f32 %v13857_v46, %v11281_v18  ;;  %v13859_v13 = vadd.f32 %v11145_v17, %v21193_v36 }
 0x743   :  { %v11283_v10 = vadd.f32 %v13859_v13, %v11282_v0 }
 0x745   :  { %v11284_v48 = vadd.f32 %v13856_v55, %v11283_v10 }
 0x747   :  { %v11285_v21 = vadd.f32 %v13858_v25, %v11284_v48 }
 0x749   :  { %v11286_v54 = vrot.slane %v11285_v21, 4 }
 0x74b   :  { %v11287_v22 = vadd.f32 %v11286_v54, %v11285_v21 }
 0x74d   :  { %v11288_v7 = vrot.slane %v11287_v22, 2 }
 0x74f   :  { %v11289_v41 = vadd.f32 %v11288_v7, %v11287_v22 }
 0x751   :  { %v11290_v38 = vrot.slane %v11289_v41, 1 }
 0x753   :  { %v11291_v56 = vadd.f32 %v11290_v38, %v11289_v41 }
 0x755   :  { %v19171_v30 = vmul.f32 0.001953125, %v11291_v56 }
 0x757   :  { %v19174_v43 = vsub.f32 %v13843_v45, %v19171_v30  ;;  %v19178_v11 = vsub.f32 %v19142_v2, %v19171_v30  ;;  %v19182_v36 = vsub.f32 %v19149_v9, %v19171_v30  ;;  %v19185_v5 = vsub.f32 %v13845_v33, %v19171_v30 }
 0x758   :  { %v19188_v21 = vsub.f32 %v13847_v57, %v19171_v30  ;;  %v19191_v38 = vsub.f32 %v13844_v3, %v19171_v30  ;;  %v19194_v45 = vsub.f32 %v13846_v59, %v19171_v30  ;;  %v19197_v42 = vsub.f32 %v13849_v12, %v19171_v30 }
 0x759   :  { %v19200_v2 = vsub.f32 %v13851_v39, %v19171_v30  ;;  %v19203_v9 = vsub.f32 %v13848_v60, %v19171_v30  ;;  %v19206_v33 = vsub.f32 %v13850_v34, %v19171_v30  ;;  %v19209_v57 = vsub.f32 %v13853_v63, %v19171_v30 }
 0x75a   :  { %v19212_v3 = vsub.f32 %v13855_v52, %v19171_v30  ;;  %v19215_v59 = vsub.f32 %v13852_v31, %v19171_v30  ;;  %v19218_v12 = vsub.f32 %v13854_v16, %v19171_v30  ;;  %v19221_v39 = vsub.f32 %v13857_v46, %v19171_v30  ;;  %v21196_v31 = vld [vmem:[#allocation47_spill] sm:$0xff] }
 0x75b   :  { %v19224_v60 = vsub.f32 %v13859_v13, %v19171_v30  ;;  %v19227_v34 = vsub.f32 %v13856_v55, %v19171_v30  ;;  %v19230_v63 = vsub.f32 %v13858_v25, %v19171_v30  ;;  %v19234_v52 = vsub.f32 %v18970_v61, %v19171_v30 }
 0x75c   :  { %21194 = vst [vmem:[#allocation66_spill] sm:$0xff] %v19215_v59  ;;  %21195 = vst [vmem:[#allocation16_spill] sm:$0xff] %v19218_v12  ;;  %v19238_v16 = vsub.f32 %v21196_v31, %v19171_v30  ;;  %v19242_v46 = vsub.f32 %v18967_v51, %v19171_v30  ;;  %v19250_v6 = vsub.f32 %v18973_v50, %v19171_v30 }
 0x75d   :  { %v11357_v18 = vmul.f32 %v19234_v52, %v19234_v52  ;;  %v19254_v61 = vsub.f32 %v18985_v53, %v19171_v30  ;;  %v19260_v51 = vsub.f32 %v18993_v19, %v19171_v30  ;;  %v19266_v50 = vsub.f32 %v18982_v29, %v19171_v30 }
 0x75e   :  { %v11358_v55 = vmul.f32 %v19238_v16, %v19238_v16  ;;  %v11359_v25 = vmul.f32 %v19242_v46, %v19242_v46  ;;  %v11360_v0 = vmul.f32 %v19250_v6, %v19250_v6  ;;  %v19272_v48 = vsub.f32 %v18989_v49, %v19171_v30 }
 0x75f   :  { %v11361_v53 = vmul.f32 %v19254_v61, %v19254_v61  ;;  %v11362_v19 = vmul.f32 %v19260_v51, %v19260_v51  ;;  %v19278_v22 = vsub.f32 %v19001_v8, %v19171_v30  ;;  %v11363_v29 = vmul.f32 %v19266_v50, %v19266_v50 }
 0x760   :  { %v11421_v17 = vadd.f32 %v11358_v55, %v11357_v18  ;;  %v19284_v41 = vsub.f32 %v19009_v35, %v19171_v30  ;;  %v11364_v49 = vmul.f32 %v19272_v48, %v19272_v48  ;;  %v19290_v31 = vsub.f32 %v18998_v28, %v19171_v30 }
 0x761   :  { %v11365_v8 = vmul.f32 %v19278_v22, %v19278_v22  ;;  %v19296_v55 = vsub.f32 %v19005_v24, %v19171_v30 }
 0x762   :  { %v11422_v13 = vadd.f32 %v11421_v17, %v11359_v25  ;;  %v11366_v35 = vmul.f32 %v19284_v41, %v19284_v41  ;;  %v19302_v17 = vsub.f32 %v19017_v26, %v19171_v30  ;;  %v11367_v28 = vmul.f32 %v19290_v31, %v19290_v31 }
 0x763   :  { %v11368_v24 = vmul.f32 %v19296_v55, %v19296_v55 }
 0x764   :  { %v11423_v10 = vadd.f32 %v11422_v13, %v11360_v0  ;;  %v19308_v13 = vsub.f32 %v19025_v14, %v19171_v30  ;;  %v11369_v26 = vmul.f32 %v19302_v17, %v19302_v17 }
 0x766   :  { %v11424_v54 = vadd.f32 %v11423_v10, %v11361_v53  ;;  %v19314_v10 = vsub.f32 %v19014_v20, %v19171_v30  ;;  %v11370_v14 = vmul.f32 %v19308_v13, %v19308_v13 }
 0x768   :  { %v11425_v7 = vadd.f32 %v11424_v54, %v11362_v19  ;;  %v19320_v54 = vsub.f32 %v19021_v40, %v19171_v30  ;;  %v11371_v20 = vmul.f32 %v19314_v10, %v19314_v10 }
 0x76a   :  { %v11426_v56 = vadd.f32 %v11425_v7, %v11363_v29  ;;  %v19326_v7 = vsub.f32 %v19033_v62, %v19171_v30  ;;  %v11372_v40 = vmul.f32 %v19320_v54, %v19320_v54 }
 0x76c   :  { %v11427_v18 = vadd.f32 %v11426_v56, %v11364_v49  ;;  %v19332_v56 = vsub.f32 %v19041_v15, %v19171_v30  ;;  %v11373_v62 = vmul.f32 %v19326_v7, %v19326_v7 }
 0x76e   :  { %v11428_v25 = vadd.f32 %v11427_v18, %v11365_v8  ;;  %v19338_v18 = vsub.f32 %v19030_v32, %v19171_v30  ;;  %v11374_v15 = vmul.f32 %v19332_v56, %v19332_v56 }
 0x770   :  { %v11429_v0 = vadd.f32 %v11428_v25, %v11366_v35  ;;  %v19344_v25 = vsub.f32 %v19037_v47, %v19171_v30  ;;  %v11375_v32 = vmul.f32 %v19338_v18, %v19338_v18 }
 0x772   :  { %v11430_v53 = vadd.f32 %v11429_v0, %v11367_v28  ;;  %v19350_v0 = vsub.f32 %v19049_v27, %v19171_v30  ;;  %v11376_v47 = vmul.f32 %v19344_v25, %v19344_v25 }
 0x774   :  { %v11431_v19 = vadd.f32 %v11430_v53, %v11368_v24  ;;  %v19356_v53 = vsub.f32 %v19057_v1, %v19171_v30  ;;  %v11377_v27 = vmul.f32 %v19350_v0, %v19350_v0 }
 0x776   :  { %v11432_v29 = vadd.f32 %v11431_v19, %v11369_v26  ;;  %v19362_v19 = vsub.f32 %v19046_v23, %v19171_v30  ;;  %v11378_v1 = vmul.f32 %v19356_v53, %v19356_v53 }
 0x778   :  { %v11433_v49 = vadd.f32 %v11432_v29, %v11370_v14  ;;  %v19368_v29 = vsub.f32 %v19053_v37, %v19171_v30  ;;  %v11379_v23 = vmul.f32 %v19362_v19, %v19362_v19 }
 0x77a   :  { %v11434_v8 = vadd.f32 %v11433_v49, %v11371_v20  ;;  %v19374_v49 = vsub.f32 %v19065_v4, %v19171_v30  ;;  %v11380_v37 = vmul.f32 %v19368_v29, %v19368_v29 }
 0x77c   :  { %v11435_v35 = vadd.f32 %v11434_v8, %v11372_v40  ;;  %v19380_v8 = vsub.f32 %v19073_v44, %v19171_v30  ;;  %v11381_v4 = vmul.f32 %v19374_v49, %v19374_v49 }
 0x77e   :  { %v11436_v28 = vadd.f32 %v11435_v35, %v11373_v62  ;;  %v19386_v35 = vsub.f32 %v19062_v58, %v19171_v30  ;;  %v11382_v44 = vmul.f32 %v19380_v8, %v19380_v8 }
 0x780   :  { %v11437_v24 = vadd.f32 %v11436_v28, %v11374_v15  ;;  %v21197_v28 = vld [vmem:[#allocation24_spill] sm:$0xff]  ;;  %v11383_v58 = vmul.f32 %v19386_v35, %v19386_v35 }
 0x782   :  { %v11438_v26 = vadd.f32 %v11437_v24, %v11375_v32  ;;  %v19392_v32 = vsub.f32 %v21197_v28, %v19171_v30 }
 0x784   :  { %v11439_v14 = vadd.f32 %v11438_v26, %v11376_v47  ;;  %v21198_v47 = vld [vmem:[#allocation52_spill] sm:$0xff] }
 0x785   :  { %v19398_v26 = vsub.f32 %v21198_v47, %v19171_v30  ;;  %v21206_v47 = vld [vmem:[#allocation56_spill] sm:$0xff] }
 0x786   :  { %v11440_v20 = vadd.f32 %v11439_v14, %v11377_v27  ;;  %v21200_v14 = vld [vmem:[#allocation54_spill] sm:$0xff] }
 0x787   :  { %21199 = vst [vmem:[#allocation67_spill] sm:$0xff] %v19398_v26 }
 0x788   :  { %v11441_v40 = vadd.f32 %v11440_v20, %v11378_v1  ;;  %v19404_v1 = vsub.f32 %v21200_v14, %v19171_v30  ;;  %v11384_v20 = vmul.f32 %v19392_v32, %v19392_v32  ;;  %v19422_v14 = vsub.f32 %v21206_v47, %v19171_v30  ;;  %v21212_v47 = vld [vmem:[#allocation57_spill] sm:$0xff] }
 0x78a   :  { %v11442_v62 = vadd.f32 %v11441_v40, %v11379_v23  ;;  %21201 = vst [vmem:[#allocation69_spill] sm:$0xff] %v19404_v1  ;;  %v21202_v40 = vld [vmem:[#allocation51_spill] sm:$0xff]  ;;  %21207 = vst [vmem:[#allocation70_spill] sm:$0xff] %v19422_v14 }
 0x78c   :  { %v11443_v15 = vadd.f32 %v11442_v62, %v11380_v37  ;;  %v19410_v37 = vsub.f32 %v21202_v40, %v19171_v30  ;;  %v11385_v62 = vmul.f32 %v19398_v26, %v19398_v26  ;;  %v21208_v40 = vld [vmem:[#allocation58_spill] sm:$0xff] }
 0x78d   :  { %v19428_v26 = vsub.f32 %v21208_v40, %v19171_v30  ;;  %v21214_v40 = vld [vmem:[#allocation60_spill] sm:$0xff] }
 0x78e   :  { %v11444_v24 = vadd.f32 %v11443_v15, %v11381_v4  ;;  %21203 = vst [vmem:[#allocation68_spill] sm:$0xff] %v19410_v37  ;;  %v21204_v15 = vld [vmem:[#allocation53_spill] sm:$0xff] }
 0x78f   :  { %v19416_v28 = vsub.f32 %v21204_v15, %v19171_v30  ;;  %21209 = vst [vmem:[#allocation73_spill] sm:$0xff] %v19428_v26  ;;  %v21210_v15 = vld [vmem:[#allocation55_spill] sm:$0xff] }
 0x790   :  { %v11445_v27 = vadd.f32 %v11444_v24, %v11382_v44  ;;  %v11386_v44 = vmul.f32 %v19404_v1, %v19404_v1  ;;  %v19434_v1 = vsub.f32 %v21210_v15, %v19171_v30  ;;  %v21216_v15 = vld [vmem:[#allocation62_spill] sm:$0xff] }
 0x791   :  { %21205 = vst [vmem:[#allocation71_spill] sm:$0xff] %v19416_v28 }
 0x792   :  { %v11446_v23 = vadd.f32 %v11445_v27, %v11383_v58  ;;  %v11387_v58 = vmul.f32 %v19410_v37, %v19410_v37  ;;  %21211 = vst [vmem:[#allocation72_spill] sm:$0xff] %v19434_v1  ;;  %v19440_v37 = vsub.f32 %v21212_v47, %v19171_v30  ;;  %v21218_v47 = vld [vmem:[#allocation59_spill] sm:$0xff] }
 0x794   :  { %v11447_v4 = vadd.f32 %v11446_v23, %v11384_v20  ;;  %v11388_v20 = vmul.f32 %v19416_v28, %v19416_v28  ;;  %21213 = vst [vmem:[#allocation75_spill] sm:$0xff] %v19440_v37  ;;  %v19446_v28 = vsub.f32 %v21214_v40, %v19171_v30  ;;  %v21220_v40 = vld [vmem:[#allocation61_spill] sm:$0xff] }
 0x796   :  { %v11448_v24 = vadd.f32 %v11447_v4, %v11385_v62  ;;  %v11389_v62 = vmul.f32 %v19422_v14, %v19422_v14  ;;  %21215 = vst [vmem:[#allocation74_spill] sm:$0xff] %v19446_v28  ;;  %v19452_v14 = vsub.f32 %v21216_v15, %v19171_v30  ;;  %v21222_v15 = vld [vmem:[#allocation17_spill] sm:$0xff] }
 0x798   :  { %v11449_v27 = vadd.f32 %v11448_v24, %v11386_v44  ;;  %v11390_v44 = vmul.f32 %v19428_v26, %v19428_v26  ;;  %21217 = vst [vmem:[#allocation77_spill] sm:$0xff] %v19452_v14  ;;  %v19458_v26 = vsub.f32 %v21218_v47, %v19171_v30  ;;  %v21223_v47 = vld [vmem:[#allocation64_spill] sm:$0xff] }
 0x79a   :  { %v11450_v23 = vadd.f32 %v11449_v27, %v11387_v58  ;;  %v11391_v58 = vmul.f32 %v19434_v1, %v19434_v1  ;;  %21219 = vst [vmem:[#allocation76_spill] sm:$0xff] %v19458_v26  ;;  %v19464_v1 = vsub.f32 %v21220_v40, %v19171_v30  ;;  %v21225_v40 = vld [vmem:[#allocation63_spill] sm:$0xff] }
 0x79c   :  { %v11451_v4 = vadd.f32 %v11450_v23, %v11388_v20  ;;  %v11392_v20 = vmul.f32 %v19440_v37, %v19440_v37  ;;  %21221 = vst [vmem:[#allocation19_spill] sm:$0xff] %v19464_v1  ;;  %v19470_v37 = vsub.f32 %v21222_v15, %v19171_v30  ;;  %v21226_v15 = vld [vmem:[#allocation29_spill] sm:$0xff] }
 0x79e   :  { %v11452_v24 = vadd.f32 %v11451_v4, %v11389_v62  ;;  %v11393_v62 = vmul.f32 %v19446_v28, %v19446_v28  ;;  %v19476_v28 = vsub.f32 %v21223_v47, %v19171_v30  ;;  %v21227_v47 = vld [vmem:[#allocation65_spill] sm:$0xff] }
 0x7a0   :  { %v11453_v27 = vadd.f32 %v11452_v24, %v11390_v44  ;;  %v11394_v44 = vmul.f32 %v19452_v14, %v19452_v14  ;;  %21224 = vst [vmem:[#allocation21_spill] sm:$0xff] %v19476_v28  ;;  %v19482_v14 = vsub.f32 %v21225_v40, %v19171_v30 }
 0x7a2   :  { %v11454_v23 = vadd.f32 %v11453_v27, %v11391_v58  ;;  %v11395_v58 = vmul.f32 %v19458_v26, %v19458_v26  ;;  %v19488_v26 = vsub.f32 %v21226_v15, %v19171_v30 }
 0x7a4   :  { %v11455_v4 = vadd.f32 %v11454_v23, %v11392_v20  ;;  %v11396_v20 = vmul.f32 %v19464_v1, %v19464_v1  ;;  %v19494_v1 = vsub.f32 %v21227_v47, %v19171_v30  ;;  %v11400_v40 = vmul.f32 %v19488_v26, %v19488_v26 }
 0x7a5   :  { %v11403_v30 = vmul.f32 %v19178_v11, %v19178_v11  ;;  %v11404_v47 = vmul.f32 %v19182_v36, %v19182_v36 }
 0x7a6   :  { %v11456_v24 = vadd.f32 %v11455_v4, %v11393_v62  ;;  %v11397_v62 = vmul.f32 %v19470_v37, %v19470_v37 }
 0x7a8   :  { %v11457_v27 = vadd.f32 %v11456_v24, %v11394_v44  ;;  %v11398_v44 = vmul.f32 %v19476_v28, %v19476_v28  ;;  %v11402_v28 = vmul.f32 %v19174_v43, %v19174_v43 }
 0x7aa   :  { %v11458_v23 = vadd.f32 %v11457_v27, %v11395_v58  ;;  %v11399_v58 = vmul.f32 %v19482_v14, %v19482_v14 }
 0x7ac   :  { %v11459_v4 = vadd.f32 %v11458_v23, %v11396_v20  ;;  %v11401_v23 = vmul.f32 %v19494_v1, %v19494_v1 }
 0x7ae   :  { %v11460_v24 = vadd.f32 %v11459_v4, %v11397_v62 }
 0x7b0   :  { %v11461_v27 = vadd.f32 %v11460_v24, %v11398_v44  ;;  %v11405_v24 = vmul.f32 %v19185_v5, %v19185_v5 }
 0x7b2   :  { %v11462_v20 = vadd.f32 %v11461_v27, %v11399_v58  ;;  %v11406_v27 = vmul.f32 %v19188_v21, %v19188_v21 }
 0x7b4   :  { %v11463_v15 = vadd.f32 %v11462_v20, %v11400_v40  ;;  %v11407_v20 = vmul.f32 %v19191_v38, %v19191_v38 }
 0x7b6   :  { %v11464_v62 = vadd.f32 %v11463_v15, %v11401_v23  ;;  %v11408_v15 = vmul.f32 %v19194_v45, %v19194_v45 }
 0x7b8   :  { %v11465_v4 = vadd.f32 %v11464_v62, %v11402_v28  ;;  %v11409_v62 = vmul.f32 %v19197_v42, %v19197_v42 }
 0x7ba   :  { %v11466_v44 = vadd.f32 %v11465_v4, %v11403_v30  ;;  %v11410_v4 = vmul.f32 %v19200_v2, %v19200_v2 }
 0x7bc   :  { %v11467_v58 = vadd.f32 %v11466_v44, %v11404_v47  ;;  %v11411_v44 = vmul.f32 %v19203_v9, %v19203_v9 }
 0x7be   :  { %v11468_v40 = vadd.f32 %v11467_v58, %v11405_v24  ;;  %v11412_v58 = vmul.f32 %v19206_v33, %v19206_v33 }
 0x7c0   :  { %v11469_v23 = vadd.f32 %v11468_v40, %v11406_v27  ;;  %v11413_v40 = vmul.f32 %v19209_v57, %v19209_v57 }
 0x7c2   :  { %v11470_v28 = vadd.f32 %v11469_v23, %v11407_v20  ;;  %v11414_v23 = vmul.f32 %v19212_v3, %v19212_v3 }
 0x7c4   :  { %v11471_v30 = vadd.f32 %v11470_v28, %v11408_v15  ;;  %v11415_v28 = vmul.f32 %v19215_v59, %v19215_v59 }
 0x7c6   :  { %v11472_v47 = vadd.f32 %v11471_v30, %v11409_v62  ;;  %v11416_v30 = vmul.f32 %v19218_v12, %v19218_v12 }
 0x7c8   :  { %v11473_v24 = vadd.f32 %v11472_v47, %v11410_v4  ;;  %v11417_v47 = vmul.f32 %v19221_v39, %v19221_v39 }
 0x7ca   :  { %v11474_v27 = vadd.f32 %v11473_v24, %v11411_v44  ;;  %v11418_v24 = vmul.f32 %v19224_v60, %v19224_v60 }
 0x7cc   :  { %v11475_v20 = vadd.f32 %v11474_v27, %v11412_v58  ;;  %v11419_v27 = vmul.f32 %v19227_v34, %v19227_v34 }
 0x7ce   :  { %v11476_v15 = vadd.f32 %v11475_v20, %v11413_v40  ;;  %v11420_v20 = vmul.f32 %v19230_v63, %v19230_v63 }
 0x7d0   :  { %v11477_v62 = vadd.f32 %v11476_v15, %v11414_v23 }
 0x7d2   :  { %v11478_v4 = vadd.f32 %v11477_v62, %v11415_v28 }
 0x7d4   :  { %v11479_v44 = vadd.f32 %v11478_v4, %v11416_v30  ;;  %v19543_v30 = vld [vmem:[%s20586_s4 + $0x2] ss:$0 sm:$0xff] }
 0x7d6   :  { %v11480_v58 = vadd.f32 %v11479_v44, %v11417_v47  ;;  %v19547_v44 = vmul.f32 %v19543_v30, %v19224_v60  ;;  %v19567_v60 = vmul.f32 %v19543_v30, %v19254_v61  ;;  %v19587_v61 = vmul.f32 %v19543_v30, %v19284_v41 }
 0x7d7   :  { %v19607_v41 = vmul.f32 %v19543_v30, %v19314_v10  ;;  %v19627_v10 = vmul.f32 %v19543_v30, %v19344_v25  ;;  %v19647_v25 = vmul.f32 %v19543_v30, %v19374_v49 }
 0x7d8   :  { %v11481_v40 = vadd.f32 %v11480_v58, %v11418_v24  ;;  %v19551_v24 = vmul.f32 %v19543_v30, %v19234_v52  ;;  %v19563_v58 = vmul.f32 %v19543_v30, %v19250_v6  ;;  %v19571_v52 = vmul.f32 %v19543_v30, %v19260_v51 }
 0x7d9   :  { %v19583_v6 = vmul.f32 %v19543_v30, %v19278_v22  ;;  %v19591_v51 = vmul.f32 %v19543_v30, %v19290_v31  ;;  %v19603_v22 = vmul.f32 %v19543_v30, %v19308_v13  ;;  %v19611_v31 = vmul.f32 %v19543_v30, %v19320_v54 }
 0x7da   :  { %v11482_v23 = vadd.f32 %v11481_v40, %v11419_v27  ;;  %v19623_v13 = vmul.f32 %v19543_v30, %v19338_v18  ;;  %v19631_v54 = vmul.f32 %v19543_v30, %v19350_v0  ;;  %v19643_v18 = vmul.f32 %v19543_v30, %v19368_v29 }
 0x7db   :  { %v19651_v0 = vmul.f32 %v19543_v30, %v19380_v8 }
 0x7dc   :  { %v11483_v15 = vadd.f32 %v11482_v23, %v11420_v20  ;;  %v21228_v20 = vld [vmem:[#allocation67_spill] sm:$0xff]  ;;  %v21229_v23 = vld [vmem:[#allocation69_spill] sm:$0xff] }
 0x7dd   :  { %v19663_v29 = vmul.f32 %v19543_v30, %v21228_v20  ;;  %v19667_v49 = vmul.f32 %v19543_v30, %v21229_v23  ;;  %v21238_v20 = vld [vmem:[#allocation75_spill] sm:$0xff] }
 0x7de   :  { %v11484_v59 = vrot.slane %v11483_v15, 4  ;;  %v19691_v23 = vmul.f32 %v19543_v30, %v21238_v20  ;;  %v19711_v20 = vmul.f32 %v19543_v30, %v19470_v37  ;;  %v19731_v37 = vmul.f32 %v19543_v30, %v19174_v43 }
 0x7df   :  { %v19751_v43 = vmul.f32 %v19543_v30, %v19191_v38  ;;  %v19771_v38 = vmul.f32 %v19543_v30, %v19206_v33  ;;  %v21251_v33 = vld [vmem:[#allocation16_spill] sm:$0xff] }
 0x7e0   :  { %v11485_v12 = vadd.f32 %v11484_v59, %v11483_v15  ;;  %v19555_v59 = vmul.f32 %v19543_v30, %v19238_v16  ;;  %v19575_v16 = vmul.f32 %v19543_v30, %v19266_v50  ;;  %v19595_v50 = vmul.f32 %v19543_v30, %v19296_v55  ;;  %v21230_v15 = vld [vmem:[#allocation68_spill] sm:$0xff]  ;;  %21239 = vst [vmem:[#allocation23_spill] sm:$0xff] %v19691_v23  ;;  %v21244_v23 = vld [vmem:[#allocation21_spill] sm:$0xff] }
 0x7e1   :  { %v19615_v55 = vmul.f32 %v19543_v30, %v19326_v7  ;;  %v19635_v7 = vmul.f32 %v19543_v30, %v19356_v53  ;;  %v19655_v53 = vmul.f32 %v19543_v30, %v19386_v35  ;;  %v19671_v8 = vmul.f32 %v19543_v30, %v21230_v15  ;;  %v21240_v15 = vld [vmem:[#allocation74_spill] sm:$0xff]  ;;  %21247 = vst [vmem:[#allocation81_spill] sm:$0xff] %v19771_v38 }
 0x7e2   :  { %v11486_v28 = vrot.slane %v11485_v12, 2  ;;  %v19794_v38 = vmul.f32 %v19543_v30, %v21251_v33 }
 0x7e4   :  { %v11487_v62 = vadd.f32 %v11486_v28, %v11485_v12  ;;  %v19559_v12 = vmul.f32 %v19543_v30, %v19242_v46  ;;  %v19579_v46 = vmul.f32 %v19543_v30, %v19272_v48  ;;  %v19599_v48 = vmul.f32 %v19543_v30, %v19302_v17  ;;  %v21231_v28 = vld [vmem:[#allocation71_spill] sm:$0xff] }
 0x7e5   :  { %v19619_v17 = vmul.f32 %v19543_v30, %v19332_v56  ;;  %v19639_v56 = vmul.f32 %v19543_v30, %v19362_v19  ;;  %v19659_v19 = vmul.f32 %v19543_v30, %v19392_v32  ;;  %v19675_v35 = vmul.f32 %v19543_v30, %v21231_v28 }
 0x7e6   :  { %v11488_v4 = vrot.slane %v11487_v62, 1  ;;  %v19695_v28 = vmul.f32 %v19543_v30, %v21240_v15  ;;  %v19715_v15 = vmul.f32 %v19543_v30, %v21244_v23  ;;  %v19735_v23 = vmul.f32 %v19543_v30, %v19178_v11 }
 0x7e7   :  { %21232 = vst [vmem:[#allocation18_spill] sm:$0xff] %v19675_v35  ;;  %v21241_v35 = vld [vmem:[#allocation77_spill] sm:$0xff]  ;;  %v19755_v11 = vmul.f32 %v19543_v30, %v19194_v45  ;;  %v19775_v45 = vmul.f32 %v19543_v30, %v19209_v57  ;;  %v19798_v57 = vmul.f32 %v19543_v30, %v19221_v39 }
 0x7e8   :  { %v11489_v47 = vadd.f32 %v11488_v4, %v11487_v62  ;;  %v21233_v62 = vld [vmem:[#allocation70_spill] sm:$0xff]  ;;  %v21235_v4 = vld [vmem:[#allocation73_spill] sm:$0xff] }
 0x7e9   :  { %v19679_v32 = vmul.f32 %v19543_v30, %v21233_v62  ;;  %v19699_v62 = vmul.f32 %v19543_v30, %v21241_v35  ;;  %v19719_v35 = vmul.f32 %v19543_v30, %v19482_v14  ;;  %v19739_v14 = vmul.f32 %v19543_v30, %v19182_v36 }
 0x7ea   :  { %v11490_v27 = vmul.f32 0.001953125, %v11489_v47  ;;  %v19683_v47 = vmul.f32 %v19543_v30, %v21235_v4  ;;  %v19759_v36 = vmul.f32 %v19543_v30, %v19197_v42  ;;  %v19779_v42 = vmul.f32 %v19543_v30, %v19212_v3 }
 0x7eb   :  { %21234 = vst [vmem:[#allocation20_spill] sm:$0xff] %v19679_v32  ;;  %v21242_v32 = vld [vmem:[#allocation76_spill] sm:$0xff]  ;;  %v19802_v3 = vmul.f32 %v19543_v30, %v19227_v34  ;;  %v11754_v34 = vld [vmem:[#allocation9 + $0x1e8] sm:$0xff] }
 0x7ec   :  { %v11559_v40 = vadd.f32 1e-05, %v11490_v27  ;;  %21236 = vst [vmem:[#allocation25_spill] sm:$0xff] %v19683_v47  ;;  %v21237_v27 = vld [vmem:[#allocation72_spill] sm:$0xff]  ;;  %v19703_v4 = vmul.f32 %v19543_v30, %v21242_v32  ;;  %v21243_v47 = vld [vmem:[#allocation19_spill] sm:$0xff]  ;;  %v19723_v32 = vmul.f32 %v19543_v30, %v19488_v26  ;;  %v19743_v26 = vmul.f32 %v19543_v30, %v19185_v5  ;;  %21245 = vst [vmem:[#allocation78_spill] sm:$0xff] %v19759_v36 }
 0x7ed   :  { %v19763_v5 = vmul.f32 %v19543_v30, %v19200_v2  ;;  %21248 = vst [vmem:[#allocation80_spill] sm:$0xff] %v19779_v42  ;;  %v21249_v36 = vld [vmem:[#allocation66_spill] sm:$0xff] }
 0x7ee   :  { %14528 = vrsqrt.f32 %v11559_v40  ;;  %v19687_v40 = vmul.f32 %v19543_v30, %v21237_v27  ;;  %v19707_v27 = vmul.f32 %v19543_v30, %v21243_v47  ;;  %v19727_v47 = vmul.f32 %v19543_v30, %v19494_v1 }
 0x7ef   :  { %v19747_v1 = vmul.f32 %v19543_v30, %v19188_v21  ;;  %21246 = vst [vmem:[#allocation79_spill] sm:$0xff] %v19763_v5  ;;  %v19767_v21 = vmul.f32 %v19543_v30, %v19203_v9  ;;  %v19783_v2 = vmul.f32 %v19543_v30, %v21249_v36  ;;  %v19790_v9 = vld [vmem:[%s20586_s4 + $0x3] ss:$0 sm:$0xff]  ;;  %v19806_v36 = vmul.f32 %v19543_v30, %v19230_v63  ;;  %s14846_s4 = smov [#allocation11]  }
 0x7f0   :  { %s11954_s24 = sshll.u32 %s14846_s4, 4  ;;  %s11955_s24 = int_to_ptr.vmem [resolvable:$true] %s11954_s24 }
 0x7f1   :  { %21250 = vst [vmem:[#allocation82_spill] sm:$0xff] %v19783_v2  ;;  %s14807_s25 = scalar_lea.vmem %s11955_s24, 8192  ;;  %p14812_p5 = scmp.lt.s32.totalorder %s11955_s24, %s11955_s24 }
 0x7f2   :  { %p14808_p4 = scmp.ne.s32.totalorder %s11955_s24, %s14807_s25  ;;  %p14813_p6 = scmp.lt.s32.totalorder %s14807_s25, %s14807_s25 }
 0x7f4   :  { %p14814_p7 = por %p14813_p6, %p14812_p5 }
 0x7f6   :  { %p14815_p8 = pnand %p14814_p7, %p14808_p4 }
 0x7f8   :  { %v19785_v5 = vpop.eup %14528 }
 0x7f9   :  { %v11622_v2 = vmul.f32 %v19785_v5, %v19547_v44  ;;  %v19812_v42 = vmul.f32 %v19785_v5, %v19551_v24  ;;  %v19816_v33 = vmul.f32 %v19785_v5, %v19555_v59  ;;  %v19820_v39 = vmul.f32 %v19785_v5, %v19559_v12 }
 0x7fa   :  { %v19824_v63 = vmul.f32 %v19785_v5, %v19563_v58  ;;  %v19828_v30 = vmul.f32 %v19785_v5, %v19567_v60  ;;  %v19832_v44 = vmul.f32 %v19785_v5, %v19571_v52  ;;  %v19836_v24 = vmul.f32 %v19785_v5, %v19575_v16 }
 0x7fb   :  { %v11690_v59 = vadd.f32 %v19790_v9, %v11622_v2  ;;  %v19841_v12 = vmul.f32 %v19785_v5, %v19579_v46  ;;  %v19845_v58 = vmul.f32 %v19785_v5, %v19583_v6  ;;  %v19849_v60 = vmul.f32 %v19785_v5, %v19587_v61 }
 0x7fc   :  { %v19853_v52 = vmul.f32 %v19785_v5, %v19591_v51  ;;  %v19857_v16 = vmul.f32 %v19785_v5, %v19595_v50  ;;  %v19861_v46 = vmul.f32 %v19785_v5, %v19599_v48  ;;  %v19865_v6 = vmul.f32 %v19785_v5, %v19603_v22 }
 0x7fd   :  { %v11818_v2 = vadd.f32 %v11754_v34, %v11690_v59  ;;  %v19869_v61 = vmul.f32 %v19785_v5, %v19607_v41  ;;  %v19873_v51 = vmul.f32 %v19785_v5, %v19611_v31  ;;  %v19877_v50 = vmul.f32 %v19785_v5, %v19615_v55  ;;  %v21253_v59 = vld [vmem:[#allocation18_spill] sm:$0xff] }
 0x7fe   :  { %v19881_v48 = vmul.f32 %v19785_v5, %v19619_v17  ;;  %v19885_v22 = vmul.f32 %v19785_v5, %v19623_v13  ;;  %v19889_v41 = vmul.f32 %v19785_v5, %v19627_v10  ;;  %v19893_v31 = vmul.f32 %v19785_v5, %v19631_v54 }
 0x7ff   :  { %v11882_v34 = vmax.f32 %v11818_v2, 0.0  ;;  %v19897_v55 = vmul.f32 %v19785_v5, %v19635_v7  ;;  %v19901_v17 = vmul.f32 %v19785_v5, %v19639_v56  ;;  %v19905_v13 = vmul.f32 %v19785_v5, %v19643_v18  ;;  %v21254_v2 = vld [vmem:[#allocation20_spill] sm:$0xff] }
 0x800   :  { %v19909_v10 = vmul.f32 %v19785_v5, %v19647_v25  ;;  %v19913_v54 = vmul.f32 %v19785_v5, %v19651_v0  ;;  %v19917_v7 = vmul.f32 %v19785_v5, %v19655_v53  ;;  %v19921_v56 = vmul.f32 %v19785_v5, %v19659_v19 }
 0x801   :  { %11946 = vst [vmem:[#allocation11 + $0x1e8] sm:$0xff] %v11882_v34  ;;  %v19925_v18 = vmul.f32 %v19785_v5, %v19663_v29  ;;  %v19929_v25 = vmul.f32 %v19785_v5, %v19667_v49  ;;  %v19933_v0 = vmul.f32 %v19785_v5, %v19671_v8  ;;  %v19937_v53 = vmul.f32 %v19785_v5, %v21253_v59  ;;  %v21255_v34 = vld [vmem:[#allocation25_spill] sm:$0xff] }
 0x802   :  { %v19941_v19 = vmul.f32 %v19785_v5, %v21254_v2  ;;  %v19945_v29 = vmul.f32 %v19785_v5, %v21255_v34  ;;  %v19949_v49 = vmul.f32 %v19785_v5, %v19687_v40  ;;  %v19957_v59 = vmul.f32 %v19785_v5, %v19695_v28 }
 0x803   :  { %21252 = vst [vmem:[#allocation22_spill] sm:$0xff] %v19929_v25  ;;  %v21256_v25 = vld [vmem:[#allocation23_spill] sm:$0xff]  ;;  %v19961_v2 = vmul.f32 %v19785_v5, %v19699_v62  ;;  %v19965_v34 = vmul.f32 %v19785_v5, %v19703_v4  ;;  %v19969_v40 = vmul.f32 %v19785_v5, %v19707_v27  ;;  %v19977_v28 = vmul.f32 %v19785_v5, %v19715_v15 }
 0x804   :  { %v19953_v8 = vmul.f32 %v19785_v5, %v21256_v25  ;;  %v19973_v25 = vmul.f32 %v19785_v5, %v19711_v20  ;;  %v19981_v62 = vmul.f32 %v19785_v5, %v19719_v35  ;;  %v19985_v4 = vmul.f32 %v19785_v5, %v19723_v32 }
 0x805   :  { %v19989_v27 = vmul.f32 %v19785_v5, %v19727_v47  ;;  %v19993_v20 = vmul.f32 %v19785_v5, %v19731_v37  ;;  %v19997_v15 = vmul.f32 %v19785_v5, %v19735_v23  ;;  %v20001_v35 = vmul.f32 %v19785_v5, %v19739_v14 }
 0x806   :  { %v20005_v32 = vmul.f32 %v19785_v5, %v19743_v26  ;;  %v20009_v47 = vmul.f32 %v19785_v5, %v19747_v1  ;;  %v20013_v37 = vmul.f32 %v19785_v5, %v19751_v43  ;;  %v20017_v23 = vmul.f32 %v19785_v5, %v19755_v11 }
 0x807   :  { %21257 = vst [vmem:[#allocation27_spill] sm:$0xff] %v19997_v15  ;;  %21258 = vst [vmem:[#allocation26_spill] sm:$0xff] %v20001_v35  ;;  %v21261_v15 = vld [vmem:[#allocation78_spill] sm:$0xff]  ;;  %v21263_v35 = vld [vmem:[#allocation79_spill] sm:$0xff]  ;;  %v20029_v1 = vmul.f32 %v19785_v5, %v19767_v21  ;;  %v20037_v11 = vmul.f32 %v19785_v5, %v19775_v45  ;;  %v20049_v21 = vmul.f32 %v19785_v5, %v19794_v38 }
 0x808   :  { %21259 = vst [vmem:[#allocation32_spill] sm:$0xff] %v20009_v47  ;;  %21260 = vst [vmem:[#allocation31_spill] sm:$0xff] %v20017_v23  ;;  %v20021_v14 = vmul.f32 %v19785_v5, %v21261_v15  ;;  %v20025_v26 = vmul.f32 %v19785_v5, %v21263_v35  ;;  %v21264_v47 = vld [vmem:[#allocation81_spill] sm:$0xff]  ;;  %v21265_v23 = vld [vmem:[#allocation80_spill] sm:$0xff]  ;;  %v20057_v45 = vmul.f32 %v19785_v5, %v19802_v3 }
 0x809   :  { %v20033_v43 = vmul.f32 %v19785_v5, %v21264_v47  ;;  %v20041_v15 = vmul.f32 %v19785_v5, %v21265_v23  ;;  %v20053_v47 = vmul.f32 %v19785_v5, %v19798_v57  ;;  %v20061_v23 = vmul.f32 %v19785_v5, %v19806_v36 }
 0x80a   :  { %21262 = vst [vmem:[#allocation34_spill] sm:$0xff] %v20021_v14  ;;  %v21266_v14 = vld [vmem:[#allocation82_spill] sm:$0xff]  ;;  %v20069_v38 = vadd.f32 %v19790_v9, %v19816_v33  ;;  %v20073_v57 = vadd.f32 %v19790_v9, %v19820_v39  ;;  %v20077_v3 = vadd.f32 %v19790_v9, %v19824_v63  ;;  %v20089_v36 = vadd.f32 %v19790_v9, %v19836_v24 }
 0x80b   :  { %v20045_v35 = vmul.f32 %v19785_v5, %v21266_v14  ;;  %v20065_v14 = vadd.f32 %v19790_v9, %v19812_v42  ;;  %v20081_v5 = vadd.f32 %v19790_v9, %v19828_v30  ;;  %v20085_v42 = vadd.f32 %v19790_v9, %v19832_v44 }
 0x80c   :  { %v20093_v33 = vadd.f32 %v19790_v9, %v19841_v12  ;;  %v20097_v39 = vadd.f32 %v19790_v9, %v19845_v58  ;;  %v20101_v63 = vadd.f32 %v19790_v9, %v19849_v60  ;;  %v20105_v30 = vadd.f32 %v19790_v9, %v19853_v52 }
 0x80d   :  { %v20109_v44 = vadd.f32 %v19790_v9, %v19857_v16  ;;  %v20113_v24 = vadd.f32 %v19790_v9, %v19861_v46  ;;  %v20117_v12 = vadd.f32 %v19790_v9, %v19865_v6  ;;  %v20121_v58 = vadd.f32 %v19790_v9, %v19869_v61 }
 0x80e   :  { %v20125_v60 = vadd.f32 %v19790_v9, %v19873_v51  ;;  %v20129_v52 = vadd.f32 %v19790_v9, %v19877_v50  ;;  %v20133_v16 = vadd.f32 %v19790_v9, %v19881_v48  ;;  %v20137_v46 = vadd.f32 %v19790_v9, %v19885_v22 }
 0x80f   :  { %v20141_v6 = vadd.f32 %v19790_v9, %v19889_v41  ;;  %v20145_v61 = vadd.f32 %v19790_v9, %v19893_v31  ;;  %v20149_v51 = vadd.f32 %v19790_v9, %v19897_v55  ;;  %v20153_v50 = vadd.f32 %v19790_v9, %v19901_v17 }
 0x810   :  { %v20157_v48 = vadd.f32 %v19790_v9, %v19905_v13  ;;  %v20161_v22 = vadd.f32 %v19790_v9, %v19909_v10  ;;  %v20165_v41 = vadd.f32 %v19790_v9, %v19913_v54  ;;  %v20169_v31 = vadd.f32 %v19790_v9, %v19917_v7  ;;  %v21267_v13 = vld [vmem:[#allocation22_spill] sm:$0xff] }
 0x811   :  { %v20173_v55 = vadd.f32 %v19790_v9, %v19921_v56  ;;  %v20177_v17 = vadd.f32 %v19790_v9, %v19925_v18  ;;  %v20181_v10 = vadd.f32 %v19790_v9, %v21267_v13  ;;  %v20185_v54 = vadd.f32 %v19790_v9, %v19933_v0 }
 0x812   :  { %v20189_v7 = vadd.f32 %v19790_v9, %v19937_v53  ;;  %v20193_v56 = vadd.f32 %v19790_v9, %v19941_v19  ;;  %v20197_v18 = vadd.f32 %v19790_v9, %v19945_v29  ;;  %v20201_v13 = vadd.f32 %v19790_v9, %v19949_v49 }
 0x813   :  { %v20205_v0 = vadd.f32 %v19790_v9, %v19953_v8  ;;  %v20209_v53 = vadd.f32 %v19790_v9, %v19957_v59  ;;  %v20213_v19 = vadd.f32 %v19790_v9, %v19961_v2  ;;  %v20217_v29 = vadd.f32 %v19790_v9, %v19965_v34 }
 0x814   :  { %21268 = vst [vmem:[#allocation33_spill] sm:$0xff] %v20193_v56  ;;  %21269 = vst [vmem:[#allocation43_spill] sm:$0xff] %v20197_v18  ;;  %v20221_v49 = vadd.f32 %v19790_v9, %v19969_v40  ;;  %v20225_v8 = vadd.f32 %v19790_v9, %v19973_v25  ;;  %v20229_v59 = vadd.f32 %v19790_v9, %v19977_v28  ;;  %v11696_v25 = vld [vmem:[#allocation9 + $0x18] sm:$0xff]  ;;  %v11702_v18 = vld [vmem:[#allocation9 + $0x48] sm:$0xff] }
 0x815   :  { %21270 = vst [vmem:[#allocation28_spill] sm:$0xff] %v20201_v13  ;;  %21271 = vst [vmem:[#allocation38_spill] sm:$0xff] %v20205_v0  ;;  %v20233_v2 = vadd.f32 %v19790_v9, %v19981_v62  ;;  %v20237_v34 = vadd.f32 %v19790_v9, %v19985_v4  ;;  %v20241_v40 = vadd.f32 %v19790_v9, %v19989_v27  ;;  %v21287_v0 = vld [vmem:[#allocation32_spill] sm:$0xff]  ;;  %v11704_v13 = vld [vmem:[#allocation9 + $0x58] sm:$0xff] }
 0x816   :  { %21272 = vst [vmem:[#allocation48_spill] sm:$0xff] %v20209_v53  ;;  %21273 = vst [vmem:[#allocation49_spill] sm:$0xff] %v20213_v19  ;;  %v20245_v28 = vadd.f32 %v19790_v9, %v19993_v20  ;;  %v20257_v27 = vadd.f32 %v19790_v9, %v20005_v32  ;;  %v11700_v19 = vld [vmem:[#allocation9 + $0x38] sm:$0xff]  ;;  %v11698_v53 = vld [vmem:[#allocation9 + $0x28] sm:$0xff]  ;;  %v20261_v20 = vadd.f32 %v19790_v9, %v21287_v0 }
 0x817   :  { %21274 = vst [vmem:[#allocation50_spill] sm:$0xff] %v20217_v29  ;;  %21275 = vst [vmem:[#allocation35_spill] sm:$0xff] %v20221_v49  ;;  %v11695_v49 = vld [vmem:[#allocation9 + $0x10] sm:$0xff]  ;;  %v11693_v29 = vld [vmem:[#allocation9] sm:$0xff]  ;;  %v20277_v0 = vadd.f32 %v19790_v9, %v20025_v26  ;;  %v20293_v26 = vadd.f32 %v19790_v9, %v20041_v15  ;;  %v20309_v15 = vadd.f32 %v19790_v9, %v20057_v45 }
 0x818   :  { %21276 = vst [vmem:[#allocation36_spill] sm:$0xff] %v20225_v8  ;;  %21277 = vst [vmem:[#allocation30_spill] sm:$0xff] %v20229_v59  ;;  %v11694_v8 = vld [vmem:[#allocation9 + $0x8] sm:$0xff]  ;;  %v21282_v59 = vld [vmem:[#allocation27_spill] sm:$0xff]  ;;  %v20322_v56 = vadd.f32 %v11695_v49, %v20073_v57  ;;  %v20325_v45 = vadd.f32 %v11696_v25, %v20077_v3  ;;  %v20343_v3 = vadd.f32 %v11702_v18, %v20101_v63 }
 0x819   :  { %21278 = vst [vmem:[#allocation37_spill] sm:$0xff] %v20233_v2  ;;  %21279 = vst [vmem:[#allocation39_spill] sm:$0xff] %v20237_v34  ;;  %v20249_v62 = vadd.f32 %v19790_v9, %v21282_v59  ;;  %v21284_v2 = vld [vmem:[#allocation26_spill] sm:$0xff]  ;;  %v11697_v34 = vld [vmem:[#allocation9 + $0x20] sm:$0xff]  ;;  %v20265_v59 = vadd.f32 %v19790_v9, %v20013_v37  ;;  %v20281_v37 = vadd.f32 %v19790_v9, %v20029_v1 }
 0x81a   :  { %21280 = vst [vmem:[#allocation40_spill] sm:$0xff] %v20241_v40  ;;  %21281 = vst [vmem:[#allocation41_spill] sm:$0xff] %v20245_v28  ;;  %v20253_v4 = vadd.f32 %v19790_v9, %v21284_v2  ;;  %v11699_v40 = vld [vmem:[#allocation9 + $0x30] sm:$0xff]  ;;  %v11701_v28 = vld [vmem:[#allocation9 + $0x40] sm:$0xff]  ;;  %v20297_v1 = vadd.f32 %v19790_v9, %v20045_v35  ;;  %v20313_v35 = vadd.f32 %v19790_v9, %v20061_v23 }
 0x81b   :  { %21283 = vst [vmem:[#allocation42_spill] sm:$0xff] %v20249_v62  ;;  %21286 = vst [vmem:[#allocation45_spill] sm:$0xff] %v20257_v27  ;;  %v21290_v62 = vld [vmem:[#allocation31_spill] sm:$0xff]  ;;  %v11703_v27 = vld [vmem:[#allocation9 + $0x50] sm:$0xff]  ;;  %v20340_v57 = vadd.f32 %v11701_v28, %v20097_v39  ;;  %v20349_v25 = vadd.f32 %v11704_v13, %v20109_v44 }
 0x81c   :  { %21285 = vst [vmem:[#allocation44_spill] sm:$0xff] %v20253_v4  ;;  %21288 = vst [vmem:[#allocation46_spill] sm:$0xff] %v20261_v20  ;;  %v20269_v2 = vadd.f32 %v19790_v9, %v21290_v62  ;;  %v21292_v4 = vld [vmem:[#allocation34_spill] sm:$0xff]  ;;  %v20285_v62 = vadd.f32 %v19790_v9, %v20033_v43  ;;  %v11706_v20 = vld [vmem:[#allocation9 + $0x68] sm:$0xff]  ;;  %v20301_v43 = vadd.f32 %v19790_v9, %v20049_v21 }
 0x81d   :  { %21289 = vst [vmem:[#allocation47_spill] sm:$0xff] %v20265_v59  ;;  %v20273_v32 = vadd.f32 %v19790_v9, %v21292_v4  ;;  %21294 = vst [vmem:[#allocation54_spill] sm:$0xff] %v20277_v0  ;;  %v20289_v4 = vadd.f32 %v19790_v9, %v20037_v11  ;;  %v11708_v59 = vld [vmem:[#allocation9 + $0x78] sm:$0xff]  ;;  %v20305_v11 = vadd.f32 %v19790_v9, %v20053_v47  ;;  %v11710_v0 = vld [vmem:[#allocation9 + $0x88] sm:$0xff] }
 0x81e   :  { %21291 = vst [vmem:[#allocation24_spill] sm:$0xff] %v20269_v2  ;;  %21295 = vst [vmem:[#allocation51_spill] sm:$0xff] %v20281_v37  ;;  %v11705_v2 = vld [vmem:[#allocation9 + $0x60] sm:$0xff]  ;;  %v11712_v37 = vld [vmem:[#allocation9 + $0x98] sm:$0xff]  ;;  %v20319_v21 = vadd.f32 %v11694_v8, %v20069_v38  ;;  %v20331_v9 = vadd.f32 %v11698_v53, %v20085_v42  ;;  %v20334_v8 = vadd.f32 %v11699_v40, %v20089_v36 }
 0x81f   :  { %21293 = vst [vmem:[#allocation52_spill] sm:$0xff] %v20273_v32  ;;  %21296 = vst [vmem:[#allocation53_spill] sm:$0xff] %v20285_v62  ;;  %v11707_v32 = vld [vmem:[#allocation9 + $0x70] sm:$0xff]  ;;  %v11709_v62 = vld [vmem:[#allocation9 + $0x80] sm:$0xff]  ;;  %v20352_v36 = vadd.f32 %v11705_v2, %v20113_v24  ;;  %v20361_v28 = vadd.f32 %v11708_v59, %v20125_v60  ;;  %v20367_v44 = vadd.f32 %v11710_v0, %v20133_v16 }
 0x820   :  { %21297 = vst [vmem:[#allocation56_spill] sm:$0xff] %v20289_v4  ;;  %21298 = vst [vmem:[#allocation58_spill] sm:$0xff] %v20293_v26  ;;  %v11711_v4 = vld [vmem:[#allocation9 + $0x90] sm:$0xff]  ;;  %v11714_v26 = vld [vmem:[#allocation9 + $0xa8] sm:$0xff]  ;;  %v20358_v40 = vadd.f32 %v11707_v32, %v20121_v58  ;;  %v20373_v2 = vadd.f32 %v11712_v37, %v20141_v6 }
 0x821   :  { %21299 = vst [vmem:[#allocation55_spill] sm:$0xff] %v20297_v1  ;;  %21300 = vst [vmem:[#allocation57_spill] sm:$0xff] %v20301_v43  ;;  %v20316_v1 = vadd.f32 %v11693_v29, %v20065_v14  ;;  %v11715_v47 = vld [vmem:[#allocation9 + $0xb0] sm:$0xff]  ;;  %v11716_v43 = vld [vmem:[#allocation9 + $0xb8] sm:$0xff]  ;;  %v20379_v60 = vadd.f32 %v11714_v26, %v20149_v51 }
 0x822   :  { %21301 = vst [vmem:[#allocation60_spill] sm:$0xff] %v20305_v11  ;;  %21302 = vst [vmem:[#allocation62_spill] sm:$0xff] %v20309_v15  ;;  %v11713_v11 = vld [vmem:[#allocation9 + $0xa0] sm:$0xff]  ;;  %v20328_v15 = vadd.f32 %v11697_v34, %v20081_v5  ;;  %v11719_v23 = vld [vmem:[#allocation9 + $0xd0] sm:$0xff]  ;;  %v20346_v34 = vadd.f32 %v11703_v27, %v20105_v30  ;;  %v20364_v30 = vadd.f32 %v11709_v62, %v20129_v52 }
 0x823   :  { %21303 = vst [vmem:[#allocation59_spill] sm:$0xff] %v20319_v21  ;;  %v11717_v14 = vld [vmem:[#allocation9 + $0xc0] sm:$0xff]  ;;  %v11720_v38 = vld [vmem:[#allocation9 + $0xd8] sm:$0xff]  ;;  %v11718_v29 = vld [vmem:[#allocation9 + $0xc8] sm:$0xff]  ;;  %v20337_v21 = vadd.f32 %v11700_v19, %v20093_v33  ;;  %v20355_v33 = vadd.f32 %v11706_v20, %v20117_v12  ;;  %v20370_v20 = vadd.f32 %v11711_v4, %v20137_v46  ;;  %v20376_v58 = vadd.f32 %v11713_v11, %v20145_v61 }
 0x824   :  { %v11723_v5 = vld [vmem:[#allocation9 + $0xf0] sm:$0xff]  ;;  %v11721_v49 = vld [vmem:[#allocation9 + $0xe0] sm:$0xff]  ;;  %v11724_v42 = vld [vmem:[#allocation9 + $0xf8] sm:$0xff]  ;;  %v20382_v0 = vadd.f32 %v11715_v47, %v20153_v50  ;;  %v20385_v62 = vadd.f32 %v11716_v43, %v20157_v48  ;;  %v20388_v46 = vadd.f32 %v11717_v14, %v20161_v22  ;;  %v20391_v6 = vadd.f32 %v11718_v29, %v20165_v41 }
 0x825   :  { %v11722_v53 = vld [vmem:[#allocation9 + $0xe8] sm:$0xff]  ;;  %v11727_v39 = vld [vmem:[#allocation9 + $0x110] sm:$0xff]  ;;  %v11725_v19 = vld [vmem:[#allocation9 + $0x100] sm:$0xff]  ;;  %v20394_v4 = vadd.f32 %v11719_v23, %v20169_v31  ;;  %v20397_v26 = vadd.f32 %v11720_v38, %v20173_v55  ;;  %v20400_v50 = vadd.f32 %v11721_v49, %v20177_v17  ;;  %v20406_v41 = vadd.f32 %v11723_v5, %v20185_v54 }
 0x826   :  { %v11728_v63 = vld [vmem:[#allocation9 + $0x118] sm:$0xff]  ;;  %v11726_v18 = vld [vmem:[#allocation9 + $0x108] sm:$0xff]  ;;  %v11731_v24 = vld [vmem:[#allocation9 + $0x130] sm:$0xff]  ;;  %v20403_v48 = vadd.f32 %v11722_v53, %v20181_v10  ;;  %v20409_v47 = vadd.f32 %v11724_v42, %v20189_v7 }
 0x827   :  { %v11729_v13 = vld [vmem:[#allocation9 + $0x120] sm:$0xff]  ;;  %v11732_v12 = vld [vmem:[#allocation9 + $0x138] sm:$0xff]  ;;  %v11730_v27 = vld [vmem:[#allocation9 + $0x128] sm:$0xff] }
 0x828   :  { %v11735_v52 = vld [vmem:[#allocation9 + $0x150] sm:$0xff]  ;;  %v11733_v59 = vld [vmem:[#allocation9 + $0x140] sm:$0xff]  ;;  %v11736_v16 = vld [vmem:[#allocation9 + $0x158] sm:$0xff]  ;;  %21304 = vst [vmem:[#allocation61_spill] sm:$0xff] %v20403_v48 }
 0x829   :  { %v11734_v32 = vld [vmem:[#allocation9 + $0x148] sm:$0xff]  ;;  %v11739_v61 = vld [vmem:[#allocation9 + $0x170] sm:$0xff]  ;;  %v11737_v37 = vld [vmem:[#allocation9 + $0x160] sm:$0xff]  ;;  %21305 = vst [vmem:[#allocation17_spill] sm:$0xff] %v20409_v47 }
 0x82a   :  { %v11740_v51 = vld [vmem:[#allocation9 + $0x178] sm:$0xff]  ;;  %v11738_v22 = vld [vmem:[#allocation9 + $0x168] sm:$0xff]  ;;  %v11743_v43 = vld [vmem:[#allocation9 + $0x190] sm:$0xff] }
 0x82b   :  { %v11741_v11 = vld [vmem:[#allocation9 + $0x180] sm:$0xff]  ;;  %v21306_v31 = vld [vmem:[#allocation33_spill] sm:$0xff]  ;;  %v21308_v55 = vld [vmem:[#allocation43_spill] sm:$0xff] }
 0x82c   :  { %v20412_v23 = vadd.f32 %v11725_v19, %v21306_v31  ;;  %v20415_v14 = vadd.f32 %v11726_v18, %v21308_v55  ;;  %v11744_v17 = vld [vmem:[#allocation9 + $0x198] sm:$0xff]  ;;  %v11742_v38 = vld [vmem:[#allocation9 + $0x188] sm:$0xff]  ;;  %v11747_v29 = vld [vmem:[#allocation9 + $0x1b0] sm:$0xff] }
 0x82d   :  { %v21310_v10 = vld [vmem:[#allocation28_spill] sm:$0xff]  ;;  %v21311_v53 = vld [vmem:[#allocation38_spill] sm:$0xff]  ;;  %v21315_v7 = vld [vmem:[#allocation49_spill] sm:$0xff] }
 0x82e   :  { %21307 = vst [vmem:[#allocation64_spill] sm:$0xff] %v20412_v23  ;;  %21309 = vst [vmem:[#allocation63_spill] sm:$0xff] %v20415_v14  ;;  %v20418_v49 = vadd.f32 %v11727_v39, %v21310_v10  ;;  %v20421_v48 = vadd.f32 %v11728_v63, %v21311_v53  ;;  %v21313_v54 = vld [vmem:[#allocation48_spill] sm:$0xff]  ;;  %v20427_v42 = vadd.f32 %v11730_v27, %v21315_v7  ;;  %v11748_v31 = vld [vmem:[#allocation9 + $0x1b8] sm:$0xff] }
 0x82f   :  { %v20424_v5 = vadd.f32 %v11729_v13, %v21313_v54  ;;  %v11745_v19 = vld [vmem:[#allocation9 + $0x1a0] sm:$0xff]  ;;  %v11746_v23 = vld [vmem:[#allocation9 + $0x1a8] sm:$0xff]  ;;  %v21317_v18 = vld [vmem:[#allocation50_spill] sm:$0xff] }
 0x830   :  { %21312 = vst [vmem:[#allocation29_spill] sm:$0xff] %v20421_v48  ;;  %21316 = vst [vmem:[#allocation67_spill] sm:$0xff] %v20427_v42  ;;  %v20430_v55 = vadd.f32 %v11731_v24, %v21317_v18  ;;  %v21318_v14 = vld [vmem:[#allocation35_spill] sm:$0xff]  ;;  %v21320_v39 = vld [vmem:[#allocation36_spill] sm:$0xff] }
 0x831   :  { %21314 = vst [vmem:[#allocation65_spill] sm:$0xff] %v20424_v5  ;;  %v20433_v47 = vadd.f32 %v11732_v12, %v21318_v14  ;;  %v20436_v10 = vadd.f32 %v11733_v59, %v21320_v39  ;;  %v21322_v63 = vld [vmem:[#allocation30_spill] sm:$0xff]  ;;  %v11749_v54 = vld [vmem:[#allocation9 + $0x1c0] sm:$0xff]  ;;  %v11750_v5 = vld [vmem:[#allocation9 + $0x1c8] sm:$0xff] }
 0x832   :  { %v20439_v53 = vadd.f32 %v11734_v32, %v21322_v63  ;;  %v11751_v13 = vld [vmem:[#allocation9 + $0x1d0] sm:$0xff]  ;;  %v21324_v27 = vld [vmem:[#allocation37_spill] sm:$0xff]  ;;  %v21325_v42 = vld [vmem:[#allocation39_spill] sm:$0xff] }
 0x833   :  { %21319 = vst [vmem:[#allocation69_spill] sm:$0xff] %v20433_v47  ;;  %21321 = vst [vmem:[#allocation68_spill] sm:$0xff] %v20436_v10  ;;  %v20442_v7 = vadd.f32 %v11735_v52, %v21324_v27  ;;  %v20445_v48 = vadd.f32 %v11736_v16, %v21325_v42  ;;  %v21327_v24 = vld [vmem:[#allocation40_spill] sm:$0xff]  ;;  %v21329_v12 = vld [vmem:[#allocation41_spill] sm:$0xff] }
 0x834   :  { %21323 = vst [vmem:[#allocation71_spill] sm:$0xff] %v20439_v53  ;;  %v20448_v18 = vadd.f32 %v11737_v37, %v21327_v24  ;;  %v20451_v14 = vadd.f32 %v11738_v22, %v21329_v12  ;;  %v11752_v59 = vld [vmem:[#allocation9 + $0x1d8] sm:$0xff]  ;;  %v11755_v39 = vld [vmem:[#allocation9 + $0x1f0] sm:$0xff]  ;;  %v11753_v10 = vld [vmem:[#allocation9 + $0x1e0] sm:$0xff] }
 0x835   :  { %21326 = vst [vmem:[#allocation70_spill] sm:$0xff] %v20445_v48  ;;  %v21331_v32 = vld [vmem:[#allocation42_spill] sm:$0xff]  ;;  %v21332_v53 = vld [vmem:[#allocation44_spill] sm:$0xff]  ;;  %v21333_v52 = vld [vmem:[#allocation45_spill] sm:$0xff] }
 0x836   :  { %21328 = vst [vmem:[#allocation73_spill] sm:$0xff] %v20448_v18  ;;  %21330 = vst [vmem:[#allocation72_spill] sm:$0xff] %v20451_v14  ;;  %v20454_v63 = vadd.f32 %v11739_v61, %v21331_v32  ;;  %v20457_v47 = vadd.f32 %v11740_v51, %v21332_v53  ;;  %v20460_v27 = vadd.f32 %v11741_v11, %v21333_v52  ;;  %v21334_v16 = vld [vmem:[#allocation46_spill] sm:$0xff]  ;;  %v11756_v37 = vld [vmem:[#allocation9 + $0x1f8] sm:$0xff] }
 0x837   :  { %v20463_v42 = vadd.f32 %v11742_v38, %v21334_v16  ;;  %v21335_v24 = vld [vmem:[#allocation47_spill] sm:$0xff]  ;;  %v21336_v22 = vld [vmem:[#allocation24_spill] sm:$0xff]  ;;  %v21338_v61 = vld [vmem:[#allocation54_spill] sm:$0xff] }
 0x838   :  { %v20466_v18 = vadd.f32 %v11743_v43, %v21335_v24  ;;  %v20469_v12 = vadd.f32 %v11744_v17, %v21336_v22  ;;  %v21337_v14 = vld [vmem:[#allocation52_spill] sm:$0xff]  ;;  %v20475_v32 = vadd.f32 %v11746_v23, %v21338_v61  ;;  %v21339_v51 = vld [vmem:[#allocation51_spill] sm:$0xff]  ;;  %v21340_v11 = vld [vmem:[#allocation53_spill] sm:$0xff] }
 0x839   :  { %v20472_v48 = vadd.f32 %v11745_v19, %v21337_v14  ;;  %v20478_v53 = vadd.f32 %v11747_v29, %v21339_v51  ;;  %v20481_v52 = vadd.f32 %v11748_v31, %v21340_v11  ;;  %v21341_v38 = vld [vmem:[#allocation56_spill] sm:$0xff]  ;;  %v21342_v43 = vld [vmem:[#allocation58_spill] sm:$0xff]  ;;  %v21343_v17 = vld [vmem:[#allocation55_spill] sm:$0xff]  ;;  %v20502_v31 = vadd.f32 %v11756_v37, %v20313_v35 }
 0x83a   :  { %v20484_v16 = vadd.f32 %v11749_v54, %v21341_v38  ;;  %v20487_v24 = vadd.f32 %v11750_v5, %v21342_v43  ;;  %v20490_v22 = vadd.f32 %v11751_v13, %v21343_v17  ;;  %v21344_v19 = vld [vmem:[#allocation57_spill] sm:$0xff]  ;;  %v21345_v23 = vld [vmem:[#allocation60_spill] sm:$0xff]  ;;  %v21346_v29 = vld [vmem:[#allocation62_spill] sm:$0xff]  ;;  %v11821_v54 = vmax.f32 %v20316_v1, 0.0 }
 0x83b   :  { %v20493_v14 = vadd.f32 %v11752_v59, %v21344_v19  ;;  %v20496_v61 = vadd.f32 %v11753_v10, %v21345_v23  ;;  %v20499_v51 = vadd.f32 %v11755_v39, %v21346_v29  ;;  %v21347_v11 = vld [vmem:[#allocation59_spill] sm:$0xff]  ;;  %v11823_v38 = vmax.f32 %v20322_v56, 0.0  ;;  %v21353_v29 = vld [vmem:[#allocation65_spill] sm:$0xff] }
 0x83c   :  { %v11822_v5 = vmax.f32 %v21347_v11, 0.0  ;;  %v11824_v13 = vmax.f32 %v20325_v45, 0.0  ;;  %v11825_v59 = vmax.f32 %v20328_v15, 0.0  ;;  %v11826_v43 = vmax.f32 %v20331_v9, 0.0  ;;  %11885 = vst [vmem:[#allocation11] sm:$0xff] %v11821_v54  ;;  %v21351_v37 = vld [vmem:[#allocation63_spill] sm:$0xff] }
 0x83d   :  { %v11827_v10 = vmax.f32 %v20334_v8, 0.0  ;;  %v11828_v39 = vmax.f32 %v20337_v21, 0.0  ;;  %v11829_v17 = vmax.f32 %v20340_v57, 0.0  ;;  %v11830_v35 = vmax.f32 %v20343_v3, 0.0  ;;  %11887 = vst [vmem:[#allocation11 + $0x10] sm:$0xff] %v11823_v38  ;;  %v21354_v54 = vld [vmem:[#allocation67_spill] sm:$0xff] }
 0x83e   :  { %v11831_v1 = vmax.f32 %v20346_v34, 0.0  ;;  %11886 = vst [vmem:[#allocation11 + $0x8] sm:$0xff] %v11822_v5  ;;  %v11832_v56 = vmax.f32 %v20349_v25, 0.0  ;;  %v11833_v45 = vmax.f32 %v20352_v36, 0.0  ;;  %v11834_v15 = vmax.f32 %v20355_v33, 0.0  ;;  %11888 = vst [vmem:[#allocation11 + $0x18] sm:$0xff] %v11824_v13 }
 0x83f   :  { %v11835_v9 = vmax.f32 %v20358_v40, 0.0  ;;  %11889 = vst [vmem:[#allocation11 + $0x20] sm:$0xff] %v11825_v59  ;;  %11890 = vst [vmem:[#allocation11 + $0x28] sm:$0xff] %v11826_v43  ;;  %v11836_v21 = vmax.f32 %v20361_v28, 0.0  ;;  %v11837_v8 = vmax.f32 %v20364_v30, 0.0  ;;  %v11838_v57 = vmax.f32 %v20367_v44, 0.0 }
 0x840   :  { %11891 = vst [vmem:[#allocation11 + $0x30] sm:$0xff] %v11827_v10  ;;  %v11839_v3 = vmax.f32 %v20370_v20, 0.0  ;;  %11892 = vst [vmem:[#allocation11 + $0x38] sm:$0xff] %v11828_v39  ;;  %v11840_v34 = vmax.f32 %v20373_v2, 0.0  ;;  %v11841_v25 = vmax.f32 %v20376_v58, 0.0  ;;  %v11842_v36 = vmax.f32 %v20379_v60, 0.0 }
 0x841   :  { %11893 = vst [vmem:[#allocation11 + $0x40] sm:$0xff] %v11829_v17  ;;  %11894 = vst [vmem:[#allocation11 + $0x48] sm:$0xff] %v11830_v35  ;;  %v11843_v33 = vmax.f32 %v20382_v0, 0.0  ;;  %v11844_v40 = vmax.f32 %v20385_v62, 0.0  ;;  %v11845_v28 = vmax.f32 %v20388_v46, 0.0  ;;  %v11846_v30 = vmax.f32 %v20391_v6, 0.0 }
 0x842   :  { %11895 = vst [vmem:[#allocation11 + $0x50] sm:$0xff] %v11831_v1  ;;  %11896 = vst [vmem:[#allocation11 + $0x58] sm:$0xff] %v11832_v56  ;;  %v11847_v44 = vmax.f32 %v20394_v4, 0.0  ;;  %v11848_v20 = vmax.f32 %v20397_v26, 0.0  ;;  %v11849_v2 = vmax.f32 %v20400_v50, 0.0  ;;  %v21348_v58 = vld [vmem:[#allocation61_spill] sm:$0xff] }
 0x843   :  { %11897 = vst [vmem:[#allocation11 + $0x60] sm:$0xff] %v11833_v45  ;;  %11898 = vst [vmem:[#allocation11 + $0x68] sm:$0xff] %v11834_v15  ;;  %v11850_v60 = vmax.f32 %v21348_v58, 0.0  ;;  %v11851_v0 = vmax.f32 %v20406_v41, 0.0  ;;  %v21349_v62 = vld [vmem:[#allocation17_spill] sm:$0xff]  ;;  %v21350_v6 = vld [vmem:[#allocation64_spill] sm:$0xff] }
 0x844   :  { %11899 = vst [vmem:[#allocation11 + $0x70] sm:$0xff] %v11835_v9  ;;  %11900 = vst [vmem:[#allocation11 + $0x78] sm:$0xff] %v11836_v21  ;;  %v11852_v46 = vmax.f32 %v21349_v62, 0.0  ;;  %v11853_v4 = vmax.f32 %v21350_v6, 0.0  ;;  %v11854_v19 = vmax.f32 %v21351_v37, 0.0  ;;  %v11855_v23 = vmax.f32 %v20418_v49, 0.0 }
 0x845   :  { %11901 = vst [vmem:[#allocation11 + $0x80] sm:$0xff] %v11837_v8  ;;  %11902 = vst [vmem:[#allocation11 + $0x88] sm:$0xff] %v11838_v57  ;;  %v21352_v26 = vld [vmem:[#allocation29_spill] sm:$0xff]  ;;  %v11857_v41 = vmax.f32 %v21353_v29, 0.0  ;;  %v11858_v11 = vmax.f32 %v21354_v54, 0.0  ;;  %v11859_v5 = vmax.f32 %v20430_v55, 0.0 }
 0x846   :  { %11903 = vst [vmem:[#allocation11 + $0x90] sm:$0xff] %v11839_v3  ;;  %11904 = vst [vmem:[#allocation11 + $0x98] sm:$0xff] %v11840_v34  ;;  %v11856_v50 = vmax.f32 %v21352_v26, 0.0  ;;  %v21355_v38 = vld [vmem:[#allocation69_spill] sm:$0xff]  ;;  %v21356_v59 = vld [vmem:[#allocation68_spill] sm:$0xff]  ;;  %v11863_v39 = vmax.f32 %v20442_v7, 0.0 }
 0x847   :  { %11905 = vst [vmem:[#allocation11 + $0xa0] sm:$0xff] %v11841_v25  ;;  %11906 = vst [vmem:[#allocation11 + $0xa8] sm:$0xff] %v11842_v36  ;;  %v11860_v13 = vmax.f32 %v21355_v38, 0.0  ;;  %v11861_v49 = vmax.f32 %v21356_v59, 0.0  ;;  %v21357_v43 = vld [vmem:[#allocation71_spill] sm:$0xff]  ;;  %v21358_v17 = vld [vmem:[#allocation70_spill] sm:$0xff] }
 0x848   :  { %11907 = vst [vmem:[#allocation11 + $0xb0] sm:$0xff] %v11843_v33  ;;  %11908 = vst [vmem:[#allocation11 + $0xb8] sm:$0xff] %v11844_v40  ;;  %v11862_v10 = vmax.f32 %v21357_v43, 0.0  ;;  %v11864_v35 = vmax.f32 %v21358_v17, 0.0  ;;  %v21359_v1 = vld [vmem:[#allocation73_spill] sm:$0xff]  ;;  %v21360_v56 = vld [vmem:[#allocation72_spill] sm:$0xff] }
 0x849   :  { %11909 = vst [vmem:[#allocation11 + $0xc0] sm:$0xff] %v11845_v28  ;;  %11910 = vst [vmem:[#allocation11 + $0xc8] sm:$0xff] %v11846_v30  ;;  %v11865_v55 = vmax.f32 %v21359_v1, 0.0  ;;  %v11866_v45 = vmax.f32 %v21360_v56, 0.0  ;;  %v11867_v15 = vmax.f32 %v20454_v63, 0.0  ;;  %v11868_v9 = vmax.f32 %v20457_v47, 0.0 }
 0x84a   :  { %11911 = vst [vmem:[#allocation11 + $0xd0] sm:$0xff] %v11847_v44  ;;  %11912 = vst [vmem:[#allocation11 + $0xd8] sm:$0xff] %v11848_v20  ;;  %v11869_v7 = vmax.f32 %v20460_v27, 0.0  ;;  %v11870_v21 = vmax.f32 %v20463_v42, 0.0  ;;  %v11871_v8 = vmax.f32 %v20466_v18, 0.0  ;;  %v11872_v63 = vmax.f32 %v20469_v12, 0.0 }
 0x84b   :  { %11913 = vst [vmem:[#allocation11 + $0xe0] sm:$0xff] %v11849_v2  ;;  %11914 = vst [vmem:[#allocation11 + $0xe8] sm:$0xff] %v11850_v60  ;;  %v11873_v57 = vmax.f32 %v20472_v48, 0.0  ;;  %v11874_v3 = vmax.f32 %v20475_v32, 0.0  ;;  %v11875_v47 = vmax.f32 %v20478_v53, 0.0  ;;  %v11876_v18 = vmax.f32 %v20481_v52, 0.0 }
 0x84c   :  { %11915 = vst [vmem:[#allocation11 + $0xf0] sm:$0xff] %v11851_v0  ;;  %11916 = vst [vmem:[#allocation11 + $0xf8] sm:$0xff] %v11852_v46  ;;  %v11877_v27 = vmax.f32 %v20484_v16, 0.0  ;;  %v11878_v42 = vmax.f32 %v20487_v24, 0.0  ;;  %v11879_v34 = vmax.f32 %v20490_v22, 0.0  ;;  %v11880_v48 = vmax.f32 %v20493_v14, 0.0 }
 0x84d   :  { %11917 = vst [vmem:[#allocation11 + $0x100] sm:$0xff] %v11853_v4  ;;  %11918 = vst [vmem:[#allocation11 + $0x108] sm:$0xff] %v11854_v19  ;;  %v11881_v12 = vmax.f32 %v20496_v61, 0.0  ;;  %v11883_v32 = vmax.f32 %v20499_v51, 0.0  ;;  %v11884_v53 = vmax.f32 %v20502_v31, 0.0 }
 0x84e   :  { %11919 = vst [vmem:[#allocation11 + $0x110] sm:$0xff] %v11855_v23  ;;  %11920 = vst [vmem:[#allocation11 + $0x118] sm:$0xff] %v11856_v50 }
 0x84f   :  { %11921 = vst [vmem:[#allocation11 + $0x120] sm:$0xff] %v11857_v41  ;;  %11922 = vst [vmem:[#allocation11 + $0x128] sm:$0xff] %v11858_v11 }
 0x850   :  { %11923 = vst [vmem:[#allocation11 + $0x130] sm:$0xff] %v11859_v5  ;;  %11924 = vst [vmem:[#allocation11 + $0x138] sm:$0xff] %v11860_v13 }
 0x851   :  { %11925 = vst [vmem:[#allocation11 + $0x140] sm:$0xff] %v11861_v49  ;;  %11926 = vst [vmem:[#allocation11 + $0x148] sm:$0xff] %v11862_v10 }
 0x852   :  { %11927 = vst [vmem:[#allocation11 + $0x150] sm:$0xff] %v11863_v39  ;;  %11928 = vst [vmem:[#allocation11 + $0x158] sm:$0xff] %v11864_v35 }
 0x853   :  { %11929 = vst [vmem:[#allocation11 + $0x160] sm:$0xff] %v11865_v55  ;;  %11930 = vst [vmem:[#allocation11 + $0x168] sm:$0xff] %v11866_v45 }
 0x854   :  { %11931 = vst [vmem:[#allocation11 + $0x170] sm:$0xff] %v11867_v15  ;;  %11932 = vst [vmem:[#allocation11 + $0x178] sm:$0xff] %v11868_v9 }
 0x855   :  { %11933 = vst [vmem:[#allocation11 + $0x180] sm:$0xff] %v11869_v7  ;;  %11934 = vst [vmem:[#allocation11 + $0x188] sm:$0xff] %v11870_v21 }
 0x856   :  { %11935 = vst [vmem:[#allocation11 + $0x190] sm:$0xff] %v11871_v8  ;;  %11936 = vst [vmem:[#allocation11 + $0x198] sm:$0xff] %v11872_v63 }
 0x857   :  { %11937 = vst [vmem:[#allocation11 + $0x1a0] sm:$0xff] %v11873_v57  ;;  %11938 = vst [vmem:[#allocation11 + $0x1a8] sm:$0xff] %v11874_v3 }
 0x858   :  { %11939 = vst [vmem:[#allocation11 + $0x1b0] sm:$0xff] %v11875_v47  ;;  %11940 = vst [vmem:[#allocation11 + $0x1b8] sm:$0xff] %v11876_v18 }
 0x859   :  { %11941 = vst [vmem:[#allocation11 + $0x1c0] sm:$0xff] %v11877_v27  ;;  %11942 = vst [vmem:[#allocation11 + $0x1c8] sm:$0xff] %v11878_v42 }
 0x85a   :  { %11943 = vst [vmem:[#allocation11 + $0x1d0] sm:$0xff] %v11879_v34  ;;  %11944 = vst [vmem:[#allocation11 + $0x1d8] sm:$0xff] %v11880_v48 }
 0x85b   :  { %11945 = vst [vmem:[#allocation11 + $0x1e0] sm:$0xff] %v11881_v12  ;;  %11947 = vst [vmem:[#allocation11 + $0x1f0] sm:$0xff] %v11883_v32 }
 0x85c   :  { %11948 = vst [vmem:[#allocation11 + $0x1f8] sm:$0xff] %v11884_v53 }
 0x85d   :  { %14818 = shalt.err (!%p14815_p8)
}
 0x85e   :  { %s14819_s28 = scalar_lea.hbm %s20587_s5, 8192 }
 0x85f   :  { %p14820_p9 = scmp.ne.s32.totalorder %s20587_s5, %s14819_s28  ;;  %p14823_p10 = scmp.lt.u32.totalorder %s14819_s28, %s20587_s5 }
 0x861   :  { %p14825_p11 = pnand %p14823_p10, %p14820_p9 }
 0x863   :  { %14828 = shalt.err (!%p14825_p11)
}
 0x864   :  { %11960 = dma.vmem_to_hbm [thread:$0]  %s11955_s24, 8192, %s20587_s5, [#allocation5], %s14843_s2, %s14843_s2, %s14844_s30  }
 0x865   :  { %14835 = dma.done.wait [#allocation5], 8192  }
 0x866   :  { %14836 = vsyncadd [#allocation5], 4294959104 }
 0x867   :  { %11964 = vsyncpa [#allocation4], 1 }
 0x868   :  { %11965 = vsyncpa [#allocation7], 1 }
 0x869   :  { %11966 = vsyncpa [#allocation10], 1 }
 0x86a   :  { %11967 = vsyncpa [#allocation5], 1 }

</bundles_post_ra>
